<compile_context>
chip_gen: v7x
topology: tpu7x:2x2x1
jax: 0.10.0
libtpu: 0.0.40
codegen_flags: <defaults>
</compile_context>

<pallas_src>
import functools
import math

import jax
import jax.numpy as jnp
from jax import lax
from jax.experimental import pallas as pl
from jax.experimental.pallas import tpu as pltpu


_PHASES = ((0, 0), (0, 1), (1, 0), (1, 1))


# --------------------------------------------------------------------------
# Per-generation tiling / VMEM budget
# --------------------------------------------------------------------------

@functools.lru_cache(maxsize=1)
def _hw_config():
    """Returns (vmem_limit_bytes, tm_cap, ck_cap).

    v4/v5e/v6e: 128 MiB VMEM per TensorCore -> large M tiles amortize the per-step
    overhead and reduce repeated weight-block DMA.  v7x (or unknown): 64 MiB per TC
    -> smaller tiles + explicit headroom for compiler-internal scratch.
    """
    try:
        kind = jax.devices()[0].device_kind.lower()
    except Exception:
        kind = ""
    if any(tag in kind for tag in ("v4", "v5", "v6")):
        return 100 * 1024 * 1024, 1024, 256
    return 48 * 1024 * 1024, 512, 256


def _pick_tile(n, cap, align=16):
    """Largest tile <= cap dividing n, preferring `align`-multiples (then 8).

    A single full block (tile == n) is always legal for a Pallas BlockSpec, so the
    fallback stays correct even when n is awkwardly shaped.
    """
    if n <= cap:
        return n
    for a in (align, 8):
        t = (cap // a) * a
        while t >= a:
            if n % t == 0:
                return t
            t -= a
    return n


# --------------------------------------------------------------------------
# Pallas kernels
# --------------------------------------------------------------------------

def _matmul_kernel(x_ref, w_ref, o_ref):
    o_ref[...] = jnp.dot(x_ref[...], w_ref[...],
                         preferred_element_type=jnp.float32).astype(o_ref.dtype)


def first_deconv_matmul(z2d, w0m, vmem_limit):
    """Layer 0: ConvTranspose2d(k=4, s=1, p=0) on a 1x1 input == (N, Cin) @ (Cin, 16*C1).

    bf16 MXU operands, f32 accumulation/output.  Output lane width 16*C1 is lane-dense.
    """
    n, k = z2d.shape
    c = w0m.shape[1]
    return pl.pallas_call(
        _matmul_kernel,
        out_shape=jax.ShapeDtypeStruct((n, c), jnp.float32),
        grid_spec=pltpu.PrefetchScalarGridSpec(
            num_scalar_prefetch=0,
            grid=(1,),
            in_specs=[pl.BlockSpec((n, k), lambda i: (0, 0)),
                      pl.BlockSpec((k, c), lambda i: (0, 0))],
            out_specs=pl.BlockSpec((n, c), lambda i: (0, 0))),
        compiler_params=pltpu.CompilerParams(
            dimension_semantics=("arbitrary",), vmem_limit_bytes=vmem_limit),
    )(z2d, w0m)


def _deconv_bn_kernel(taps_ref, w_ref, y_ref, ssum_ref, ssq_ref, acc_ref):
    """One (m, k) grid step of the phase-decomposed ConvTranspose2d(k=4, s=2, p=1)
    with the BatchNorm channel sum / sum-of-squares fused into the epilogue.

    taps_ref : (9, tm, ck)      bf16  3x3-neighbourhood taps of the padded input
    w_ref    : (4, 4, ck, Co)   bf16  [phase, tap, ci, co]
    y_ref    : (4, tm, Co)      bf16  conv output per phase (written at last k)
    ssum_ref : (1, 1, Co)       f32   per-M-block channel sums
    ssq_ref  : (1, 1, Co)       f32   per-M-block channel sum-of-squares
    acc_ref  : (4, tm, Co)      f32   VMEM accumulator across the Cin grid axis
    """
    k = pl.program_id(1)

    @pl.when(k == 0)
    def _init():
        acc_ref[...] = jnp.zeros_like(acc_ref)

    # 4 output phases x 4 taps = 16 MXU matmuls, f32 accumulation; a single
    # acc read + write per phase per k step (vst-slot friendly on v5e).
    for p, (py, px) in enumerate(_PHASES):
        acc = acc_ref[p]
        for t, (ty, tx) in enumerate(_PHASES):
            j = 3 * (py + ty) + (px + tx)
            acc = acc + jnp.dot(taps_ref[j], w_ref[p, t],
                                preferred_element_type=jnp.float32)
        acc_ref[p] = acc

    @pl.when(k == pl.num_programs(1) - 1)
    def _finish():
        co = acc_ref.shape[-1]
        s = jnp.zeros((1, co), jnp.float32)
        q = jnp.zeros((1, co), jnp.float32)
        for p in range(4):
            y = acc_ref[p]                                  # (tm, Co) f32
            y_ref[p] = y.astype(y_ref.dtype)                # bf16 store
            s = s + jnp.sum(y, axis=0, keepdims=True)
            q = q + jnp.sum(y * y, axis=0, keepdims=True)
        ssum_ref[0] = s
        ssq_ref[0] = q


def deconv_s2_fused(taps, wph, m, cin, cout, *, tm_cap, ck_cap, vmem_limit):
    """Fused phase-decomposed ConvTranspose2d(k=4, s=2, p=1) + BN statistics.

    Returns (y4, ssum, ssq):
      y4   : (4, M, Cout) bf16 phase-major conv output (phase = 2*py + px)
      ssum : (n_m_blocks, 1, Cout) f32 per-block channel sums
      ssq  : (n_m_blocks, 1, Cout) f32 per-block channel sum-of-squares
    """
    tm = _pick_tile(m, tm_cap, align=16)
    ck = _pick_tile(cin, ck_cap, align=128)
    nmb, nkb = m // tm, cin // ck
    return pl.pallas_call(
        _deconv_bn_kernel,
        out_shape=(jax.ShapeDtypeStruct((4, m, cout), jnp.bfloat16),
                   jax.ShapeDtypeStruct((nmb, 1, cout), jnp.float32),
                   jax.ShapeDtypeStruct((nmb, 1, cout), jnp.float32)),
        grid_spec=pltpu.PrefetchScalarGridSpec(
            num_scalar_prefetch=0,
            grid=(nmb, nkb),
            in_specs=[pl.BlockSpec((9, tm, ck), lambda i, k: (0, i, k)),
                      pl.BlockSpec((4, 4, ck, cout), lambda i, k: (0, 0, k, 0))],
            out_specs=(pl.BlockSpec((4, tm, cout), lambda i, k: (0, i, 0)),
                       pl.BlockSpec((1, 1, cout), lambda i, k: (i, 0, 0)),
                       pl.BlockSpec((1, 1, cout), lambda i, k: (i, 0, 0))),
            scratch_shapes=[pltpu.VMEM((4, tm, cout), jnp.float32)]),
        compiler_params=pltpu.CompilerParams(
            dimension_semantics=("parallel", "arbitrary"),
            vmem_limit_bytes=vmem_limit),
    )(taps, wph)


def _deconv_final_kernel(taps_ref, w_ref, y_ref, acc_ref, *, cout):
    """Final layer: same phase-decomposed deconv, tanh on the *real* channels only.

    The accumulator (tm, Cout_pad=128) is transposed on the XLU, sliced to the real
    `cout` channels and stored channel-outer (cout, tm) -> lane-dense output, and
    tanh/EUP work + HBM writes shrink ~42x vs. the padded layout.
    """
    k = pl.program_id(1)

    @pl.when(k == 0)
    def _init():
        acc_ref[...] = jnp.zeros_like(acc_ref)

    for p, (py, px) in enumerate(_PHASES):
        acc = acc_ref[p]
        for t, (ty, tx) in enumerate(_PHASES):
            j = 3 * (py + ty) + (px + tx)
            acc = acc + jnp.dot(taps_ref[j], w_ref[p, t],
                                preferred_element_type=jnp.float32)
        acc_ref[p] = acc

    @pl.when(k == pl.num_programs(1) - 1)
    def _finish():
        for p in range(4):
            yt = jnp.transpose(acc_ref[p])                  # (Cout_pad, tm) via XLU
            y_ref[p] = jnp.tanh(yt[:cout, :]).astype(y_ref.dtype)   # (cout, tm)


def deconv_s2_final(taps, wph, m, cin, cout, *, tm_cap, ck_cap, vmem_limit):
    """Final ConvTranspose2d(k=4, s=2, p=1) + Tanh, channel-outer (4, cout, M) bf16."""
    cout_pad = wph.shape[-1]                    # weights pre-padded to >=128 lanes
    tm = _pick_tile(m, tm_cap, align=128)
    if tm != m and tm % 128 != 0:
        tm = m                                  # keep the (.., cout, tm) block legal
    ck = _pick_tile(cin, ck_cap, align=128)
    nmb, nkb = m // tm, cin // ck
    return pl.pallas_call(
        functools.partial(_deconv_final_kernel, cout=cout),
        out_shape=jax.ShapeDtypeStruct((4, cout, m), jnp.bfloat16),
        grid_spec=pltpu.PrefetchScalarGridSpec(
            num_scalar_prefetch=0,
            grid=(nmb, nkb),
            in_specs=[pl.BlockSpec((9, tm, ck), lambda i, k: (0, i, k)),
                      pl.BlockSpec((4, 4, ck, cout_pad), lambda i, k: (0, 0, k, 0))],
            out_specs=pl.BlockSpec((4, cout, tm), lambda i, k: (0, 0, i)),
            scratch_shapes=[pltpu.VMEM((4, tm, cout_pad), jnp.float32)]),
        compiler_params=pltpu.CompilerParams(
            dimension_semantics=("parallel", "arbitrary"),
            vmem_limit_bytes=vmem_limit),
    )(taps, wph)


# --------------------------------------------------------------------------
# Weight preparation (hoisted, one-time) and JAX glue
# --------------------------------------------------------------------------

def _phase_weights(w):
    """PyTorch ConvTranspose2d weight (Cin, Cout, 4, 4) -> (4, 4, Cin, Cout).

    Phase p = 2*py + px is the output sub-pixel (oy = 2*qy + py); tap t = 2*ty + tx
    selects neighbourhood position (py+ty, px+tx) and kernel element
    (ky, kx) = (3 - py - 2*ty, 3 - px - 2*tx)."""
    phases = []
    for py, px in _PHASES:
        taps = [w[:, :, 3 - py - 2 * ty, 3 - px - 2 * tx] for ty, tx in _PHASES]
        phases.append(jnp.stack(taps, axis=0))              # (4, Cin, Cout)
    return jnp.stack(phases, axis=0)                        # (4, 4, Cin, Cout)


def prepare_params(weights):
    """One-time weight preprocessing: phase/tap transpose, bf16 cast, final pad."""
    w0 = weights[0]
    cin0, c1 = w0.shape[0], w0.shape[1]
    w0m = jnp.transpose(w0, (0, 2, 3, 1)).reshape(cin0, 16 * c1).astype(jnp.bfloat16)
    mid = tuple(_phase_weights(w).astype(jnp.bfloat16) for w in weights[1:-1])
    wl = _phase_weights(weights[-1]).astype(jnp.bfloat16)
    cout = weights[-1].shape[1]
    pad_to = max(128, cout)                 # lane-dense MXU output columns
    if pad_to > cout:
        wl = jnp.pad(wl, ((0, 0), (0, 0), (0, 0), (0, pad_to - cout)))
    return w0m, mid, wl


def _build_taps(x_nhwc):
    """3x3-neighbourhood tap stack of the zero-padded activation: (9, N*H*W, C) bf16.

    Tap j = 3*a + b holds x_pad[:, qy+a, qx+b, :] for output centre (qy, qx)."""
    n, h, w, c = x_nhwc.shape
    xp = jnp.pad(x_nhwc, ((0, 0), (1, 1), (1, 1), (0, 0)))
    taps = [xp[:, a:a + h, b:b + w, :].reshape(n * h * w, c)
            for a in range(3) for b in range(3)]
    return jnp.stack(taps, axis=0)


def bn_scale_shift(ssum, ssq, count, gamma, beta, eps=1e-5):
    """Fold training-mode BatchNorm2d statistics into a per-channel affine (f32)."""
    mean = ssum / count
    var = jnp.maximum(ssq / count - mean * mean, 0.0)
    scale = gamma / jnp.sqrt(var + eps)
    shift = beta - mean * scale
    return scale, shift


def _affine_relu_to_taps(y4, scale, shift, n, h, w, c):
    """Folded-BN affine + ReLU + depth-to-space + pad + 9-tap stack, one XLA fusion.

    y4: (4, N*H*W, C) bf16 phase-major deconv output -> (9, N*2H*2W, C) bf16 taps."""
    a = jnp.maximum(y4.astype(jnp.float32) * scale + shift, 0.0).astype(jnp.bfloat16)
    a = a.reshape(2, 2, n, h, w, c)                   # (py, px, n, qy, qx, c)
    a = jnp.transpose(a, (2, 3, 0, 4, 1, 5)).reshape(n, 2 * h, 2 * w, c)
    return _build_taps(a)


def init_params(key, input_dim=128, output_channels=3, image_size=128, Gscale=16,
                another_times=0):
    up_times = int(round(math.log2(image_size))) - 3 - another_times
    first_hidden = image_size * Gscale
    dims = [input_dim, first_hidden]
    h = first_hidden
    for _ in range(up_times):
        dims.append(h // 2)
        h //= 2
    dims.append(output_channels)
    keys = jax.random.split(key, len(dims) - 1)
    weights = [0.05 * jax.random.normal(k, (dims[i], dims[i + 1], 4, 4), jnp.float32)
               for i, k in enumerate(keys)]
    # BatchNorm2d defaults: weight=1, bias=0 (deterministic)
    bn_params = [(jnp.ones((d,), jnp.float32), jnp.zeros((d,), jnp.float32))
                 for d in dims[1:-1]]
    return weights, bn_params


def generator_forward(z_nchw, w0m, mid_wph, final_wph, bn_params, *, final_cout):
    vmem_limit, tm_cap, ck_cap = _hw_config()
    n = z_nchw.shape[0]
    x = z_nchw.reshape(n, -1).astype(jnp.bfloat16)

    # --- layer 0: ConvTranspose2d(k=4, s=1, p=0) on 1x1 -> 4x4 (Pallas matmul) ---
    c1 = w0m.shape[1] // 16
    y0 = first_deconv_matmul(x, w0m, vmem_limit)            # (N, 16*C1) f32
    yr = y0.reshape(n, 4, 4, c1)                            # NHWC, f32
    gamma, beta = bn_params[0]
    s0 = jnp.sum(yr, axis=(0, 1, 2))
    q0 = jnp.sum(yr * yr, axis=(0, 1, 2))
    scale, shift = bn_scale_shift(s0, q0, n * 16, gamma, beta)
    a0 = jnp.maximum(yr * scale + shift, 0.0).astype(jnp.bfloat16)
    h = wd = 4
    cin = c1
    taps = _build_taps(a0)                                  # (9, N*16, C1) bf16

    # --- upsampling layers: ConvTranspose2d(k=4, s=2, p=1) + BN + ReLU ----------
    for li, wph in enumerate(mid_wph, start=1):
        cout = wph.shape[-1]
        m = n * h * wd
        y4, ssum, ssq = deconv_s2_fused(taps, wph, m, cin, cout,
                                        tm_cap=tm_cap, ck_cap=ck_cap,
                                        vmem_limit=vmem_limit)
        gamma, beta = bn_params[li]
        scale, shift = bn_scale_shift(jnp.sum(ssum, axis=0).reshape(-1),
                                      jnp.sum(ssq, axis=0).reshape(-1),
                                      4 * m, gamma, beta)
        taps = _affine_relu_to_taps(y4, scale, shift, n, h, wd, cout)
        h, wd, cin = 2 * h, 2 * wd, cout

    # --- final layer: ConvTranspose2d(k=4, s=2, p=1) + Tanh (channel-outer) -----
    m = n * h * wd
    y4 = deconv_s2_final(taps, final_wph, m, cin, final_cout,
                         tm_cap=tm_cap, ck_cap=ck_cap, vmem_limit=vmem_limit)
    img = y4.astype(jnp.float32).reshape(2, 2, final_cout, n, h, wd)
    img = jnp.transpose(img, (3, 2, 4, 0, 5, 1))            # (n, c, qy, py, qx, px)
    return img.reshape(n, final_cout, 2 * h, 2 * wd)        # NCHW


# --------------------------------------------------------------------------
# Pure-JAX reference (XLA)
# --------------------------------------------------------------------------

def _convtranspose_ref(x_nchw, w, stride, padding, operand_dtype):
    rhs = jnp.transpose(w[:, :, ::-1, ::-1], (1, 0, 2, 3))   # (Cout, Cin, 4, 4)
    pad = 4 - 1 - padding
    return lax.conv_general_dilated(
        x_nchw.astype(operand_dtype), rhs.astype(operand_dtype),
        window_strides=(1, 1), padding=[(pad, pad), (pad, pad)],
        lhs_dilation=(stride, stride),
        dimension_numbers=("NCHW", "OIHW", "NCHW"),
        preferred_element_type=jnp.float32)


def _bn_relu_ref(x, gamma, beta, eps=1e-5):
    mean = x.mean(axis=(0, 2, 3), keepdims=True)
    var = x.var(axis=(0, 2, 3), keepdims=True)
    y = (x - mean) / jnp.sqrt(var + eps)
    y = y * gamma.reshape(1, -1, 1, 1) + beta.reshape(1, -1, 1, 1)
    return jnp.maximum(y, 0.0)


def reference_forward(z, weights, bn_params, operand_dtype=jnp.float32):
    x = _convtranspose_ref(z, weights[0], 1, 0, operand_dtype)
    x = _bn_relu_ref(x, *bn_params[0])
    for li in range(1, len(weights) - 1):
        x = _convtranspose_ref(x, weights[li], 2, 1, operand_dtype)
        x = _bn_relu_ref(x, *bn_params[li])
    x = _convtranspose_ref(x, weights[-1], 2, 1, operand_dtype)
    return jnp.tanh(x)


# --------------------------------------------------------------------------
# main
# --------------------------------------------------------------------------

if __name__ == "__main__":
    # Small config consistent with the module: image_size=32, Gscale=2 -> up_times=2
    input_dim, output_channels, image_size, Gscale = 32, 3, 32, 2
    N = 2

    key = jax.random.PRNGKey(0)
    kz, kp = jax.random.split(key)
    z = jax.random.normal(kz, (N, input_dim, 1, 1), jnp.float32)
    weights, bn_params = init_params(kp, input_dim, output_channels, image_size, Gscale)

    # One-time weight prep (phase layout, bf16 cast, final 128-lane pad) — hoisted
    # out of the per-step forward per the review.
    w0m, mid_wph, final_wph = prepare_params(weights)

    fwd = jax.jit(functools.partial(generator_forward, final_cout=output_channels))
    out = jax.block_until_ready(fwd(z, w0m, mid_wph, final_wph, tuple(bn_params)))
    assert out.shape == (N, output_channels, image_size, image_size), out.shape

    # Precision-matched reference (bf16 conv operands, f32 accumulation).
    ref_bf16 = reference_forward(z, weights, bn_params, operand_dtype=jnp.bfloat16)
    err_matched = float(jnp.max(jnp.abs(out - ref_bf16)))
    assert err_matched < 5e-2, f"precision-matched max abs err = {err_matched}"

    # Full-f32 reference -> loose sanity check (bf16 MXU operands / bf16 intermediates).
    ref_f32 = reference_forward(z, weights, bn_params, operand_dtype=jnp.float32)
    err_f32 = float(jnp.max(jnp.abs(out - ref_f32)))
    assert err_f32 < 1.5e-1, f"f32-reference max abs err = {err_f32}"

    print("KERNEL_OK")
</pallas_src>

<mosaic_0001>
module attributes {stable_mosaic.version = 11 : i64} {
  func.func @_matmul_kernel(%arg0: i32, %arg1: memref<2x32xbf16, #tpu.memory_space<vmem>>, %arg2: memref<32x1024xbf16, #tpu.memory_space<vmem>>, %arg3: memref<2x1024xf32, #tpu.memory_space<vmem>>) attributes {dimension_semantics = [#tpu.dimension_semantics<arbitrary>], iteration_bounds = array<i64: 1>, scalar_prefetch = 0 : i64, scratch_operands = 0 : i64, tpu.core_type = #tpu.core_type<tc>, window_params = [{pipeline_mode = #tpu.pipeline_mode<synchronous>, transform_indices = @transform_0, window_bounds = array<i64: 2, 32>}, {pipeline_mode = #tpu.pipeline_mode<synchronous>, transform_indices = @transform_1, window_bounds = array<i64: 32, 1024>}, {pipeline_mode = #tpu.pipeline_mode<synchronous>, transform_indices = @transform_2, window_bounds = array<i64: 2, 1024>}]} {
    %c0 = arith.constant 0 : index
    %c0_0 = arith.constant 0 : index
    %0 = vector.load %arg1[%c0, %c0_0] : memref<2x32xbf16, #tpu.memory_space<vmem>>, vector<2x32xbf16>
    %c0_1 = arith.constant 0 : index
    %c0_2 = arith.constant 0 : index
    %1 = vector.load %arg2[%c0_1, %c0_2] : memref<32x1024xbf16, #tpu.memory_space<vmem>>, vector<32x1024xbf16>
    %cst = arith.constant dense<0.000000e+00> : vector<2x1024xf32>
    %2 = tpu.matmul %0, %1, %cst {dimension_numbers = #tpu.dot_dimension_numbers<[1], [0], [0], [1], [0, 0, 1, 1], [], []>} : vector<2x32xbf16>, vector<32x1024xbf16>, vector<2x1024xf32> -> vector<2x1024xf32>
    %c0_3 = arith.constant 0 : index
    %c0_4 = arith.constant 0 : index
    %3 = vector.load %arg3[%c0_3, %c0_4] : memref<2x1024xf32, #tpu.memory_space<vmem>>, vector<2x1024xf32>
    tpu.vector_store %arg3[%c0_3, %c0_4], %2 {strides = array<i32>} : memref<2x1024xf32, #tpu.memory_space<vmem>>, vector<2x1024xf32>,
    return
  }
  func.func @transform_0(%arg0: i32) -> (i32, i32) {
    %c0_i32 = arith.constant 0 : i32
    %c0_i32_0 = arith.constant 0 : i32
    %c0_i32_1 = arith.constant 0 : i32
    return %c0_i32, %c0_i32_0 : i32, i32
  }
  func.func @transform_1(%arg0: i32) -> (i32, i32) {
    %c0_i32 = arith.constant 0 : i32
    %c0_i32_0 = arith.constant 0 : i32
    %c0_i32_1 = arith.constant 0 : i32
    return %c0_i32, %c0_i32_0 : i32, i32
  }
  func.func @transform_2(%arg0: i32) -> (i32, i32) {
    %c0_i32 = arith.constant 0 : i32
    %c0_i32_0 = arith.constant 0 : i32
    %c0_i32_1 = arith.constant 0 : i32
    return %c0_i32, %c0_i32_0 : i32, i32
  }
}

module attributes {stable_mosaic.version = 11 : i64} {
  func.func @_deconv_bn_kernel(%arg0: i32, %arg1: i32, %arg2: memref<9x32x64xbf16, #tpu.memory_space<vmem>>, %arg3: memref<4x4x64x32xbf16, #tpu.memory_space<vmem>>, %arg4: memref<4x32x32xbf16, #tpu.memory_space<vmem>>, %arg5: memref<1x1x32xf32, #tpu.memory_space<vmem>>, %arg6: memref<1x1x32xf32, #tpu.memory_space<vmem>>, %arg7: memref<4x32x32xf32, #tpu.memory_space<vmem>>) attributes {dimension_semantics = [#tpu.dimension_semantics<parallel>, #tpu.dimension_semantics<arbitrary>], iteration_bounds = array<i64: 1, 1>, scalar_prefetch = 0 : i64, scratch_operands = 1 : i64, tpu.core_type = #tpu.core_type<tc>, window_params = [{transform_indices = @transform_0, window_bounds = array<i64: 9, 32, 64>}, {transform_indices = @transform_1, window_bounds = array<i64: 4, 4, 64, 32>}, {transform_indices = @transform_2, window_bounds = array<i64: 4, 32, 32>}, {transform_indices = @transform_3, window_bounds = array<i64: 1, 1, 32>}, {transform_indices = @transform_4, window_bounds = array<i64: 1, 1, 32>}]} {
    %c0_i32 = arith.constant 0 : i32
    %0 = arith.cmpi eq, %arg1, %c0_i32 : i32
    %1 = arith.extui %0 : i1 to i32
    %c0_i32_0 = arith.constant 0 : i32
    %2 = arith.cmpi ne, %1, %c0_i32_0 : i32
    scf.if %2 {
      %cst_145 = arith.constant 0.000000e+00 : f32
      %122 = vector.broadcast %cst_145 : f32 to vector<4x32x32xf32>
      %c0_146 = arith.constant 0 : index
      %c0_147 = arith.constant 0 : index
      %c0_148 = arith.constant 0 : index
      %123 = vector.load %arg7[%c0_146, %c0_147, %c0_148] : memref<4x32x32xf32, #tpu.memory_space<vmem>>, vector<4x32x32xf32>
      tpu.vector_store %arg7[%c0_146, %c0_147, %c0_148], %122 {strides = array<i32>} : memref<4x32x32xf32, #tpu.memory_space<vmem>>, vector<4x32x32xf32>,
    } else {
    }
    %c0 = arith.constant 0 : index
    %c0_1 = arith.constant 0 : index
    %c0_2 = arith.constant 0 : index
    %3 = vector.load %arg7[%c0, %c0_1, %c0_2] : memref<4x32x32xf32, #tpu.memory_space<vmem>>, vector<1x32x32xf32>
    %4 = vector.shape_cast %3 : vector<1x32x32xf32> to vector<32x32xf32>
    %c0_3 = arith.constant 0 : index
    %c0_4 = arith.constant 0 : index
    %c0_5 = arith.constant 0 : index
    %5 = vector.load %arg2[%c0_3, %c0_4, %c0_5] : memref<9x32x64xbf16, #tpu.memory_space<vmem>>, vector<1x32x64xbf16>
    %6 = vector.shape_cast %5 : vector<1x32x64xbf16> to vector<32x64xbf16>
    %c0_6 = arith.constant 0 : index
    %c0_7 = arith.constant 0 : index
    %c0_8 = arith.constant 0 : index
    %c0_9 = arith.constant 0 : index
    %7 = vector.load %arg3[%c0_6, %c0_7, %c0_8, %c0_9] : memref<4x4x64x32xbf16, #tpu.memory_space<vmem>>, vector<1x1x64x32xbf16>
    %8 = vector.shape_cast %7 : vector<1x1x64x32xbf16> to vector<64x32xbf16>
    %cst = arith.constant dense<0.000000e+00> : vector<32x32xf32>
    %9 = tpu.matmul %6, %8, %cst {dimension_numbers = #tpu.dot_dimension_numbers<[1], [0], [0], [1], [0, 0, 1, 1], [], []>} : vector<32x64xbf16>, vector<64x32xbf16>, vector<32x32xf32> -> vector<32x32xf32>
    %10 = arith.addf %4, %9 : vector<32x32xf32>
    %c1 = arith.constant 1 : index
    %c0_10 = arith.constant 0 : index
    %c0_11 = arith.constant 0 : index
    %11 = vector.load %arg2[%c1, %c0_10, %c0_11] : memref<9x32x64xbf16, #tpu.memory_space<vmem>>, vector<1x32x64xbf16>
    %12 = vector.shape_cast %11 : vector<1x32x64xbf16> to vector<32x64xbf16>
    %c0_12 = arith.constant 0 : index
    %c1_13 = arith.constant 1 : index
    %c0_14 = arith.constant 0 : index
    %c0_15 = arith.constant 0 : index
    %13 = vector.load %arg3[%c0_12, %c1_13, %c0_14, %c0_15] : memref<4x4x64x32xbf16, #tpu.memory_space<vmem>>, vector<1x1x64x32xbf16>
    %14 = vector.shape_cast %13 : vector<1x1x64x32xbf16> to vector<64x32xbf16>
    %cst_16 = arith.constant dense<0.000000e+00> : vector<32x32xf32>
    %15 = tpu.matmul %12, %14, %cst_16 {dimension_numbers = #tpu.dot_dimension_numbers<[1], [0], [0], [1], [0, 0, 1, 1], [], []>} : vector<32x64xbf16>, vector<64x32xbf16>, vector<32x32xf32> -> vector<32x32xf32>
    %16 = arith.addf %10, %15 : vector<32x32xf32>
    %c3 = arith.constant 3 : index
    %c0_17 = arith.constant 0 : index
    %c0_18 = arith.constant 0 : index
    %17 = vector.load %arg2[%c3, %c0_17, %c0_18] : memref<9x32x64xbf16, #tpu.memory_space<vmem>>, vector<1x32x64xbf16>
    %18 = vector.shape_cast %17 : vector<1x32x64xbf16> to vector<32x64xbf16>
    %c0_19 = arith.constant 0 : index
    %c2 = arith.constant 2 : index
    %c0_20 = arith.constant 0 : index
    %c0_21 = arith.constant 0 : index
    %19 = vector.load %arg3[%c0_19, %c2, %c0_20, %c0_21] : memref<4x4x64x32xbf16, #tpu.memory_space<vmem>>, vector<1x1x64x32xbf16>
    %20 = vector.shape_cast %19 : vector<1x1x64x32xbf16> to vector<64x32xbf16>
    %cst_22 = arith.constant dense<0.000000e+00> : vector<32x32xf32>
    %21 = tpu.matmul %18, %20, %cst_22 {dimension_numbers = #tpu.dot_dimension_numbers<[1], [0], [0], [1], [0, 0, 1, 1], [], []>} : vector<32x64xbf16>, vector<64x32xbf16>, vector<32x32xf32> -> vector<32x32xf32>
    %22 = arith.addf %16, %21 : vector<32x32xf32>
    %c4 = arith.constant 4 : index
    %c0_23 = arith.constant 0 : index
    %c0_24 = arith.constant 0 : index
    %23 = vector.load %arg2[%c4, %c0_23, %c0_24] : memref<9x32x64xbf16, #tpu.memory_space<vmem>>, vector<1x32x64xbf16>
    %24 = vector.shape_cast %23 : vector<1x32x64xbf16> to vector<32x64xbf16>
    %c0_25 = arith.constant 0 : index
    %c3_26 = arith.constant 3 : index
    %c0_27 = arith.constant 0 : index
    %c0_28 = arith.constant 0 : index
    %25 = vector.load %arg3[%c0_25, %c3_26, %c0_27, %c0_28] : memref<4x4x64x32xbf16, #tpu.memory_space<vmem>>, vector<1x1x64x32xbf16>
    %26 = vector.shape_cast %25 : vector<1x1x64x32xbf16> to vector<64x32xbf16>
    %cst_29 = arith.constant dense<0.000000e+00> : vector<32x32xf32>
    %27 = tpu.matmul %24, %26, %cst_29 {dimension_numbers = #tpu.dot_dimension_numbers<[1], [0], [0], [1], [0, 0, 1, 1], [], []>} : vector<32x64xbf16>, vector<64x32xbf16>, vector<32x32xf32> -> vector<32x32xf32>
    %28 = arith.addf %22, %27 : vector<32x32xf32>
    %c0_30 = arith.constant 0 : index
    %c0_31 = arith.constant 0 : index
    %c0_32 = arith.constant 0 : index
    %29 = vector.load %arg7[%c0_30, %c0_31, %c0_32] : memref<4x32x32xf32, #tpu.memory_space<vmem>>, vector<1x32x32xf32>
    %30 = vector.shape_cast %29 : vector<1x32x32xf32> to vector<32x32xf32>
    %31 = vector.shape_cast %28 : vector<32x32xf32> to vector<1x32x32xf32>
    tpu.vector_store %arg7[%c0_30, %c0_31, %c0_32], %31 {strides = array<i32>} : memref<4x32x32xf32, #tpu.memory_space<vmem>>, vector<1x32x32xf32>,
    %c1_33 = arith.constant 1 : index
    %c0_34 = arith.constant 0 : index
    %c0_35 = arith.constant 0 : index
    %32 = vector.load %arg7[%c1_33, %c0_34, %c0_35] : memref<4x32x32xf32, #tpu.memory_space<vmem>>, vector<1x32x32xf32>
    %33 = vector.shape_cast %32 : vector<1x32x32xf32> to vector<32x32xf32>
    %c1_36 = arith.constant 1 : index
    %c0_37 = arith.constant 0 : index
    %c0_38 = arith.constant 0 : index
    %34 = vector.load %arg2[%c1_36, %c0_37, %c0_38] : memref<9x32x64xbf16, #tpu.memory_space<vmem>>, vector<1x32x64xbf16>
    %35 = vector.shape_cast %34 : vector<1x32x64xbf16> to vector<32x64xbf16>
    %c1_39 = arith.constant 1 : index
    %c0_40 = arith.constant 0 : index
    %c0_41 = arith.constant 0 : index
    %c0_42 = arith.constant 0 : index
    %36 = vector.load %arg3[%c1_39, %c0_40, %c0_41, %c0_42] : memref<4x4x64x32xbf16, #tpu.memory_space<vmem>>, vector<1x1x64x32xbf16>
    %37 = vector.shape_cast %36 : vector<1x1x64x32xbf16> to vector<64x32xbf16>
    %cst_43 = arith.constant dense<0.000000e+00> : vector<32x32xf32>
    %38 = tpu.matmul %35, %37, %cst_43 {dimension_numbers = #tpu.dot_dimension_numbers<[1], [0], [0], [1], [0, 0, 1, 1], [], []>} : vector<32x64xbf16>, vector<64x32xbf16>, vector<32x32xf32> -> vector<32x32xf32>
    %39 = arith.addf %33, %38 : vector<32x32xf32>
    %c2_44 = arith.constant 2 : index
    %c0_45 = arith.constant 0 : index
    %c0_46 = arith.constant 0 : index
    %40 = vector.load %arg2[%c2_44, %c0_45, %c0_46] : memref<9x32x64xbf16, #tpu.memory_space<vmem>>, vector<1x32x64xbf16>
    %41 = vector.shape_cast %40 : vector<1x32x64xbf16> to vector<32x64xbf16>
    %c1_47 = arith.constant 1 : index
    %c1_48 = arith.constant 1 : index
    %c0_49 = arith.constant 0 : index
    %c0_50 = arith.constant 0 : index
    %42 = vector.load %arg3[%c1_47, %c1_48, %c0_49, %c0_50] : memref<4x4x64x32xbf16, #tpu.memory_space<vmem>>, vector<1x1x64x32xbf16>
    %43 = vector.shape_cast %42 : vector<1x1x64x32xbf16> to vector<64x32xbf16>
    %cst_51 = arith.constant dense<0.000000e+00> : vector<32x32xf32>
    %44 = tpu.matmul %41, %43, %cst_51 {dimension_numbers = #tpu.dot_dimension_numbers<[1], [0], [0], [1], [0, 0, 1, 1], [], []>} : vector<32x64xbf16>, vector<64x32xbf16>, vector<32x32xf32> -> vector<32x32xf32>
    %45 = arith.addf %39, %44 : vector<32x32xf32>
    %c4_52 = arith.constant 4 : index
    %c0_53 = arith.constant 0 : index
    %c0_54 = arith.constant 0 : index
    %46 = vector.load %arg2[%c4_52, %c0_53, %c0_54] : memref<9x32x64xbf16, #tpu.memory_space<vmem>>, vector<1x32x64xbf16>
    %47 = vector.shape_cast %46 : vector<1x32x64xbf16> to vector<32x64xbf16>
    %c1_55 = arith.constant 1 : index
    %c2_56 = arith.constant 2 : index
    %c0_57 = arith.constant 0 : index
    %c0_58 = arith.constant 0 : index
    %48 = vector.load %arg3[%c1_55, %c2_56, %c0_57, %c0_58] : memref<4x4x64x32xbf16, #tpu.memory_space<vmem>>, vector<1x1x64x32xbf16>
    %49 = vector.shape_cast %48 : vector<1x1x64x32xbf16> to vector<64x32xbf16>
    %cst_59 = arith.constant dense<0.000000e+00> : vector<32x32xf32>
    %50 = tpu.matmul %47, %49, %cst_59 {dimension_numbers = #tpu.dot_dimension_numbers<[1], [0], [0], [1], [0, 0, 1, 1], [], []>} : vector<32x64xbf16>, vector<64x32xbf16>, vector<32x32xf32> -> vector<32x32xf32>
    %51 = arith.addf %45, %50 : vector<32x32xf32>
    %c5 = arith.constant 5 : index
    %c0_60 = arith.constant 0 : index
    %c0_61 = arith.constant 0 : index
    %52 = vector.load %arg2[%c5, %c0_60, %c0_61] : memref<9x32x64xbf16, #tpu.memory_space<vmem>>, vector<1x32x64xbf16>
    %53 = vector.shape_cast %52 : vector<1x32x64xbf16> to vector<32x64xbf16>
    %c1_62 = arith.constant 1 : index
    %c3_63 = arith.constant 3 : index
    %c0_64 = arith.constant 0 : index
    %c0_65 = arith.constant 0 : index
    %54 = vector.load %arg3[%c1_62, %c3_63, %c0_64, %c0_65] : memref<4x4x64x32xbf16, #tpu.memory_space<vmem>>, vector<1x1x64x32xbf16>
    %55 = vector.shape_cast %54 : vector<1x1x64x32xbf16> to vector<64x32xbf16>
    %cst_66 = arith.constant dense<0.000000e+00> : vector<32x32xf32>
    %56 = tpu.matmul %53, %55, %cst_66 {dimension_numbers = #tpu.dot_dimension_numbers<[1], [0], [0], [1], [0, 0, 1, 1], [], []>} : vector<32x64xbf16>, vector<64x32xbf16>, vector<32x32xf32> -> vector<32x32xf32>
    %57 = arith.addf %51, %56 : vector<32x32xf32>
    %c1_67 = arith.constant 1 : index
    %c0_68 = arith.constant 0 : index
    %c0_69 = arith.constant 0 : index
    %58 = vector.load %arg7[%c1_67, %c0_68, %c0_69] : memref<4x32x32xf32, #tpu.memory_space<vmem>>, vector<1x32x32xf32>
    %59 = vector.shape_cast %58 : vector<1x32x32xf32> to vector<32x32xf32>
    %60 = vector.shape_cast %57 : vector<32x32xf32> to vector<1x32x32xf32>
    tpu.vector_store %arg7[%c1_67, %c0_68, %c0_69], %60 {strides = array<i32>} : memref<4x32x32xf32, #tpu.memory_space<vmem>>, vector<1x32x32xf32>,
    %c2_70 = arith.constant 2 : index
    %c0_71 = arith.constant 0 : index
    %c0_72 = arith.constant 0 : index
    %61 = vector.load %arg7[%c2_70, %c0_71, %c0_72] : memref<4x32x32xf32, #tpu.memory_space<vmem>>, vector<1x32x32xf32>
    %62 = vector.shape_cast %61 : vector<1x32x32xf32> to vector<32x32xf32>
    %c3_73 = arith.constant 3 : index
    %c0_74 = arith.constant 0 : index
    %c0_75 = arith.constant 0 : index
    %63 = vector.load %arg2[%c3_73, %c0_74, %c0_75] : memref<9x32x64xbf16, #tpu.memory_space<vmem>>, vector<1x32x64xbf16>
    %64 = vector.shape_cast %63 : vector<1x32x64xbf16> to vector<32x64xbf16>
    %c2_76 = arith.constant 2 : index
    %c0_77 = arith.constant 0 : index
    %c0_78 = arith.constant 0 : index
    %c0_79 = arith.constant 0 : index
    %65 = vector.load %arg3[%c2_76, %c0_77, %c0_78, %c0_79] : memref<4x4x64x32xbf16, #tpu.memory_space<vmem>>, vector<1x1x64x32xbf16>
    %66 = vector.shape_cast %65 : vector<1x1x64x32xbf16> to vector<64x32xbf16>
    %cst_80 = arith.constant dense<0.000000e+00> : vector<32x32xf32>
    %67 = tpu.matmul %64, %66, %cst_80 {dimension_numbers = #tpu.dot_dimension_numbers<[1], [0], [0], [1], [0, 0, 1, 1], [], []>} : vector<32x64xbf16>, vector<64x32xbf16>, vector<32x32xf32> -> vector<32x32xf32>
    %68 = arith.addf %62, %67 : vector<32x32xf32>
    %c4_81 = arith.constant 4 : index
    %c0_82 = arith.constant 0 : index
    %c0_83 = arith.constant 0 : index
    %69 = vector.load %arg2[%c4_81, %c0_82, %c0_83] : memref<9x32x64xbf16, #tpu.memory_space<vmem>>, vector<1x32x64xbf16>
    %70 = vector.shape_cast %69 : vector<1x32x64xbf16> to vector<32x64xbf16>
    %c2_84 = arith.constant 2 : index
    %c1_85 = arith.constant 1 : index
    %c0_86 = arith.constant 0 : index
    %c0_87 = arith.constant 0 : index
    %71 = vector.load %arg3[%c2_84, %c1_85, %c0_86, %c0_87] : memref<4x4x64x32xbf16, #tpu.memory_space<vmem>>, vector<1x1x64x32xbf16>
    %72 = vector.shape_cast %71 : vector<1x1x64x32xbf16> to vector<64x32xbf16>
    %cst_88 = arith.constant dense<0.000000e+00> : vector<32x32xf32>
    %73 = tpu.matmul %70, %72, %cst_88 {dimension_numbers = #tpu.dot_dimension_numbers<[1], [0], [0], [1], [0, 0, 1, 1], [], []>} : vector<32x64xbf16>, vector<64x32xbf16>, vector<32x32xf32> -> vector<32x32xf32>
    %74 = arith.addf %68, %73 : vector<32x32xf32>
    %c6 = arith.constant 6 : index
    %c0_89 = arith.constant 0 : index
    %c0_90 = arith.constant 0 : index
    %75 = vector.load %arg2[%c6, %c0_89, %c0_90] : memref<9x32x64xbf16, #tpu.memory_space<vmem>>, vector<1x32x64xbf16>
    %76 = vector.shape_cast %75 : vector<1x32x64xbf16> to vector<32x64xbf16>
    %c2_91 = arith.constant 2 : index
    %c2_92 = arith.constant 2 : index
    %c0_93 = arith.constant 0 : index
    %c0_94 = arith.constant 0 : index
    %77 = vector.load %arg3[%c2_91, %c2_92, %c0_93, %c0_94] : memref<4x4x64x32xbf16, #tpu.memory_space<vmem>>, vector<1x1x64x32xbf16>
    %78 = vector.shape_cast %77 : vector<1x1x64x32xbf16> to vector<64x32xbf16>
    %cst_95 = arith.constant dense<0.000000e+00> : vector<32x32xf32>
    %79 = tpu.matmul %76, %78, %cst_95 {dimension_numbers = #tpu.dot_dimension_numbers<[1], [0], [0], [1], [0, 0, 1, 1], [], []>} : vector<32x64xbf16>, vector<64x32xbf16>, vector<32x32xf32> -> vector<32x32xf32>
    %80 = arith.addf %74, %79 : vector<32x32xf32>
    %c7 = arith.constant 7 : index
    %c0_96 = arith.constant 0 : index
    %c0_97 = arith.constant 0 : index
    %81 = vector.load %arg2[%c7, %c0_96, %c0_97] : memref<9x32x64xbf16, #tpu.memory_space<vmem>>, vector<1x32x64xbf16>
    %82 = vector.shape_cast %81 : vector<1x32x64xbf16> to vector<32x64xbf16>
    %c2_98 = arith.constant 2 : index
    %c3_99 = arith.constant 3 : index
    %c0_100 = arith.constant 0 : index
    %c0_101 = arith.constant 0 : index
    %83 = vector.load %arg3[%c2_98, %c3_99, %c0_100, %c0_101] : memref<4x4x64x32xbf16, #tpu.memory_space<vmem>>, vector<1x1x64x32xbf16>
    %84 = vector.shape_cast %83 : vector<1x1x64x32xbf16> to vector<64x32xbf16>
    %cst_102 = arith.constant dense<0.000000e+00> : vector<32x32xf32>
    %85 = tpu.matmul %82, %84, %cst_102 {dimension_numbers = #tpu.dot_dimension_numbers<[1], [0], [0], [1], [0, 0, 1, 1], [], []>} : vector<32x64xbf16>, vector<64x32xbf16>, vector<32x32xf32> -> vector<32x32xf32>
    %86 = arith.addf %80, %85 : vector<32x32xf32>
    %c2_103 = arith.constant 2 : index
    %c0_104 = arith.constant 0 : index
    %c0_105 = arith.constant 0 : index
    %87 = vector.load %arg7[%c2_103, %c0_104, %c0_105] : memref<4x32x32xf32, #tpu.memory_space<vmem>>, vector<1x32x32xf32>
    %88 = vector.shape_cast %87 : vector<1x32x32xf32> to vector<32x32xf32>
    %89 = vector.shape_cast %86 : vector<32x32xf32> to vector<1x32x32xf32>
    tpu.vector_store %arg7[%c2_103, %c0_104, %c0_105], %89 {strides = array<i32>} : memref<4x32x32xf32, #tpu.memory_space<vmem>>, vector<1x32x32xf32>,
    %c3_106 = arith.constant 3 : index
    %c0_107 = arith.constant 0 : index
    %c0_108 = arith.constant 0 : index
    %90 = vector.load %arg7[%c3_106, %c0_107, %c0_108] : memref<4x32x32xf32, #tpu.memory_space<vmem>>, vector<1x32x32xf32>
    %91 = vector.shape_cast %90 : vector<1x32x32xf32> to vector<32x32xf32>
    %c4_109 = arith.constant 4 : index
    %c0_110 = arith.constant 0 : index
    %c0_111 = arith.constant 0 : index
    %92 = vector.load %arg2[%c4_109, %c0_110, %c0_111] : memref<9x32x64xbf16, #tpu.memory_space<vmem>>, vector<1x32x64xbf16>
    %93 = vector.shape_cast %92 : vector<1x32x64xbf16> to vector<32x64xbf16>
    %c3_112 = arith.constant 3 : index
    %c0_113 = arith.constant 0 : index
    %c0_114 = arith.constant 0 : index
    %c0_115 = arith.constant 0 : index
    %94 = vector.load %arg3[%c3_112, %c0_113, %c0_114, %c0_115] : memref<4x4x64x32xbf16, #tpu.memory_space<vmem>>, vector<1x1x64x32xbf16>
    %95 = vector.shape_cast %94 : vector<1x1x64x32xbf16> to vector<64x32xbf16>
    %cst_116 = arith.constant dense<0.000000e+00> : vector<32x32xf32>
    %96 = tpu.matmul %93, %95, %cst_116 {dimension_numbers = #tpu.dot_dimension_numbers<[1], [0], [0], [1], [0, 0, 1, 1], [], []>} : vector<32x64xbf16>, vector<64x32xbf16>, vector<32x32xf32> -> vector<32x32xf32>
    %97 = arith.addf %91, %96 : vector<32x32xf32>
    %c5_117 = arith.constant 5 : index
    %c0_118 = arith.constant 0 : index
    %c0_119 = arith.constant 0 : index
    %98 = vector.load %arg2[%c5_117, %c0_118, %c0_119] : memref<9x32x64xbf16, #tpu.memory_space<vmem>>, vector<1x32x64xbf16>
    %99 = vector.shape_cast %98 : vector<1x32x64xbf16> to vector<32x64xbf16>
    %c3_120 = arith.constant 3 : index
    %c1_121 = arith.constant 1 : index
    %c0_122 = arith.constant 0 : index
    %c0_123 = arith.constant 0 : index
    %100 = vector.load %arg3[%c3_120, %c1_121, %c0_122, %c0_123] : memref<4x4x64x32xbf16, #tpu.memory_space<vmem>>, vector<1x1x64x32xbf16>
    %101 = vector.shape_cast %100 : vector<1x1x64x32xbf16> to vector<64x32xbf16>
    %cst_124 = arith.constant dense<0.000000e+00> : vector<32x32xf32>
    %102 = tpu.matmul %99, %101, %cst_124 {dimension_numbers = #tpu.dot_dimension_numbers<[1], [0], [0], [1], [0, 0, 1, 1], [], []>} : vector<32x64xbf16>, vector<64x32xbf16>, vector<32x32xf32> -> vector<32x32xf32>
    %103 = arith.addf %97, %102 : vector<32x32xf32>
    %c7_125 = arith.constant 7 : index
    %c0_126 = arith.constant 0 : index
    %c0_127 = arith.constant 0 : index
    %104 = vector.load %arg2[%c7_125, %c0_126, %c0_127] : memref<9x32x64xbf16, #tpu.memory_space<vmem>>, vector<1x32x64xbf16>
    %105 = vector.shape_cast %104 : vector<1x32x64xbf16> to vector<32x64xbf16>
    %c3_128 = arith.constant 3 : index
    %c2_129 = arith.constant 2 : index
    %c0_130 = arith.constant 0 : index
    %c0_131 = arith.constant 0 : index
    %106 = vector.load %arg3[%c3_128, %c2_129, %c0_130, %c0_131] : memref<4x4x64x32xbf16, #tpu.memory_space<vmem>>, vector<1x1x64x32xbf16>
    %107 = vector.shape_cast %106 : vector<1x1x64x32xbf16> to vector<64x32xbf16>
    %cst_132 = arith.constant dense<0.000000e+00> : vector<32x32xf32>
    %108 = tpu.matmul %105, %107, %cst_132 {dimension_numbers = #tpu.dot_dimension_numbers<[1], [0], [0], [1], [0, 0, 1, 1], [], []>} : vector<32x64xbf16>, vector<64x32xbf16>, vector<32x32xf32> -> vector<32x32xf32>
    %109 = arith.addf %103, %108 : vector<32x32xf32>
    %c8 = arith.constant 8 : index
    %c0_133 = arith.constant 0 : index
    %c0_134 = arith.constant 0 : index
    %110 = vector.load %arg2[%c8, %c0_133, %c0_134] : memref<9x32x64xbf16, #tpu.memory_space<vmem>>, vector<1x32x64xbf16>
    %111 = vector.shape_cast %110 : vector<1x32x64xbf16> to vector<32x64xbf16>
    %c3_135 = arith.constant 3 : index
    %c3_136 = arith.constant 3 : index
    %c0_137 = arith.constant 0 : index
    %c0_138 = arith.constant 0 : index
    %112 = vector.load %arg3[%c3_135, %c3_136, %c0_137, %c0_138] : memref<4x4x64x32xbf16, #tpu.memory_space<vmem>>, vector<1x1x64x32xbf16>
    %113 = vector.shape_cast %112 : vector<1x1x64x32xbf16> to vector<64x32xbf16>
    %cst_139 = arith.constant dense<0.000000e+00> : vector<32x32xf32>
    %114 = tpu.matmul %111, %113, %cst_139 {dimension_numbers = #tpu.dot_dimension_numbers<[1], [0], [0], [1], [0, 0, 1, 1], [], []>} : vector<32x64xbf16>, vector<64x32xbf16>, vector<32x32xf32> -> vector<32x32xf32>
    %115 = arith.addf %109, %114 : vector<32x32xf32>
    %c3_140 = arith.constant 3 : index
    %c0_141 = arith.constant 0 : index
    %c0_142 = arith.constant 0 : index
    %116 = vector.load %arg7[%c3_140, %c0_141, %c0_142] : memref<4x32x32xf32, #tpu.memory_space<vmem>>, vector<1x32x32xf32>
    %117 = vector.shape_cast %116 : vector<1x32x32xf32> to vector<32x32xf32>
    %118 = vector.shape_cast %115 : vector<32x32xf32> to vector<1x32x32xf32>
    tpu.vector_store %arg7[%c3_140, %c0_141, %c0_142], %118 {strides = array<i32>} : memref<4x32x32xf32, #tpu.memory_space<vmem>>, vector<1x32x32xf32>,
    %c0_i32_143 = arith.constant 0 : i32
    %119 = arith.cmpi eq, %arg1, %c0_i32_143 : i32
    %120 = arith.extui %119 : i1 to i32
    %c0_i32_144 = arith.constant 0 : i32
    %121 = arith.cmpi ne, %120, %c0_i32_144 : i32
    scf.if %121 {
      %cst_145 = arith.constant 0.000000e+00 : f32
      %122 = vector.broadcast %cst_145 : f32 to vector<1x32xf32>
      %cst_146 = arith.constant 0.000000e+00 : f32
      %123 = vector.broadcast %cst_146 : f32 to vector<1x32xf32>
      %c0_147 = arith.constant 0 : index
      %c0_148 = arith.constant 0 : index
      %c0_149 = arith.constant 0 : index
      %124 = vector.load %arg7[%c0_147, %c0_148, %c0_149] : memref<4x32x32xf32, #tpu.memory_space<vmem>>, vector<1x32x32xf32>
      %125 = vector.shape_cast %124 : vector<1x32x32xf32> to vector<32x32xf32>
      %126 = arith.truncf %125 : vector<32x32xf32> to vector<32x32xbf16>
      %c0_150 = arith.constant 0 : index
      %c0_151 = arith.constant 0 : index
      %c0_152 = arith.constant 0 : index
      %127 = vector.load %arg4[%c0_150, %c0_151, %c0_152] : memref<4x32x32xbf16, #tpu.memory_space<vmem>>, vector<1x32x32xbf16>
      %128 = vector.shape_cast %127 : vector<1x32x32xbf16> to vector<32x32xbf16>
      %129 = vector.shape_cast %126 : vector<32x32xbf16> to vector<1x32x32xbf16>
      tpu.vector_store %arg4[%c0_150, %c0_151, %c0_152], %129 {strides = array<i32>} : memref<4x32x32xbf16, #tpu.memory_space<vmem>>, vector<1x32x32xbf16>,
      %cst_153 = arith.constant dense<0.000000e+00> : vector<32xf32>
      %130 = vector.multi_reduction <add>, %125, %cst_153 [0] : vector<32x32xf32> to vector<32xf32>
      %131 = vector.shape_cast %130 : vector<32xf32> to vector<1x32xf32>
      %132 = arith.addf %122, %131 : vector<1x32xf32>
      %133 = arith.mulf %125, %125 : vector<32x32xf32>
      %cst_154 = arith.constant dense<0.000000e+00> : vector<32xf32>
      %134 = vector.multi_reduction <add>, %133, %cst_154 [0] : vector<32x32xf32> to vector<32xf32>
      %135 = vector.shape_cast %134 : vector<32xf32> to vector<1x32xf32>
      %136 = arith.addf %123, %135 : vector<1x32xf32>
      %c1_155 = arith.constant 1 : index
      %c0_156 = arith.constant 0 : index
      %c0_157 = arith.constant 0 : index
      %137 = vector.load %arg7[%c1_155, %c0_156, %c0_157] : memref<4x32x32xf32, #tpu.memory_space<vmem>>, vector<1x32x32xf32>
      %138 = vector.shape_cast %137 : vector<1x32x32xf32> to vector<32x32xf32>
      %139 = arith.truncf %138 : vector<32x32xf32> to vector<32x32xbf16>
      %c1_158 = arith.constant 1 : index
      %c0_159 = arith.constant 0 : index
      %c0_160 = arith.constant 0 : index
      %140 = vector.load %arg4[%c1_158, %c0_159, %c0_160] : memref<4x32x32xbf16, #tpu.memory_space<vmem>>, vector<1x32x32xbf16>
      %141 = vector.shape_cast %140 : vector<1x32x32xbf16> to vector<32x32xbf16>
      %142 = vector.shape_cast %139 : vector<32x32xbf16> to vector<1x32x32xbf16>
      tpu.vector_store %arg4[%c1_158, %c0_159, %c0_160], %142 {strides = array<i32>} : memref<4x32x32xbf16, #tpu.memory_space<vmem>>, vector<1x32x32xbf16>,
      %cst_161 = arith.constant dense<0.000000e+00> : vector<32xf32>
      %143 = vector.multi_reduction <add>, %138, %cst_161 [0] : vector<32x32xf32> to vector<32xf32>
      %144 = vector.shape_cast %143 : vector<32xf32> to vector<1x32xf32>
      %145 = arith.addf %132, %144 : vector<1x32xf32>
      %146 = arith.mulf %138, %138 : vector<32x32xf32>
      %cst_162 = arith.constant dense<0.000000e+00> : vector<32xf32>
      %147 = vector.multi_reduction <add>, %146, %cst_162 [0] : vector<32x32xf32> to vector<32xf32>
      %148 = vector.shape_cast %147 : vector<32xf32> to vector<1x32xf32>
      %149 = arith.addf %136, %148 : vector<1x32xf32>
      %c2_163 = arith.constant 2 : index
      %c0_164 = arith.constant 0 : index
      %c0_165 = arith.constant 0 : index
      %150 = vector.load %arg7[%c2_163, %c0_164, %c0_165] : memref<4x32x32xf32, #tpu.memory_space<vmem>>, vector<1x32x32xf32>
      %151 = vector.shape_cast %150 : vector<1x32x32xf32> to vector<32x32xf32>
      %152 = arith.truncf %151 : vector<32x32xf32> to vector<32x32xbf16>
      %c2_166 = arith.constant 2 : index
      %c0_167 = arith.constant 0 : index
      %c0_168 = arith.constant 0 : index
      %153 = vector.load %arg4[%c2_166, %c0_167, %c0_168] : memref<4x32x32xbf16, #tpu.memory_space<vmem>>, vector<1x32x32xbf16>
      %154 = vector.shape_cast %153 : vector<1x32x32xbf16> to vector<32x32xbf16>
      %155 = vector.shape_cast %152 : vector<32x32xbf16> to vector<1x32x32xbf16>
      tpu.vector_store %arg4[%c2_166, %c0_167, %c0_168], %155 {strides = array<i32>} : memref<4x32x32xbf16, #tpu.memory_space<vmem>>, vector<1x32x32xbf16>,
      %cst_169 = arith.constant dense<0.000000e+00> : vector<32xf32>
      %156 = vector.multi_reduction <add>, %151, %cst_169 [0] : vector<32x32xf32> to vector<32xf32>
      %157 = vector.shape_cast %156 : vector<32xf32> to vector<1x32xf32>
      %158 = arith.addf %145, %157 : vector<1x32xf32>
      %159 = arith.mulf %151, %151 : vector<32x32xf32>
      %cst_170 = arith.constant dense<0.000000e+00> : vector<32xf32>
      %160 = vector.multi_reduction <add>, %159, %cst_170 [0] : vector<32x32xf32> to vector<32xf32>
      %161 = vector.shape_cast %160 : vector<32xf32> to vector<1x32xf32>
      %162 = arith.addf %149, %161 : vector<1x32xf32>
      %c3_171 = arith.constant 3 : index
      %c0_172 = arith.constant 0 : index
      %c0_173 = arith.constant 0 : index
      %163 = vector.load %arg7[%c3_171, %c0_172, %c0_173] : memref<4x32x32xf32, #tpu.memory_space<vmem>>, vector<1x32x32xf32>
      %164 = vector.shape_cast %163 : vector<1x32x32xf32> to vector<32x32xf32>
      %165 = arith.truncf %164 : vector<32x32xf32> to vector<32x32xbf16>
      %c3_174 = arith.constant 3 : index
      %c0_175 = arith.constant 0 : index
      %c0_176 = arith.constant 0 : index
      %166 = vector.load %arg4[%c3_174, %c0_175, %c0_176] : memref<4x32x32xbf16, #tpu.memory_space<vmem>>, vector<1x32x32xbf16>
      %167 = vector.shape_cast %166 : vector<1x32x32xbf16> to vector<32x32xbf16>
      %168 = vector.shape_cast %165 : vector<32x32xbf16> to vector<1x32x32xbf16>
      tpu.vector_store %arg4[%c3_174, %c0_175, %c0_176], %168 {strides = array<i32>} : memref<4x32x32xbf16, #tpu.memory_space<vmem>>, vector<1x32x32xbf16>,
      %cst_177 = arith.constant dense<0.000000e+00> : vector<32xf32>
      %169 = vector.multi_reduction <add>, %164, %cst_177 [0] : vector<32x32xf32> to vector<32xf32>
      %170 = vector.shape_cast %169 : vector<32xf32> to vector<1x32xf32>
      %171 = arith.addf %158, %170 : vector<1x32xf32>
      %172 = arith.mulf %164, %164 : vector<32x32xf32>
      %cst_178 = arith.constant dense<0.000000e+00> : vector<32xf32>
      %173 = vector.multi_reduction <add>, %172, %cst_178 [0] : vector<32x32xf32> to vector<32xf32>
      %174 = vector.shape_cast %173 : vector<32xf32> to vector<1x32xf32>
      %175 = arith.addf %162, %174 : vector<1x32xf32>
      %c0_179 = arith.constant 0 : index
      %c0_180 = arith.constant 0 : index
      %c0_181 = arith.constant 0 : index
      %176 = vector.load %arg5[%c0_179, %c0_180, %c0_181] : memref<1x1x32xf32, #tpu.memory_space<vmem>>, vector<1x1x32xf32>
      %177 = vector.shape_cast %176 : vector<1x1x32xf32> to vector<1x32xf32>
      %178 = vector.shape_cast %171 : vector<1x32xf32> to vector<1x1x32xf32>
      tpu.vector_store %arg5[%c0_179, %c0_180, %c0_181], %178 {strides = array<i32>} : memref<1x1x32xf32, #tpu.memory_space<vmem>>, vector<1x1x32xf32>,
      %c0_182 = arith.constant 0 : index
      %c0_183 = arith.constant 0 : index
      %c0_184 = arith.constant 0 : index
      %179 = vector.load %arg6[%c0_182, %c0_183, %c0_184] : memref<1x1x32xf32, #tpu.memory_space<vmem>>, vector<1x1x32xf32>
      %180 = vector.shape_cast %179 : vector<1x1x32xf32> to vector<1x32xf32>
      %181 = vector.shape_cast %175 : vector<1x32xf32> to vector<1x1x32xf32>
      tpu.vector_store %arg6[%c0_182, %c0_183, %c0_184], %181 {strides = array<i32>} : memref<1x1x32xf32, #tpu.memory_space<vmem>>, vector<1x1x32xf32>,
    } else {
    }
    return
  }
  func.func @transform_0(%arg0: i32, %arg1: i32) -> (i32, i32, i32) {
    %c0_i32 = arith.constant 0 : i32
    %c0_i32_0 = arith.constant 0 : i32
    return %c0_i32, %arg0, %arg1 : i32, i32, i32
  }
  func.func @transform_1(%arg0: i32, %arg1: i32) -> (i32, i32, i32, i32) {
    %c0_i32 = arith.constant 0 : i32
    %c0_i32_0 = arith.constant 0 : i32
    %c0_i32_1 = arith.constant 0 : i32
    %c0_i32_2 = arith.constant 0 : i32
    return %c0_i32, %c0_i32_0, %arg1, %c0_i32_1 : i32, i32, i32, i32
  }
  func.func @transform_2(%arg0: i32, %arg1: i32) -> (i32, i32, i32) {
    %c0_i32 = arith.constant 0 : i32
    %c0_i32_0 = arith.constant 0 : i32
    %c0_i32_1 = arith.constant 0 : i32
    return %c0_i32, %arg0, %c0_i32_0 : i32, i32, i32
  }
  func.func @transform_3(%arg0: i32, %arg1: i32) -> (i32, i32, i32) {
    %c0_i32 = arith.constant 0 : i32
    %c0_i32_0 = arith.constant 0 : i32
    %c0_i32_1 = arith.constant 0 : i32
    return %arg0, %c0_i32, %c0_i32_0 : i32, i32, i32
  }
  func.func @transform_4(%arg0: i32, %arg1: i32) -> (i32, i32, i32) {
    %c0_i32 = arith.constant 0 : i32
    %c0_i32_0 = arith.constant 0 : i32
    %c0_i32_1 = arith.constant 0 : i32
    return %arg0, %c0_i32, %c0_i32_0 : i32, i32, i32
  }
}

module attributes {stable_mosaic.version = 11 : i64} {
  func.func @_deconv_bn_kernel(%arg0: i32, %arg1: i32, %arg2: memref<9x128x32xbf16, #tpu.memory_space<vmem>>, %arg3: memref<4x4x32x16xbf16, #tpu.memory_space<vmem>>, %arg4: memref<4x128x16xbf16, #tpu.memory_space<vmem>>, %arg5: memref<1x1x16xf32, #tpu.memory_space<vmem>>, %arg6: memref<1x1x16xf32, #tpu.memory_space<vmem>>, %arg7: memref<4x128x16xf32, #tpu.memory_space<vmem>>) attributes {dimension_semantics = [#tpu.dimension_semantics<parallel>, #tpu.dimension_semantics<arbitrary>], iteration_bounds = array<i64: 1, 1>, scalar_prefetch = 0 : i64, scratch_operands = 1 : i64, tpu.core_type = #tpu.core_type<tc>, window_params = [{transform_indices = @transform_0, window_bounds = array<i64: 9, 128, 32>}, {transform_indices = @transform_1, window_bounds = array<i64: 4, 4, 32, 16>}, {transform_indices = @transform_2, window_bounds = array<i64: 4, 128, 16>}, {transform_indices = @transform_3, window_bounds = array<i64: 1, 1, 16>}, {transform_indices = @transform_4, window_bounds = array<i64: 1, 1, 16>}]} {
    %c0_i32 = arith.constant 0 : i32
    %0 = arith.cmpi eq, %arg1, %c0_i32 : i32
    %1 = arith.extui %0 : i1 to i32
    %c0_i32_0 = arith.constant 0 : i32
    %2 = arith.cmpi ne, %1, %c0_i32_0 : i32
    scf.if %2 {
      %cst_145 = arith.constant 0.000000e+00 : f32
      %122 = vector.broadcast %cst_145 : f32 to vector<4x128x16xf32>
      %c0_146 = arith.constant 0 : index
      %c0_147 = arith.constant 0 : index
      %c0_148 = arith.constant 0 : index
      %123 = vector.load %arg7[%c0_146, %c0_147, %c0_148] : memref<4x128x16xf32, #tpu.memory_space<vmem>>, vector<4x128x16xf32>
      tpu.vector_store %arg7[%c0_146, %c0_147, %c0_148], %122 {strides = array<i32>} : memref<4x128x16xf32, #tpu.memory_space<vmem>>, vector<4x128x16xf32>,
    } else {
    }
    %c0 = arith.constant 0 : index
    %c0_1 = arith.constant 0 : index
    %c0_2 = arith.constant 0 : index
    %3 = vector.load %arg7[%c0, %c0_1, %c0_2] : memref<4x128x16xf32, #tpu.memory_space<vmem>>, vector<1x128x16xf32>
    %4 = vector.shape_cast %3 : vector<1x128x16xf32> to vector<128x16xf32>
    %c0_3 = arith.constant 0 : index
    %c0_4 = arith.constant 0 : index
    %c0_5 = arith.constant 0 : index
    %5 = vector.load %arg2[%c0_3, %c0_4, %c0_5] : memref<9x128x32xbf16, #tpu.memory_space<vmem>>, vector<1x128x32xbf16>
    %6 = vector.shape_cast %5 : vector<1x128x32xbf16> to vector<128x32xbf16>
    %c0_6 = arith.constant 0 : index
    %c0_7 = arith.constant 0 : index
    %c0_8 = arith.constant 0 : index
    %c0_9 = arith.constant 0 : index
    %7 = vector.load %arg3[%c0_6, %c0_7, %c0_8, %c0_9] : memref<4x4x32x16xbf16, #tpu.memory_space<vmem>>, vector<1x1x32x16xbf16>
    %8 = vector.shape_cast %7 : vector<1x1x32x16xbf16> to vector<32x16xbf16>
    %cst = arith.constant dense<0.000000e+00> : vector<128x16xf32>
    %9 = tpu.matmul %6, %8, %cst {dimension_numbers = #tpu.dot_dimension_numbers<[1], [0], [0], [1], [0, 0, 1, 1], [], []>} : vector<128x32xbf16>, vector<32x16xbf16>, vector<128x16xf32> -> vector<128x16xf32>
    %10 = arith.addf %4, %9 : vector<128x16xf32>
    %c1 = arith.constant 1 : index
    %c0_10 = arith.constant 0 : index
    %c0_11 = arith.constant 0 : index
    %11 = vector.load %arg2[%c1, %c0_10, %c0_11] : memref<9x128x32xbf16, #tpu.memory_space<vmem>>, vector<1x128x32xbf16>
    %12 = vector.shape_cast %11 : vector<1x128x32xbf16> to vector<128x32xbf16>
    %c0_12 = arith.constant 0 : index
    %c1_13 = arith.constant 1 : index
    %c0_14 = arith.constant 0 : index
    %c0_15 = arith.constant 0 : index
    %13 = vector.load %arg3[%c0_12, %c1_13, %c0_14, %c0_15] : memref<4x4x32x16xbf16, #tpu.memory_space<vmem>>, vector<1x1x32x16xbf16>
    %14 = vector.shape_cast %13 : vector<1x1x32x16xbf16> to vector<32x16xbf16>
    %cst_16 = arith.constant dense<0.000000e+00> : vector<128x16xf32>
    %15 = tpu.matmul %12, %14, %cst_16 {dimension_numbers = #tpu.dot_dimension_numbers<[1], [0], [0], [1], [0, 0, 1, 1], [], []>} : vector<128x32xbf16>, vector<32x16xbf16>, vector<128x16xf32> -> vector<128x16xf32>
    %16 = arith.addf %10, %15 : vector<128x16xf32>
    %c3 = arith.constant 3 : index
    %c0_17 = arith.constant 0 : index
    %c0_18 = arith.constant 0 : index
    %17 = vector.load %arg2[%c3, %c0_17, %c0_18] : memref<9x128x32xbf16, #tpu.memory_space<vmem>>, vector<1x128x32xbf16>
    %18 = vector.shape_cast %17 : vector<1x128x32xbf16> to vector<128x32xbf16>
    %c0_19 = arith.constant 0 : index
    %c2 = arith.constant 2 : index
    %c0_20 = arith.constant 0 : index
    %c0_21 = arith.constant 0 : index
    %19 = vector.load %arg3[%c0_19, %c2, %c0_20, %c0_21] : memref<4x4x32x16xbf16, #tpu.memory_space<vmem>>, vector<1x1x32x16xbf16>
    %20 = vector.shape_cast %19 : vector<1x1x32x16xbf16> to vector<32x16xbf16>
    %cst_22 = arith.constant dense<0.000000e+00> : vector<128x16xf32>
    %21 = tpu.matmul %18, %20, %cst_22 {dimension_numbers = #tpu.dot_dimension_numbers<[1], [0], [0], [1], [0, 0, 1, 1], [], []>} : vector<128x32xbf16>, vector<32x16xbf16>, vector<128x16xf32> -> vector<128x16xf32>
    %22 = arith.addf %16, %21 : vector<128x16xf32>
    %c4 = arith.constant 4 : index
    %c0_23 = arith.constant 0 : index
    %c0_24 = arith.constant 0 : index
    %23 = vector.load %arg2[%c4, %c0_23, %c0_24] : memref<9x128x32xbf16, #tpu.memory_space<vmem>>, vector<1x128x32xbf16>
    %24 = vector.shape_cast %23 : vector<1x128x32xbf16> to vector<128x32xbf16>
    %c0_25 = arith.constant 0 : index
    %c3_26 = arith.constant 3 : index
    %c0_27 = arith.constant 0 : index
    %c0_28 = arith.constant 0 : index
    %25 = vector.load %arg3[%c0_25, %c3_26, %c0_27, %c0_28] : memref<4x4x32x16xbf16, #tpu.memory_space<vmem>>, vector<1x1x32x16xbf16>
    %26 = vector.shape_cast %25 : vector<1x1x32x16xbf16> to vector<32x16xbf16>
    %cst_29 = arith.constant dense<0.000000e+00> : vector<128x16xf32>
    %27 = tpu.matmul %24, %26, %cst_29 {dimension_numbers = #tpu.dot_dimension_numbers<[1], [0], [0], [1], [0, 0, 1, 1], [], []>} : vector<128x32xbf16>, vector<32x16xbf16>, vector<128x16xf32> -> vector<128x16xf32>
    %28 = arith.addf %22, %27 : vector<128x16xf32>
    %c0_30 = arith.constant 0 : index
    %c0_31 = arith.constant 0 : index
    %c0_32 = arith.constant 0 : index
    %29 = vector.load %arg7[%c0_30, %c0_31, %c0_32] : memref<4x128x16xf32, #tpu.memory_space<vmem>>, vector<1x128x16xf32>
    %30 = vector.shape_cast %29 : vector<1x128x16xf32> to vector<128x16xf32>
    %31 = vector.shape_cast %28 : vector<128x16xf32> to vector<1x128x16xf32>
    tpu.vector_store %arg7[%c0_30, %c0_31, %c0_32], %31 {strides = array<i32>} : memref<4x128x16xf32, #tpu.memory_space<vmem>>, vector<1x128x16xf32>,
    %c1_33 = arith.constant 1 : index
    %c0_34 = arith.constant 0 : index
    %c0_35 = arith.constant 0 : index
    %32 = vector.load %arg7[%c1_33, %c0_34, %c0_35] : memref<4x128x16xf32, #tpu.memory_space<vmem>>, vector<1x128x16xf32>
    %33 = vector.shape_cast %32 : vector<1x128x16xf32> to vector<128x16xf32>
    %c1_36 = arith.constant 1 : index
    %c0_37 = arith.constant 0 : index
    %c0_38 = arith.constant 0 : index
    %34 = vector.load %arg2[%c1_36, %c0_37, %c0_38] : memref<9x128x32xbf16, #tpu.memory_space<vmem>>, vector<1x128x32xbf16>
    %35 = vector.shape_cast %34 : vector<1x128x32xbf16> to vector<128x32xbf16>
    %c1_39 = arith.constant 1 : index
    %c0_40 = arith.constant 0 : index
    %c0_41 = arith.constant 0 : index
    %c0_42 = arith.constant 0 : index
    %36 = vector.load %arg3[%c1_39, %c0_40, %c0_41, %c0_42] : memref<4x4x32x16xbf16, #tpu.memory_space<vmem>>, vector<1x1x32x16xbf16>
    %37 = vector.shape_cast %36 : vector<1x1x32x16xbf16> to vector<32x16xbf16>
    %cst_43 = arith.constant dense<0.000000e+00> : vector<128x16xf32>
    %38 = tpu.matmul %35, %37, %cst_43 {dimension_numbers = #tpu.dot_dimension_numbers<[1], [0], [0], [1], [0, 0, 1, 1], [], []>} : vector<128x32xbf16>, vector<32x16xbf16>, vector<128x16xf32> -> vector<128x16xf32>
    %39 = arith.addf %33, %38 : vector<128x16xf32>
    %c2_44 = arith.constant 2 : index
    %c0_45 = arith.constant 0 : index
    %c0_46 = arith.constant 0 : index
    %40 = vector.load %arg2[%c2_44, %c0_45, %c0_46] : memref<9x128x32xbf16, #tpu.memory_space<vmem>>, vector<1x128x32xbf16>
    %41 = vector.shape_cast %40 : vector<1x128x32xbf16> to vector<128x32xbf16>
    %c1_47 = arith.constant 1 : index
    %c1_48 = arith.constant 1 : index
    %c0_49 = arith.constant 0 : index
    %c0_50 = arith.constant 0 : index
    %42 = vector.load %arg3[%c1_47, %c1_48, %c0_49, %c0_50] : memref<4x4x32x16xbf16, #tpu.memory_space<vmem>>, vector<1x1x32x16xbf16>
    %43 = vector.shape_cast %42 : vector<1x1x32x16xbf16> to vector<32x16xbf16>
    %cst_51 = arith.constant dense<0.000000e+00> : vector<128x16xf32>
    %44 = tpu.matmul %41, %43, %cst_51 {dimension_numbers = #tpu.dot_dimension_numbers<[1], [0], [0], [1], [0, 0, 1, 1], [], []>} : vector<128x32xbf16>, vector<32x16xbf16>, vector<128x16xf32> -> vector<128x16xf32>
    %45 = arith.addf %39, %44 : vector<128x16xf32>
    %c4_52 = arith.constant 4 : index
    %c0_53 = arith.constant 0 : index
    %c0_54 = arith.constant 0 : index
    %46 = vector.load %arg2[%c4_52, %c0_53, %c0_54] : memref<9x128x32xbf16, #tpu.memory_space<vmem>>, vector<1x128x32xbf16>
    %47 = vector.shape_cast %46 : vector<1x128x32xbf16> to vector<128x32xbf16>
    %c1_55 = arith.constant 1 : index
    %c2_56 = arith.constant 2 : index
    %c0_57 = arith.constant 0 : index
    %c0_58 = arith.constant 0 : index
    %48 = vector.load %arg3[%c1_55, %c2_56, %c0_57, %c0_58] : memref<4x4x32x16xbf16, #tpu.memory_space<vmem>>, vector<1x1x32x16xbf16>
    %49 = vector.shape_cast %48 : vector<1x1x32x16xbf16> to vector<32x16xbf16>
    %cst_59 = arith.constant dense<0.000000e+00> : vector<128x16xf32>
    %50 = tpu.matmul %47, %49, %cst_59 {dimension_numbers = #tpu.dot_dimension_numbers<[1], [0], [0], [1], [0, 0, 1, 1], [], []>} : vector<128x32xbf16>, vector<32x16xbf16>, vector<128x16xf32> -> vector<128x16xf32>
    %51 = arith.addf %45, %50 : vector<128x16xf32>
    %c5 = arith.constant 5 : index
    %c0_60 = arith.constant 0 : index
    %c0_61 = arith.constant 0 : index
    %52 = vector.load %arg2[%c5, %c0_60, %c0_61] : memref<9x128x32xbf16, #tpu.memory_space<vmem>>, vector<1x128x32xbf16>
    %53 = vector.shape_cast %52 : vector<1x128x32xbf16> to vector<128x32xbf16>
    %c1_62 = arith.constant 1 : index
    %c3_63 = arith.constant 3 : index
    %c0_64 = arith.constant 0 : index
    %c0_65 = arith.constant 0 : index
    %54 = vector.load %arg3[%c1_62, %c3_63, %c0_64, %c0_65] : memref<4x4x32x16xbf16, #tpu.memory_space<vmem>>, vector<1x1x32x16xbf16>
    %55 = vector.shape_cast %54 : vector<1x1x32x16xbf16> to vector<32x16xbf16>
    %cst_66 = arith.constant dense<0.000000e+00> : vector<128x16xf32>
    %56 = tpu.matmul %53, %55, %cst_66 {dimension_numbers = #tpu.dot_dimension_numbers<[1], [0], [0], [1], [0, 0, 1, 1], [], []>} : vector<128x32xbf16>, vector<32x16xbf16>, vector<128x16xf32> -> vector<128x16xf32>
    %57 = arith.addf %51, %56 : vector<128x16xf32>
    %c1_67 = arith.constant 1 : index
    %c0_68 = arith.constant 0 : index
    %c0_69 = arith.constant 0 : index
    %58 = vector.load %arg7[%c1_67, %c0_68, %c0_69] : memref<4x128x16xf32, #tpu.memory_space<vmem>>, vector<1x128x16xf32>
    %59 = vector.shape_cast %58 : vector<1x128x16xf32> to vector<128x16xf32>
    %60 = vector.shape_cast %57 : vector<128x16xf32> to vector<1x128x16xf32>
    tpu.vector_store %arg7[%c1_67, %c0_68, %c0_69], %60 {strides = array<i32>} : memref<4x128x16xf32, #tpu.memory_space<vmem>>, vector<1x128x16xf32>,
    %c2_70 = arith.constant 2 : index
    %c0_71 = arith.constant 0 : index
    %c0_72 = arith.constant 0 : index
    %61 = vector.load %arg7[%c2_70, %c0_71, %c0_72] : memref<4x128x16xf32, #tpu.memory_space<vmem>>, vector<1x128x16xf32>
    %62 = vector.shape_cast %61 : vector<1x128x16xf32> to vector<128x16xf32>
    %c3_73 = arith.constant 3 : index
    %c0_74 = arith.constant 0 : index
    %c0_75 = arith.constant 0 : index
    %63 = vector.load %arg2[%c3_73, %c0_74, %c0_75] : memref<9x128x32xbf16, #tpu.memory_space<vmem>>, vector<1x128x32xbf16>
    %64 = vector.shape_cast %63 : vector<1x128x32xbf16> to vector<128x32xbf16>
    %c2_76 = arith.constant 2 : index
    %c0_77 = arith.constant 0 : index
    %c0_78 = arith.constant 0 : index
    %c0_79 = arith.constant 0 : index
    %65 = vector.load %arg3[%c2_76, %c0_77, %c0_78, %c0_79] : memref<4x4x32x16xbf16, #tpu.memory_space<vmem>>, vector<1x1x32x16xbf16>
    %66 = vector.shape_cast %65 : vector<1x1x32x16xbf16> to vector<32x16xbf16>
    %cst_80 = arith.constant dense<0.000000e+00> : vector<128x16xf32>
    %67 = tpu.matmul %64, %66, %cst_80 {dimension_numbers = #tpu.dot_dimension_numbers<[1], [0], [0], [1], [0, 0, 1, 1], [], []>} : vector<128x32xbf16>, vector<32x16xbf16>, vector<128x16xf32> -> vector<128x16xf32>
    %68 = arith.addf %62, %67 : vector<128x16xf32>
    %c4_81 = arith.constant 4 : index
    %c0_82 = arith.constant 0 : index
    %c0_83 = arith.constant 0 : index
    %69 = vector.load %arg2[%c4_81, %c0_82, %c0_83] : memref<9x128x32xbf16, #tpu.memory_space<vmem>>, vector<1x128x32xbf16>
    %70 = vector.shape_cast %69 : vector<1x128x32xbf16> to vector<128x32xbf16>
    %c2_84 = arith.constant 2 : index
    %c1_85 = arith.constant 1 : index
    %c0_86 = arith.constant 0 : index
    %c0_87 = arith.constant 0 : index
    %71 = vector.load %arg3[%c2_84, %c1_85, %c0_86, %c0_87] : memref<4x4x32x16xbf16, #tpu.memory_space<vmem>>, vector<1x1x32x16xbf16>
    %72 = vector.shape_cast %71 : vector<1x1x32x16xbf16> to vector<32x16xbf16>
    %cst_88 = arith.constant dense<0.000000e+00> : vector<128x16xf32>
    %73 = tpu.matmul %70, %72, %cst_88 {dimension_numbers = #tpu.dot_dimension_numbers<[1], [0], [0], [1], [0, 0, 1, 1], [], []>} : vector<128x32xbf16>, vector<32x16xbf16>, vector<128x16xf32> -> vector<128x16xf32>
    %74 = arith.addf %68, %73 : vector<128x16xf32>
    %c6 = arith.constant 6 : index
    %c0_89 = arith.constant 0 : index
    %c0_90 = arith.constant 0 : index
    %75 = vector.load %arg2[%c6, %c0_89, %c0_90] : memref<9x128x32xbf16, #tpu.memory_space<vmem>>, vector<1x128x32xbf16>
    %76 = vector.shape_cast %75 : vector<1x128x32xbf16> to vector<128x32xbf16>
    %c2_91 = arith.constant 2 : index
    %c2_92 = arith.constant 2 : index
    %c0_93 = arith.constant 0 : index
    %c0_94 = arith.constant 0 : index
    %77 = vector.load %arg3[%c2_91, %c2_92, %c0_93, %c0_94] : memref<4x4x32x16xbf16, #tpu.memory_space<vmem>>, vector<1x1x32x16xbf16>
    %78 = vector.shape_cast %77 : vector<1x1x32x16xbf16> to vector<32x16xbf16>
    %cst_95 = arith.constant dense<0.000000e+00> : vector<128x16xf32>
    %79 = tpu.matmul %76, %78, %cst_95 {dimension_numbers = #tpu.dot_dimension_numbers<[1], [0], [0], [1], [0, 0, 1, 1], [], []>} : vector<128x32xbf16>, vector<32x16xbf16>, vector<128x16xf32> -> vector<128x16xf32>
    %80 = arith.addf %74, %79 : vector<128x16xf32>
    %c7 = arith.constant 7 : index
    %c0_96 = arith.constant 0 : index
    %c0_97 = arith.constant 0 : index
    %81 = vector.load %arg2[%c7, %c0_96, %c0_97] : memref<9x128x32xbf16, #tpu.memory_space<vmem>>, vector<1x128x32xbf16>
    %82 = vector.shape_cast %81 : vector<1x128x32xbf16> to vector<128x32xbf16>
    %c2_98 = arith.constant 2 : index
    %c3_99 = arith.constant 3 : index
    %c0_100 = arith.constant 0 : index
    %c0_101 = arith.constant 0 : index
    %83 = vector.load %arg3[%c2_98, %c3_99, %c0_100, %c0_101] : memref<4x4x32x16xbf16, #tpu.memory_space<vmem>>, vector<1x1x32x16xbf16>
    %84 = vector.shape_cast %83 : vector<1x1x32x16xbf16> to vector<32x16xbf16>
    %cst_102 = arith.constant dense<0.000000e+00> : vector<128x16xf32>
    %85 = tpu.matmul %82, %84, %cst_102 {dimension_numbers = #tpu.dot_dimension_numbers<[1], [0], [0], [1], [0, 0, 1, 1], [], []>} : vector<128x32xbf16>, vector<32x16xbf16>, vector<128x16xf32> -> vector<128x16xf32>
    %86 = arith.addf %80, %85 : vector<128x16xf32>
    %c2_103 = arith.constant 2 : index
    %c0_104 = arith.constant 0 : index
    %c0_105 = arith.constant 0 : index
    %87 = vector.load %arg7[%c2_103, %c0_104, %c0_105] : memref<4x128x16xf32, #tpu.memory_space<vmem>>, vector<1x128x16xf32>
    %88 = vector.shape_cast %87 : vector<1x128x16xf32> to vector<128x16xf32>
    %89 = vector.shape_cast %86 : vector<128x16xf32> to vector<1x128x16xf32>
    tpu.vector_store %arg7[%c2_103, %c0_104, %c0_105], %89 {strides = array<i32>} : memref<4x128x16xf32, #tpu.memory_space<vmem>>, vector<1x128x16xf32>,
    %c3_106 = arith.constant 3 : index
    %c0_107 = arith.constant 0 : index
    %c0_108 = arith.constant 0 : index
    %90 = vector.load %arg7[%c3_106, %c0_107, %c0_108] : memref<4x128x16xf32, #tpu.memory_space<vmem>>, vector<1x128x16xf32>
    %91 = vector.shape_cast %90 : vector<1x128x16xf32> to vector<128x16xf32>
    %c4_109 = arith.constant 4 : index
    %c0_110 = arith.constant 0 : index
    %c0_111 = arith.constant 0 : index
    %92 = vector.load %arg2[%c4_109, %c0_110, %c0_111] : memref<9x128x32xbf16, #tpu.memory_space<vmem>>, vector<1x128x32xbf16>
    %93 = vector.shape_cast %92 : vector<1x128x32xbf16> to vector<128x32xbf16>
    %c3_112 = arith.constant 3 : index
    %c0_113 = arith.constant 0 : index
    %c0_114 = arith.constant 0 : index
    %c0_115 = arith.constant 0 : index
    %94 = vector.load %arg3[%c3_112, %c0_113, %c0_114, %c0_115] : memref<4x4x32x16xbf16, #tpu.memory_space<vmem>>, vector<1x1x32x16xbf16>
    %95 = vector.shape_cast %94 : vector<1x1x32x16xbf16> to vector<32x16xbf16>
    %cst_116 = arith.constant dense<0.000000e+00> : vector<128x16xf32>
    %96 = tpu.matmul %93, %95, %cst_116 {dimension_numbers = #tpu.dot_dimension_numbers<[1], [0], [0], [1], [0, 0, 1, 1], [], []>} : vector<128x32xbf16>, vector<32x16xbf16>, vector<128x16xf32> -> vector<128x16xf32>
    %97 = arith.addf %91, %96 : vector<128x16xf32>
    %c5_117 = arith.constant 5 : index
    %c0_118 = arith.constant 0 : index
    %c0_119 = arith.constant 0 : index
    %98 = vector.load %arg2[%c5_117, %c0_118, %c0_119] : memref<9x128x32xbf16, #tpu.memory_space<vmem>>, vector<1x128x32xbf16>
    %99 = vector.shape_cast %98 : vector<1x128x32xbf16> to vector<128x32xbf16>
    %c3_120 = arith.constant 3 : index
    %c1_121 = arith.constant 1 : index
    %c0_122 = arith.constant 0 : index
    %c0_123 = arith.constant 0 : index
    %100 = vector.load %arg3[%c3_120, %c1_121, %c0_122, %c0_123] : memref<4x4x32x16xbf16, #tpu.memory_space<vmem>>, vector<1x1x32x16xbf16>
    %101 = vector.shape_cast %100 : vector<1x1x32x16xbf16> to vector<32x16xbf16>
    %cst_124 = arith.constant dense<0.000000e+00> : vector<128x16xf32>
    %102 = tpu.matmul %99, %101, %cst_124 {dimension_numbers = #tpu.dot_dimension_numbers<[1], [0], [0], [1], [0, 0, 1, 1], [], []>} : vector<128x32xbf16>, vector<32x16xbf16>, vector<128x16xf32> -> vector<128x16xf32>
    %103 = arith.addf %97, %102 : vector<128x16xf32>
    %c7_125 = arith.constant 7 : index
    %c0_126 = arith.constant 0 : index
    %c0_127 = arith.constant 0 : index
    %104 = vector.load %arg2[%c7_125, %c0_126, %c0_127] : memref<9x128x32xbf16, #tpu.memory_space<vmem>>, vector<1x128x32xbf16>
    %105 = vector.shape_cast %104 : vector<1x128x32xbf16> to vector<128x32xbf16>
    %c3_128 = arith.constant 3 : index
    %c2_129 = arith.constant 2 : index
    %c0_130 = arith.constant 0 : index
    %c0_131 = arith.constant 0 : index
    %106 = vector.load %arg3[%c3_128, %c2_129, %c0_130, %c0_131] : memref<4x4x32x16xbf16, #tpu.memory_space<vmem>>, vector<1x1x32x16xbf16>
    %107 = vector.shape_cast %106 : vector<1x1x32x16xbf16> to vector<32x16xbf16>
    %cst_132 = arith.constant dense<0.000000e+00> : vector<128x16xf32>
    %108 = tpu.matmul %105, %107, %cst_132 {dimension_numbers = #tpu.dot_dimension_numbers<[1], [0], [0], [1], [0, 0, 1, 1], [], []>} : vector<128x32xbf16>, vector<32x16xbf16>, vector<128x16xf32> -> vector<128x16xf32>
    %109 = arith.addf %103, %108 : vector<128x16xf32>
    %c8 = arith.constant 8 : index
    %c0_133 = arith.constant 0 : index
    %c0_134 = arith.constant 0 : index
    %110 = vector.load %arg2[%c8, %c0_133, %c0_134] : memref<9x128x32xbf16, #tpu.memory_space<vmem>>, vector<1x128x32xbf16>
    %111 = vector.shape_cast %110 : vector<1x128x32xbf16> to vector<128x32xbf16>
    %c3_135 = arith.constant 3 : index
    %c3_136 = arith.constant 3 : index
    %c0_137 = arith.constant 0 : index
    %c0_138 = arith.constant 0 : index
    %112 = vector.load %arg3[%c3_135, %c3_136, %c0_137, %c0_138] : memref<4x4x32x16xbf16, #tpu.memory_space<vmem>>, vector<1x1x32x16xbf16>
    %113 = vector.shape_cast %112 : vector<1x1x32x16xbf16> to vector<32x16xbf16>
    %cst_139 = arith.constant dense<0.000000e+00> : vector<128x16xf32>
    %114 = tpu.matmul %111, %113, %cst_139 {dimension_numbers = #tpu.dot_dimension_numbers<[1], [0], [0], [1], [0, 0, 1, 1], [], []>} : vector<128x32xbf16>, vector<32x16xbf16>, vector<128x16xf32> -> vector<128x16xf32>
    %115 = arith.addf %109, %114 : vector<128x16xf32>
    %c3_140 = arith.constant 3 : index
    %c0_141 = arith.constant 0 : index
    %c0_142 = arith.constant 0 : index
    %116 = vector.load %arg7[%c3_140, %c0_141, %c0_142] : memref<4x128x16xf32, #tpu.memory_space<vmem>>, vector<1x128x16xf32>
    %117 = vector.shape_cast %116 : vector<1x128x16xf32> to vector<128x16xf32>
    %118 = vector.shape_cast %115 : vector<128x16xf32> to vector<1x128x16xf32>
    tpu.vector_store %arg7[%c3_140, %c0_141, %c0_142], %118 {strides = array<i32>} : memref<4x128x16xf32, #tpu.memory_space<vmem>>, vector<1x128x16xf32>,
    %c0_i32_143 = arith.constant 0 : i32
    %119 = arith.cmpi eq, %arg1, %c0_i32_143 : i32
    %120 = arith.extui %119 : i1 to i32
    %c0_i32_144 = arith.constant 0 : i32
    %121 = arith.cmpi ne, %120, %c0_i32_144 : i32
    scf.if %121 {
      %cst_145 = arith.constant 0.000000e+00 : f32
      %122 = vector.broadcast %cst_145 : f32 to vector<1x16xf32>
      %cst_146 = arith.constant 0.000000e+00 : f32
      %123 = vector.broadcast %cst_146 : f32 to vector<1x16xf32>
      %c0_147 = arith.constant 0 : index
      %c0_148 = arith.constant 0 : index
      %c0_149 = arith.constant 0 : index
      %124 = vector.load %arg7[%c0_147, %c0_148, %c0_149] : memref<4x128x16xf32, #tpu.memory_space<vmem>>, vector<1x128x16xf32>
      %125 = vector.shape_cast %124 : vector<1x128x16xf32> to vector<128x16xf32>
      %126 = arith.truncf %125 : vector<128x16xf32> to vector<128x16xbf16>
      %c0_150 = arith.constant 0 : index
      %c0_151 = arith.constant 0 : index
      %c0_152 = arith.constant 0 : index
      %127 = vector.load %arg4[%c0_150, %c0_151, %c0_152] : memref<4x128x16xbf16, #tpu.memory_space<vmem>>, vector<1x128x16xbf16>
      %128 = vector.shape_cast %127 : vector<1x128x16xbf16> to vector<128x16xbf16>
      %129 = vector.shape_cast %126 : vector<128x16xbf16> to vector<1x128x16xbf16>
      tpu.vector_store %arg4[%c0_150, %c0_151, %c0_152], %129 {strides = array<i32>} : memref<4x128x16xbf16, #tpu.memory_space<vmem>>, vector<1x128x16xbf16>,
      %cst_153 = arith.constant dense<0.000000e+00> : vector<16xf32>
      %130 = vector.multi_reduction <add>, %125, %cst_153 [0] : vector<128x16xf32> to vector<16xf32>
      %131 = vector.shape_cast %130 : vector<16xf32> to vector<1x16xf32>
      %132 = arith.addf %122, %131 : vector<1x16xf32>
      %133 = arith.mulf %125, %125 : vector<128x16xf32>
      %cst_154 = arith.constant dense<0.000000e+00> : vector<16xf32>
      %134 = vector.multi_reduction <add>, %133, %cst_154 [0] : vector<128x16xf32> to vector<16xf32>
      %135 = vector.shape_cast %134 : vector<16xf32> to vector<1x16xf32>
      %136 = arith.addf %123, %135 : vector<1x16xf32>
      %c1_155 = arith.constant 1 : index
      %c0_156 = arith.constant 0 : index
      %c0_157 = arith.constant 0 : index
      %137 = vector.load %arg7[%c1_155, %c0_156, %c0_157] : memref<4x128x16xf32, #tpu.memory_space<vmem>>, vector<1x128x16xf32>
      %138 = vector.shape_cast %137 : vector<1x128x16xf32> to vector<128x16xf32>
      %139 = arith.truncf %138 : vector<128x16xf32> to vector<128x16xbf16>
      %c1_158 = arith.constant 1 : index
      %c0_159 = arith.constant 0 : index
      %c0_160 = arith.constant 0 : index
      %140 = vector.load %arg4[%c1_158, %c0_159, %c0_160] : memref<4x128x16xbf16, #tpu.memory_space<vmem>>, vector<1x128x16xbf16>
      %141 = vector.shape_cast %140 : vector<1x128x16xbf16> to vector<128x16xbf16>
      %142 = vector.shape_cast %139 : vector<128x16xbf16> to vector<1x128x16xbf16>
      tpu.vector_store %arg4[%c1_158, %c0_159, %c0_160], %142 {strides = array<i32>} : memref<4x128x16xbf16, #tpu.memory_space<vmem>>, vector<1x128x16xbf16>,
      %cst_161 = arith.constant dense<0.000000e+00> : vector<16xf32>
      %143 = vector.multi_reduction <add>, %138, %cst_161 [0] : vector<128x16xf32> to vector<16xf32>
      %144 = vector.shape_cast %143 : vector<16xf32> to vector<1x16xf32>
      %145 = arith.addf %132, %144 : vector<1x16xf32>
      %146 = arith.mulf %138, %138 : vector<128x16xf32>
      %cst_162 = arith.constant dense<0.000000e+00> : vector<16xf32>
      %147 = vector.multi_reduction <add>, %146, %cst_162 [0] : vector<128x16xf32> to vector<16xf32>
      %148 = vector.shape_cast %147 : vector<16xf32> to vector<1x16xf32>
      %149 = arith.addf %136, %148 : vector<1x16xf32>
      %c2_163 = arith.constant 2 : index
      %c0_164 = arith.constant 0 : index
      %c0_165 = arith.constant 0 : index
      %150 = vector.load %arg7[%c2_163, %c0_164, %c0_165] : memref<4x128x16xf32, #tpu.memory_space<vmem>>, vector<1x128x16xf32>
      %151 = vector.shape_cast %150 : vector<1x128x16xf32> to vector<128x16xf32>
      %152 = arith.truncf %151 : vector<128x16xf32> to vector<128x16xbf16>
      %c2_166 = arith.constant 2 : index
      %c0_167 = arith.constant 0 : index
      %c0_168 = arith.constant 0 : index
      %153 = vector.load %arg4[%c2_166, %c0_167, %c0_168] : memref<4x128x16xbf16, #tpu.memory_space<vmem>>, vector<1x128x16xbf16>
      %154 = vector.shape_cast %153 : vector<1x128x16xbf16> to vector<128x16xbf16>
      %155 = vector.shape_cast %152 : vector<128x16xbf16> to vector<1x128x16xbf16>
      tpu.vector_store %arg4[%c2_166, %c0_167, %c0_168], %155 {strides = array<i32>} : memref<4x128x16xbf16, #tpu.memory_space<vmem>>, vector<1x128x16xbf16>,
      %cst_169 = arith.constant dense<0.000000e+00> : vector<16xf32>
      %156 = vector.multi_reduction <add>, %151, %cst_169 [0] : vector<128x16xf32> to vector<16xf32>
      %157 = vector.shape_cast %156 : vector<16xf32> to vector<1x16xf32>
      %158 = arith.addf %145, %157 : vector<1x16xf32>
      %159 = arith.mulf %151, %151 : vector<128x16xf32>
      %cst_170 = arith.constant dense<0.000000e+00> : vector<16xf32>
      %160 = vector.multi_reduction <add>, %159, %cst_170 [0] : vector<128x16xf32> to vector<16xf32>
      %161 = vector.shape_cast %160 : vector<16xf32> to vector<1x16xf32>
      %162 = arith.addf %149, %161 : vector<1x16xf32>
      %c3_171 = arith.constant 3 : index
      %c0_172 = arith.constant 0 : index
      %c0_173 = arith.constant 0 : index
      %163 = vector.load %arg7[%c3_171, %c0_172, %c0_173] : memref<4x128x16xf32, #tpu.memory_space<vmem>>, vector<1x128x16xf32>
      %164 = vector.shape_cast %163 : vector<1x128x16xf32> to vector<128x16xf32>
      %165 = arith.truncf %164 : vector<128x16xf32> to vector<128x16xbf16>
      %c3_174 = arith.constant 3 : index
      %c0_175 = arith.constant 0 : index
      %c0_176 = arith.constant 0 : index
      %166 = vector.load %arg4[%c3_174, %c0_175, %c0_176] : memref<4x128x16xbf16, #tpu.memory_space<vmem>>, vector<1x128x16xbf16>
      %167 = vector.shape_cast %166 : vector<1x128x16xbf16> to vector<128x16xbf16>
      %168 = vector.shape_cast %165 : vector<128x16xbf16> to vector<1x128x16xbf16>
      tpu.vector_store %arg4[%c3_174, %c0_175, %c0_176], %168 {strides = array<i32>} : memref<4x128x16xbf16, #tpu.memory_space<vmem>>, vector<1x128x16xbf16>,
      %cst_177 = arith.constant dense<0.000000e+00> : vector<16xf32>
      %169 = vector.multi_reduction <add>, %164, %cst_177 [0] : vector<128x16xf32> to vector<16xf32>
      %170 = vector.shape_cast %169 : vector<16xf32> to vector<1x16xf32>
      %171 = arith.addf %158, %170 : vector<1x16xf32>
      %172 = arith.mulf %164, %164 : vector<128x16xf32>
      %cst_178 = arith.constant dense<0.000000e+00> : vector<16xf32>
      %173 = vector.multi_reduction <add>, %172, %cst_178 [0] : vector<128x16xf32> to vector<16xf32>
      %174 = vector.shape_cast %173 : vector<16xf32> to vector<1x16xf32>
      %175 = arith.addf %162, %174 : vector<1x16xf32>
      %c0_179 = arith.constant 0 : index
      %c0_180 = arith.constant 0 : index
      %c0_181 = arith.constant 0 : index
      %176 = vector.load %arg5[%c0_179, %c0_180, %c0_181] : memref<1x1x16xf32, #tpu.memory_space<vmem>>, vector<1x1x16xf32>
      %177 = vector.shape_cast %176 : vector<1x1x16xf32> to vector<1x16xf32>
      %178 = vector.shape_cast %171 : vector<1x16xf32> to vector<1x1x16xf32>
      tpu.vector_store %arg5[%c0_179, %c0_180, %c0_181], %178 {strides = array<i32>} : memref<1x1x16xf32, #tpu.memory_space<vmem>>, vector<1x1x16xf32>,
      %c0_182 = arith.constant 0 : index
      %c0_183 = arith.constant 0 : index
      %c0_184 = arith.constant 0 : index
      %179 = vector.load %arg6[%c0_182, %c0_183, %c0_184] : memref<1x1x16xf32, #tpu.memory_space<vmem>>, vector<1x1x16xf32>
      %180 = vector.shape_cast %179 : vector<1x1x16xf32> to vector<1x16xf32>
      %181 = vector.shape_cast %175 : vector<1x16xf32> to vector<1x1x16xf32>
      tpu.vector_store %arg6[%c0_182, %c0_183, %c0_184], %181 {strides = array<i32>} : memref<1x1x16xf32, #tpu.memory_space<vmem>>, vector<1x1x16xf32>,
    } else {
    }
    return
  }
  func.func @transform_0(%arg0: i32, %arg1: i32) -> (i32, i32, i32) {
    %c0_i32 = arith.constant 0 : i32
    %c0_i32_0 = arith.constant 0 : i32
    return %c0_i32, %arg0, %arg1 : i32, i32, i32
  }
  func.func @transform_1(%arg0: i32, %arg1: i32) -> (i32, i32, i32, i32) {
    %c0_i32 = arith.constant 0 : i32
    %c0_i32_0 = arith.constant 0 : i32
    %c0_i32_1 = arith.constant 0 : i32
    %c0_i32_2 = arith.constant 0 : i32
    return %c0_i32, %c0_i32_0, %arg1, %c0_i32_1 : i32, i32, i32, i32
  }
  func.func @transform_2(%arg0: i32, %arg1: i32) -> (i32, i32, i32) {
    %c0_i32 = arith.constant 0 : i32
    %c0_i32_0 = arith.constant 0 : i32
    %c0_i32_1 = arith.constant 0 : i32
    return %c0_i32, %arg0, %c0_i32_0 : i32, i32, i32
  }
  func.func @transform_3(%arg0: i32, %arg1: i32) -> (i32, i32, i32) {
    %c0_i32 = arith.constant 0 : i32
    %c0_i32_0 = arith.constant 0 : i32
    %c0_i32_1 = arith.constant 0 : i32
    return %arg0, %c0_i32, %c0_i32_0 : i32, i32, i32
  }
  func.func @transform_4(%arg0: i32, %arg1: i32) -> (i32, i32, i32) {
    %c0_i32 = arith.constant 0 : i32
    %c0_i32_0 = arith.constant 0 : i32
    %c0_i32_1 = arith.constant 0 : i32
    return %arg0, %c0_i32, %c0_i32_0 : i32, i32, i32
  }
}

module attributes {stable_mosaic.version = 11 : i64} {
  func.func @_deconv_final_kernel(%arg0: i32, %arg1: i32, %arg2: memref<9x512x16xbf16, #tpu.memory_space<vmem>>, %arg3: memref<4x4x16x128xbf16, #tpu.memory_space<vmem>>, %arg4: memref<4x3x512xbf16, #tpu.memory_space<vmem>>, %arg5: memref<4x512x128xf32, #tpu.memory_space<vmem>>) attributes {dimension_semantics = [#tpu.dimension_semantics<parallel>, #tpu.dimension_semantics<arbitrary>], iteration_bounds = array<i64: 1, 1>, scalar_prefetch = 0 : i64, scratch_operands = 1 : i64, tpu.core_type = #tpu.core_type<tc>, window_params = [{transform_indices = @transform_0, window_bounds = array<i64: 9, 512, 16>}, {transform_indices = @transform_1, window_bounds = array<i64: 4, 4, 16, 128>}, {transform_indices = @transform_2, window_bounds = array<i64: 4, 3, 512>}]} {
    %c0_i32 = arith.constant 0 : i32
    %0 = arith.cmpi eq, %arg1, %c0_i32 : i32
    %1 = arith.extui %0 : i1 to i32
    %c0_i32_0 = arith.constant 0 : i32
    %2 = arith.cmpi ne, %1, %c0_i32_0 : i32
    scf.if %2 {
      %cst_145 = arith.constant 0.000000e+00 : f32
      %122 = vector.broadcast %cst_145 : f32 to vector<4x512x128xf32>
      %c0_146 = arith.constant 0 : index
      %c0_147 = arith.constant 0 : index
      %c0_148 = arith.constant 0 : index
      %123 = vector.load %arg5[%c0_146, %c0_147, %c0_148] : memref<4x512x128xf32, #tpu.memory_space<vmem>>, vector<4x512x128xf32>
      tpu.vector_store %arg5[%c0_146, %c0_147, %c0_148], %122 {strides = array<i32>} : memref<4x512x128xf32, #tpu.memory_space<vmem>>, vector<4x512x128xf32>,
    } else {
    }
    %c0 = arith.constant 0 : index
    %c0_1 = arith.constant 0 : index
    %c0_2 = arith.constant 0 : index
    %3 = vector.load %arg5[%c0, %c0_1, %c0_2] : memref<4x512x128xf32, #tpu.memory_space<vmem>>, vector<1x512x128xf32>
    %4 = vector.shape_cast %3 : vector<1x512x128xf32> to vector<512x128xf32>
    %c0_3 = arith.constant 0 : index
    %c0_4 = arith.constant 0 : index
    %c0_5 = arith.constant 0 : index
    %5 = vector.load %arg2[%c0_3, %c0_4, %c0_5] : memref<9x512x16xbf16, #tpu.memory_space<vmem>>, vector<1x512x16xbf16>
    %6 = vector.shape_cast %5 : vector<1x512x16xbf16> to vector<512x16xbf16>
    %c0_6 = arith.constant 0 : index
    %c0_7 = arith.constant 0 : index
    %c0_8 = arith.constant 0 : index
    %c0_9 = arith.constant 0 : index
    %7 = vector.load %arg3[%c0_6, %c0_7, %c0_8, %c0_9] : memref<4x4x16x128xbf16, #tpu.memory_space<vmem>>, vector<1x1x16x128xbf16>
    %8 = vector.shape_cast %7 : vector<1x1x16x128xbf16> to vector<16x128xbf16>
    %cst = arith.constant dense<0.000000e+00> : vector<512x128xf32>
    %9 = tpu.matmul %6, %8, %cst {dimension_numbers = #tpu.dot_dimension_numbers<[1], [0], [0], [1], [0, 0, 1, 1], [], []>} : vector<512x16xbf16>, vector<16x128xbf16>, vector<512x128xf32> -> vector<512x128xf32>
    %10 = arith.addf %4, %9 : vector<512x128xf32>
    %c1 = arith.constant 1 : index
    %c0_10 = arith.constant 0 : index
    %c0_11 = arith.constant 0 : index
    %11 = vector.load %arg2[%c1, %c0_10, %c0_11] : memref<9x512x16xbf16, #tpu.memory_space<vmem>>, vector<1x512x16xbf16>
    %12 = vector.shape_cast %11 : vector<1x512x16xbf16> to vector<512x16xbf16>
    %c0_12 = arith.constant 0 : index
    %c1_13 = arith.constant 1 : index
    %c0_14 = arith.constant 0 : index
    %c0_15 = arith.constant 0 : index
    %13 = vector.load %arg3[%c0_12, %c1_13, %c0_14, %c0_15] : memref<4x4x16x128xbf16, #tpu.memory_space<vmem>>, vector<1x1x16x128xbf16>
    %14 = vector.shape_cast %13 : vector<1x1x16x128xbf16> to vector<16x128xbf16>
    %cst_16 = arith.constant dense<0.000000e+00> : vector<512x128xf32>
    %15 = tpu.matmul %12, %14, %cst_16 {dimension_numbers = #tpu.dot_dimension_numbers<[1], [0], [0], [1], [0, 0, 1, 1], [], []>} : vector<512x16xbf16>, vector<16x128xbf16>, vector<512x128xf32> -> vector<512x128xf32>
    %16 = arith.addf %10, %15 : vector<512x128xf32>
    %c3 = arith.constant 3 : index
    %c0_17 = arith.constant 0 : index
    %c0_18 = arith.constant 0 : index
    %17 = vector.load %arg2[%c3, %c0_17, %c0_18] : memref<9x512x16xbf16, #tpu.memory_space<vmem>>, vector<1x512x16xbf16>
    %18 = vector.shape_cast %17 : vector<1x512x16xbf16> to vector<512x16xbf16>
    %c0_19 = arith.constant 0 : index
    %c2 = arith.constant 2 : index
    %c0_20 = arith.constant 0 : index
    %c0_21 = arith.constant 0 : index
    %19 = vector.load %arg3[%c0_19, %c2, %c0_20, %c0_21] : memref<4x4x16x128xbf16, #tpu.memory_space<vmem>>, vector<1x1x16x128xbf16>
    %20 = vector.shape_cast %19 : vector<1x1x16x128xbf16> to vector<16x128xbf16>
    %cst_22 = arith.constant dense<0.000000e+00> : vector<512x128xf32>
    %21 = tpu.matmul %18, %20, %cst_22 {dimension_numbers = #tpu.dot_dimension_numbers<[1], [0], [0], [1], [0, 0, 1, 1], [], []>} : vector<512x16xbf16>, vector<16x128xbf16>, vector<512x128xf32> -> vector<512x128xf32>
    %22 = arith.addf %16, %21 : vector<512x128xf32>
    %c4 = arith.constant 4 : index
    %c0_23 = arith.constant 0 : index
    %c0_24 = arith.constant 0 : index
    %23 = vector.load %arg2[%c4, %c0_23, %c0_24] : memref<9x512x16xbf16, #tpu.memory_space<vmem>>, vector<1x512x16xbf16>
    %24 = vector.shape_cast %23 : vector<1x512x16xbf16> to vector<512x16xbf16>
    %c0_25 = arith.constant 0 : index
    %c3_26 = arith.constant 3 : index
    %c0_27 = arith.constant 0 : index
    %c0_28 = arith.constant 0 : index
    %25 = vector.load %arg3[%c0_25, %c3_26, %c0_27, %c0_28] : memref<4x4x16x128xbf16, #tpu.memory_space<vmem>>, vector<1x1x16x128xbf16>
    %26 = vector.shape_cast %25 : vector<1x1x16x128xbf16> to vector<16x128xbf16>
    %cst_29 = arith.constant dense<0.000000e+00> : vector<512x128xf32>
    %27 = tpu.matmul %24, %26, %cst_29 {dimension_numbers = #tpu.dot_dimension_numbers<[1], [0], [0], [1], [0, 0, 1, 1], [], []>} : vector<512x16xbf16>, vector<16x128xbf16>, vector<512x128xf32> -> vector<512x128xf32>
    %28 = arith.addf %22, %27 : vector<512x128xf32>
    %c0_30 = arith.constant 0 : index
    %c0_31 = arith.constant 0 : index
    %c0_32 = arith.constant 0 : index
    %29 = vector.load %arg5[%c0_30, %c0_31, %c0_32] : memref<4x512x128xf32, #tpu.memory_space<vmem>>, vector<1x512x128xf32>
    %30 = vector.shape_cast %29 : vector<1x512x128xf32> to vector<512x128xf32>
    %31 = vector.shape_cast %28 : vector<512x128xf32> to vector<1x512x128xf32>
    tpu.vector_store %arg5[%c0_30, %c0_31, %c0_32], %31 {strides = array<i32>} : memref<4x512x128xf32, #tpu.memory_space<vmem>>, vector<1x512x128xf32>,
    %c1_33 = arith.constant 1 : index
    %c0_34 = arith.constant 0 : index
    %c0_35 = arith.constant 0 : index
    %32 = vector.load %arg5[%c1_33, %c0_34, %c0_35] : memref<4x512x128xf32, #tpu.memory_space<vmem>>, vector<1x512x128xf32>
    %33 = vector.shape_cast %32 : vector<1x512x128xf32> to vector<512x128xf32>
    %c1_36 = arith.constant 1 : index
    %c0_37 = arith.constant 0 : index
    %c0_38 = arith.constant 0 : index
    %34 = vector.load %arg2[%c1_36, %c0_37, %c0_38] : memref<9x512x16xbf16, #tpu.memory_space<vmem>>, vector<1x512x16xbf16>
    %35 = vector.shape_cast %34 : vector<1x512x16xbf16> to vector<512x16xbf16>
    %c1_39 = arith.constant 1 : index
    %c0_40 = arith.constant 0 : index
    %c0_41 = arith.constant 0 : index
    %c0_42 = arith.constant 0 : index
    %36 = vector.load %arg3[%c1_39, %c0_40, %c0_41, %c0_42] : memref<4x4x16x128xbf16, #tpu.memory_space<vmem>>, vector<1x1x16x128xbf16>
    %37 = vector.shape_cast %36 : vector<1x1x16x128xbf16> to vector<16x128xbf16>
    %cst_43 = arith.constant dense<0.000000e+00> : vector<512x128xf32>
    %38 = tpu.matmul %35, %37, %cst_43 {dimension_numbers = #tpu.dot_dimension_numbers<[1], [0], [0], [1], [0, 0, 1, 1], [], []>} : vector<512x16xbf16>, vector<16x128xbf16>, vector<512x128xf32> -> vector<512x128xf32>
    %39 = arith.addf %33, %38 : vector<512x128xf32>
    %c2_44 = arith.constant 2 : index
    %c0_45 = arith.constant 0 : index
    %c0_46 = arith.constant 0 : index
    %40 = vector.load %arg2[%c2_44, %c0_45, %c0_46] : memref<9x512x16xbf16, #tpu.memory_space<vmem>>, vector<1x512x16xbf16>
    %41 = vector.shape_cast %40 : vector<1x512x16xbf16> to vector<512x16xbf16>
    %c1_47 = arith.constant 1 : index
    %c1_48 = arith.constant 1 : index
    %c0_49 = arith.constant 0 : index
    %c0_50 = arith.constant 0 : index
    %42 = vector.load %arg3[%c1_47, %c1_48, %c0_49, %c0_50] : memref<4x4x16x128xbf16, #tpu.memory_space<vmem>>, vector<1x1x16x128xbf16>
    %43 = vector.shape_cast %42 : vector<1x1x16x128xbf16> to vector<16x128xbf16>
    %cst_51 = arith.constant dense<0.000000e+00> : vector<512x128xf32>
    %44 = tpu.matmul %41, %43, %cst_51 {dimension_numbers = #tpu.dot_dimension_numbers<[1], [0], [0], [1], [0, 0, 1, 1], [], []>} : vector<512x16xbf16>, vector<16x128xbf16>, vector<512x128xf32> -> vector<512x128xf32>
    %45 = arith.addf %39, %44 : vector<512x128xf32>
    %c4_52 = arith.constant 4 : index
    %c0_53 = arith.constant 0 : index
    %c0_54 = arith.constant 0 : index
    %46 = vector.load %arg2[%c4_52, %c0_53, %c0_54] : memref<9x512x16xbf16, #tpu.memory_space<vmem>>, vector<1x512x16xbf16>
    %47 = vector.shape_cast %46 : vector<1x512x16xbf16> to vector<512x16xbf16>
    %c1_55 = arith.constant 1 : index
    %c2_56 = arith.constant 2 : index
    %c0_57 = arith.constant 0 : index
    %c0_58 = arith.constant 0 : index
    %48 = vector.load %arg3[%c1_55, %c2_56, %c0_57, %c0_58] : memref<4x4x16x128xbf16, #tpu.memory_space<vmem>>, vector<1x1x16x128xbf16>
    %49 = vector.shape_cast %48 : vector<1x1x16x128xbf16> to vector<16x128xbf16>
    %cst_59 = arith.constant dense<0.000000e+00> : vector<512x128xf32>
    %50 = tpu.matmul %47, %49, %cst_59 {dimension_numbers = #tpu.dot_dimension_numbers<[1], [0], [0], [1], [0, 0, 1, 1], [], []>} : vector<512x16xbf16>, vector<16x128xbf16>, vector<512x128xf32> -> vector<512x128xf32>
    %51 = arith.addf %45, %50 : vector<512x128xf32>
    %c5 = arith.constant 5 : index
    %c0_60 = arith.constant 0 : index
    %c0_61 = arith.constant 0 : index
    %52 = vector.load %arg2[%c5, %c0_60, %c0_61] : memref<9x512x16xbf16, #tpu.memory_space<vmem>>, vector<1x512x16xbf16>
    %53 = vector.shape_cast %52 : vector<1x512x16xbf16> to vector<512x16xbf16>
    %c1_62 = arith.constant 1 : index
    %c3_63 = arith.constant 3 : index
    %c0_64 = arith.constant 0 : index
    %c0_65 = arith.constant 0 : index
    %54 = vector.load %arg3[%c1_62, %c3_63, %c0_64, %c0_65] : memref<4x4x16x128xbf16, #tpu.memory_space<vmem>>, vector<1x1x16x128xbf16>
    %55 = vector.shape_cast %54 : vector<1x1x16x128xbf16> to vector<16x128xbf16>
    %cst_66 = arith.constant dense<0.000000e+00> : vector<512x128xf32>
    %56 = tpu.matmul %53, %55, %cst_66 {dimension_numbers = #tpu.dot_dimension_numbers<[1], [0], [0], [1], [0, 0, 1, 1], [], []>} : vector<512x16xbf16>, vector<16x128xbf16>, vector<512x128xf32> -> vector<512x128xf32>
    %57 = arith.addf %51, %56 : vector<512x128xf32>
    %c1_67 = arith.constant 1 : index
    %c0_68 = arith.constant 0 : index
    %c0_69 = arith.constant 0 : index
    %58 = vector.load %arg5[%c1_67, %c0_68, %c0_69] : memref<4x512x128xf32, #tpu.memory_space<vmem>>, vector<1x512x128xf32>
    %59 = vector.shape_cast %58 : vector<1x512x128xf32> to vector<512x128xf32>
    %60 = vector.shape_cast %57 : vector<512x128xf32> to vector<1x512x128xf32>
    tpu.vector_store %arg5[%c1_67, %c0_68, %c0_69], %60 {strides = array<i32>} : memref<4x512x128xf32, #tpu.memory_space<vmem>>, vector<1x512x128xf32>,
    %c2_70 = arith.constant 2 : index
    %c0_71 = arith.constant 0 : index
    %c0_72 = arith.constant 0 : index
    %61 = vector.load %arg5[%c2_70, %c0_71, %c0_72] : memref<4x512x128xf32, #tpu.memory_space<vmem>>, vector<1x512x128xf32>
    %62 = vector.shape_cast %61 : vector<1x512x128xf32> to vector<512x128xf32>
    %c3_73 = arith.constant 3 : index
    %c0_74 = arith.constant 0 : index
    %c0_75 = arith.constant 0 : index
    %63 = vector.load %arg2[%c3_73, %c0_74, %c0_75] : memref<9x512x16xbf16, #tpu.memory_space<vmem>>, vector<1x512x16xbf16>
    %64 = vector.shape_cast %63 : vector<1x512x16xbf16> to vector<512x16xbf16>
    %c2_76 = arith.constant 2 : index
    %c0_77 = arith.constant 0 : index
    %c0_78 = arith.constant 0 : index
    %c0_79 = arith.constant 0 : index
    %65 = vector.load %arg3[%c2_76, %c0_77, %c0_78, %c0_79] : memref<4x4x16x128xbf16, #tpu.memory_space<vmem>>, vector<1x1x16x128xbf16>
    %66 = vector.shape_cast %65 : vector<1x1x16x128xbf16> to vector<16x128xbf16>
    %cst_80 = arith.constant dense<0.000000e+00> : vector<512x128xf32>
    %67 = tpu.matmul %64, %66, %cst_80 {dimension_numbers = #tpu.dot_dimension_numbers<[1], [0], [0], [1], [0, 0, 1, 1], [], []>} : vector<512x16xbf16>, vector<16x128xbf16>, vector<512x128xf32> -> vector<512x128xf32>
    %68 = arith.addf %62, %67 : vector<512x128xf32>
    %c4_81 = arith.constant 4 : index
    %c0_82 = arith.constant 0 : index
    %c0_83 = arith.constant 0 : index
    %69 = vector.load %arg2[%c4_81, %c0_82, %c0_83] : memref<9x512x16xbf16, #tpu.memory_space<vmem>>, vector<1x512x16xbf16>
    %70 = vector.shape_cast %69 : vector<1x512x16xbf16> to vector<512x16xbf16>
    %c2_84 = arith.constant 2 : index
    %c1_85 = arith.constant 1 : index
    %c0_86 = arith.constant 0 : index
    %c0_87 = arith.constant 0 : index
    %71 = vector.load %arg3[%c2_84, %c1_85, %c0_86, %c0_87] : memref<4x4x16x128xbf16, #tpu.memory_space<vmem>>, vector<1x1x16x128xbf16>
    %72 = vector.shape_cast %71 : vector<1x1x16x128xbf16> to vector<16x128xbf16>
    %cst_88 = arith.constant dense<0.000000e+00> : vector<512x128xf32>
    %73 = tpu.matmul %70, %72, %cst_88 {dimension_numbers = #tpu.dot_dimension_numbers<[1], [0], [0], [1], [0, 0, 1, 1], [], []>} : vector<512x16xbf16>, vector<16x128xbf16>, vector<512x128xf32> -> vector<512x128xf32>
    %74 = arith.addf %68, %73 : vector<512x128xf32>
    %c6 = arith.constant 6 : index
    %c0_89 = arith.constant 0 : index
    %c0_90 = arith.constant 0 : index
    %75 = vector.load %arg2[%c6, %c0_89, %c0_90] : memref<9x512x16xbf16, #tpu.memory_space<vmem>>, vector<1x512x16xbf16>
    %76 = vector.shape_cast %75 : vector<1x512x16xbf16> to vector<512x16xbf16>
    %c2_91 = arith.constant 2 : index
    %c2_92 = arith.constant 2 : index
    %c0_93 = arith.constant 0 : index
    %c0_94 = arith.constant 0 : index
    %77 = vector.load %arg3[%c2_91, %c2_92, %c0_93, %c0_94] : memref<4x4x16x128xbf16, #tpu.memory_space<vmem>>, vector<1x1x16x128xbf16>
    %78 = vector.shape_cast %77 : vector<1x1x16x128xbf16> to vector<16x128xbf16>
    %cst_95 = arith.constant dense<0.000000e+00> : vector<512x128xf32>
    %79 = tpu.matmul %76, %78, %cst_95 {dimension_numbers = #tpu.dot_dimension_numbers<[1], [0], [0], [1], [0, 0, 1, 1], [], []>} : vector<512x16xbf16>, vector<16x128xbf16>, vector<512x128xf32> -> vector<512x128xf32>
    %80 = arith.addf %74, %79 : vector<512x128xf32>
    %c7 = arith.constant 7 : index
    %c0_96 = arith.constant 0 : index
    %c0_97 = arith.constant 0 : index
    %81 = vector.load %arg2[%c7, %c0_96, %c0_97] : memref<9x512x16xbf16, #tpu.memory_space<vmem>>, vector<1x512x16xbf16>
    %82 = vector.shape_cast %81 : vector<1x512x16xbf16> to vector<512x16xbf16>
    %c2_98 = arith.constant 2 : index
    %c3_99 = arith.constant 3 : index
    %c0_100 = arith.constant 0 : index
    %c0_101 = arith.constant 0 : index
    %83 = vector.load %arg3[%c2_98, %c3_99, %c0_100, %c0_101] : memref<4x4x16x128xbf16, #tpu.memory_space<vmem>>, vector<1x1x16x128xbf16>
    %84 = vector.shape_cast %83 : vector<1x1x16x128xbf16> to vector<16x128xbf16>
    %cst_102 = arith.constant dense<0.000000e+00> : vector<512x128xf32>
    %85 = tpu.matmul %82, %84, %cst_102 {dimension_numbers = #tpu.dot_dimension_numbers<[1], [0], [0], [1], [0, 0, 1, 1], [], []>} : vector<512x16xbf16>, vector<16x128xbf16>, vector<512x128xf32> -> vector<512x128xf32>
    %86 = arith.addf %80, %85 : vector<512x128xf32>
    %c2_103 = arith.constant 2 : index
    %c0_104 = arith.constant 0 : index
    %c0_105 = arith.constant 0 : index
    %87 = vector.load %arg5[%c2_103, %c0_104, %c0_105] : memref<4x512x128xf32, #tpu.memory_space<vmem>>, vector<1x512x128xf32>
    %88 = vector.shape_cast %87 : vector<1x512x128xf32> to vector<512x128xf32>
    %89 = vector.shape_cast %86 : vector<512x128xf32> to vector<1x512x128xf32>
    tpu.vector_store %arg5[%c2_103, %c0_104, %c0_105], %89 {strides = array<i32>} : memref<4x512x128xf32, #tpu.memory_space<vmem>>, vector<1x512x128xf32>,
    %c3_106 = arith.constant 3 : index
    %c0_107 = arith.constant 0 : index
    %c0_108 = arith.constant 0 : index
    %90 = vector.load %arg5[%c3_106, %c0_107, %c0_108] : memref<4x512x128xf32, #tpu.memory_space<vmem>>, vector<1x512x128xf32>
    %91 = vector.shape_cast %90 : vector<1x512x128xf32> to vector<512x128xf32>
    %c4_109 = arith.constant 4 : index
    %c0_110 = arith.constant 0 : index
    %c0_111 = arith.constant 0 : index
    %92 = vector.load %arg2[%c4_109, %c0_110, %c0_111] : memref<9x512x16xbf16, #tpu.memory_space<vmem>>, vector<1x512x16xbf16>
    %93 = vector.shape_cast %92 : vector<1x512x16xbf16> to vector<512x16xbf16>
    %c3_112 = arith.constant 3 : index
    %c0_113 = arith.constant 0 : index
    %c0_114 = arith.constant 0 : index
    %c0_115 = arith.constant 0 : index
    %94 = vector.load %arg3[%c3_112, %c0_113, %c0_114, %c0_115] : memref<4x4x16x128xbf16, #tpu.memory_space<vmem>>, vector<1x1x16x128xbf16>
    %95 = vector.shape_cast %94 : vector<1x1x16x128xbf16> to vector<16x128xbf16>
    %cst_116 = arith.constant dense<0.000000e+00> : vector<512x128xf32>
    %96 = tpu.matmul %93, %95, %cst_116 {dimension_numbers = #tpu.dot_dimension_numbers<[1], [0], [0], [1], [0, 0, 1, 1], [], []>} : vector<512x16xbf16>, vector<16x128xbf16>, vector<512x128xf32> -> vector<512x128xf32>
    %97 = arith.addf %91, %96 : vector<512x128xf32>
    %c5_117 = arith.constant 5 : index
    %c0_118 = arith.constant 0 : index
    %c0_119 = arith.constant 0 : index
    %98 = vector.load %arg2[%c5_117, %c0_118, %c0_119] : memref<9x512x16xbf16, #tpu.memory_space<vmem>>, vector<1x512x16xbf16>
    %99 = vector.shape_cast %98 : vector<1x512x16xbf16> to vector<512x16xbf16>
    %c3_120 = arith.constant 3 : index
    %c1_121 = arith.constant 1 : index
    %c0_122 = arith.constant 0 : index
    %c0_123 = arith.constant 0 : index
    %100 = vector.load %arg3[%c3_120, %c1_121, %c0_122, %c0_123] : memref<4x4x16x128xbf16, #tpu.memory_space<vmem>>, vector<1x1x16x128xbf16>
    %101 = vector.shape_cast %100 : vector<1x1x16x128xbf16> to vector<16x128xbf16>
    %cst_124 = arith.constant dense<0.000000e+00> : vector<512x128xf32>
    %102 = tpu.matmul %99, %101, %cst_124 {dimension_numbers = #tpu.dot_dimension_numbers<[1], [0], [0], [1], [0, 0, 1, 1], [], []>} : vector<512x16xbf16>, vector<16x128xbf16>, vector<512x128xf32> -> vector<512x128xf32>
    %103 = arith.addf %97, %102 : vector<512x128xf32>
    %c7_125 = arith.constant 7 : index
    %c0_126 = arith.constant 0 : index
    %c0_127 = arith.constant 0 : index
    %104 = vector.load %arg2[%c7_125, %c0_126, %c0_127] : memref<9x512x16xbf16, #tpu.memory_space<vmem>>, vector<1x512x16xbf16>
    %105 = vector.shape_cast %104 : vector<1x512x16xbf16> to vector<512x16xbf16>
    %c3_128 = arith.constant 3 : index
    %c2_129 = arith.constant 2 : index
    %c0_130 = arith.constant 0 : index
    %c0_131 = arith.constant 0 : index
    %106 = vector.load %arg3[%c3_128, %c2_129, %c0_130, %c0_131] : memref<4x4x16x128xbf16, #tpu.memory_space<vmem>>, vector<1x1x16x128xbf16>
    %107 = vector.shape_cast %106 : vector<1x1x16x128xbf16> to vector<16x128xbf16>
    %cst_132 = arith.constant dense<0.000000e+00> : vector<512x128xf32>
    %108 = tpu.matmul %105, %107, %cst_132 {dimension_numbers = #tpu.dot_dimension_numbers<[1], [0], [0], [1], [0, 0, 1, 1], [], []>} : vector<512x16xbf16>, vector<16x128xbf16>, vector<512x128xf32> -> vector<512x128xf32>
    %109 = arith.addf %103, %108 : vector<512x128xf32>
    %c8 = arith.constant 8 : index
    %c0_133 = arith.constant 0 : index
    %c0_134 = arith.constant 0 : index
    %110 = vector.load %arg2[%c8, %c0_133, %c0_134] : memref<9x512x16xbf16, #tpu.memory_space<vmem>>, vector<1x512x16xbf16>
    %111 = vector.shape_cast %110 : vector<1x512x16xbf16> to vector<512x16xbf16>
    %c3_135 = arith.constant 3 : index
    %c3_136 = arith.constant 3 : index
    %c0_137 = arith.constant 0 : index
    %c0_138 = arith.constant 0 : index
    %112 = vector.load %arg3[%c3_135, %c3_136, %c0_137, %c0_138] : memref<4x4x16x128xbf16, #tpu.memory_space<vmem>>, vector<1x1x16x128xbf16>
    %113 = vector.shape_cast %112 : vector<1x1x16x128xbf16> to vector<16x128xbf16>
    %cst_139 = arith.constant dense<0.000000e+00> : vector<512x128xf32>
    %114 = tpu.matmul %111, %113, %cst_139 {dimension_numbers = #tpu.dot_dimension_numbers<[1], [0], [0], [1], [0, 0, 1, 1], [], []>} : vector<512x16xbf16>, vector<16x128xbf16>, vector<512x128xf32> -> vector<512x128xf32>
    %115 = arith.addf %109, %114 : vector<512x128xf32>
    %c3_140 = arith.constant 3 : index
    %c0_141 = arith.constant 0 : index
    %c0_142 = arith.constant 0 : index
    %116 = vector.load %arg5[%c3_140, %c0_141, %c0_142] : memref<4x512x128xf32, #tpu.memory_space<vmem>>, vector<1x512x128xf32>
    %117 = vector.shape_cast %116 : vector<1x512x128xf32> to vector<512x128xf32>
    %118 = vector.shape_cast %115 : vector<512x128xf32> to vector<1x512x128xf32>
    tpu.vector_store %arg5[%c3_140, %c0_141, %c0_142], %118 {strides = array<i32>} : memref<4x512x128xf32, #tpu.memory_space<vmem>>, vector<1x512x128xf32>,
    %c0_i32_143 = arith.constant 0 : i32
    %119 = arith.cmpi eq, %arg1, %c0_i32_143 : i32
    %120 = arith.extui %119 : i1 to i32
    %c0_i32_144 = arith.constant 0 : i32
    %121 = arith.cmpi ne, %120, %c0_i32_144 : i32
    scf.if %121 {
      %c0_145 = arith.constant 0 : index
      %c0_146 = arith.constant 0 : index
      %c0_147 = arith.constant 0 : index
      %122 = vector.load %arg5[%c0_145, %c0_146, %c0_147] : memref<4x512x128xf32, #tpu.memory_space<vmem>>, vector<1x512x128xf32>
      %123 = vector.shape_cast %122 : vector<1x512x128xf32> to vector<512x128xf32>
      %124 = tpu.transpose %123, [1, 0] : vector<512x128xf32> -> vector<128x512xf32>
      %125 = vector.extract_strided_slice %124 {offsets = [0, 0], sizes = [3, 512], strides = [1, 1]} : vector<128x512xf32> to vector<3x512xf32>
      %126 = math.tanh %125 : vector<3x512xf32>
      %127 = arith.truncf %126 : vector<3x512xf32> to vector<3x512xbf16>
      %c0_148 = arith.constant 0 : index
      %c0_149 = arith.constant 0 : index
      %c0_150 = arith.constant 0 : index
      %128 = vector.load %arg4[%c0_148, %c0_149, %c0_150] : memref<4x3x512xbf16, #tpu.memory_space<vmem>>, vector<1x3x512xbf16>
      %129 = vector.shape_cast %128 : vector<1x3x512xbf16> to vector<3x512xbf16>
      %130 = vector.shape_cast %127 : vector<3x512xbf16> to vector<1x3x512xbf16>
      tpu.vector_store %arg4[%c0_148, %c0_149, %c0_150], %130 {strides = array<i32>} : memref<4x3x512xbf16, #tpu.memory_space<vmem>>, vector<1x3x512xbf16>,
      %c1_151 = arith.constant 1 : index
      %c0_152 = arith.constant 0 : index
      %c0_153 = arith.constant 0 : index
      %131 = vector.load %arg5[%c1_151, %c0_152, %c0_153] : memref<4x512x128xf32, #tpu.memory_space<vmem>>, vector<1x512x128xf32>
      %132 = vector.shape_cast %131 : vector<1x512x128xf32> to vector<512x128xf32>
      %133 = tpu.transpose %132, [1, 0] : vector<512x128xf32> -> vector<128x512xf32>
      %134 = vector.extract_strided_slice %133 {offsets = [0, 0], sizes = [3, 512], strides = [1, 1]} : vector<128x512xf32> to vector<3x512xf32>
      %135 = math.tanh %134 : vector<3x512xf32>
      %136 = arith.truncf %135 : vector<3x512xf32> to vector<3x512xbf16>
      %c1_154 = arith.constant 1 : index
      %c0_155 = arith.constant 0 : index
      %c0_156 = arith.constant 0 : index
      %137 = vector.load %arg4[%c1_154, %c0_155, %c0_156] : memref<4x3x512xbf16, #tpu.memory_space<vmem>>, vector<1x3x512xbf16>
      %138 = vector.shape_cast %137 : vector<1x3x512xbf16> to vector<3x512xbf16>
      %139 = vector.shape_cast %136 : vector<3x512xbf16> to vector<1x3x512xbf16>
      tpu.vector_store %arg4[%c1_154, %c0_155, %c0_156], %139 {strides = array<i32>} : memref<4x3x512xbf16, #tpu.memory_space<vmem>>, vector<1x3x512xbf16>,
      %c2_157 = arith.constant 2 : index
      %c0_158 = arith.constant 0 : index
      %c0_159 = arith.constant 0 : index
      %140 = vector.load %arg5[%c2_157, %c0_158, %c0_159] : memref<4x512x128xf32, #tpu.memory_space<vmem>>, vector<1x512x128xf32>
      %141 = vector.shape_cast %140 : vector<1x512x128xf32> to vector<512x128xf32>
      %142 = tpu.transpose %141, [1, 0] : vector<512x128xf32> -> vector<128x512xf32>
      %143 = vector.extract_strided_slice %142 {offsets = [0, 0], sizes = [3, 512], strides = [1, 1]} : vector<128x512xf32> to vector<3x512xf32>
      %144 = math.tanh %143 : vector<3x512xf32>
      %145 = arith.truncf %144 : vector<3x512xf32> to vector<3x512xbf16>
      %c2_160 = arith.constant 2 : index
      %c0_161 = arith.constant 0 : index
      %c0_162 = arith.constant 0 : index
      %146 = vector.load %arg4[%c2_160, %c0_161, %c0_162] : memref<4x3x512xbf16, #tpu.memory_space<vmem>>, vector<1x3x512xbf16>
      %147 = vector.shape_cast %146 : vector<1x3x512xbf16> to vector<3x512xbf16>
      %148 = vector.shape_cast %145 : vector<3x512xbf16> to vector<1x3x512xbf16>
      tpu.vector_store %arg4[%c2_160, %c0_161, %c0_162], %148 {strides = array<i32>} : memref<4x3x512xbf16, #tpu.memory_space<vmem>>, vector<1x3x512xbf16>,
      %c3_163 = arith.constant 3 : index
      %c0_164 = arith.constant 0 : index
      %c0_165 = arith.constant 0 : index
      %149 = vector.load %arg5[%c3_163, %c0_164, %c0_165] : memref<4x512x128xf32, #tpu.memory_space<vmem>>, vector<1x512x128xf32>
      %150 = vector.shape_cast %149 : vector<1x512x128xf32> to vector<512x128xf32>
      %151 = tpu.transpose %150, [1, 0] : vector<512x128xf32> -> vector<128x512xf32>
      %152 = vector.extract_strided_slice %151 {offsets = [0, 0], sizes = [3, 512], strides = [1, 1]} : vector<128x512xf32> to vector<3x512xf32>
      %153 = math.tanh %152 : vector<3x512xf32>
      %154 = arith.truncf %153 : vector<3x512xf32> to vector<3x512xbf16>
      %c3_166 = arith.constant 3 : index
      %c0_167 = arith.constant 0 : index
      %c0_168 = arith.constant 0 : index
      %155 = vector.load %arg4[%c3_166, %c0_167, %c0_168] : memref<4x3x512xbf16, #tpu.memory_space<vmem>>, vector<1x3x512xbf16>
      %156 = vector.shape_cast %155 : vector<1x3x512xbf16> to vector<3x512xbf16>
      %157 = vector.shape_cast %154 : vector<3x512xbf16> to vector<1x3x512xbf16>
      tpu.vector_store %arg4[%c3_166, %c0_167, %c0_168], %157 {strides = array<i32>} : memref<4x3x512xbf16, #tpu.memory_space<vmem>>, vector<1x3x512xbf16>,
    } else {
    }
    return
  }
  func.func @transform_0(%arg0: i32, %arg1: i32) -> (i32, i32, i32) {
    %c0_i32 = arith.constant 0 : i32
    %c0_i32_0 = arith.constant 0 : i32
    return %c0_i32, %arg0, %arg1 : i32, i32, i32
  }
  func.func @transform_1(%arg0: i32, %arg1: i32) -> (i32, i32, i32, i32) {
    %c0_i32 = arith.constant 0 : i32
    %c0_i32_0 = arith.constant 0 : i32
    %c0_i32_1 = arith.constant 0 : i32
    %c0_i32_2 = arith.constant 0 : i32
    return %c0_i32, %c0_i32_0, %arg1, %c0_i32_1 : i32, i32, i32, i32
  }
  func.func @transform_2(%arg0: i32, %arg1: i32) -> (i32, i32, i32) {
    %c0_i32 = arith.constant 0 : i32
    %c0_i32_0 = arith.constant 0 : i32
    %c0_i32_1 = arith.constant 0 : i32
    return %c0_i32, %c0_i32_0, %arg0 : i32, i32, i32
  }
}

</mosaic_0001>

<bundles_post_ra>
// kernel: generator_forward.4
= control target key start
LH: loop header
LB: loop body
LE: loop exit
PB: predicated region body
PF: predicated region fallthrough
CT: control target
= control target key end

     0   :  { %7 = vsyncpa [#allocation3], 0  ;;  %s391_s9 = smov [#allocation2]   ;;  %s436_s0 = inlined_call_operand.vmem [shape: bf16[2,32], index: 0, kind: input, shape index: {}]   ;;  %s437_s1 = inlined_call_operand.hbm [shape: bf16[32,1024], index: 1, kind: input, shape index: {}]   ;;  %s438_s2 = inlined_call_operand.vmem [shape: f32[2,1024], index: 2, kind: output, shape index: {}]  }
   0x1   :  { %s15_s10 = sshll.u32 %s391_s9, 4  ;;  %s367_s13 = scalar_lea.hbm %s437_s1, 2048  ;;  %s16_s10 = int_to_ptr.vmem [resolvable:$true] %s15_s10 }
   0x2   :  { %p368_p0 = scmp.ne.s32.totalorder %s437_s1, %s367_s13  ;;  %p371_p1 = scmp.lt.u32.totalorder %s367_s13, %s437_s1 }
   0x4   :  { %p373_p2 = pnand %p371_p1, %p368_p0 }
   0x6   :  { %376 = shalt.err (!%p373_p2)
}
   0x7   :  { %s377_s18 = scalar_lea.vmem %s16_s10, 2048  ;;  %p382_p4 = scmp.lt.s32.totalorder %s16_s10, %s16_s10 }
   0x8   :  { %p378_p3 = scmp.ne.s32.totalorder %s16_s10, %s377_s18  ;;  %p383_p5 = scmp.lt.s32.totalorder %s377_s18, %s377_s18 }
   0xa   :  { %p384_p6 = por %p383_p5, %p382_p4 }
   0xc   :  { %p385_p7 = pnand %p384_p6, %p378_p3 }
   0xe   :  { %388 = shalt.err (!%p385_p7)
}
   0xf   :  { %s392_s19 = smov 512   ;;  %s393_s20 = smov 32  }
  0x10   :  { %21 = dma.hbm_to_vmem [thread:$0]  %s437_s1, 2048, %s16_s10, [#allocation3], %s392_s19, %s392_s19, %s393_s20  }
  0x11   :  { %389 = dma.done.wait [#allocation3], 2048  }
  0x12   :  { %390 = vsyncadd [#allocation3], 4294965248  ;;  %v394_v0 = vmov 0   ;;  %v27_v1 = vld [vmem:[#allocation2] sm:$0xff]  ;;  %v28_v3 = vld [vmem:[#allocation2 + $0x8] sm:$0xff]  ;;  %vm123_vm0 = vcmask 261120   ;;  %v304_v36 = vlaneseq }
  0x13   :  { %159 = vmatprep.mubr.bf16.mxu0 %v394_v0  ;;  %200 = vmatprep.mubr.bf16.mxu1 %v394_v0  ;;  %v31_v2 = vld [vmem:[#allocation2 + $0x20] sm:$0xff]  ;;  %v32_v5 = vld [vmem:[#allocation2 + $0x28] sm:$0xff]  ;;  %v29_v15 = vld [vmem:[#allocation2 + $0x10] sm:$0xff]  ;;  %v395_v34 = vmov 1983009808  }
  0x14   :  { %v343_v4 = vcombine.high %v27_v1, %v31_v2  ;;  %v342_v6 = vcombine.low %v27_v1, %v31_v2  ;;  %v35_v7 = vld [vmem:[#allocation2 + $0x40] sm:$0xff]  ;;  %v345_v9 = vcombine.high %v28_v3, %v32_v5  ;;  %v344_v10 = vcombine.low %v28_v3, %v32_v5  ;;  %v36_v12 = vld [vmem:[#allocation2 + $0x48] sm:$0xff]  ;;  %v33_v16 = vld [vmem:[#allocation2 + $0x30] sm:$0xff] }
  0x15   :  { %v39_v8 = vld [vmem:[#allocation2 + $0x60] sm:$0xff]  ;;  %v40_v13 = vld [vmem:[#allocation2 + $0x68] sm:$0xff]  ;;  %v30_v17 = vld [vmem:[#allocation2 + $0x18] sm:$0xff]  ;;  %v347_v21 = vcombine.high %v29_v15, %v33_v16  ;;  %v346_v28 = vcombine.low %v29_v15, %v33_v16  ;;  %v302_v35 = vunpack.c.l.s4 %v395_v34  ;;  %v305_v38 = vshrl.u32 %v304_v36, 7 }
  0x16   :  { %v351_v11 = vcombine.high %v35_v7, %v39_v8  ;;  %127 = vmatprep.subr.bf16.mxu0 %v343_v4  ;;  %v353_v14 = vcombine.high %v36_v12, %v40_v13  ;;  %168 = vmatprep.subr.bf16.mxu1 %v345_v9  ;;  %v350_v18 = vcombine.low %v35_v7, %v39_v8  ;;  %v34_v19 = vld [vmem:[#allocation2 + $0x38] sm:$0xff]  ;;  %v37_v23 = vld [vmem:[#allocation2 + $0x50] sm:$0xff]  ;;  %v26_v27 = vld [vmem:[%s436_s0] sm:$0x1] }
  0x17   :  { %128 = vmatpush1.bf16.msra.mxu0 %v342_v6  ;;  %169 = vmatpush1.bf16.msra.mxu1 %v344_v10  ;;  %v352_v20 = vcombine.low %v36_v12, %v40_v13  ;;  %v349_v22 = vcombine.high %v30_v17, %v34_v19  ;;  %v41_v24 = vld [vmem:[#allocation2 + $0x70] sm:$0xff]  ;;  %v38_v25 = vld [vmem:[#allocation2 + $0x58] sm:$0xff]  ;;  %v348_v29 = vcombine.low %v30_v17, %v34_v19  ;;  %v303_v37 = vunpack.c.0.s8 %v302_v35 }
  0x18   :  { %129 = vmatprep.subr.bf16.mxu0 %v351_v11  ;;  %170 = vmatprep.subr.bf16.mxu1 %v353_v14  ;;  %v42_v26 = vld [vmem:[#allocation2 + $0x78] sm:$0xff]  ;;  %v355_v30 = vcombine.high %v37_v23, %v41_v24  ;;  %v354_v32 = vcombine.low %v37_v23, %v41_v24 }
  0x19   :  { %v357_v31 = vcombine.high %v38_v25, %v42_v26  ;;  %v356_v33 = vcombine.low %v38_v25, %v42_v26  ;;  %v306_v40 = vsub.s32 %v303_v37, %v305_v38 }
  0x1b   :  { %130 = vmatpush1.bf16.msra.mxu0 %v350_v18  ;;  %171 = vmatpush1.bf16.msra.mxu1 %v352_v20 }
  0x1c   :  { %209 = vmatprep.subr.bf16.mxu0 %v347_v21  ;;  %250 = vmatprep.subr.bf16.mxu1 %v349_v22 }
  0x1e   :  { %358 = vmatmul.mubr.msk.bf16.vlgmr.msra.gmra.mrb[0].mxu0 %vm123_vm0, %v26_v27  ;;  %359 = vmatmul.mubr.msk.bf16.vlgmr.msra.gmra.mrb[0].mxu1 %vm123_vm0, %v26_v27 }
  0x1f   :  { %210 = vmatpush1.bf16.msra.mxu0 %v346_v28  ;;  %251 = vmatpush1.bf16.msra.mxu1 %v348_v29 }
  0x20   :  { %211 = vmatprep.subr.bf16.mxu0 %v355_v30  ;;  %252 = vmatprep.subr.bf16.mxu1 %v357_v31 }
  0x21   :  { %241 = vmatprep.mubr.bf16.mxu0 %v394_v0  ;;  %282 = vmatprep.mubr.bf16.mxu1 %v394_v0 }
  0x23   :  { %212 = vmatpush1.bf16.msra.mxu0 %v354_v32  ;;  %253 = vmatpush1.bf16.msra.mxu1 %v356_v33 }
  0x26   :  { %360 = vmatmul.mubr.msk.bf16.vlgmr.msra.gmra.mrb[4].mxu0 %vm123_vm0, %v26_v27  ;;  %361 = vmatmul.mubr.msk.bf16.vlgmr.msra.gmra.mrb[4].mxu1 %vm123_vm0, %v26_v27 }
  0xf1   :  { %v161_v39 = vpop.f32.mrb[0].mxu0  ;;  %v202_v41 = vpop.f32.mrb[0].mxu1 }
  0xf2   :  { %v163_v42 = vpop.f32.mrb[1].mxu0  ;;  %v204_v44 = vpop.f32.mrb[1].mxu1 }
  0xf3   :  { %v299_v43 = vcombine.low %v161_v39, %v163_v42  ;;  %v165_v45 = vpop.f32.mrb[2].mxu0  ;;  %v300_v46 = vcombine.low %v202_v41, %v204_v44  ;;  %v206_v47 = vpop.f32.mrb[2].mxu1 }
  0xf4   :  { %v166_v48 = vpop.f32.mrb[3].mxu0  ;;  %v207_v50 = vpop.f32.mrb[3].mxu1 }
  0xf5   :  { %v307_v49 = vrot.slane %v299_v43, %v306_v40  ;;  %v314_v51 = vrot.slane %v300_v46, %v306_v40 }
  0xf7   :  { %v315_v52 = vcombine.low %v307_v49, %v314_v51 }
  0xf9   :  { %v243_v53 = vpop.f32.mrb[4].mxu0  ;;  %335 = vst [vmem:[%s438_s2] sm:$0xff] %v315_v52  ;;  %v284_v54 = vpop.f32.mrb[4].mxu1 }
  0xfa   :  { %v245_v55 = vpop.f32.mrb[5].mxu0  ;;  %v286_v57 = vpop.f32.mrb[5].mxu1 }
  0xfb   :  { %v316_v56 = vcombine.low %v243_v53, %v245_v55  ;;  %v247_v58 = vpop.f32.mrb[6].mxu0  ;;  %v317_v59 = vcombine.low %v284_v54, %v286_v57  ;;  %v288_v60 = vpop.f32.mrb[6].mxu1 }
  0xfc   :  { %v248_v61 = vpop.f32.mrb[7].mxu0  ;;  %v289_v63 = vpop.f32.mrb[7].mxu1 }
  0xfd   :  { %v324_v62 = vrot.slane %v316_v56, %v306_v40  ;;  %v331_v0 = vrot.slane %v317_v59, %v306_v40 }
  0xff   :  { %v332_v1 = vcombine.low %v324_v62, %v331_v0 }
 0x101   :  { %336 = vst [vmem:[%s438_s2 + $0x8] sm:$0xff] %v332_v1 }
 0x102   :  { %341 = vsyncpa [#allocation3], 1 }

// kernel: generator_forward.5
= control target key start
LH: loop header
LB: loop body
LE: loop exit
PB: predicated region body
PF: predicated region fallthrough
CT: control target
= control target key end

     0   :  { %vm19_vm0 = vcmask 261120   ;;  %v2823_v6 = vmov 0.0   ;;  %vm86_vm1 = vcmask 523264   ;;  %vm1799_vm2 = vcmask 257024   ;;  %s3309_s1 = inlined_call_operand.vmem [shape: bf16[4,4,64,32], index: 1, kind: input, shape index: {}]   ;;  %s3310_s0 = inlined_call_operand.vmem [shape: bf16[9,32,64], index: 0, kind: input, shape index: {}]   ;;  %s3311_s2 = inlined_call_operand.vmem [shape: bf16[4,32,32], index: 2, kind: output, shape index: {0}]   ;;  %s3312_s3 = inlined_call_operand.vmem [shape: f32[1,1,32], index: 3, kind: output, shape index: {1}]   ;;  %s3313_s4 = inlined_call_operand.vmem [shape: f32[1,1,32], index: 4, kind: output, shape index: {2}]  }
   0x1   :  { %v2727_v0 = vld [vmem:[%s3309_s1] sm:$0xff]   ;;  %v2729_v2 = vld [vmem:[%s3309_s1 + $0x8] sm:$0xff]   ;;  %v2731_v4 = vld [vmem:[%s3309_s1 + $0x10] sm:$0xff]   ;;  %22 = vst.msk [vmem:[#allocation2 + $0x10] sm:$0xff] %vm19_vm0, %v2823_v6  ;;  %vm2007_vm3 = vcmask 253952  }
   0x2   :  { %v2728_v1 = vld [vmem:[%s3309_s1 + $0x80] sm:$0xff]   ;;  %2470 = vmatprep.subr.bf16.mxu0 %v2727_v0  ;;  %v2730_v3 = vld [vmem:[%s3309_s1 + $0x88] sm:$0xff]   ;;  %v2732_v5 = vld [vmem:[%s3309_s1 + $0x90] sm:$0xff]   ;;  %20 = vst.msk [vmem:[#allocation2] sm:$0xff] %vm19_vm0, %v2823_v6 }
   0x3   :  { %2518 = vmatprep.subr.bf16.mxu1 %v2728_v1  ;;  %2471 = vmatpush3.bf16.msra.mxu0 %v2727_v0  ;;  %21 = vst.msk [vmem:[#allocation2 + $0x8] sm:$0xff] %vm19_vm0, %v2823_v6  ;;  %23 = vst.msk [vmem:[#allocation2 + $0x18] sm:$0xff] %vm19_vm0, %v2823_v6  ;;  %v2733_v7 = vld [vmem:[%s3309_s1 + $0x18] sm:$0xff]   ;;  %v2735_v8 = vld [vmem:[%s3310_s0] sm:$0xff]  }
   0x4   :  { %2519 = vmatpush3.bf16.msra.mxu1 %v2728_v1  ;;  %2472 = vmatprep.subr.bf16.mxu0 %v2729_v2  ;;  %24 = vst.msk [vmem:[#allocation2 + $0x20] sm:$0xff] %vm19_vm0, %v2823_v6  ;;  %25 = vst.msk [vmem:[#allocation2 + $0x28] sm:$0xff] %vm19_vm0, %v2823_v6  ;;  %v2734_v9 = vld [vmem:[%s3309_s1 + $0x98] sm:$0xff]   ;;  %v2737_v10 = vld [vmem:[%s3310_s0 + $0x10] sm:$0xff]  }
   0x5   :  { %2520 = vmatprep.subr.bf16.mxu1 %v2730_v3  ;;  %26 = vst.msk [vmem:[#allocation2 + $0x30] sm:$0xff] %vm19_vm0, %v2823_v6  ;;  %27 = vst.msk [vmem:[#allocation2 + $0x38] sm:$0xff] %vm19_vm0, %v2823_v6  ;;  %2478 = vmatprep.mubr.msk.bf16.mxu0 %vm86_vm1, %v2735_v8  ;;  %v2736_v11 = vld [vmem:[%s3309_s1 + $0x20] sm:$0xff]   ;;  %v2739_v13 = vld [vmem:[%s3310_s0 + $0x8] sm:$0xff]  }
   0x6   :  { %28 = vst.msk [vmem:[#allocation2 + $0x40] sm:$0xff] %vm19_vm0, %v2823_v6  ;;  %29 = vst.msk [vmem:[#allocation2 + $0x48] sm:$0xff] %vm19_vm0, %v2823_v6  ;;  %2526 = vmatprep.mubr.msk.bf16.mxu1 %vm86_vm1, %v2737_v10  ;;  %v2738_v12 = vld [vmem:[%s3309_s1 + $0xa0] sm:$0xff]   ;;  %v2740_v14 = vld [vmem:[%s3310_s0 + $0x18] sm:$0xff]  }
   0x7   :  { %30 = vst.msk [vmem:[#allocation2 + $0x50] sm:$0xff] %vm19_vm0, %v2823_v6  ;;  %31 = vst.msk [vmem:[#allocation2 + $0x58] sm:$0xff] %vm19_vm0, %v2823_v6  ;;  %2473 = vmatpush3.bf16.msra.mxu0 %v2729_v2  ;;  %v2741_v15 = vld [vmem:[%s3309_s1 + $0x28] sm:$0xff]   ;;  %v2743_v17 = vld [vmem:[%s3309_s1 + $0x30] sm:$0xff]  }
   0x8   :  { %32 = vst.msk [vmem:[#allocation2 + $0x60] sm:$0xff] %vm19_vm0, %v2823_v6  ;;  %33 = vst.msk [vmem:[#allocation2 + $0x68] sm:$0xff] %vm19_vm0, %v2823_v6  ;;  %2521 = vmatpush3.bf16.msra.mxu1 %v2730_v3  ;;  %2474 = vmatprep.subr.bf16.mxu0 %v2731_v4  ;;  %v2742_v16 = vld [vmem:[%s3309_s1 + $0xa8] sm:$0xff]   ;;  %v2747_v18 = vld [vmem:[%s3310_s0 + $0x10] sm:$0xff]  }
   0x9   :  { %34 = vst.msk [vmem:[#allocation2 + $0x70] sm:$0xff] %vm19_vm0, %v2823_v6  ;;  %35 = vst.msk [vmem:[#allocation2 + $0x78] sm:$0xff] %vm19_vm0, %v2823_v6  ;;  %2522 = vmatprep.subr.bf16.mxu1 %v2732_v5  ;;  %v2744_v19 = vld [vmem:[%s3309_s1 + $0xb0] sm:$0xff]   ;;  %v2749_v20 = vld [vmem:[%s3310_s0 + $0x20] sm:$0xff]  }
   0xa   :  { %v2745_v21 = vld [vmem:[%s3309_s1 + $0x38] sm:$0xff]   ;;  %v2748_v23 = vld [vmem:[%s3309_s1 + $0x40] sm:$0xff]   ;;  %v2752_v26 = vld [vmem:[%s3310_s0 + $0x28] sm:$0xff]  }
   0xb   :  { %2475 = vmatpush3.bf16.msra.mxu0 %v2731_v4  ;;  %v2746_v22 = vld [vmem:[%s3309_s1 + $0xb8] sm:$0xff]   ;;  %v2750_v24 = vld [vmem:[%s3309_s1 + $0xc0] sm:$0xff]   ;;  %v2753_v27 = vld [vmem:[%s3309_s1 + $0x48] sm:$0xff]  }
   0xc   :  { %2523 = vmatpush3.bf16.msra.mxu1 %v2732_v5  ;;  %2476 = vmatprep.subr.bf16.mxu0 %v2733_v7  ;;  %v2751_v25 = vld [vmem:[%s3310_s0 + $0x18] sm:$0xff]   ;;  %v2754_v28 = vld [vmem:[%s3309_s1 + $0xc8] sm:$0xff]   ;;  %v2759_v29 = vld [vmem:[%s3310_s0 + $0x30] sm:$0xff]  }
   0xd   :  { %2524 = vmatprep.subr.bf16.mxu1 %v2734_v9  ;;  %v2761_v30 = vld [vmem:[%s3310_s0 + $0x40] sm:$0xff]   ;;  %v2755_v31 = vld [vmem:[%s3309_s1 + $0x50] sm:$0xff]   ;;  %v2757_v33 = vld [vmem:[%s3309_s1 + $0x58] sm:$0xff]  }
   0xe   :  { %v2756_v32 = vld [vmem:[%s3309_s1 + $0xd0] sm:$0xff]   ;;  %v2758_v34 = vld [vmem:[%s3309_s1 + $0xd8] sm:$0xff]   ;;  %v2760_v35 = vld [vmem:[%s3309_s1 + $0x60] sm:$0xff]  }
   0xf   :  { %2477 = vmatpush3.bf16.msra.mxu0 %v2733_v7  ;;  %v2762_v36 = vld [vmem:[%s3309_s1 + $0xe0] sm:$0xff]   ;;  %v2763_v37 = vld [vmem:[%s3310_s0 + $0x38] sm:$0xff]   ;;  %v2764_v38 = vld [vmem:[%s3310_s0 + $0x48] sm:$0xff]  }
  0x10   :  { %2525 = vmatpush3.bf16.msra.mxu1 %v2734_v9  ;;  %2482 = vmatprep.subr.bf16.mxu0 %v2736_v11  ;;  %v2765_v39 = vld [vmem:[%s3309_s1 + $0x68] sm:$0xff]   ;;  %v2771_v41 = vld [vmem:[%s3310_s0 + $0x40] sm:$0xff]   ;;  %v2772_v42 = vld [vmem:[%s3310_s0 + $0x50] sm:$0xff]  }
  0x11   :  { %2530 = vmatprep.subr.bf16.mxu1 %v2738_v12  ;;  %v2766_v40 = vld [vmem:[%s3309_s1 + $0xe8] sm:$0xff]   ;;  %v2767_v43 = vld [vmem:[%s3309_s1 + $0x70] sm:$0xff]   ;;  %v2769_v45 = vld [vmem:[%s3309_s1 + $0x78] sm:$0xff]  }
  0x12   :  { %2479 = vmatmul.mubr.msk.bf16.vlgmr.msra.gmra.mrb[0].mxu0 %vm86_vm1, %v2739_v13  ;;  %v2768_v44 = vld [vmem:[%s3309_s1 + $0xf0] sm:$0xff]   ;;  %v2770_v46 = vld [vmem:[%s3309_s1 + $0xf8] sm:$0xff]   ;;  %v2773_v47 = vld [vmem:[%s3310_s0 + $0x48] sm:$0xff]  }
  0x13   :  { %2483 = vmatpush3.bf16.msra.mxu0 %v2736_v11  ;;  %2527 = vmatmul.mubr.msk.bf16.vlgmr.msra.gmra.mrb[0].mxu1 %vm86_vm1, %v2740_v14  ;;  %v2775_v48 = vld [vmem:[%s3309_s1 + $0x100] sm:$0xff]   ;;  %v2774_v50 = vld [vmem:[%s3310_s0 + $0x58] sm:$0xff]   ;;  %v2777_v51 = vld [vmem:[%s3309_s1 + $0x108] sm:$0xff]  }
  0x14   :  { %2531 = vmatpush3.bf16.msra.mxu1 %v2738_v12  ;;  %2484 = vmatprep.subr.bf16.mxu0 %v2741_v15  ;;  %v2776_v49 = vld [vmem:[%s3309_s1 + $0x180] sm:$0xff]   ;;  %v2778_v52 = vld [vmem:[%s3309_s1 + $0x188] sm:$0xff]   ;;  %v2783_v53 = vld [vmem:[%s3310_s0 + $0x30] sm:$0xff]  }
  0x15   :  { %2532 = vmatprep.subr.bf16.mxu1 %v2742_v16  ;;  %2490 = vmatprep.mubr.msk.bf16.mxu0 %vm86_vm1, %v2747_v18  ;;  %v2785_v54 = vld [vmem:[%s3310_s0 + $0x40] sm:$0xff]   ;;  %v2779_v55 = vld [vmem:[%s3309_s1 + $0x110] sm:$0xff]   ;;  %v2781_v57 = vld [vmem:[%s3309_s1 + $0x118] sm:$0xff]  }
  0x16   :  { %2538 = vmatprep.mubr.msk.bf16.mxu1 %vm86_vm1, %v2749_v20  ;;  %v2780_v56 = vld [vmem:[%s3309_s1 + $0x190] sm:$0xff]   ;;  %v2782_v58 = vld [vmem:[%s3309_s1 + $0x198] sm:$0xff]   ;;  %v2784_v59 = vld [vmem:[%s3309_s1 + $0x120] sm:$0xff]  }
  0x17   :  { %2485 = vmatpush3.bf16.msra.mxu0 %v2741_v15  ;;  %v2786_v60 = vld [vmem:[%s3309_s1 + $0x1a0] sm:$0xff]   ;;  %v2787_v61 = vld [vmem:[%s3310_s0 + $0x38] sm:$0xff]   ;;  %v2788_v62 = vld [vmem:[%s3310_s0 + $0x48] sm:$0xff]  }
  0x18   :  { %2533 = vmatpush3.bf16.msra.mxu1 %v2742_v16  ;;  %2486 = vmatprep.subr.bf16.mxu0 %v2743_v17  ;;  %v2789_v63 = vld [vmem:[%s3309_s1 + $0x128] sm:$0xff]   ;;  %v2795_v1 = vld [vmem:[%s3310_s0 + $0x40] sm:$0xff]   ;;  %v2797_v2 = vld [vmem:[%s3310_s0 + $0x50] sm:$0xff]  }
  0x19   :  { %2534 = vmatprep.subr.bf16.mxu1 %v2744_v19  ;;  %v2790_v0 = vld [vmem:[%s3309_s1 + $0x1a8] sm:$0xff]   ;;  %v2791_v3 = vld [vmem:[%s3309_s1 + $0x130] sm:$0xff]   ;;  %v2793_v5 = vld [vmem:[%s3309_s1 + $0x138] sm:$0xff]  }
  0x1a   :  { %v2792_v4 = vld [vmem:[%s3309_s1 + $0x1b0] sm:$0xff]   ;;  %v2794_v6 = vld [vmem:[%s3309_s1 + $0x1b8] sm:$0xff]   ;;  %v2796_v7 = vld [vmem:[%s3309_s1 + $0x140] sm:$0xff]  }
  0x1b   :  { %2487 = vmatpush3.bf16.msra.mxu0 %v2743_v17  ;;  %v2798_v8 = vld [vmem:[%s3309_s1 + $0x1c0] sm:$0xff]   ;;  %v2799_v9 = vld [vmem:[%s3310_s0 + $0x48] sm:$0xff]   ;;  %v2800_v10 = vld [vmem:[%s3310_s0 + $0x58] sm:$0xff]  }
  0x1c   :  { %2535 = vmatpush3.bf16.msra.mxu1 %v2744_v19  ;;  %2488 = vmatprep.subr.bf16.mxu0 %v2745_v21  ;;  %v2801_v11 = vld [vmem:[%s3309_s1 + $0x148] sm:$0xff]   ;;  %v2807_v13 = vld [vmem:[%s3310_s0 + $0x60] sm:$0xff]   ;;  %v2809_v14 = vld [vmem:[%s3310_s0 + $0x70] sm:$0xff]  }
  0x1d   :  { %2536 = vmatprep.subr.bf16.mxu1 %v2746_v22  ;;  %v2802_v12 = vld [vmem:[%s3309_s1 + $0x1c8] sm:$0xff]   ;;  %v2803_v15 = vld [vmem:[%s3309_s1 + $0x150] sm:$0xff]   ;;  %v2805_v17 = vld [vmem:[%s3309_s1 + $0x158] sm:$0xff]  }
  0x1e   :  { %v2804_v16 = vld [vmem:[%s3309_s1 + $0x1d0] sm:$0xff]   ;;  %v2806_v18 = vld [vmem:[%s3309_s1 + $0x1d8] sm:$0xff]   ;;  %v2808_v19 = vld [vmem:[%s3309_s1 + $0x160] sm:$0xff]  }
  0x1f   :  { %2489 = vmatpush3.bf16.msra.mxu0 %v2745_v21  ;;  %v2810_v20 = vld [vmem:[%s3309_s1 + $0x1e0] sm:$0xff]   ;;  %v2811_v21 = vld [vmem:[%s3310_s0 + $0x68] sm:$0xff]  }
  0x20   :  { %2537 = vmatpush3.bf16.msra.mxu1 %v2746_v22  ;;  %2494 = vmatprep.subr.bf16.mxu0 %v2748_v23  ;;  %v2812_v22 = vld [vmem:[%s3310_s0 + $0x78] sm:$0xff]  }
  0x21   :  { %2542 = vmatprep.subr.bf16.mxu1 %v2750_v24 }
  0x22   :  { %2491 = vmatmul.mubr.msk.bf16.vlgmr.msra.gmra.mrb[0].mxu0 %vm86_vm1, %v2751_v25  ;;  %v2819_v25 = vld [vmem:[%s3310_s0 + $0x70] sm:$0xff]  }
  0x23   :  { %2495 = vmatpush3.bf16.msra.mxu0 %v2748_v23  ;;  %2539 = vmatmul.mubr.msk.bf16.vlgmr.msra.gmra.mrb[0].mxu1 %vm86_vm1, %v2752_v26  ;;  %v2813_v23 = vld [vmem:[%s3309_s1 + $0x168] sm:$0xff]   ;;  %v2820_v26 = vld [vmem:[%s3310_s0 + $0x80] sm:$0xff]  }
  0x24   :  { %2543 = vmatpush3.bf16.msra.mxu1 %v2750_v24  ;;  %2496 = vmatprep.subr.bf16.mxu0 %v2753_v27  ;;  %v2814_v24 = vld [vmem:[%s3309_s1 + $0x1e8] sm:$0xff]  }
  0x25   :  { %2544 = vmatprep.subr.bf16.mxu1 %v2754_v28  ;;  %2502 = vmatprep.mubr.msk.bf16.mxu0 %vm86_vm1, %v2759_v29  ;;  %v2817_v29 = vld [vmem:[%s3309_s1 + $0x178] sm:$0xff]  }
  0x26   :  { %2550 = vmatprep.mubr.msk.bf16.mxu1 %vm86_vm1, %v2761_v30  ;;  %v2818_v30 = vld [vmem:[%s3309_s1 + $0x1f8] sm:$0xff]  }
  0x27   :  { %2497 = vmatpush3.bf16.msra.mxu0 %v2753_v27  ;;  %v2815_v27 = vld [vmem:[%s3309_s1 + $0x170] sm:$0xff]  }
  0x28   :  { %2545 = vmatpush3.bf16.msra.mxu1 %v2754_v28  ;;  %2498 = vmatprep.subr.bf16.mxu0 %v2755_v31  ;;  %v2816_v28 = vld [vmem:[%s3309_s1 + $0x1f0] sm:$0xff]  }
  0x29   :  { %2546 = vmatprep.subr.bf16.mxu1 %v2756_v32 }
  0x2b   :  { %2499 = vmatpush3.bf16.msra.mxu0 %v2755_v31  ;;  %v2821_v31 = vld [vmem:[%s3310_s0 + $0x78] sm:$0xff]  }
  0x2c   :  { %2547 = vmatpush3.bf16.msra.mxu1 %v2756_v32  ;;  %2500 = vmatprep.subr.bf16.mxu0 %v2757_v33  ;;  %v2822_v32 = vld [vmem:[%s3310_s0 + $0x88] sm:$0xff]  }
  0x2d   :  { %2548 = vmatprep.subr.bf16.mxu1 %v2758_v34 }
  0x2f   :  { %2501 = vmatpush3.bf16.msra.mxu0 %v2757_v33  ;;  %v38_v33 = vld [vmem:[#allocation2 + $0x10] sm:$0xff] }
  0x30   :  { %2549 = vmatpush3.bf16.msra.mxu1 %v2758_v34  ;;  %2506 = vmatprep.subr.bf16.mxu0 %v2760_v35  ;;  %v475_v34 = vld [vmem:[#allocation2 + $0x30] sm:$0xff] }
  0x31   :  { %2554 = vmatprep.subr.bf16.mxu1 %v2762_v36 }
  0x32   :  { %2503 = vmatmul.mubr.msk.bf16.vlgmr.msra.gmra.mrb[0].mxu0 %vm86_vm1, %v2763_v37  ;;  %v473_v37 = vld [vmem:[#allocation2 + $0x20] sm:$0xff] }
  0x33   :  { %2507 = vmatpush3.bf16.msra.mxu0 %v2760_v35  ;;  %2551 = vmatmul.mubr.msk.bf16.vlgmr.msra.gmra.mrb[0].mxu1 %vm86_vm1, %v2764_v38  ;;  %v36_v35 = vld [vmem:[#allocation2] sm:$0xff]  ;;  %v39_v38 = vld [vmem:[#allocation2 + $0x18] sm:$0xff] }
  0x34   :  { %2555 = vmatpush3.bf16.msra.mxu1 %v2762_v36  ;;  %2508 = vmatprep.subr.bf16.mxu0 %v2765_v39 }
  0x35   :  { %2556 = vmatprep.subr.bf16.mxu1 %v2766_v40  ;;  %2514 = vmatprep.mubr.msk.bf16.mxu0 %vm86_vm1, %v2771_v41 }
  0x36   :  { %2562 = vmatprep.mubr.msk.bf16.mxu1 %vm86_vm1, %v2772_v42  ;;  %v476_v42 = vld [vmem:[#allocation2 + $0x38] sm:$0xff] }
  0x37   :  { %2509 = vmatpush3.bf16.msra.mxu0 %v2765_v39 }
  0x38   :  { %2557 = vmatpush3.bf16.msra.mxu1 %v2766_v40  ;;  %2510 = vmatprep.subr.bf16.mxu0 %v2767_v43 }
  0x39   :  { %2558 = vmatprep.subr.bf16.mxu1 %v2768_v44 }
  0x3b   :  { %2511 = vmatpush3.bf16.msra.mxu0 %v2767_v43  ;;  %v37_v43 = vld [vmem:[#allocation2 + $0x8] sm:$0xff] }
  0x3c   :  { %2559 = vmatpush3.bf16.msra.mxu1 %v2768_v44  ;;  %2512 = vmatprep.subr.bf16.mxu0 %v2769_v45 }
  0x3d   :  { %2560 = vmatprep.subr.bf16.mxu1 %v2770_v46 }
  0x3f   :  { %2513 = vmatpush3.bf16.msra.mxu0 %v2769_v45 }
  0x40   :  { %2561 = vmatpush3.bf16.msra.mxu1 %v2770_v46  ;;  %2566 = vmatprep.subr.bf16.mxu0 %v2775_v48 }
  0x41   :  { %2614 = vmatprep.subr.bf16.mxu1 %v2776_v49 }
  0x42   :  { %2515 = vmatmul.mubr.msk.bf16.vlgmr.msra.gmra.mrb[0].mxu0 %vm86_vm1, %v2773_v47 }
  0x43   :  { %2563 = vmatmul.mubr.msk.bf16.vlgmr.msra.gmra.mrb[0].mxu1 %vm86_vm1, %v2774_v50  ;;  %2567 = vmatpush3.bf16.msra.mxu0 %v2775_v48  ;;  %v474_v48 = vld [vmem:[#allocation2 + $0x28] sm:$0xff] }
  0x44   :  { %2615 = vmatpush3.bf16.msra.mxu1 %v2776_v49  ;;  %2568 = vmatprep.subr.bf16.mxu0 %v2777_v51 }
  0x45   :  { %2616 = vmatprep.subr.bf16.mxu1 %v2778_v52  ;;  %2574 = vmatprep.mubr.msk.bf16.mxu0 %vm86_vm1, %v2783_v53 }
  0x46   :  { %2622 = vmatprep.mubr.msk.bf16.mxu1 %vm86_vm1, %v2785_v54 }
  0x47   :  { %2569 = vmatpush3.bf16.msra.mxu0 %v2777_v51 }
  0x48   :  { %2617 = vmatpush3.bf16.msra.mxu1 %v2778_v52  ;;  %2570 = vmatprep.subr.bf16.mxu0 %v2779_v55 }
  0x49   :  { %2618 = vmatprep.subr.bf16.mxu1 %v2780_v56 }
  0x4b   :  { %2571 = vmatpush3.bf16.msra.mxu0 %v2779_v55 }
  0x4c   :  { %2619 = vmatpush3.bf16.msra.mxu1 %v2780_v56  ;;  %2572 = vmatprep.subr.bf16.mxu0 %v2781_v57 }
  0x4d   :  { %2620 = vmatprep.subr.bf16.mxu1 %v2782_v58 }
  0x4f   :  { %2573 = vmatpush3.bf16.msra.mxu0 %v2781_v57 }
  0x50   :  { %2621 = vmatpush3.bf16.msra.mxu1 %v2782_v58  ;;  %2578 = vmatprep.subr.bf16.mxu0 %v2784_v59 }
  0x51   :  { %2626 = vmatprep.subr.bf16.mxu1 %v2786_v60 }
  0x52   :  { %2575 = vmatmul.mubr.msk.bf16.vlgmr.msra.gmra.mrb[4].mxu0 %vm86_vm1, %v2787_v61 }
  0x53   :  { %2579 = vmatpush3.bf16.msra.mxu0 %v2784_v59  ;;  %2623 = vmatmul.mubr.msk.bf16.vlgmr.msra.gmra.mrb[4].mxu1 %vm86_vm1, %v2788_v62 }
  0x54   :  { %2627 = vmatpush3.bf16.msra.mxu1 %v2786_v60  ;;  %2580 = vmatprep.subr.bf16.mxu0 %v2789_v63 }
  0x55   :  { %2628 = vmatprep.subr.bf16.mxu1 %v2790_v0  ;;  %2586 = vmatprep.mubr.msk.bf16.mxu0 %vm86_vm1, %v2795_v1 }
  0x56   :  { %2634 = vmatprep.mubr.msk.bf16.mxu1 %vm86_vm1, %v2797_v2 }
  0x57   :  { %2581 = vmatpush3.bf16.msra.mxu0 %v2789_v63 }
  0x58   :  { %2629 = vmatpush3.bf16.msra.mxu1 %v2790_v0  ;;  %2582 = vmatprep.subr.bf16.mxu0 %v2791_v3 }
  0x59   :  { %2630 = vmatprep.subr.bf16.mxu1 %v2792_v4 }
  0x5b   :  { %2583 = vmatpush3.bf16.msra.mxu0 %v2791_v3 }
  0x5c   :  { %2631 = vmatpush3.bf16.msra.mxu1 %v2792_v4  ;;  %2584 = vmatprep.subr.bf16.mxu0 %v2793_v5 }
  0x5d   :  { %2632 = vmatprep.subr.bf16.mxu1 %v2794_v6 }
  0x5f   :  { %2585 = vmatpush3.bf16.msra.mxu0 %v2793_v5 }
  0x60   :  { %2633 = vmatpush3.bf16.msra.mxu1 %v2794_v6  ;;  %2590 = vmatprep.subr.bf16.mxu0 %v2796_v7 }
  0x61   :  { %2638 = vmatprep.subr.bf16.mxu1 %v2798_v8 }
  0x62   :  { %2587 = vmatmul.mubr.msk.bf16.vlgmr.msra.gmra.mrb[4].mxu0 %vm86_vm1, %v2799_v9 }
  0x63   :  { %2591 = vmatpush3.bf16.msra.mxu0 %v2796_v7  ;;  %2635 = vmatmul.mubr.msk.bf16.vlgmr.msra.gmra.mrb[4].mxu1 %vm86_vm1, %v2800_v10 }
  0x64   :  { %2639 = vmatpush3.bf16.msra.mxu1 %v2798_v8  ;;  %2592 = vmatprep.subr.bf16.mxu0 %v2801_v11 }
  0x65   :  { %2640 = vmatprep.subr.bf16.mxu1 %v2802_v12  ;;  %2598 = vmatprep.mubr.msk.bf16.mxu0 %vm86_vm1, %v2807_v13 }
  0x66   :  { %2646 = vmatprep.mubr.msk.bf16.mxu1 %vm86_vm1, %v2809_v14 }
  0x67   :  { %2593 = vmatpush3.bf16.msra.mxu0 %v2801_v11 }
  0x68   :  { %2641 = vmatpush3.bf16.msra.mxu1 %v2802_v12  ;;  %2594 = vmatprep.subr.bf16.mxu0 %v2803_v15 }
  0x69   :  { %2642 = vmatprep.subr.bf16.mxu1 %v2804_v16 }
  0x6b   :  { %2595 = vmatpush3.bf16.msra.mxu0 %v2803_v15 }
  0x6c   :  { %2643 = vmatpush3.bf16.msra.mxu1 %v2804_v16  ;;  %2596 = vmatprep.subr.bf16.mxu0 %v2805_v17 }
  0x6d   :  { %2644 = vmatprep.subr.bf16.mxu1 %v2806_v18 }
  0x6f   :  { %2597 = vmatpush3.bf16.msra.mxu0 %v2805_v17 }
  0x70   :  { %2645 = vmatpush3.bf16.msra.mxu1 %v2806_v18  ;;  %2602 = vmatprep.subr.bf16.mxu0 %v2808_v19 }
  0x71   :  { %2650 = vmatprep.subr.bf16.mxu1 %v2810_v20 }
  0x72   :  { %2599 = vmatmul.mubr.msk.bf16.vlgmr.msra.gmra.mrb[4].mxu0 %vm86_vm1, %v2811_v21 }
  0x73   :  { %2603 = vmatpush3.bf16.msra.mxu0 %v2808_v19  ;;  %2647 = vmatmul.mubr.msk.bf16.vlgmr.msra.gmra.mrb[4].mxu1 %vm86_vm1, %v2812_v22 }
  0x74   :  { %2651 = vmatpush3.bf16.msra.mxu1 %v2810_v20  ;;  %2604 = vmatprep.subr.bf16.mxu0 %v2813_v23 }
  0x75   :  { %2652 = vmatprep.subr.bf16.mxu1 %v2814_v24  ;;  %2610 = vmatprep.mubr.msk.bf16.mxu0 %vm86_vm1, %v2819_v25 }
  0x76   :  { %2658 = vmatprep.mubr.msk.bf16.mxu1 %vm86_vm1, %v2820_v26 }
  0x77   :  { %2605 = vmatpush3.bf16.msra.mxu0 %v2813_v23 }
  0x78   :  { %2653 = vmatpush3.bf16.msra.mxu1 %v2814_v24  ;;  %2606 = vmatprep.subr.bf16.mxu0 %v2815_v27 }
  0x79   :  { %2654 = vmatprep.subr.bf16.mxu1 %v2816_v28 }
  0x7b   :  { %2607 = vmatpush3.bf16.msra.mxu0 %v2815_v27 }
  0x7c   :  { %2655 = vmatpush3.bf16.msra.mxu1 %v2816_v28  ;;  %2608 = vmatprep.subr.bf16.mxu0 %v2817_v29 }
  0x7d   :  { %2656 = vmatprep.subr.bf16.mxu1 %v2818_v30 }
  0x7f   :  { %2609 = vmatpush3.bf16.msra.mxu0 %v2817_v29 }
  0x80   :  { %2657 = vmatpush3.bf16.msra.mxu1 %v2818_v30 }
  0x82   :  { %2611 = vmatmul.mubr.msk.bf16.vlgmr.msra.gmra.mrb[4].mxu0 %vm86_vm1, %v2821_v31 }
  0x83   :  { %2659 = vmatmul.mubr.msk.bf16.vlgmr.msra.gmra.mrb[4].mxu1 %vm86_vm1, %v2822_v32 }
 0x115   :  { %v2516_v36 = vpop.f32.mrb[0].mxu0 }
 0x116   :  { %v2662_v39 = vadd.f32 %v2516_v36, %v38_v33  ;;  %v2564_v40 = vpop.f32.mrb[0].mxu1  ;;  %v448_v41 = vpop.f32.mrb[1].mxu0 }
 0x117   :  { %v2666_v44 = vadd.f32 %v2564_v40, %v475_v34  ;;  %v2663_v45 = vadd.f32 %v448_v41, %v36_v35  ;;  %v884_v46 = vpop.f32.mrb[1].mxu1  ;;  %v2517_v47 = vpop.f32.mrb[2].mxu0 }
 0x118   :  { %470 = vst.msk [vmem:[#allocation2 + $0x10] sm:$0xff] %vm19_vm0, %v2662_v39  ;;  %v2667_v49 = vadd.f32 %v884_v46, %v473_v37  ;;  %v2664_v50 = vadd.f32 %v2517_v47, %v39_v38  ;;  %v2565_v51 = vpop.f32.mrb[2].mxu1  ;;  %v451_v52 = vpop.f32.mrb[3].mxu0 }
 0x119   :  { %905 = vst.msk [vmem:[#allocation2 + $0x30] sm:$0xff] %vm19_vm0, %v2666_v44  ;;  %468 = vst.msk [vmem:[#allocation2] sm:$0xff] %vm19_vm0, %v2663_v45  ;;  %v2668_v53 = vadd.f32 %v2565_v51, %v476_v42  ;;  %v2665_v54 = vadd.f32 %v451_v52, %v37_v43  ;;  %v887_v55 = vpop.f32.mrb[3].mxu1 }
 0x11a   :  { %903 = vst.msk [vmem:[#allocation2 + $0x20] sm:$0xff] %vm19_vm0, %v2667_v49  ;;  %471 = vst.msk [vmem:[#allocation2 + $0x18] sm:$0xff] %vm19_vm0, %v2664_v50  ;;  %v2669_v56 = vadd.f32 %v887_v55, %v474_v48 }
 0x11b   :  { %906 = vst.msk [vmem:[#allocation2 + $0x38] sm:$0xff] %vm19_vm0, %v2668_v53  ;;  %469 = vst.msk [vmem:[#allocation2 + $0x8] sm:$0xff] %vm19_vm0, %v2665_v54 }
 0x11c   :  { %904 = vst.msk [vmem:[#allocation2 + $0x28] sm:$0xff] %vm19_vm0, %v2669_v56 }
 0x11f   :  { %v1781_v57 = vld [vmem:[#allocation2 + $0x10] sm:$0xff] }
 0x120   :  { %v2360_v58 = vpack.c.bf16 %v1781_v57, %v1781_v57  ;;  %v1838_v59 = vld [vmem:[#allocation2 + $0x30] sm:$0xff]  ;;  %v1779_v60 = vld [vmem:[#allocation2] sm:$0xff]  ;;  %v1807_v7 = vsel %vm19_vm0, %v1781_v57, 0.0  ;;  %v1820_v8 = vmul.f32 %v1781_v57, %v1781_v57 }
 0x121   :  { %v2364_v61 = vpack.c.bf16 %v1838_v59, %v1838_v59  ;;  %v2358_v62 = vpack.c.bf16 %v1779_v60, %v1779_v60  ;;  %v1836_v63 = vld [vmem:[#allocation2 + $0x20] sm:$0xff]  ;;  %v1782_v0 = vld [vmem:[#allocation2 + $0x18] sm:$0xff]  ;;  %v1818_v4 = vmul.f32 %v1779_v60, %v1779_v60  ;;  %v1864_v11 = vsel %vm19_vm0, %v1838_v59, 0.0 }
 0x122   :  { %1802 = vst.msk [vmem:[%s3311_s2 + $0x8] sm:$0xf] %vm1799_vm2, %v2360_v58  ;;  %v2362_v1 = vpack.c.bf16 %v1836_v63, %v1836_v63  ;;  %v1839_v2 = vld [vmem:[#allocation2 + $0x38] sm:$0xff]  ;;  %v1780_v3 = vld [vmem:[#allocation2 + $0x8] sm:$0xff]  ;;  %v2361_v5 = vpack.c.bf16 %v1782_v0, %v1782_v0  ;;  %v1875_v9 = vmul.f32 %v1836_v63, %v1836_v63  ;;  %v1877_v12 = vmul.f32 %v1838_v59, %v1838_v59 }
 0x123   :  { %2340 = vst.msk [vmem:[%s3311_s2 + $0x18] sm:$0xf] %vm1799_vm2, %v2364_v61  ;;  %1800 = vst.msk [vmem:[%s3311_s2] sm:$0xf] %vm1799_vm2, %v2358_v62  ;;  %v1837_v6 = vld [vmem:[#allocation2 + $0x28] sm:$0xff]  ;;  %v2365_v10 = vpack.c.bf16 %v1839_v2, %v1839_v2  ;;  %v1804_v13 = vsel %vm19_vm0, %v1779_v60, 0.0  ;;  %v2359_v14 = vpack.c.bf16 %v1780_v3, %v1780_v3  ;;  %v1819_v17 = vmul.f32 %v1780_v3, %v1780_v3 }
 0x124   :  { %2338 = vst.msk [vmem:[%s3311_s2 + $0x10] sm:$0xf] %vm1799_vm2, %v2362_v1  ;;  %1803 = vst.msk [vmem:[%s3311_s2 + $0xc] sm:$0xf] %vm1799_vm2, %v2361_v5  ;;  %v1861_v15 = vsel %vm19_vm0, %v1836_v63, 0.0  ;;  %v1805_v16 = vsel %vm19_vm0, %v1780_v3, 0.0  ;;  %v2363_v18 = vpack.c.bf16 %v1837_v6, %v1837_v6  ;;  %v1876_v22 = vmul.f32 %v1837_v6, %v1837_v6 }
 0x125   :  { %2341 = vst.msk [vmem:[%s3311_s2 + $0x1c] sm:$0xf] %vm1799_vm2, %v2365_v10  ;;  %v1822_v19 = vsel %vm19_vm0, %v1818_v4, 0.0  ;;  %1801 = vst.msk [vmem:[%s3311_s2 + $0x4] sm:$0xf] %vm1799_vm2, %v2359_v14  ;;  %v1806_v20 = vadd.f32 %v1805_v16, %v1804_v13  ;;  %v1862_v21 = vsel %vm19_vm0, %v1837_v6, 0.0  ;;  %v1821_v24 = vmul.f32 %v1782_v0, %v1782_v0 }
 0x126   :  { %v1879_v23 = vsel %vm19_vm0, %v1875_v9, 0.0  ;;  %v1823_v25 = vsel %vm19_vm0, %v1819_v17, 0.0  ;;  %2339 = vst.msk [vmem:[%s3311_s2 + $0x14] sm:$0xf] %vm1799_vm2, %v2363_v18  ;;  %v1863_v26 = vadd.f32 %v1862_v21, %v1861_v15  ;;  %v1878_v27 = vmul.f32 %v1839_v2, %v1839_v2  ;;  %v908_v9 = vld [vmem:[#allocation2 + $0x40] sm:$0xff]  ;;  %v1346_v16 = vld [vmem:[#allocation2 + $0x78] sm:$0xff] }
 0x127   :  { %v1808_v28 = vadd.f32 %v1807_v7, %v1806_v20  ;;  %v1824_v29 = vadd.f32 %v1823_v25, %v1822_v19  ;;  %v1880_v30 = vsel %vm19_vm0, %v1876_v22, 0.0  ;;  %v1825_v31 = vsel %vm19_vm0, %v1820_v8, 0.0  ;;  %v910_v7 = vld [vmem:[#allocation2 + $0x50] sm:$0xff]  ;;  %v909_v17 = vld [vmem:[#allocation2 + $0x48] sm:$0xff] }
 0x128   :  { %v1809_v32 = vsel %vm19_vm0, %v1782_v0, 0.0  ;;  %v1865_v33 = vadd.f32 %v1864_v11, %v1863_v26  ;;  %v1881_v34 = vadd.f32 %v1880_v30, %v1879_v23  ;;  %v1882_v35 = vsel %vm19_vm0, %v1877_v12, 0.0  ;;  %v1345_v8 = vld [vmem:[#allocation2 + $0x70] sm:$0xff]  ;;  %v1343_v11 = vld [vmem:[#allocation2 + $0x60] sm:$0xff]  ;;  %v911_v12 = vld [vmem:[#allocation2 + $0x58] sm:$0xff] }
 0x129   :  { %v1866_v36 = vsel %vm19_vm0, %v1839_v2, 0.0  ;;  %v1810_v37 = vadd.f32 %v1809_v32, %v1808_v28  ;;  %v1826_v38 = vadd.f32 %v1825_v31, %v1824_v29  ;;  %v1827_v39 = vsel %vm19_vm0, %v1821_v24, 0.0  ;;  %v1344_v22 = vld [vmem:[#allocation2 + $0x68] sm:$0xff] }
 0x12a   :  { %v1867_v40 = vadd.f32 %v1866_v36, %v1865_v33  ;;  %v1883_v41 = vadd.f32 %v1882_v35, %v1881_v34  ;;  %v1884_v42 = vsel %vm19_vm0, %v1878_v27, 0.0 }
 0x12b   :  { %v1811_v43 = vrot.slane %v1810_v37, 4  ;;  %v1828_v44 = vadd.f32 %v1827_v39, %v1826_v38 }
 0x12c   :  { %v1868_v45 = vrot.slane %v1867_v40, 4  ;;  %v1885_v46 = vadd.f32 %v1884_v42, %v1883_v41 }
 0x12d   :  { %v1812_v47 = vadd.f32 %v1811_v43, %v1810_v37  ;;  %v1829_v48 = vrot.slane %v1828_v44, 4 }
 0x12e   :  { %v1869_v49 = vadd.f32 %v1868_v45, %v1867_v40  ;;  %v1886_v50 = vrot.slane %v1885_v46, 4 }
 0x12f   :  { %v1813_v51 = vrot.slane %v1812_v47, 2  ;;  %v1830_v52 = vadd.f32 %v1829_v48, %v1828_v44 }
 0x130   :  { %v1870_v53 = vrot.slane %v1869_v49, 2  ;;  %v1887_v54 = vadd.f32 %v1886_v50, %v1885_v46 }
 0x131   :  { %v1814_v55 = vadd.f32 %v1813_v51, %v1812_v47  ;;  %v1831_v56 = vrot.slane %v1830_v52, 2 }
 0x132   :  { %v1871_v57 = vadd.f32 %v1870_v53, %v1869_v49  ;;  %v1888_v58 = vrot.slane %v1887_v54, 2 }
 0x133   :  { %v1815_v59 = vrot.slane %v1814_v55, 1  ;;  %v1832_v60 = vadd.f32 %v1831_v56, %v1830_v52 }
 0x134   :  { %v1872_v61 = vrot.slane %v1871_v57, 1  ;;  %v1889_v62 = vadd.f32 %v1888_v58, %v1887_v54 }
 0x135   :  { %v1816_v63 = vadd.f32 %v1815_v59, %v1814_v55  ;;  %v1833_v0 = vrot.slane %v1832_v60, 1 }
 0x136   :  { %v1873_v1 = vadd.f32 %v1872_v61, %v1871_v57  ;;  %v1890_v2 = vrot.slane %v1889_v62, 1 }
 0x137   :  { %v1834_v3 = vadd.f32 %v1833_v0, %v1832_v60 }
 0x138   :  { %v3241_v4 = vadd.f32 %v1873_v1, %v1816_v63  ;;  %v1891_v5 = vadd.f32 %v1890_v2, %v1889_v62 }
 0x13a   :  { %v3243_v6 = vadd.f32 %v1891_v5, %v1834_v3 }
 0x155   :  { %v2612_v10 = vpop.f32.mrb[4].mxu0 }
 0x156   :  { %v2670_v13 = vadd.f32 %v2612_v10, %v910_v7  ;;  %v2660_v14 = vpop.f32.mrb[4].mxu1  ;;  %v1319_v15 = vpop.f32.mrb[5].mxu0 }
 0x157   :  { %v2674_v18 = vadd.f32 %v2660_v14, %v1345_v8  ;;  %v2671_v19 = vadd.f32 %v1319_v15, %v908_v9  ;;  %v1753_v20 = vpop.f32.mrb[5].mxu1  ;;  %v2613_v21 = vpop.f32.mrb[6].mxu0 }
 0x158   :  { %1340 = vst.msk [vmem:[#allocation2 + $0x50] sm:$0xff] %vm19_vm0, %v2670_v13  ;;  %v2675_v23 = vadd.f32 %v1753_v20, %v1343_v11  ;;  %v2672_v24 = vadd.f32 %v2613_v21, %v911_v12  ;;  %v2661_v25 = vpop.f32.mrb[6].mxu1  ;;  %v1322_v26 = vpop.f32.mrb[7].mxu0 }
 0x159   :  { %1774 = vst.msk [vmem:[#allocation2 + $0x70] sm:$0xff] %vm19_vm0, %v2674_v18  ;;  %1338 = vst.msk [vmem:[#allocation2 + $0x40] sm:$0xff] %vm19_vm0, %v2671_v19  ;;  %v2676_v27 = vadd.f32 %v2661_v25, %v1346_v16  ;;  %v2673_v28 = vadd.f32 %v1322_v26, %v909_v17  ;;  %v1756_v29 = vpop.f32.mrb[7].mxu1 }
 0x15a   :  { %1772 = vst.msk [vmem:[#allocation2 + $0x60] sm:$0xff] %vm19_vm0, %v2675_v23  ;;  %1341 = vst.msk [vmem:[#allocation2 + $0x58] sm:$0xff] %vm19_vm0, %v2672_v24  ;;  %v2677_v30 = vadd.f32 %v1756_v29, %v1344_v22 }
 0x15b   :  { %1775 = vst.msk [vmem:[#allocation2 + $0x78] sm:$0xff] %vm19_vm0, %v2676_v27  ;;  %1339 = vst.msk [vmem:[#allocation2 + $0x48] sm:$0xff] %vm19_vm0, %v2673_v28 }
 0x15c   :  { %1773 = vst.msk [vmem:[#allocation2 + $0x68] sm:$0xff] %vm19_vm0, %v2677_v30 }
 0x15f   :  { %v1895_v31 = vld [vmem:[#allocation2 + $0x50] sm:$0xff] }
 0x160   :  { %v2368_v32 = vpack.c.bf16 %v1895_v31, %v1895_v31  ;;  %v1952_v33 = vld [vmem:[#allocation2 + $0x70] sm:$0xff]  ;;  %v1893_v34 = vld [vmem:[#allocation2 + $0x40] sm:$0xff]  ;;  %v1921_v45 = vsel %vm19_vm0, %v1895_v31, 0.0  ;;  %v1934_v46 = vmul.f32 %v1895_v31, %v1895_v31 }
 0x161   :  { %v2372_v35 = vpack.c.bf16 %v1952_v33, %v1952_v33  ;;  %v2366_v36 = vpack.c.bf16 %v1893_v34, %v1893_v34  ;;  %v1950_v37 = vld [vmem:[#allocation2 + $0x60] sm:$0xff]  ;;  %v1896_v38 = vld [vmem:[#allocation2 + $0x58] sm:$0xff]  ;;  %v1932_v42 = vmul.f32 %v1893_v34, %v1893_v34  ;;  %v1978_v49 = vsel %vm19_vm0, %v1952_v33, 0.0 }
 0x162   :  { %2348 = vst.msk [vmem:[%s3311_s2 + $0x28] sm:$0xf] %vm1799_vm2, %v2368_v32  ;;  %v2370_v39 = vpack.c.bf16 %v1950_v37, %v1950_v37  ;;  %v1953_v40 = vld [vmem:[#allocation2 + $0x78] sm:$0xff]  ;;  %v1894_v41 = vld [vmem:[#allocation2 + $0x48] sm:$0xff]  ;;  %v2369_v43 = vpack.c.bf16 %v1896_v38, %v1896_v38  ;;  %v1989_v47 = vmul.f32 %v1950_v37, %v1950_v37  ;;  %v1991_v50 = vmul.f32 %v1952_v33, %v1952_v33 }
 0x163   :  { %2356 = vst.msk [vmem:[%s3311_s2 + $0x38] sm:$0xf] %vm1799_vm2, %v2372_v35  ;;  %2346 = vst.msk [vmem:[%s3311_s2 + $0x20] sm:$0xf] %vm1799_vm2, %v2366_v36  ;;  %v1951_v44 = vld [vmem:[#allocation2 + $0x68] sm:$0xff]  ;;  %v2373_v48 = vpack.c.bf16 %v1953_v40, %v1953_v40  ;;  %v1918_v51 = vsel %vm19_vm0, %v1893_v34, 0.0  ;;  %v2367_v52 = vpack.c.bf16 %v1894_v41, %v1894_v41  ;;  %v1933_v55 = vmul.f32 %v1894_v41, %v1894_v41 }
 0x164   :  { %2354 = vst.msk [vmem:[%s3311_s2 + $0x30] sm:$0xf] %vm1799_vm2, %v2370_v39  ;;  %2349 = vst.msk [vmem:[%s3311_s2 + $0x2c] sm:$0xf] %vm1799_vm2, %v2369_v43  ;;  %v1975_v53 = vsel %vm19_vm0, %v1950_v37, 0.0  ;;  %v1919_v54 = vsel %vm19_vm0, %v1894_v41, 0.0  ;;  %v2371_v56 = vpack.c.bf16 %v1951_v44, %v1951_v44  ;;  %v1990_v60 = vmul.f32 %v1951_v44, %v1951_v44 }
 0x165   :  { %2357 = vst.msk [vmem:[%s3311_s2 + $0x3c] sm:$0xf] %vm1799_vm2, %v2373_v48  ;;  %v1936_v57 = vsel %vm19_vm0, %v1932_v42, 0.0  ;;  %2347 = vst.msk [vmem:[%s3311_s2 + $0x24] sm:$0xf] %vm1799_vm2, %v2367_v52  ;;  %v1920_v58 = vadd.f32 %v1919_v54, %v1918_v51  ;;  %v1976_v59 = vsel %vm19_vm0, %v1951_v44, 0.0  ;;  %v1935_v62 = vmul.f32 %v1896_v38, %v1896_v38 }
 0x166   :  { %v1993_v61 = vsel %vm19_vm0, %v1989_v47, 0.0  ;;  %v1937_v63 = vsel %vm19_vm0, %v1933_v55, 0.0  ;;  %2355 = vst.msk [vmem:[%s3311_s2 + $0x34] sm:$0xf] %vm1799_vm2, %v2371_v56  ;;  %v1977_v0 = vadd.f32 %v1976_v59, %v1975_v53  ;;  %v1992_v1 = vmul.f32 %v1953_v40, %v1953_v40 }
 0x167   :  { %v1922_v2 = vadd.f32 %v1921_v45, %v1920_v58  ;;  %v1938_v3 = vadd.f32 %v1937_v63, %v1936_v57  ;;  %v1994_v5 = vsel %vm19_vm0, %v1990_v60, 0.0  ;;  %v1939_v7 = vsel %vm19_vm0, %v1934_v46, 0.0 }
 0x168   :  { %v1923_v8 = vsel %vm19_vm0, %v1896_v38, 0.0  ;;  %v1979_v9 = vadd.f32 %v1978_v49, %v1977_v0  ;;  %v1995_v10 = vadd.f32 %v1994_v5, %v1993_v61  ;;  %v1996_v11 = vsel %vm19_vm0, %v1991_v50, 0.0 }
 0x169   :  { %v1980_v12 = vsel %vm19_vm0, %v1953_v40, 0.0  ;;  %v1924_v13 = vadd.f32 %v1923_v8, %v1922_v2  ;;  %v1940_v14 = vadd.f32 %v1939_v7, %v1938_v3  ;;  %v1941_v15 = vsel %vm19_vm0, %v1935_v62, 0.0 }
 0x16a   :  { %v1981_v16 = vadd.f32 %v1980_v12, %v1979_v9  ;;  %v1997_v17 = vadd.f32 %v1996_v11, %v1995_v10  ;;  %v1998_v18 = vsel %vm19_vm0, %v1992_v1, 0.0 }
 0x16b   :  { %v1925_v19 = vrot.slane %v1924_v13, 4  ;;  %v1942_v20 = vadd.f32 %v1941_v15, %v1940_v14 }
 0x16c   :  { %v1982_v21 = vrot.slane %v1981_v16, 4  ;;  %v1999_v22 = vadd.f32 %v1998_v18, %v1997_v17 }
 0x16d   :  { %v1926_v23 = vadd.f32 %v1925_v19, %v1924_v13  ;;  %v1943_v24 = vrot.slane %v1942_v20, 4 }
 0x16e   :  { %v1983_v25 = vadd.f32 %v1982_v21, %v1981_v16  ;;  %v2000_v26 = vrot.slane %v1999_v22, 4 }
 0x16f   :  { %v1927_v27 = vrot.slane %v1926_v23, 2  ;;  %v1944_v28 = vadd.f32 %v1943_v24, %v1942_v20 }
 0x170   :  { %v1984_v29 = vrot.slane %v1983_v25, 2  ;;  %v2001_v30 = vadd.f32 %v2000_v26, %v1999_v22 }
 0x171   :  { %v1928_v31 = vadd.f32 %v1927_v27, %v1926_v23  ;;  %v1945_v32 = vrot.slane %v1944_v28, 2 }
 0x172   :  { %v1985_v33 = vadd.f32 %v1984_v29, %v1983_v25  ;;  %v2002_v34 = vrot.slane %v2001_v30, 2 }
 0x173   :  { %v1929_v35 = vrot.slane %v1928_v31, 1  ;;  %v1946_v36 = vadd.f32 %v1945_v32, %v1944_v28 }
 0x174   :  { %v1986_v37 = vrot.slane %v1985_v33, 1  ;;  %v2003_v38 = vadd.f32 %v2002_v34, %v2001_v30 }
 0x175   :  { %v1930_v39 = vadd.f32 %v1929_v35, %v1928_v31  ;;  %v1947_v40 = vrot.slane %v1946_v36, 1 }
 0x176   :  { %v2004_v41 = vrot.slane %v2003_v38, 1  ;;  %v1987_v44 = vadd.f32 %v1986_v37, %v1985_v33 }
 0x177   :  { %v1931_v42 = vadd.f32 %v1930_v39, %v3241_v4  ;;  %v1948_v43 = vadd.f32 %v1947_v40, %v1946_v36 }
 0x178   :  { %v2005_v47 = vadd.f32 %v2004_v41, %v2003_v38 }
 0x179   :  { %v1949_v45 = vadd.f32 %v1948_v43, %v3243_v6  ;;  %v1988_v46 = vadd.f32 %v1987_v44, %v1931_v42 }
 0x17b   :  { %v2006_v48 = vadd.f32 %v2005_v47, %v1949_v45  ;;  %2008 = vst.msk [vmem:[%s3312_s3] sm:$0x1] %vm2007_vm3, %v1988_v46 }
 0x17d   :  { %2009 = vst.msk [vmem:[%s3313_s4] sm:$0x1] %vm2007_vm3, %v2006_v48 }

// kernel: generator_forward.6
= control target key start
LH: loop header
LB: loop body
LE: loop exit
PB: predicated region body
PF: predicated region fallthrough
CT: control target
= control target key end

     0   :  { %vm172_vm0 = vcmask 261120   ;;  %vm19_vm1 = vcmask 130048   ;;  %vm3667_vm2 = vcmask 125952   ;;  %vm4343_vm3 = vcmask 122880   ;;  %s7408_s1 = inlined_call_operand.vmem [shape: bf16[4,4,32,16], index: 1, kind: input, shape index: {}]   ;;  %s7409_s0 = inlined_call_operand.vmem [shape: bf16[9,128,32], index: 0, kind: input, shape index: {}]   ;;  %s7410_s2 = inlined_call_operand.vmem [shape: bf16[4,128,16], index: 2, kind: output, shape index: {0}]   ;;  %s7411_s3 = inlined_call_operand.vmem [shape: f32[1,1,16], index: 3, kind: output, shape index: {1}]   ;;  %s7412_s4 = inlined_call_operand.vmem [shape: f32[1,1,16], index: 4, kind: output, shape index: {2}]  }
   0x1   :  { %v5859_v0 = vld [vmem:[%s7408_s1] sm:$0xff]   ;;  %v5861_v2 = vld [vmem:[%s7408_s1 + $0x8] sm:$0xff]   ;;  %v5866_v7 = vld [vmem:[%s7408_s1 + $0x10] sm:$0xff]  }
   0x2   :  { %v5860_v1 = vld [vmem:[%s7408_s1 + $0x40] sm:$0xff]   ;;  %5282 = vmatprep.subr.bf16.mxu0 %v5859_v0  ;;  %v5862_v3 = vld [vmem:[%s7408_s1 + $0x48] sm:$0xff]   ;;  %v5868_v9 = vld [vmem:[%s7408_s1 + $0x50] sm:$0xff]  }
   0x3   :  { %5362 = vmatprep.subr.bf16.mxu1 %v5860_v1  ;;  %5283 = vmatpush3.bf16.msra.mxu0 %v5859_v0  ;;  %v5863_v4 = vld [vmem:[%s7409_s0] sm:$0xff]   ;;  %v5865_v6 = vld [vmem:[%s7409_s0 + $0x8] sm:$0xff]   ;;  %v5869_v10 = vld [vmem:[%s7409_s0 + $0x10] sm:$0xff]  }
   0x4   :  { %5363 = vmatpush3.bf16.msra.mxu1 %v5860_v1  ;;  %5284 = vmatprep.subr.bf16.mxu0 %v5861_v2  ;;  %v5864_v5 = vld [vmem:[%s7409_s0 + $0x40] sm:$0xff]   ;;  %v5867_v8 = vld [vmem:[%s7409_s0 + $0x48] sm:$0xff]   ;;  %v5870_v11 = vld [vmem:[%s7409_s0 + $0x50] sm:$0xff]  }
   0x5   :  { %5364 = vmatprep.subr.bf16.mxu1 %v5862_v3  ;;  %5286 = vmatprep.mubr.msk.bf16.mxu0 %vm172_vm0, %v5863_v4  ;;  %v5871_v12 = vld [vmem:[%s7409_s0 + $0x18] sm:$0xff]   ;;  %v5873_v14 = vld [vmem:[%s7409_s0 + $0x20] sm:$0xff]   ;;  %v5875_v18 = vld [vmem:[%s7409_s0 + $0x28] sm:$0xff]  }
   0x6   :  { %5366 = vmatprep.mubr.msk.bf16.mxu1 %vm172_vm0, %v5864_v5  ;;  %v5872_v13 = vld [vmem:[%s7409_s0 + $0x58] sm:$0xff]   ;;  %v5874_v15 = vld [vmem:[%s7409_s0 + $0x60] sm:$0xff]   ;;  %v5877_v19 = vld [vmem:[%s7409_s0 + $0x68] sm:$0xff]  }
   0x7   :  { %5285 = vmatpush3.bf16.msra.mxu0 %v5861_v2  ;;  %v5876_v16 = vld [vmem:[%s7408_s1 + $0x18] sm:$0xff]   ;;  %v5879_v20 = vld [vmem:[%s7409_s0 + $0x30] sm:$0xff]   ;;  %v5886_v22 = vld [vmem:[%s7408_s1 + $0x20] sm:$0xff]  }
   0x8   :  { %5365 = vmatpush3.bf16.msra.mxu1 %v5862_v3  ;;  %5302 = vmatprep.subr.bf16.mxu0 %v5866_v7  ;;  %v5878_v17 = vld [vmem:[%s7408_s1 + $0x58] sm:$0xff]   ;;  %v5880_v21 = vld [vmem:[%s7409_s0 + $0x70] sm:$0xff]   ;;  %v5888_v24 = vld [vmem:[%s7408_s1 + $0x60] sm:$0xff]  }
   0x9   :  { %5382 = vmatprep.subr.bf16.mxu1 %v5868_v9  ;;  %v5881_v23 = vld [vmem:[%s7409_s0 + $0x38] sm:$0xff]   ;;  %v5883_v26 = vld [vmem:[%s7409_s0 + $0x40] sm:$0xff]   ;;  %v5885_v28 = vld [vmem:[%s7409_s0 + $0x48] sm:$0xff]  }
   0xa   :  { %5287 = vmatmul.mubr.msk.bf16.vlgmr.msra.gmra.mrb[0].mxu0 %vm172_vm0, %v5865_v6  ;;  %v5882_v25 = vld [vmem:[%s7409_s0 + $0x78] sm:$0xff]   ;;  %v5884_v27 = vld [vmem:[%s7409_s0 + $0x80] sm:$0xff]   ;;  %v5887_v29 = vld [vmem:[%s7409_s0 + $0x88] sm:$0xff]  }
   0xb   :  { %5367 = vmatmul.mubr.msk.bf16.vlgmr.msra.gmra.mrb[0].mxu1 %vm172_vm0, %v5867_v8  ;;  %5303 = vmatpush3.bf16.msra.mxu0 %v5866_v7  ;;  %v5889_v30 = vld [vmem:[%s7409_s0 + $0x50] sm:$0xff]   ;;  %v5896_v32 = vld [vmem:[%s7408_s1 + $0x28] sm:$0xff]   ;;  %v5891_v34 = vld [vmem:[%s7409_s0 + $0x58] sm:$0xff]  }
   0xc   :  { %5290 = vmatprep.mubr.msk.bf16.mxu0 %vm172_vm0, %v5869_v10  ;;  %5383 = vmatpush3.bf16.msra.mxu1 %v5868_v9  ;;  %v5890_v31 = vld [vmem:[%s7409_s0 + $0x90] sm:$0xff]   ;;  %v5898_v33 = vld [vmem:[%s7408_s1 + $0x68] sm:$0xff]   ;;  %v5892_v35 = vld [vmem:[%s7409_s0 + $0x98] sm:$0xff]  }
   0xd   :  { %5370 = vmatprep.mubr.msk.bf16.mxu1 %vm172_vm0, %v5870_v11  ;;  %5304 = vmatprep.subr.bf16.mxu0 %v5876_v16  ;;  %v5893_v36 = vld [vmem:[%s7409_s0 + $0x60] sm:$0xff]   ;;  %v5906_v37 = vld [vmem:[%s7408_s1 + $0x30] sm:$0xff]   ;;  %v5895_v40 = vld [vmem:[%s7409_s0 + $0x68] sm:$0xff]  }
   0xe   :  { %5384 = vmatprep.subr.bf16.mxu1 %v5878_v17  ;;  %v5894_v38 = vld [vmem:[%s7409_s0 + $0xa0] sm:$0xff]   ;;  %v5908_v39 = vld [vmem:[%s7408_s1 + $0x70] sm:$0xff]   ;;  %v5897_v41 = vld [vmem:[%s7409_s0 + $0xa8] sm:$0xff]  }
   0xf   :  { %5305 = vmatpush3.bf16.msra.mxu0 %v5876_v16  ;;  %v5899_v42 = vld [vmem:[%s7409_s0 + $0x70] sm:$0xff]   ;;  %v5901_v44 = vld [vmem:[%s7409_s0 + $0x78] sm:$0xff]   ;;  %v5903_v46 = vld [vmem:[%s7409_s0 + $0xc0] sm:$0xff]  }
  0x10   :  { %5385 = vmatpush3.bf16.msra.mxu1 %v5878_v17  ;;  %5322 = vmatprep.subr.bf16.mxu0 %v5886_v22  ;;  %v5900_v43 = vld [vmem:[%s7409_s0 + $0xb0] sm:$0xff]   ;;  %v5902_v45 = vld [vmem:[%s7409_s0 + $0xb8] sm:$0xff]   ;;  %v5904_v47 = vld [vmem:[%s7409_s0 + $0x100] sm:$0xff]  }
  0x11   :  { %5402 = vmatprep.subr.bf16.mxu1 %v5888_v24  ;;  %v5905_v48 = vld [vmem:[%s7409_s0 + $0xc8] sm:$0xff]   ;;  %v5909_v50 = vld [vmem:[%s7409_s0 + $0xd0] sm:$0xff]   ;;  %v5916_v52 = vld [vmem:[%s7408_s1 + $0x38] sm:$0xff]  }
  0x12   :  { %5291 = vmatmul.mubr.msk.bf16.gmra.mrb[4].mxu0 %vm172_vm0, %v5871_v12  ;;  %v5907_v49 = vld [vmem:[%s7409_s0 + $0x108] sm:$0xff]   ;;  %v5910_v51 = vld [vmem:[%s7409_s0 + $0x110] sm:$0xff]   ;;  %v5918_v53 = vld [vmem:[%s7408_s1 + $0x78] sm:$0xff]  }
  0x13   :  { %5371 = vmatmul.mubr.msk.bf16.gmra.mrb[4].mxu1 %vm172_vm0, %v5872_v13  ;;  %5294 = vmatprep.mubr.msk.bf16.mxu0 %vm172_vm0, %v5873_v14  ;;  %v5911_v54 = vld [vmem:[%s7409_s0 + $0xd8] sm:$0xff]   ;;  %v5927_v55 = vld [vmem:[%s7408_s1 + $0x80] sm:$0xff]   ;;  %v5915_v60 = vld [vmem:[%s7409_s0 + $0xe8] sm:$0xff]  }
  0x14   :  { %5374 = vmatprep.mubr.msk.bf16.mxu1 %vm172_vm0, %v5874_v15  ;;  %v5928_v56 = vld [vmem:[%s7408_s1 + $0xc0] sm:$0xff]   ;;  %v5912_v57 = vld [vmem:[%s7409_s0 + $0x118] sm:$0xff]   ;;  %v5917_v61 = vld [vmem:[%s7409_s0 + $0x128] sm:$0xff]  }
  0x15   :  { %v5913_v58 = vld [vmem:[%s7409_s0 + $0xe0] sm:$0xff]   ;;  %v5919_v62 = vld [vmem:[%s7409_s0 + $0xf0] sm:$0xff]   ;;  %v5921_v0 = vld [vmem:[%s7409_s0 + $0xf8] sm:$0xff]  }
  0x16   :  { %v5914_v59 = vld [vmem:[%s7409_s0 + $0x120] sm:$0xff]   ;;  %v5920_v63 = vld [vmem:[%s7409_s0 + $0x130] sm:$0xff]   ;;  %v5922_v1 = vld [vmem:[%s7409_s0 + $0x138] sm:$0xff]  }
  0x17   :  { %v5923_v2 = vld [vmem:[%s7409_s0 + $0x100] sm:$0xff]   ;;  %v5925_v4 = vld [vmem:[%s7409_s0 + $0x108] sm:$0xff]   ;;  %v5929_v6 = vld [vmem:[%s7409_s0 + $0x110] sm:$0xff]  }
  0x18   :  { %v5924_v3 = vld [vmem:[%s7409_s0 + $0x140] sm:$0xff]   ;;  %v5926_v5 = vld [vmem:[%s7409_s0 + $0x148] sm:$0xff]   ;;  %v5930_v7 = vld [vmem:[%s7409_s0 + $0x150] sm:$0xff]  }
  0x19   :  { %v5937_v8 = vld [vmem:[%s7408_s1 + $0x88] sm:$0xff]   ;;  %v5931_v10 = vld [vmem:[%s7409_s0 + $0x118] sm:$0xff]   ;;  %v6326_v11 = vld [vmem:[%s7408_s1 + $0x90] sm:$0xff]  }
  0x1a   :  { %5295 = vmatmul.mubr.msk.bf16.gmra.mrb[8].mxu0 %vm172_vm0, %v5875_v18  ;;  %v5938_v9 = vld [vmem:[%s7408_s1 + $0xc8] sm:$0xff]   ;;  %v6332_v12 = vld [vmem:[%s7408_s1 + $0xd0] sm:$0xff]   ;;  %v5932_v13 = vld [vmem:[%s7409_s0 + $0x158] sm:$0xff]  }
  0x1b   :  { %5375 = vmatmul.mubr.msk.bf16.gmra.mrb[8].mxu1 %vm172_vm0, %v5877_v19  ;;  %5298 = vmatprep.mubr.msk.bf16.mxu0 %vm172_vm0, %v5879_v20  ;;  %v5933_v14 = vld [vmem:[%s7409_s0 + $0x120] sm:$0xff]   ;;  %v5935_v16 = vld [vmem:[%s7409_s0 + $0x128] sm:$0xff]   ;;  %v5939_v18 = vld [vmem:[%s7409_s0 + $0x130] sm:$0xff]  }
  0x1c   :  { %5378 = vmatprep.mubr.msk.bf16.mxu1 %vm172_vm0, %v5880_v21  ;;  %v5934_v15 = vld [vmem:[%s7409_s0 + $0x160] sm:$0xff]   ;;  %v5936_v17 = vld [vmem:[%s7409_s0 + $0x168] sm:$0xff]   ;;  %v5940_v19 = vld [vmem:[%s7409_s0 + $0x170] sm:$0xff]  }
  0x1d   :  { %v5941_v20 = vld [vmem:[%s7409_s0 + $0x138] sm:$0xff]  }
  0x1e   :  { %v5942_v21 = vld [vmem:[%s7409_s0 + $0x178] sm:$0xff]  }
  0x22   :  { %5299 = vmatmul.mubr.msk.bf16.gmra.mrb[12].mxu0 %vm172_vm0, %v5881_v23  ;;  %v5944_v23 = vld [vmem:[%s7409_s0 + $0x100] sm:$0xff]  }
  0x23   :  { %5379 = vmatmul.mubr.msk.bf16.gmra.mrb[12].mxu1 %vm172_vm0, %v5882_v25  ;;  %5306 = vmatprep.mubr.msk.bf16.mxu0 %vm172_vm0, %v5883_v26  ;;  %v6019_v25 = vmov 0.0   ;;  %v5947_v26 = vld [vmem:[%s7409_s0 + $0x108] sm:$0xff]  }
  0x24   :  { %5386 = vmatprep.mubr.msk.bf16.mxu1 %vm172_vm0, %v5884_v27  ;;  %22 = vst.msk [vmem:[#allocation2 + $0x10] sm:$0xff] %vm19_vm1, %v6019_v25  ;;  %20 = vst.msk [vmem:[#allocation2] sm:$0xff] %vm19_vm1, %v6019_v25  ;;  %v5949_v27 = vld [vmem:[%s7409_s0 + $0xd0] sm:$0xff]  }
  0x25   :  { %21 = vst.msk [vmem:[#allocation2 + $0x8] sm:$0xff] %vm19_vm1, %v6019_v25  ;;  %23 = vst.msk [vmem:[#allocation2 + $0x18] sm:$0xff] %vm19_vm1, %v6019_v25 }
  0x26   :  { %24 = vst.msk [vmem:[#allocation2 + $0x20] sm:$0xff] %vm19_vm1, %v6019_v25  ;;  %25 = vst.msk [vmem:[#allocation2 + $0x28] sm:$0xff] %vm19_vm1, %v6019_v25 }
  0x27   :  { %26 = vst.msk [vmem:[#allocation2 + $0x30] sm:$0xff] %vm19_vm1, %v6019_v25  ;;  %27 = vst.msk [vmem:[#allocation2 + $0x38] sm:$0xff] %vm19_vm1, %v6019_v25 }
  0x28   :  { %28 = vst.msk [vmem:[#allocation2 + $0x40] sm:$0xff] %vm19_vm1, %v6019_v25  ;;  %29 = vst.msk [vmem:[#allocation2 + $0x48] sm:$0xff] %vm19_vm1, %v6019_v25 }
  0x29   :  { %30 = vst.msk [vmem:[#allocation2 + $0x50] sm:$0xff] %vm19_vm1, %v6019_v25  ;;  %31 = vst.msk [vmem:[#allocation2 + $0x58] sm:$0xff] %vm19_vm1, %v6019_v25 }
  0x2a   :  { %5307 = vmatmul.mubr.msk.bf16.vlgmr.msra.gmra.mrb[0].mxu0 %vm172_vm0, %v5885_v28  ;;  %32 = vst.msk [vmem:[#allocation2 + $0x60] sm:$0xff] %vm19_vm1, %v6019_v25  ;;  %33 = vst.msk [vmem:[#allocation2 + $0x68] sm:$0xff] %vm19_vm1, %v6019_v25  ;;  %v5950_v28 = vld [vmem:[%s7409_s0 + $0x110] sm:$0xff]  }
  0x2b   :  { %5387 = vmatmul.mubr.msk.bf16.vlgmr.msra.gmra.mrb[0].mxu1 %vm172_vm0, %v5887_v29  ;;  %5323 = vmatpush3.bf16.msra.mxu0 %v5886_v22  ;;  %v5943_v22 = vld [vmem:[%s7409_s0 + $0xc0] sm:$0xff]   ;;  %34 = vst.msk [vmem:[#allocation2 + $0x70] sm:$0xff] %vm19_vm1, %v6019_v25  ;;  %35 = vst.msk [vmem:[#allocation2 + $0x78] sm:$0xff] %vm19_vm1, %v6019_v25  ;;  %v5956_v29 = vld [vmem:[%s7408_s1 + $0x98] sm:$0xff]  }
  0x2c   :  { %5403 = vmatpush3.bf16.msra.mxu1 %v5888_v24  ;;  %5310 = vmatprep.mubr.msk.bf16.mxu0 %vm172_vm0, %v5889_v30  ;;  %v6384_v24 = vld [vmem:[%s7409_s0 + $0xc8] sm:$0xff]   ;;  %36 = vst.msk [vmem:[#allocation2 + $0x80] sm:$0xff] %vm19_vm1, %v6019_v25  ;;  %37 = vst.msk [vmem:[#allocation2 + $0x88] sm:$0xff] %vm19_vm1, %v6019_v25  ;;  %v5958_v30 = vld [vmem:[%s7408_s1 + $0xd8] sm:$0xff]  }
  0x2d   :  { %5390 = vmatprep.mubr.msk.bf16.mxu1 %vm172_vm0, %v5890_v31  ;;  %5324 = vmatprep.subr.bf16.mxu0 %v5896_v32  ;;  %38 = vst.msk [vmem:[#allocation2 + $0x90] sm:$0xff] %vm19_vm1, %v6019_v25  ;;  %39 = vst.msk [vmem:[#allocation2 + $0x98] sm:$0xff] %vm19_vm1, %v6019_v25  ;;  %v5951_v31 = vld [vmem:[%s7409_s0 + $0xd8] sm:$0xff]  }
  0x2e   :  { %5404 = vmatprep.subr.bf16.mxu1 %v5898_v33  ;;  %40 = vst.msk [vmem:[#allocation2 + $0xa0] sm:$0xff] %vm19_vm1, %v6019_v25  ;;  %41 = vst.msk [vmem:[#allocation2 + $0xa8] sm:$0xff] %vm19_vm1, %v6019_v25 }
  0x2f   :  { %5325 = vmatpush3.bf16.msra.mxu0 %v5896_v32  ;;  %42 = vst.msk [vmem:[#allocation2 + $0xb0] sm:$0xff] %vm19_vm1, %v6019_v25  ;;  %43 = vst.msk [vmem:[#allocation2 + $0xb8] sm:$0xff] %vm19_vm1, %v6019_v25  ;;  %v5966_v32 = vld [vmem:[%s7408_s1 + $0xa0] sm:$0xff]  }
  0x30   :  { %5405 = vmatpush3.bf16.msra.mxu1 %v5898_v33  ;;  %5342 = vmatprep.subr.bf16.mxu0 %v5906_v37  ;;  %44 = vst.msk [vmem:[#allocation2 + $0xc0] sm:$0xff] %vm19_vm1, %v6019_v25  ;;  %45 = vst.msk [vmem:[#allocation2 + $0xc8] sm:$0xff] %vm19_vm1, %v6019_v25  ;;  %v5968_v33 = vld [vmem:[%s7408_s1 + $0xe0] sm:$0xff]  }
  0x31   :  { %5422 = vmatprep.subr.bf16.mxu1 %v5908_v39  ;;  %46 = vst.msk [vmem:[#allocation2 + $0xd0] sm:$0xff] %vm19_vm1, %v6019_v25  ;;  %47 = vst.msk [vmem:[#allocation2 + $0xd8] sm:$0xff] %vm19_vm1, %v6019_v25 }
  0x32   :  { %5311 = vmatmul.mubr.msk.bf16.gmra.mrb[4].mxu0 %vm172_vm0, %v5891_v34  ;;  %48 = vst.msk [vmem:[#allocation2 + $0xe0] sm:$0xff] %vm19_vm1, %v6019_v25  ;;  %49 = vst.msk [vmem:[#allocation2 + $0xe8] sm:$0xff] %vm19_vm1, %v6019_v25  ;;  %v5952_v34 = vld [vmem:[%s7409_s0 + $0x118] sm:$0xff]  }
  0x33   :  { %5391 = vmatmul.mubr.msk.bf16.gmra.mrb[4].mxu1 %vm172_vm0, %v5892_v35  ;;  %5314 = vmatprep.mubr.msk.bf16.mxu0 %vm172_vm0, %v5893_v36  ;;  %50 = vst.msk [vmem:[#allocation2 + $0xf0] sm:$0xff] %vm19_vm1, %v6019_v25  ;;  %51 = vst.msk [vmem:[#allocation2 + $0xf8] sm:$0xff] %vm19_vm1, %v6019_v25  ;;  %v5953_v35 = vld [vmem:[%s7409_s0 + $0xe0] sm:$0xff]  }
  0x34   :  { %5394 = vmatprep.mubr.msk.bf16.mxu1 %vm172_vm0, %v5894_v38  ;;  %52 = vst.msk [vmem:[#allocation2 + $0x100] sm:$0xff] %vm19_vm1, %v6019_v25  ;;  %53 = vst.msk [vmem:[#allocation2 + $0x108] sm:$0xff] %vm19_vm1, %v6019_v25  ;;  %v5954_v36 = vld [vmem:[%s7409_s0 + $0x120] sm:$0xff]   ;;  %v5957_v38 = vld [vmem:[%s7409_s0 + $0x128] sm:$0xff]  }
  0x35   :  { %54 = vst.msk [vmem:[#allocation2 + $0x110] sm:$0xff] %vm19_vm1, %v6019_v25  ;;  %55 = vst.msk [vmem:[#allocation2 + $0x118] sm:$0xff] %vm19_vm1, %v6019_v25 }
  0x36   :  { %56 = vst.msk [vmem:[#allocation2 + $0x120] sm:$0xff] %vm19_vm1, %v6019_v25  ;;  %57 = vst.msk [vmem:[#allocation2 + $0x128] sm:$0xff] %vm19_vm1, %v6019_v25 }
  0x37   :  { %58 = vst.msk [vmem:[#allocation2 + $0x130] sm:$0xff] %vm19_vm1, %v6019_v25  ;;  %59 = vst.msk [vmem:[#allocation2 + $0x138] sm:$0xff] %vm19_vm1, %v6019_v25 }
  0x38   :  { %60 = vst.msk [vmem:[#allocation2 + $0x140] sm:$0xff] %vm19_vm1, %v6019_v25  ;;  %61 = vst.msk [vmem:[#allocation2 + $0x148] sm:$0xff] %vm19_vm1, %v6019_v25 }
  0x39   :  { %62 = vst.msk [vmem:[#allocation2 + $0x150] sm:$0xff] %vm19_vm1, %v6019_v25  ;;  %63 = vst.msk [vmem:[#allocation2 + $0x158] sm:$0xff] %vm19_vm1, %v6019_v25 }
  0x3a   :  { %5315 = vmatmul.mubr.msk.bf16.gmra.mrb[8].mxu0 %vm172_vm0, %v5895_v40  ;;  %64 = vst.msk [vmem:[#allocation2 + $0x160] sm:$0xff] %vm19_vm1, %v6019_v25  ;;  %65 = vst.msk [vmem:[#allocation2 + $0x168] sm:$0xff] %vm19_vm1, %v6019_v25  ;;  %v5960_v40 = vld [vmem:[%s7409_s0 + $0x130] sm:$0xff]  }
  0x3b   :  { %5395 = vmatmul.mubr.msk.bf16.gmra.mrb[8].mxu1 %vm172_vm0, %v5897_v41  ;;  %5318 = vmatprep.mubr.msk.bf16.mxu0 %vm172_vm0, %v5899_v42  ;;  %66 = vst.msk [vmem:[#allocation2 + $0x170] sm:$0xff] %vm19_vm1, %v6019_v25  ;;  %67 = vst.msk [vmem:[#allocation2 + $0x178] sm:$0xff] %vm19_vm1, %v6019_v25  ;;  %v5961_v41 = vld [vmem:[%s7409_s0 + $0xf8] sm:$0xff]  }
  0x3c   :  { %5398 = vmatprep.mubr.msk.bf16.mxu1 %vm172_vm0, %v5900_v43  ;;  %68 = vst.msk [vmem:[#allocation2 + $0x180] sm:$0xff] %vm19_vm1, %v6019_v25  ;;  %69 = vst.msk [vmem:[#allocation2 + $0x188] sm:$0xff] %vm19_vm1, %v6019_v25  ;;  %v5962_v42 = vld [vmem:[%s7409_s0 + $0x138] sm:$0xff]   ;;  %v5963_v43 = vld [vmem:[%s7409_s0 + $0x100] sm:$0xff]  }
  0x3d   :  { %70 = vst.msk [vmem:[#allocation2 + $0x190] sm:$0xff] %vm19_vm1, %v6019_v25  ;;  %71 = vst.msk [vmem:[#allocation2 + $0x198] sm:$0xff] %vm19_vm1, %v6019_v25 }
  0x3e   :  { %72 = vst.msk [vmem:[#allocation2 + $0x1a0] sm:$0xff] %vm19_vm1, %v6019_v25  ;;  %73 = vst.msk [vmem:[#allocation2 + $0x1a8] sm:$0xff] %vm19_vm1, %v6019_v25 }
  0x3f   :  { %74 = vst.msk [vmem:[#allocation2 + $0x1b0] sm:$0xff] %vm19_vm1, %v6019_v25  ;;  %75 = vst.msk [vmem:[#allocation2 + $0x1b8] sm:$0xff] %vm19_vm1, %v6019_v25 }
  0x40   :  { %76 = vst.msk [vmem:[#allocation2 + $0x1c0] sm:$0xff] %vm19_vm1, %v6019_v25  ;;  %77 = vst.msk [vmem:[#allocation2 + $0x1c8] sm:$0xff] %vm19_vm1, %v6019_v25 }
  0x41   :  { %78 = vst.msk [vmem:[#allocation2 + $0x1d0] sm:$0xff] %vm19_vm1, %v6019_v25  ;;  %79 = vst.msk [vmem:[#allocation2 + $0x1d8] sm:$0xff] %vm19_vm1, %v6019_v25 }
  0x42   :  { %5319 = vmatmul.mubr.msk.bf16.gmra.mrb[12].mxu0 %vm172_vm0, %v5901_v44  ;;  %80 = vst.msk [vmem:[#allocation2 + $0x1e0] sm:$0xff] %vm19_vm1, %v6019_v25  ;;  %81 = vst.msk [vmem:[#allocation2 + $0x1e8] sm:$0xff] %vm19_vm1, %v6019_v25  ;;  %v5964_v44 = vld [vmem:[%s7409_s0 + $0x140] sm:$0xff]  }
  0x43   :  { %5399 = vmatmul.mubr.msk.bf16.gmra.mrb[12].mxu1 %vm172_vm0, %v5902_v45  ;;  %5326 = vmatprep.mubr.msk.bf16.mxu0 %vm172_vm0, %v5903_v46  ;;  %82 = vst.msk [vmem:[#allocation2 + $0x1f0] sm:$0xff] %vm19_vm1, %v6019_v25  ;;  %83 = vst.msk [vmem:[#allocation2 + $0x1f8] sm:$0xff] %vm19_vm1, %v6019_v25  ;;  %v5965_v45 = vld [vmem:[%s7409_s0 + $0x108] sm:$0xff]   ;;  %v6011_v25 = vld [vmem:[%s7409_s0 + $0x1e0] sm:$0xff]  }
  0x44   :  { %5406 = vmatprep.mubr.msk.bf16.mxu1 %vm172_vm0, %v5904_v47  ;;  %v5967_v46 = vld [vmem:[%s7409_s0 + $0x148] sm:$0xff]   ;;  %v5969_v47 = vld [vmem:[%s7409_s0 + $0x110] sm:$0xff]  }
  0x4a   :  { %5327 = vmatmul.mubr.msk.bf16.vlgmr.msra.gmra.mrb[0].mxu0 %vm172_vm0, %v5905_v48  ;;  %v5970_v48 = vld [vmem:[%s7409_s0 + $0x150] sm:$0xff]  }
  0x4b   :  { %5407 = vmatmul.mubr.msk.bf16.vlgmr.msra.gmra.mrb[0].mxu1 %vm172_vm0, %v5907_v49  ;;  %5343 = vmatpush3.bf16.msra.mxu0 %v5906_v37  ;;  %v5955_v37 = vld [vmem:[%s7409_s0 + $0xe8] sm:$0xff]  }
  0x4c   :  { %5423 = vmatpush3.bf16.msra.mxu1 %v5908_v39  ;;  %5330 = vmatprep.mubr.msk.bf16.mxu0 %vm172_vm0, %v5909_v50  ;;  %v5959_v39 = vld [vmem:[%s7409_s0 + $0xf0] sm:$0xff]   ;;  %v5976_v49 = vld [vmem:[%s7408_s1 + $0xa8] sm:$0xff]  }
  0x4d   :  { %5410 = vmatprep.mubr.msk.bf16.mxu1 %vm172_vm0, %v5910_v51  ;;  %5344 = vmatprep.subr.bf16.mxu0 %v5916_v52  ;;  %v5978_v50 = vld [vmem:[%s7408_s1 + $0xe8] sm:$0xff]   ;;  %v5986_v51 = vld [vmem:[%s7408_s1 + $0xb0] sm:$0xff]  }
  0x4e   :  { %5424 = vmatprep.subr.bf16.mxu1 %v5918_v53 }
  0x4f   :  { %5345 = vmatpush3.bf16.msra.mxu0 %v5916_v52  ;;  %v5988_v52 = vld [vmem:[%s7408_s1 + $0xf0] sm:$0xff]  }
  0x50   :  { %5425 = vmatpush3.bf16.msra.mxu1 %v5918_v53  ;;  %5442 = vmatprep.subr.bf16.mxu0 %v5927_v55  ;;  %v5971_v53 = vld [vmem:[%s7409_s0 + $0x118] sm:$0xff]  }
  0x51   :  { %5522 = vmatprep.subr.bf16.mxu1 %v5928_v56 }
  0x52   :  { %5331 = vmatmul.mubr.msk.bf16.gmra.mrb[4].mxu0 %vm172_vm0, %v5911_v54  ;;  %v5972_v54 = vld [vmem:[%s7409_s0 + $0x158] sm:$0xff]  }
  0x53   :  { %5411 = vmatmul.mubr.msk.bf16.gmra.mrb[4].mxu1 %vm172_vm0, %v5912_v57  ;;  %5334 = vmatprep.mubr.msk.bf16.mxu0 %vm172_vm0, %v5913_v58  ;;  %v5975_v57 = vld [vmem:[%s7409_s0 + $0x128] sm:$0xff]  }
  0x54   :  { %5414 = vmatprep.mubr.msk.bf16.mxu1 %vm172_vm0, %v5914_v59  ;;  %v5977_v58 = vld [vmem:[%s7409_s0 + $0x168] sm:$0xff]   ;;  %v5979_v59 = vld [vmem:[%s7409_s0 + $0x130] sm:$0xff]  }
  0x5a   :  { %5335 = vmatmul.mubr.msk.bf16.gmra.mrb[8].mxu0 %vm172_vm0, %v5915_v60  ;;  %v5980_v60 = vld [vmem:[%s7409_s0 + $0x170] sm:$0xff]  }
  0x5b   :  { %5415 = vmatmul.mubr.msk.bf16.gmra.mrb[8].mxu1 %vm172_vm0, %v5917_v61  ;;  %5338 = vmatprep.mubr.msk.bf16.mxu0 %vm172_vm0, %v5919_v62  ;;  %v5981_v61 = vld [vmem:[%s7409_s0 + $0x138] sm:$0xff]  }
  0x5c   :  { %5418 = vmatprep.mubr.msk.bf16.mxu1 %vm172_vm0, %v5920_v63  ;;  %v5982_v62 = vld [vmem:[%s7409_s0 + $0x178] sm:$0xff]   ;;  %v5983_v63 = vld [vmem:[%s7409_s0 + $0x180] sm:$0xff]  }
  0x62   :  { %5339 = vmatmul.mubr.msk.bf16.gmra.mrb[12].mxu0 %vm172_vm0, %v5921_v0  ;;  %v5984_v0 = vld [vmem:[%s7409_s0 + $0x1c0] sm:$0xff]  }
  0x63   :  { %5419 = vmatmul.mubr.msk.bf16.gmra.mrb[12].mxu1 %vm172_vm0, %v5922_v1  ;;  %5346 = vmatprep.mubr.msk.bf16.mxu0 %vm172_vm0, %v5923_v2  ;;  %v5985_v1 = vld [vmem:[%s7409_s0 + $0x188] sm:$0xff]  }
  0x64   :  { %5426 = vmatprep.mubr.msk.bf16.mxu1 %vm172_vm0, %v5924_v3  ;;  %v5987_v2 = vld [vmem:[%s7409_s0 + $0x1c8] sm:$0xff]   ;;  %v5989_v3 = vld [vmem:[%s7409_s0 + $0x190] sm:$0xff]  }
  0x6a   :  { %5347 = vmatmul.mubr.msk.bf16.vlgmr.msra.gmra.mrb[0].mxu0 %vm172_vm0, %v5925_v4  ;;  %v5990_v4 = vld [vmem:[%s7409_s0 + $0x1d0] sm:$0xff]  }
  0x6b   :  { %5427 = vmatmul.mubr.msk.bf16.vlgmr.msra.gmra.mrb[0].mxu1 %vm172_vm0, %v5926_v5  ;;  %5443 = vmatpush3.bf16.msra.mxu0 %v5927_v55  ;;  %v5973_v55 = vld [vmem:[%s7409_s0 + $0x120] sm:$0xff]   ;;  %v5996_v5 = vld [vmem:[%s7408_s1 + $0xb8] sm:$0xff]  }
  0x6c   :  { %5523 = vmatpush3.bf16.msra.mxu1 %v5928_v56  ;;  %5350 = vmatprep.mubr.msk.bf16.mxu0 %vm172_vm0, %v5929_v6  ;;  %v5974_v56 = vld [vmem:[%s7409_s0 + $0x160] sm:$0xff]   ;;  %v5998_v6 = vld [vmem:[%s7408_s1 + $0xf8] sm:$0xff]  }
  0x6d   :  { %5430 = vmatprep.mubr.msk.bf16.mxu1 %vm172_vm0, %v5930_v7  ;;  %5444 = vmatprep.subr.bf16.mxu0 %v5937_v8  ;;  %v5991_v7 = vld [vmem:[%s7409_s0 + $0x198] sm:$0xff]  }
  0x6e   :  { %5524 = vmatprep.subr.bf16.mxu1 %v5938_v9 }
  0x6f   :  { %5445 = vmatpush3.bf16.msra.mxu0 %v5937_v8  ;;  %v5992_v8 = vld [vmem:[%s7409_s0 + $0x1d8] sm:$0xff]  }
  0x70   :  { %5525 = vmatpush3.bf16.msra.mxu1 %v5938_v9  ;;  %5462 = vmatprep.subr.bf16.mxu0 %v6326_v11  ;;  %v5993_v9 = vld [vmem:[%s7409_s0 + $0x1a0] sm:$0xff]  }
  0x71   :  { %5542 = vmatprep.subr.bf16.mxu1 %v6332_v12 }
  0x72   :  { %5351 = vmatmul.mubr.msk.bf16.gmra.mrb[4].mxu0 %vm172_vm0, %v5931_v10  ;;  %v5994_v10 = vld [vmem:[%s7409_s0 + $0x1e0] sm:$0xff]  }
  0x73   :  { %5431 = vmatmul.mubr.msk.bf16.gmra.mrb[4].mxu1 %vm172_vm0, %v5932_v13  ;;  %5354 = vmatprep.mubr.msk.bf16.mxu0 %vm172_vm0, %v5933_v14  ;;  %v5999_v13 = vld [vmem:[%s7409_s0 + $0x1b0] sm:$0xff]  }
  0x74   :  { %5434 = vmatprep.mubr.msk.bf16.mxu1 %vm172_vm0, %v5934_v15  ;;  %v6000_v14 = vld [vmem:[%s7409_s0 + $0x1f0] sm:$0xff]   ;;  %v6001_v15 = vld [vmem:[%s7409_s0 + $0x1b8] sm:$0xff]  }
  0x7a   :  { %5355 = vmatmul.mubr.msk.bf16.gmra.mrb[8].mxu0 %vm172_vm0, %v5935_v16  ;;  %v6002_v16 = vld [vmem:[%s7409_s0 + $0x1f8] sm:$0xff]  }
  0x7b   :  { %5435 = vmatmul.mubr.msk.bf16.gmra.mrb[8].mxu1 %vm172_vm0, %v5936_v17  ;;  %5358 = vmatprep.mubr.msk.bf16.mxu0 %vm172_vm0, %v5939_v18  ;;  %v6003_v17 = vld [vmem:[%s7409_s0 + $0x1c0] sm:$0xff]  }
  0x7c   :  { %5438 = vmatprep.mubr.msk.bf16.mxu1 %vm172_vm0, %v5940_v19  ;;  %v6004_v18 = vld [vmem:[%s7409_s0 + $0x200] sm:$0xff]   ;;  %v6005_v19 = vld [vmem:[%s7409_s0 + $0x1c8] sm:$0xff]  }
  0x82   :  { %5359 = vmatmul.mubr.msk.bf16.gmra.mrb[12].mxu0 %vm172_vm0, %v5941_v20  ;;  %v6006_v20 = vld [vmem:[%s7409_s0 + $0x208] sm:$0xff]  }
  0x83   :  { %5439 = vmatmul.mubr.msk.bf16.gmra.mrb[12].mxu1 %vm172_vm0, %v5942_v21  ;;  %5446 = vmatprep.mubr.msk.bf16.mxu0 %vm172_vm0, %v5943_v22  ;;  %v6007_v21 = vld [vmem:[%s7409_s0 + $0x1d0] sm:$0xff]  }
  0x84   :  { %5526 = vmatprep.mubr.msk.bf16.mxu1 %vm172_vm0, %v5944_v23  ;;  %v6008_v22 = vld [vmem:[%s7409_s0 + $0x210] sm:$0xff]   ;;  %v6009_v23 = vld [vmem:[%s7409_s0 + $0x1d8] sm:$0xff]  }
  0x8a   :  { %5447 = vmatmul.mubr.msk.bf16.vlgmr.msra.gmra.mrb[16].mxu0 %vm172_vm0, %v6384_v24  ;;  %v6010_v24 = vld [vmem:[%s7409_s0 + $0x218] sm:$0xff]  }
  0x8b   :  { %5527 = vmatmul.mubr.msk.bf16.vlgmr.msra.gmra.mrb[16].mxu1 %vm172_vm0, %v5947_v26  ;;  %5463 = vmatpush3.bf16.msra.mxu0 %v6326_v11  ;;  %v5995_v11 = vld [vmem:[%s7409_s0 + $0x1a8] sm:$0xff]   ;;  %v6012_v26 = vld [vmem:[%s7409_s0 + $0x220] sm:$0xff]  }
  0x8c   :  { %5543 = vmatpush3.bf16.msra.mxu1 %v6332_v12  ;;  %5450 = vmatprep.mubr.msk.bf16.mxu0 %vm172_vm0, %v5949_v27  ;;  %v5997_v12 = vld [vmem:[%s7409_s0 + $0x1e8] sm:$0xff]  }
  0x8d   :  { %5530 = vmatprep.mubr.msk.bf16.mxu1 %vm172_vm0, %v5950_v28  ;;  %5464 = vmatprep.subr.bf16.mxu0 %v5956_v29  ;;  %v6013_v27 = vld [vmem:[%s7409_s0 + $0x1e8] sm:$0xff]  }
  0x8e   :  { %5544 = vmatprep.subr.bf16.mxu1 %v5958_v30  ;;  %v6014_v28 = vld [vmem:[%s7409_s0 + $0x228] sm:$0xff]  }
  0x8f   :  { %5465 = vmatpush3.bf16.msra.mxu0 %v5956_v29  ;;  %v6015_v29 = vld [vmem:[%s7409_s0 + $0x1f0] sm:$0xff]  }
  0x90   :  { %5545 = vmatpush3.bf16.msra.mxu1 %v5958_v30  ;;  %5482 = vmatprep.subr.bf16.mxu0 %v5966_v32  ;;  %v6016_v30 = vld [vmem:[%s7409_s0 + $0x230] sm:$0xff]  }
  0x91   :  { %5562 = vmatprep.subr.bf16.mxu1 %v5968_v33 }
  0x92   :  { %5451 = vmatmul.mubr.msk.bf16.gmra.mrb[20].mxu0 %vm172_vm0, %v5951_v31  ;;  %v6017_v31 = vld [vmem:[%s7409_s0 + $0x1f8] sm:$0xff]  }
  0x93   :  { %5531 = vmatmul.mubr.msk.bf16.gmra.mrb[20].mxu1 %vm172_vm0, %v5952_v34  ;;  %5454 = vmatprep.mubr.msk.bf16.mxu0 %vm172_vm0, %v5953_v35  ;;  %v963_v34 = vld [vmem:[#allocation2 + $0x90] sm:$0xff]  ;;  %v84_v35 = vld [vmem:[#allocation2] sm:$0xff] }
  0x94   :  { %5534 = vmatprep.mubr.msk.bf16.mxu1 %vm172_vm0, %v5954_v36 }
  0x9a   :  { %5455 = vmatmul.mubr.msk.bf16.gmra.mrb[24].mxu0 %vm172_vm0, %v5955_v37  ;;  %v961_v37 = vld [vmem:[#allocation2 + $0x80] sm:$0xff] }
  0x9b   :  { %5535 = vmatmul.mubr.msk.bf16.gmra.mrb[24].mxu1 %vm172_vm0, %v5957_v38  ;;  %5458 = vmatprep.mubr.msk.bf16.mxu0 %vm172_vm0, %v5959_v39  ;;  %v87_v38 = vld [vmem:[#allocation2 + $0x18] sm:$0xff] }
  0x9c   :  { %5538 = vmatprep.mubr.msk.bf16.mxu1 %vm172_vm0, %v5960_v40 }
  0xa2   :  { %5459 = vmatmul.mubr.msk.bf16.gmra.mrb[28].mxu0 %vm172_vm0, %v5961_v41 }
  0xa3   :  { %5539 = vmatmul.mubr.msk.bf16.gmra.mrb[28].mxu1 %vm172_vm0, %v5962_v42  ;;  %5466 = vmatprep.mubr.msk.bf16.mxu0 %vm172_vm0, %v5963_v43  ;;  %v964_v42 = vld [vmem:[#allocation2 + $0x98] sm:$0xff]  ;;  %v85_v43 = vld [vmem:[#allocation2 + $0x8] sm:$0xff] }
  0xa4   :  { %5546 = vmatprep.mubr.msk.bf16.mxu1 %vm172_vm0, %v5964_v44 }
  0xaa   :  { %5467 = vmatmul.mubr.msk.bf16.vlgmr.msra.gmra.mrb[16].mxu0 %vm172_vm0, %v5965_v45 }
  0xab   :  { %5547 = vmatmul.mubr.msk.bf16.vlgmr.msra.gmra.mrb[16].mxu1 %vm172_vm0, %v5967_v46  ;;  %5483 = vmatpush3.bf16.msra.mxu0 %v5966_v32  ;;  %v6018_v32 = vld [vmem:[%s7409_s0 + $0x238] sm:$0xff]  }
  0xac   :  { %5563 = vmatpush3.bf16.msra.mxu1 %v5968_v33  ;;  %5470 = vmatprep.mubr.msk.bf16.mxu0 %vm172_vm0, %v5969_v47  ;;  %v86_v33 = vld [vmem:[#allocation2 + $0x10] sm:$0xff] }
  0xad   :  { %5550 = vmatprep.mubr.msk.bf16.mxu1 %vm172_vm0, %v5970_v48  ;;  %5484 = vmatprep.subr.bf16.mxu0 %v5976_v49  ;;  %v962_v48 = vld [vmem:[#allocation2 + $0x88] sm:$0xff] }
  0xae   :  { %5564 = vmatprep.subr.bf16.mxu1 %v5978_v50 }
  0xaf   :  { %5485 = vmatpush3.bf16.msra.mxu0 %v5976_v49 }
  0xb0   :  { %5565 = vmatpush3.bf16.msra.mxu1 %v5978_v50  ;;  %5502 = vmatprep.subr.bf16.mxu0 %v5986_v51 }
  0xb1   :  { %5582 = vmatprep.subr.bf16.mxu1 %v5988_v52 }
  0xb2   :  { %5471 = vmatmul.mubr.msk.bf16.gmra.mrb[20].mxu0 %vm172_vm0, %v5971_v53 }
  0xb3   :  { %5551 = vmatmul.mubr.msk.bf16.gmra.mrb[20].mxu1 %vm172_vm0, %v5972_v54  ;;  %5474 = vmatprep.mubr.msk.bf16.mxu0 %vm172_vm0, %v5973_v55 }
  0xb4   :  { %5554 = vmatprep.mubr.msk.bf16.mxu1 %vm172_vm0, %v5974_v56 }
  0xba   :  { %5475 = vmatmul.mubr.msk.bf16.gmra.mrb[24].mxu0 %vm172_vm0, %v5975_v57  ;;  %v90_v57 = vld [vmem:[#allocation2 + $0x30] sm:$0xff] }
  0xbb   :  { %5555 = vmatmul.mubr.msk.bf16.gmra.mrb[24].mxu1 %vm172_vm0, %v5977_v58  ;;  %5478 = vmatprep.mubr.msk.bf16.mxu0 %vm172_vm0, %v5979_v59  ;;  %v967_v58 = vld [vmem:[#allocation2 + $0xb0] sm:$0xff]  ;;  %v88_v59 = vld [vmem:[#allocation2 + $0x20] sm:$0xff] }
  0xbc   :  { %5558 = vmatprep.mubr.msk.bf16.mxu1 %vm172_vm0, %v5980_v60 }
  0xc2   :  { %5479 = vmatmul.mubr.msk.bf16.gmra.mrb[28].mxu0 %vm172_vm0, %v5981_v61  ;;  %v965_v61 = vld [vmem:[#allocation2 + $0xa0] sm:$0xff] }
  0xc3   :  { %5559 = vmatmul.mubr.msk.bf16.gmra.mrb[28].mxu1 %vm172_vm0, %v5982_v62  ;;  %5486 = vmatprep.mubr.msk.bf16.mxu0 %vm172_vm0, %v5983_v63 }
  0xc4   :  { %5566 = vmatprep.mubr.msk.bf16.mxu1 %vm172_vm0, %v5984_v0 }
  0xca   :  { %5487 = vmatmul.mubr.msk.bf16.vlgmr.msra.gmra.mrb[16].mxu0 %vm172_vm0, %v5985_v1 }
  0xcb   :  { %5567 = vmatmul.mubr.msk.bf16.vlgmr.msra.gmra.mrb[16].mxu1 %vm172_vm0, %v5987_v2  ;;  %5503 = vmatpush3.bf16.msra.mxu0 %v5986_v51 }
  0xcc   :  { %5583 = vmatpush3.bf16.msra.mxu1 %v5988_v52  ;;  %5490 = vmatprep.mubr.msk.bf16.mxu0 %vm172_vm0, %v5989_v3 }
  0xcd   :  { %5570 = vmatprep.mubr.msk.bf16.mxu1 %vm172_vm0, %v5990_v4  ;;  %5504 = vmatprep.subr.bf16.mxu0 %v5996_v5 }
  0xce   :  { %5584 = vmatprep.subr.bf16.mxu1 %v5998_v6 }
  0xcf   :  { %5505 = vmatpush3.bf16.msra.mxu0 %v5996_v5 }
  0xd0   :  { %5585 = vmatpush3.bf16.msra.mxu1 %v5998_v6 }
  0xd2   :  { %5491 = vmatmul.mubr.msk.bf16.gmra.mrb[20].mxu0 %vm172_vm0, %v5991_v7 }
  0xd3   :  { %5571 = vmatmul.mubr.msk.bf16.gmra.mrb[20].mxu1 %vm172_vm0, %v5992_v8  ;;  %5494 = vmatprep.mubr.msk.bf16.mxu0 %vm172_vm0, %v5993_v9 }
  0xd4   :  { %5574 = vmatprep.mubr.msk.bf16.mxu1 %vm172_vm0, %v5994_v10 }
  0xda   :  { %5495 = vmatmul.mubr.msk.bf16.gmra.mrb[24].mxu0 %vm172_vm0, %v5995_v11 }
  0xdb   :  { %5575 = vmatmul.mubr.msk.bf16.gmra.mrb[24].mxu1 %vm172_vm0, %v5997_v12  ;;  %5498 = vmatprep.mubr.msk.bf16.mxu0 %vm172_vm0, %v5999_v13 }
  0xdc   :  { %5578 = vmatprep.mubr.msk.bf16.mxu1 %vm172_vm0, %v6000_v14 }
  0xe2   :  { %5499 = vmatmul.mubr.msk.bf16.gmra.mrb[28].mxu0 %vm172_vm0, %v6001_v15 }
  0xe3   :  { %5579 = vmatmul.mubr.msk.bf16.gmra.mrb[28].mxu1 %vm172_vm0, %v6002_v16  ;;  %5506 = vmatprep.mubr.msk.bf16.mxu0 %vm172_vm0, %v6003_v17 }
  0xe4   :  { %5586 = vmatprep.mubr.msk.bf16.mxu1 %vm172_vm0, %v6004_v18 }
  0xea   :  { %5507 = vmatmul.mubr.msk.bf16.vlgmr.msra.gmra.mrb[16].mxu0 %vm172_vm0, %v6005_v19 }
  0xeb   :  { %5587 = vmatmul.mubr.msk.bf16.vlgmr.msra.gmra.mrb[16].mxu1 %vm172_vm0, %v6006_v20  ;;  %5510 = vmatprep.mubr.msk.bf16.mxu0 %vm172_vm0, %v6007_v21 }
  0xec   :  { %5590 = vmatprep.mubr.msk.bf16.mxu1 %vm172_vm0, %v6008_v22 }
  0xf2   :  { %5511 = vmatmul.mubr.msk.bf16.gmra.mrb[20].mxu0 %vm172_vm0, %v6009_v23 }
  0xf3   :  { %5591 = vmatmul.mubr.msk.bf16.gmra.mrb[20].mxu1 %vm172_vm0, %v6010_v24  ;;  %5514 = vmatprep.mubr.msk.bf16.mxu0 %vm172_vm0, %v6011_v25 }
  0xf4   :  { %5594 = vmatprep.mubr.msk.bf16.mxu1 %vm172_vm0, %v6012_v26 }
  0xfa   :  { %5515 = vmatmul.mubr.msk.bf16.gmra.mrb[24].mxu0 %vm172_vm0, %v6013_v27 }
  0xfb   :  { %5595 = vmatmul.mubr.msk.bf16.gmra.mrb[24].mxu1 %vm172_vm0, %v6014_v28  ;;  %5518 = vmatprep.mubr.msk.bf16.mxu0 %vm172_vm0, %v6015_v29 }
  0xfc   :  { %5598 = vmatprep.mubr.msk.bf16.mxu1 %vm172_vm0, %v6016_v30 }
 0x102   :  { %5519 = vmatmul.mubr.msk.bf16.gmra.mrb[28].mxu0 %vm172_vm0, %v6017_v31 }
 0x103   :  { %5599 = vmatmul.mubr.msk.bf16.gmra.mrb[28].mxu1 %vm172_vm0, %v6018_v32 }
 0x13d   :  { %v5348_v36 = vpop.f32.mrb[0].mxu0 }
 0x13e   :  { %v5602_v39 = vadd.f32 %v5348_v36, %v86_v33  ;;  %v5428_v40 = vpop.f32.mrb[0].mxu1  ;;  %v864_v41 = vpop.f32.mrb[1].mxu0 }
 0x13f   :  { %v5618_v44 = vadd.f32 %v5428_v40, %v963_v34  ;;  %v5603_v45 = vadd.f32 %v864_v41, %v84_v35  ;;  %v1740_v46 = vpop.f32.mrb[1].mxu1  ;;  %v5349_v47 = vpop.f32.mrb[2].mxu0 }
 0x140   :  { %946 = vst.msk [vmem:[#allocation2 + $0x10] sm:$0xff] %vm19_vm1, %v5602_v39  ;;  %v5619_v49 = vadd.f32 %v1740_v46, %v961_v37  ;;  %v5604_v50 = vadd.f32 %v5349_v47, %v87_v38  ;;  %v5429_v51 = vpop.f32.mrb[2].mxu1  ;;  %v867_v52 = vpop.f32.mrb[3].mxu0 }
 0x141   :  { %1821 = vst.msk [vmem:[#allocation2 + $0x90] sm:$0xff] %vm19_vm1, %v5618_v44  ;;  %944 = vst.msk [vmem:[#allocation2] sm:$0xff] %vm19_vm1, %v5603_v45  ;;  %v5620_v53 = vadd.f32 %v5429_v51, %v964_v42  ;;  %v5605_v54 = vadd.f32 %v867_v52, %v85_v43  ;;  %v1743_v55 = vpop.f32.mrb[3].mxu1 }
 0x142   :  { %1819 = vst.msk [vmem:[#allocation2 + $0x80] sm:$0xff] %vm19_vm1, %v5619_v49  ;;  %947 = vst.msk [vmem:[#allocation2 + $0x18] sm:$0xff] %vm19_vm1, %v5604_v50  ;;  %v5621_v56 = vadd.f32 %v1743_v55, %v962_v48 }
 0x143   :  { %1822 = vst.msk [vmem:[#allocation2 + $0x98] sm:$0xff] %vm19_vm1, %v5620_v53  ;;  %945 = vst.msk [vmem:[#allocation2 + $0x8] sm:$0xff] %vm19_vm1, %v5605_v54 }
 0x144   :  { %1820 = vst.msk [vmem:[#allocation2 + $0x88] sm:$0xff] %vm19_vm1, %v5621_v56 }
 0x145   :  { %v5352_v60 = vpop.f32.mrb[4].mxu0 }
 0x146   :  { %v5606_v62 = vadd.f32 %v5352_v60, %v90_v57  ;;  %v5432_v63 = vpop.f32.mrb[4].mxu1  ;;  %v880_v0 = vpop.f32.mrb[5].mxu0 }
 0x147   :  { %v3589_v1 = vld [vmem:[#allocation2 + $0x10] sm:$0xff]  ;;  %v5622_v2 = vadd.f32 %v5432_v63, %v967_v58  ;;  %v5607_v3 = vadd.f32 %v880_v0, %v88_v59  ;;  %v1756_v4 = vpop.f32.mrb[5].mxu1  ;;  %v6800_v5 = vpop.f32.mrb[6].mxu0 }
 0x148   :  { %v5060_v6 = vpack.c.bf16 %v3589_v1, %v3589_v1  ;;  %v3724_v7 = vmul.f32 %v3589_v1, %v3589_v1  ;;  %v3778_v8 = vld [vmem:[#allocation2 + $0x90] sm:$0xff]  ;;  %v3587_v9 = vld [vmem:[#allocation2] sm:$0xff]  ;;  %950 = vst.msk [vmem:[#allocation2 + $0x30] sm:$0xff] %vm19_vm1, %v5606_v62  ;;  %v5623_v10 = vadd.f32 %v1756_v4, %v965_v61  ;;  %v6803_v11 = vpop.f32.mrb[6].mxu1  ;;  %v6805_v12 = vpop.f32.mrb[7].mxu0  ;;  %v3687_v23 = vsel %vm19_vm1, %v3589_v1, 0.0 }
 0x149   :  { %v5076_v13 = vpack.c.bf16 %v3778_v8, %v3778_v8  ;;  %v3913_v14 = vmul.f32 %v3778_v8, %v3778_v8  ;;  %v5058_v15 = vpack.c.bf16 %v3587_v9, %v3587_v9  ;;  %v3776_v16 = vld [vmem:[#allocation2 + $0x80] sm:$0xff]  ;;  %v3590_v17 = vld [vmem:[#allocation2 + $0x18] sm:$0xff]  ;;  %1825 = vst.msk [vmem:[#allocation2 + $0xb0] sm:$0xff] %vm19_vm1, %v5622_v2  ;;  %948 = vst.msk [vmem:[#allocation2 + $0x20] sm:$0xff] %vm19_vm1, %v5607_v3  ;;  %v6809_v18 = vpop.f32.mrb[7].mxu1  ;;  %v3876_v27 = vsel %vm19_vm1, %v3778_v8, 0.0 }
 0x14a   :  { %3670 = vst.msk [vmem:[%s7410_s2 + $0x8] sm:$0xf] %vm3667_vm2, %v5060_v6  ;;  %v3722_v19 = vmul.f32 %v3587_v9, %v3587_v9  ;;  %v5074_v20 = vpack.c.bf16 %v3776_v16, %v3776_v16  ;;  %v3779_v21 = vld [vmem:[#allocation2 + $0x98] sm:$0xff]  ;;  %v3588_v22 = vld [vmem:[#allocation2 + $0x8] sm:$0xff]  ;;  %v5061_v24 = vpack.c.bf16 %v3590_v17, %v3590_v17  ;;  %v3741_v26 = vsel %vm19_vm1, %v3724_v7, 0.0 }
 0x14b   :  { %1823 = vst.msk [vmem:[#allocation2 + $0xa0] sm:$0xff] %vm19_vm1, %v5623_v10  ;;  %v3777_v25 = vld [vmem:[#allocation2 + $0x88] sm:$0xff]  ;;  %v3911_v28 = vmul.f32 %v3776_v16, %v3776_v16  ;;  %v5077_v29 = vpack.c.bf16 %v3779_v21, %v3779_v21  ;;  %v3930_v30 = vsel %vm19_vm1, %v3913_v14, 0.0  ;;  %v3684_v31 = vsel %vm19_vm1, %v3587_v9, 0.0  ;;  %v91_v7 = vld [vmem:[#allocation2 + $0x38] sm:$0xff] }
 0x14c   :  { %4980 = vst.msk [vmem:[%s7410_s2 + $0x48] sm:$0xf] %vm3667_vm2, %v5076_v13  ;;  %3668 = vst.msk [vmem:[%s7410_s2] sm:$0xf] %vm3667_vm2, %v5058_v15  ;;  %v3873_v32 = vsel %vm19_vm1, %v3776_v16, 0.0  ;;  %v5059_v33 = vpack.c.bf16 %v3588_v22, %v3588_v22  ;;  %v3738_v35 = vsel %vm19_vm1, %v3722_v19, 0.0  ;;  %v3723_v37 = vmul.f32 %v3588_v22, %v3588_v22 }
 0x14d   :  { %4978 = vst.msk [vmem:[%s7410_s2 + $0x40] sm:$0xf] %vm3667_vm2, %v5074_v20  ;;  %3671 = vst.msk [vmem:[%s7410_s2 + $0xc] sm:$0xf] %vm3667_vm2, %v5061_v24  ;;  %v6838_v34 = vpop.f32.mrb[8].mxu0  ;;  %v3685_v36 = vsel %vm19_vm1, %v3588_v22, 0.0  ;;  %v5075_v38 = vpack.c.bf16 %v3777_v25, %v3777_v25  ;;  %v3725_v41 = vmul.f32 %v3590_v17, %v3590_v17  ;;  %v3912_v44 = vmul.f32 %v3777_v25, %v3777_v25 }
 0x14e   :  { %4981 = vst.msk [vmem:[%s7410_s2 + $0x4c] sm:$0xf] %vm3667_vm2, %v5077_v29  ;;  %v6846_v39 = vpop.f32.mrb[8].mxu1  ;;  %v6848_v40 = vpop.f32.mrb[9].mxu0  ;;  %3669 = vst.msk [vmem:[%s7410_s2 + $0x4] sm:$0xf] %vm3667_vm2, %v5059_v33  ;;  %v3686_v42 = vadd.f32 %v3685_v36, %v3684_v31  ;;  %v3914_v56 = vmul.f32 %v3779_v21, %v3779_v21 }
 0x14f   :  { %v3874_v43 = vsel %vm19_vm1, %v3777_v25, 0.0  ;;  %v6855_v45 = vld [vmem:[#allocation2 + $0x30] sm:$0xff]  ;;  %v6857_v46 = vpop.f32.mrb[9].mxu1  ;;  %v6859_v47 = vpop.f32.mrb[10].mxu0  ;;  %v3927_v48 = vsel %vm19_vm1, %v3911_v28, 0.0  ;;  %v3739_v49 = vsel %vm19_vm1, %v3723_v37, 0.0 }
 0x150   :  { %4979 = vst.msk [vmem:[%s7410_s2 + $0x44] sm:$0xf] %vm3667_vm2, %v5075_v38  ;;  %v3875_v50 = vadd.f32 %v3874_v43, %v3873_v32  ;;  %v5064_v51 = vpack.c.bf16 %v6855_v45, %v6855_v45  ;;  %v6869_v52 = vld [vmem:[#allocation2 + $0xb0] sm:$0xff]  ;;  %v3591_v53 = vld [vmem:[#allocation2 + $0x20] sm:$0xff]  ;;  %v6871_v54 = vpop.f32.mrb[10].mxu1  ;;  %v6873_v55 = vpop.f32.mrb[11].mxu0  ;;  %v3688_v57 = vadd.f32 %v3687_v23, %v3686_v42  ;;  %v3740_v58 = vadd.f32 %v3739_v49, %v3738_v35 }
 0x151   :  { %v3928_v59 = vsel %vm19_vm1, %v3912_v44, 0.0  ;;  %v6876_v60 = vpop.f32.mrb[11].mxu1  ;;  %v3689_v61 = vsel %vm19_vm1, %v3590_v17, 0.0  ;;  %v5080_v0 = vpack.c.bf16 %v6869_v52, %v6869_v52  ;;  %v3743_v2 = vsel %vm19_vm1, %v3725_v41, 0.0  ;;  %v968_v8 = vld [vmem:[#allocation2 + $0xb8] sm:$0xff]  ;;  %v89_v15 = vld [vmem:[#allocation2 + $0x28] sm:$0xff] }
 0x152   :  { %v3877_v62 = vadd.f32 %v3876_v27, %v3875_v50  ;;  %v3929_v63 = vadd.f32 %v3928_v59, %v3927_v48  ;;  %3674 = vst.msk [vmem:[%s7410_s2 + $0x18] sm:$0xf] %vm3667_vm2, %v5064_v51  ;;  %v3780_v1 = vld [vmem:[#allocation2 + $0xa0] sm:$0xff]  ;;  %v3878_v3 = vsel %vm19_vm1, %v3779_v21, 0.0  ;;  %v3742_v4 = vadd.f32 %v3741_v26, %v3740_v58  ;;  %v966_v16 = vld [vmem:[#allocation2 + $0xa8] sm:$0xff]  ;;  %v94_v17 = vld [vmem:[#allocation2 + $0x50] sm:$0xff] }
 0x153   :  { %v5062_v6 = vpack.c.bf16 %v3591_v53, %v3591_v53  ;;  %4984 = vst.msk [vmem:[%s7410_s2 + $0x58] sm:$0xf] %vm3667_vm2, %v5080_v0  ;;  %v3690_v10 = vadd.f32 %v3689_v61, %v3688_v57  ;;  %v3691_v13 = vsel %vm19_vm1, %v3591_v53, 0.0  ;;  %v3726_v14 = vmul.f32 %v3591_v53, %v3591_v53  ;;  %v971_v23 = vld [vmem:[#allocation2 + $0xd0] sm:$0xff]  ;;  %v92_v24 = vld [vmem:[#allocation2 + $0x40] sm:$0xff]  ;;  %v95_v31 = vld [vmem:[#allocation2 + $0x58] sm:$0xff] }
 0x154   :  { %v3931_v9 = vadd.f32 %v3930_v30, %v3929_v63  ;;  %v3932_v19 = vsel %vm19_vm1, %v3914_v56, 0.0  ;;  %v3744_v20 = vadd.f32 %v3743_v2, %v3742_v4  ;;  %v5078_v21 = vpack.c.bf16 %v3780_v1, %v3780_v1  ;;  %v969_v25 = vld [vmem:[#allocation2 + $0xc0] sm:$0xff]  ;;  %v972_v32 = vld [vmem:[#allocation2 + $0xd8] sm:$0xff]  ;;  %v93_v42 = vld [vmem:[#allocation2 + $0x48] sm:$0xff] }
 0x155   :  { %3672 = vst.msk [vmem:[%s7410_s2 + $0x10] sm:$0xf] %vm3667_vm2, %v5062_v6  ;;  %v3879_v22 = vadd.f32 %v3878_v3, %v3877_v62  ;;  %v5360_v26 = vpop.f32.mrb[12].mxu0  ;;  %v6897_v27 = vadd.f32 %v3691_v13, %v3690_v10  ;;  %v3745_v28 = vsel %vm19_vm1, %v3726_v14, 0.0  ;;  %v3880_v29 = vsel %vm19_vm1, %v3780_v1, 0.0  ;;  %v970_v43 = vld [vmem:[#allocation2 + $0xc8] sm:$0xff] }
 0x156   :  { %v3915_v30 = vmul.f32 %v3780_v1, %v3780_v1  ;;  %v5440_v33 = vpop.f32.mrb[12].mxu1  ;;  %v912_v35 = vpop.f32.mrb[13].mxu0  ;;  %v6901_v36 = vadd.f32 %v3745_v28, %v3744_v20  ;;  %4982 = vst.msk [vmem:[%s7410_s2 + $0x50] sm:$0xf] %vm3667_vm2, %v5078_v21  ;;  %v3933_v38 = vadd.f32 %v3932_v19, %v3931_v9  ;;  %v5608_v41 = vadd.f32 %v6800_v5, %v91_v7  ;;  %v98_v44 = vld [vmem:[#allocation2 + $0x70] sm:$0xff]  ;;  %v96_v58 = vld [vmem:[#allocation2 + $0x60] sm:$0xff] }
 0x157   :  { %v6907_v37 = vadd.f32 %v3880_v29, %v3879_v22  ;;  %v1788_v48 = vpop.f32.mrb[13].mxu1  ;;  %v5361_v49 = vpop.f32.mrb[14].mxu0  ;;  %v5624_v51 = vadd.f32 %v6803_v11, %v968_v8  ;;  %v5609_v53 = vadd.f32 %v6805_v12, %v89_v15  ;;  %v5625_v56 = vadd.f32 %v6809_v18, %v966_v16  ;;  %v975_v57 = vld [vmem:[#allocation2 + $0xf0] sm:$0xff]  ;;  %v973_v59 = vld [vmem:[#allocation2 + $0xe0] sm:$0xff]  ;;  %v99_v11 = vld [vmem:[#allocation2 + $0x78] sm:$0xff] }
 0x158   :  { %v3934_v50 = vsel %vm19_vm1, %v3915_v30, 0.0  ;;  %v5441_v61 = vpop.f32.mrb[14].mxu1  ;;  %v915_v62 = vpop.f32.mrb[15].mxu0  ;;  %951 = vst.msk [vmem:[#allocation2 + $0x38] sm:$0xff] %vm19_vm1, %v5608_v41  ;;  %v5610_v5 = vadd.f32 %v6838_v34, %v94_v17  ;;  %v5626_v0 = vadd.f32 %v6846_v39, %v971_v23  ;;  %v5611_v1 = vadd.f32 %v6848_v40, %v92_v24  ;;  %v976_v2 = vld [vmem:[#allocation2 + $0xf8] sm:$0xff]  ;;  %v97_v12 = vld [vmem:[#allocation2 + $0x68] sm:$0xff] }
 0x159   :  { %v6914_v63 = vadd.f32 %v3934_v50, %v3933_v38  ;;  %v1791_v3 = vpop.f32.mrb[15].mxu1  ;;  %1826 = vst.msk [vmem:[#allocation2 + $0xb8] sm:$0xff] %vm19_vm1, %v5624_v51  ;;  %949 = vst.msk [vmem:[#allocation2 + $0x28] sm:$0xff] %vm19_vm1, %v5609_v53  ;;  %v5627_v18 = vadd.f32 %v6857_v46, %v969_v25  ;;  %v5612_v4 = vadd.f32 %v6859_v47, %v95_v31  ;;  %v974_v6 = vld [vmem:[#allocation2 + $0xe8] sm:$0xff]  ;;  %v3695_v14 = vsel %vm19_vm1, %v6855_v45, 0.0 }
 0x15a   :  { %1824 = vst.msk [vmem:[#allocation2 + $0xa8] sm:$0xff] %vm19_vm1, %v5625_v56  ;;  %v5628_v34 = vadd.f32 %v6871_v54, %v972_v32  ;;  %v5613_v39 = vadd.f32 %v6873_v55, %v93_v42  ;;  %954 = vst.msk [vmem:[#allocation2 + $0x50] sm:$0xff] %vm19_vm1, %v5610_v5  ;;  %v5629_v40 = vadd.f32 %v6876_v60, %v970_v43  ;;  %v3884_v22 = vsel %vm19_vm1, %v6869_v52, 0.0 }
 0x15b   :  { %1829 = vst.msk [vmem:[#allocation2 + $0xd0] sm:$0xff] %vm19_vm1, %v5626_v0  ;;  %952 = vst.msk [vmem:[#allocation2 + $0x40] sm:$0xff] %vm19_vm1, %v5611_v1  ;;  %v5614_v7 = vadd.f32 %v5360_v26, %v98_v44  ;;  %v5630_v8 = vadd.f32 %v5440_v33, %v975_v57  ;;  %v5615_v9 = vadd.f32 %v912_v35, %v96_v58 }
 0x15c   :  { %1827 = vst.msk [vmem:[#allocation2 + $0xc0] sm:$0xff] %vm19_vm1, %v5627_v18  ;;  %955 = vst.msk [vmem:[#allocation2 + $0x58] sm:$0xff] %vm19_vm1, %v5612_v4  ;;  %v5631_v46 = vadd.f32 %v1788_v48, %v973_v59  ;;  %v5616_v47 = vadd.f32 %v5361_v49, %v99_v11  ;;  %v5632_v54 = vadd.f32 %v5441_v61, %v976_v2 }
 0x15d   :  { %1830 = vst.msk [vmem:[#allocation2 + $0xd8] sm:$0xff] %vm19_vm1, %v5628_v34  ;;  %953 = vst.msk [vmem:[#allocation2 + $0x48] sm:$0xff] %vm19_vm1, %v5613_v39  ;;  %v5617_v55 = vadd.f32 %v915_v62, %v97_v12  ;;  %v5633_v60 = vadd.f32 %v1791_v3, %v974_v6  ;;  %v3728_v10 = vmul.f32 %v6855_v45, %v6855_v45 }
 0x15e   :  { %1828 = vst.msk [vmem:[#allocation2 + $0xc8] sm:$0xff] %vm19_vm1, %v5629_v40  ;;  %958 = vst.msk [vmem:[#allocation2 + $0x70] sm:$0xff] %vm19_vm1, %v5614_v7  ;;  %v3917_v15 = vmul.f32 %v6869_v52, %v6869_v52 }
 0x15f   :  { %1833 = vst.msk [vmem:[#allocation2 + $0xf0] sm:$0xff] %vm19_vm1, %v5630_v8  ;;  %956 = vst.msk [vmem:[#allocation2 + $0x60] sm:$0xff] %vm19_vm1, %v5615_v9  ;;  %v3594_v13 = vld [vmem:[#allocation2 + $0x38] sm:$0xff]  ;;  %v3749_v21 = vsel %vm19_vm1, %v3728_v10, 0.0 }
 0x160   :  { %1831 = vst.msk [vmem:[#allocation2 + $0xe0] sm:$0xff] %vm19_vm1, %v5631_v46  ;;  %959 = vst.msk [vmem:[#allocation2 + $0x78] sm:$0xff] %vm19_vm1, %v5616_v47  ;;  %v5065_v16 = vpack.c.bf16 %v3594_v13, %v3594_v13  ;;  %v3783_v17 = vld [vmem:[#allocation2 + $0xb8] sm:$0xff]  ;;  %v3592_v19 = vld [vmem:[#allocation2 + $0x28] sm:$0xff]  ;;  %v3729_v45 = vmul.f32 %v3594_v13, %v3594_v13  ;;  %v3938_v35 = vsel %vm19_vm1, %v3917_v15, 0.0  ;;  %v3697_v44 = vsel %vm19_vm1, %v3594_v13, 0.0 }
 0x161   :  { %1834 = vst.msk [vmem:[#allocation2 + $0xf8] sm:$0xff] %vm19_vm1, %v5632_v54  ;;  %957 = vst.msk [vmem:[#allocation2 + $0x68] sm:$0xff] %vm19_vm1, %v5617_v55  ;;  %v3781_v20 = vld [vmem:[#allocation2 + $0xa8] sm:$0xff]  ;;  %v5081_v23 = vpack.c.bf16 %v3783_v17, %v3783_v17  ;;  %v5063_v24 = vpack.c.bf16 %v3592_v19, %v3592_v19  ;;  %v3597_v25 = vld [vmem:[#allocation2 + $0x50] sm:$0xff]  ;;  %v3693_v26 = vsel %vm19_vm1, %v3592_v19, 0.0  ;;  %v3727_v28 = vmul.f32 %v3592_v19, %v3592_v19 }
 0x162   :  { %1832 = vst.msk [vmem:[#allocation2 + $0xe8] sm:$0xff] %vm19_vm1, %v5633_v60  ;;  %v5079_v29 = vpack.c.bf16 %v3781_v20, %v3781_v20  ;;  %v3918_v30 = vmul.f32 %v3783_v17, %v3783_v17  ;;  %v3694_v52 = vadd.f32 %v3693_v26, %v6897_v27  ;;  %v3882_v31 = vsel %vm19_vm1, %v3781_v20, 0.0  ;;  %v3786_v33 = vld [vmem:[#allocation2 + $0xd0] sm:$0xff]  ;;  %v3595_v43 = vld [vmem:[#allocation2 + $0x40] sm:$0xff] }
 0x163   :  { %3675 = vst.msk [vmem:[%s7410_s2 + $0x1c] sm:$0xf] %vm3667_vm2, %v5065_v16  ;;  %4985 = vst.msk [vmem:[%s7410_s2 + $0x5c] sm:$0xf] %vm3667_vm2, %v5081_v23  ;;  %v3916_v32 = vmul.f32 %v3781_v20, %v3781_v20  ;;  %v3747_v38 = vsel %vm19_vm1, %v3727_v28, 0.0  ;;  %v3883_v41 = vadd.f32 %v3882_v31, %v6907_v37  ;;  %v5068_v42 = vpack.c.bf16 %v3597_v25, %v3597_v25  ;;  %v3784_v56 = vld [vmem:[#allocation2 + $0xc0] sm:$0xff] }
 0x164   :  { %3673 = vst.msk [vmem:[%s7410_s2 + $0x14] sm:$0xf] %vm3667_vm2, %v5063_v24  ;;  %4983 = vst.msk [vmem:[%s7410_s2 + $0x54] sm:$0xf] %vm3667_vm2, %v5079_v29  ;;  %v3696_v27 = vadd.f32 %v3695_v14, %v3694_v52  ;;  %v3748_v48 = vadd.f32 %v3747_v38, %v6901_v36  ;;  %v3886_v50 = vsel %vm19_vm1, %v3783_v17, 0.0  ;;  %v5084_v37 = vpack.c.bf16 %v3786_v33, %v3786_v33  ;;  %v3598_v0 = vld [vmem:[#allocation2 + $0x58] sm:$0xff] }
 0x165   :  { %v3936_v49 = vsel %vm19_vm1, %v3916_v32, 0.0  ;;  %v3885_v51 = vadd.f32 %v3884_v22, %v3883_v41  ;;  %3678 = vst.msk [vmem:[%s7410_s2 + $0x28] sm:$0xf] %vm3667_vm2, %v5068_v42  ;;  %v3751_v57 = vsel %vm19_vm1, %v3729_v45, 0.0  ;;  %v3940_v58 = vsel %vm19_vm1, %v3918_v30, 0.0  ;;  %v3787_v3 = vld [vmem:[#allocation2 + $0xd8] sm:$0xff] }
 0x166   :  { %v3937_v53 = vadd.f32 %v3936_v49, %v6914_v63  ;;  %v3750_v59 = vadd.f32 %v3749_v21, %v3748_v48  ;;  %v5066_v36 = vpack.c.bf16 %v3595_v43, %v3595_v43  ;;  %4988 = vst.msk [vmem:[%s7410_s2 + $0x68] sm:$0xf] %vm3667_vm2, %v5084_v37  ;;  %v3698_v62 = vadd.f32 %v3697_v44, %v3696_v27  ;;  %v3596_v6 = vld [vmem:[#allocation2 + $0x48] sm:$0xff]  ;;  %v3601_v15 = vld [vmem:[#allocation2 + $0x70] sm:$0xff]  ;;  %v3599_v30 = vld [vmem:[#allocation2 + $0x60] sm:$0xff] }
 0x167   :  { %v3699_v63 = vsel %vm19_vm1, %v3595_v43, 0.0  ;;  %v3730_v5 = vmul.f32 %v3595_v43, %v3595_v43  ;;  %v3732_v1 = vmul.f32 %v3597_v25, %v3597_v25  ;;  %v5082_v2 = vpack.c.bf16 %v3784_v56, %v3784_v56  ;;  %v3785_v46 = vld [vmem:[#allocation2 + $0xc8] sm:$0xff]  ;;  %v3788_v43 = vld [vmem:[#allocation2 + $0xe0] sm:$0xff] }
 0x168   :  { %v3939_v61 = vadd.f32 %v3938_v35, %v3937_v53  ;;  %3676 = vst.msk [vmem:[%s7410_s2 + $0x20] sm:$0xf] %vm3667_vm2, %v5066_v36  ;;  %v3752_v11 = vadd.f32 %v3751_v57, %v3750_v59  ;;  %v3887_v12 = vadd.f32 %v3886_v50, %v3885_v51  ;;  %v3700_v18 = vadd.f32 %v3699_v63, %v3698_v62 }
 0x169   :  { %v3753_v4 = vsel %vm19_vm1, %v3730_v5, 0.0  ;;  %v3888_v34 = vsel %vm19_vm1, %v3784_v56, 0.0  ;;  %v3919_v39 = vmul.f32 %v3784_v56, %v3784_v56  ;;  %4986 = vst.msk [vmem:[%s7410_s2 + $0x60] sm:$0xf] %vm3667_vm2, %v5082_v2  ;;  %v5069_v9 = vpack.c.bf16 %v3598_v0, %v3598_v0  ;;  %v3602_v56 = vld [vmem:[#allocation2 + $0x78] sm:$0xff] }
 0x16a   :  { %v3754_v40 = vadd.f32 %v3753_v4, %v3752_v11  ;;  %v3889_v7 = vadd.f32 %v3888_v34, %v3887_v12  ;;  %v3941_v8 = vadd.f32 %v3940_v58, %v3939_v61  ;;  %v3921_v47 = vmul.f32 %v3786_v33, %v3786_v33  ;;  %v3791_v61 = vld [vmem:[#allocation2 + $0xf8] sm:$0xff] }
 0x16b   :  { %v3942_v54 = vsel %vm19_vm1, %v3919_v39, 0.0  ;;  %v5085_v55 = vpack.c.bf16 %v3787_v3, %v3787_v3  ;;  %v3703_v60 = vsel %vm19_vm1, %v3597_v25, 0.0  ;;  %v3892_v10 = vsel %vm19_vm1, %v3786_v33, 0.0  ;;  %3679 = vst.msk [vmem:[%s7410_s2 + $0x2c] sm:$0xf] %vm3667_vm2, %v5069_v9  ;;  %v3790_v25 = vld [vmem:[#allocation2 + $0xf0] sm:$0xff] }
 0x16c   :  { %v3943_v13 = vadd.f32 %v3942_v54, %v3941_v8  ;;  %v5067_v14 = vpack.c.bf16 %v3596_v6, %v3596_v6  ;;  %v3757_v16 = vsel %vm19_vm1, %v3732_v1, 0.0  ;;  %v3701_v17 = vsel %vm19_vm1, %v3596_v6, 0.0  ;;  %v3600_v1 = vld [vmem:[#allocation2 + $0x68] sm:$0xff] }
 0x16d   :  { %4989 = vst.msk [vmem:[%s7410_s2 + $0x6c] sm:$0xf] %vm3667_vm2, %v5085_v55  ;;  %v3731_v19 = vmul.f32 %v3596_v6, %v3596_v6  ;;  %v5083_v20 = vpack.c.bf16 %v3785_v46, %v3785_v46  ;;  %v3733_v21 = vmul.f32 %v3598_v0, %v3598_v0  ;;  %v3702_v22 = vadd.f32 %v3701_v17, %v3700_v18  ;;  %v3789_v18 = vld [vmem:[#allocation2 + $0xe8] sm:$0xff] }
 0x16e   :  { %3677 = vst.msk [vmem:[%s7410_s2 + $0x24] sm:$0xf] %vm3667_vm2, %v5067_v14  ;;  %v3890_v23 = vsel %vm19_vm1, %v3785_v46, 0.0  ;;  %v3920_v24 = vmul.f32 %v3785_v46, %v3785_v46  ;;  %v3946_v45 = vsel %vm19_vm1, %v3921_v47, 0.0  ;;  %v5072_v29 = vpack.c.bf16 %v3601_v15, %v3601_v15 }
 0x16f   :  { %v3755_v26 = vsel %vm19_vm1, %v3731_v19, 0.0  ;;  %4987 = vst.msk [vmem:[%s7410_s2 + $0x64] sm:$0xf] %vm3667_vm2, %v5083_v20  ;;  %v3891_v28 = vadd.f32 %v3890_v23, %v3889_v7  ;;  %v3922_v52 = vmul.f32 %v3787_v3, %v3787_v3  ;;  %v3704_v31 = vadd.f32 %v3703_v60, %v3702_v22 }
 0x170   :  { %v3756_v32 = vadd.f32 %v3755_v26, %v3754_v40  ;;  %v3944_v33 = vsel %vm19_vm1, %v3920_v24, 0.0  ;;  %v3705_v35 = vsel %vm19_vm1, %v3598_v0, 0.0  ;;  %3682 = vst.msk [vmem:[%s7410_s2 + $0x38] sm:$0xf] %vm3667_vm2, %v5072_v29  ;;  %v5088_v42 = vpack.c.bf16 %v3790_v25, %v3790_v25 }
 0x171   :  { %v3893_v38 = vadd.f32 %v3892_v10, %v3891_v28  ;;  %v3945_v41 = vadd.f32 %v3944_v33, %v3943_v13  ;;  %v3759_v44 = vsel %vm19_vm1, %v3733_v21, 0.0  ;;  %v3894_v27 = vsel %vm19_vm1, %v3787_v3, 0.0 }
 0x172   :  { %v3758_v48 = vadd.f32 %v3757_v16, %v3756_v32  ;;  %v5070_v49 = vpack.c.bf16 %v3599_v30, %v3599_v30  ;;  %4992 = vst.msk [vmem:[%s7410_s2 + $0x78] sm:$0xf] %vm3667_vm2, %v5088_v42  ;;  %v3706_v51 = vadd.f32 %v3705_v35, %v3704_v31  ;;  %v3707_v53 = vsel %vm19_vm1, %v3599_v30, 0.0 }
 0x173   :  { %v3947_v50 = vadd.f32 %v3946_v45, %v3945_v41  ;;  %v3734_v37 = vmul.f32 %v3599_v30, %v3599_v30  ;;  %v3948_v57 = vsel %vm19_vm1, %v3922_v52, 0.0  ;;  %v5086_v59 = vpack.c.bf16 %v3788_v43, %v3788_v43 }
 0x174   :  { %3680 = vst.msk [vmem:[%s7410_s2 + $0x30] sm:$0xf] %vm3667_vm2, %v5070_v49  ;;  %v3760_v58 = vadd.f32 %v3759_v44, %v3758_v48  ;;  %v3895_v36 = vadd.f32 %v3894_v27, %v3893_v38  ;;  %v3708_v62 = vadd.f32 %v3707_v53, %v3706_v51  ;;  %v3896_v5 = vsel %vm19_vm1, %v3788_v43, 0.0 }
 0x175   :  { %v3761_v63 = vsel %vm19_vm1, %v3734_v37, 0.0  ;;  %v3923_v0 = vmul.f32 %v3788_v43, %v3788_v43  ;;  %4990 = vst.msk [vmem:[%s7410_s2 + $0x70] sm:$0xf] %vm3667_vm2, %v5086_v59  ;;  %v3949_v12 = vadd.f32 %v3948_v57, %v3947_v50  ;;  %v5073_v3 = vpack.c.bf16 %v3602_v56, %v3602_v56 }
 0x176   :  { %v3762_v11 = vadd.f32 %v3761_v63, %v3760_v58  ;;  %v3897_v2 = vadd.f32 %v3896_v5, %v3895_v36  ;;  %v5089_v34 = vpack.c.bf16 %v3791_v61, %v3791_v61  ;;  %v3711_v39 = vsel %vm19_vm1, %v3601_v15, 0.0 }
 0x177   :  { %v3950_v4 = vsel %vm19_vm1, %v3923_v0, 0.0  ;;  %3683 = vst.msk [vmem:[%s7410_s2 + $0x3c] sm:$0xf] %vm3667_vm2, %v5073_v3  ;;  %v5071_v40 = vpack.c.bf16 %v3600_v1, %v3600_v1  ;;  %v3736_v7 = vmul.f32 %v3601_v15, %v3601_v15  ;;  %v3709_v8 = vsel %vm19_vm1, %v3600_v1, 0.0  ;;  %v2713_v3 = vld [vmem:[#allocation2 + $0x190] sm:$0xff] }
 0x178   :  { %v3951_v6 = vadd.f32 %v3950_v4, %v3949_v12  ;;  %4993 = vst.msk [vmem:[%s7410_s2 + $0x7c] sm:$0xf] %vm3667_vm2, %v5089_v34  ;;  %v3735_v9 = vmul.f32 %v3600_v1, %v3600_v1  ;;  %v5087_v46 = vpack.c.bf16 %v3789_v18, %v3789_v18  ;;  %v3925_v47 = vmul.f32 %v3790_v25, %v3790_v25  ;;  %v1838_v12 = vld [vmem:[#allocation2 + $0x110] sm:$0xff]  ;;  %v2711_v34 = vld [vmem:[#allocation2 + $0x180] sm:$0xff] }
 0x179   :  { %3681 = vst.msk [vmem:[%s7410_s2 + $0x34] sm:$0xf] %vm3667_vm2, %v5071_v40  ;;  %v3710_v54 = vadd.f32 %v3709_v8, %v3708_v62  ;;  %v3898_v55 = vsel %vm19_vm1, %v3789_v18, 0.0  ;;  %v3924_v60 = vmul.f32 %v3789_v18, %v3789_v18  ;;  %v3900_v10 = vsel %vm19_vm1, %v3790_v25, 0.0  ;;  %v1836_v18 = vld [vmem:[#allocation2 + $0x100] sm:$0xff]  ;;  %v2714_v8 = vld [vmem:[#allocation2 + $0x198] sm:$0xff] }
 0x17a   :  { %v3737_v13 = vmul.f32 %v3602_v56, %v3602_v56  ;;  %v3763_v14 = vsel %vm19_vm1, %v3735_v9, 0.0  ;;  %4991 = vst.msk [vmem:[%s7410_s2 + $0x74] sm:$0xf] %vm3667_vm2, %v5087_v46  ;;  %v3899_v15 = vadd.f32 %v3898_v55, %v3897_v2  ;;  %v3926_v16 = vmul.f32 %v3791_v61, %v3791_v61  ;;  %v1837_v9 = vld [vmem:[#allocation2 + $0x108] sm:$0xff] }
 0x17b   :  { %v3712_v17 = vadd.f32 %v3711_v39, %v3710_v54  ;;  %v3764_v19 = vadd.f32 %v3763_v14, %v3762_v11  ;;  %v3952_v20 = vsel %vm19_vm1, %v3924_v60, 0.0  ;;  %v3765_v21 = vsel %vm19_vm1, %v3736_v7, 0.0  ;;  %v1839_v39 = vld [vmem:[#allocation2 + $0x118] sm:$0xff]  ;;  %v2712_v60 = vld [vmem:[#allocation2 + $0x188] sm:$0xff] }
 0x17c   :  { %v3713_v22 = vsel %vm19_vm1, %v3602_v56, 0.0  ;;  %v3901_v23 = vadd.f32 %v3900_v10, %v3899_v15  ;;  %v3953_v24 = vadd.f32 %v3952_v20, %v3951_v6  ;;  %v3954_v25 = vsel %vm19_vm1, %v3925_v47, 0.0 }
 0x17d   :  { %v3902_v45 = vsel %vm19_vm1, %v3791_v61, 0.0  ;;  %v3714_v26 = vadd.f32 %v3713_v22, %v3712_v17  ;;  %v3766_v28 = vadd.f32 %v3765_v21, %v3764_v19  ;;  %v3767_v29 = vsel %vm19_vm1, %v3737_v13, 0.0  ;;  %v1842_v21 = vld [vmem:[#allocation2 + $0x130] sm:$0xff] }
 0x17e   :  { %v3903_v30 = vadd.f32 %v3902_v45, %v3901_v23  ;;  %v3955_v52 = vadd.f32 %v3954_v25, %v3953_v24  ;;  %v3956_v31 = vsel %vm19_vm1, %v3926_v16, 0.0  ;;  %v2717_v22 = vld [vmem:[#allocation2 + $0x1b0] sm:$0xff]  ;;  %v1840_v23 = vld [vmem:[#allocation2 + $0x120] sm:$0xff] }
 0x17f   :  { %v3715_v32 = vrot.slane %v3714_v26, 4  ;;  %v3768_v33 = vadd.f32 %v3767_v29, %v3766_v28  ;;  %v2715_v25 = vld [vmem:[#allocation2 + $0x1a0] sm:$0xff] }
 0x180   :  { %v3904_v35 = vrot.slane %v3903_v30, 4  ;;  %v3957_v38 = vadd.f32 %v3956_v31, %v3955_v52 }
 0x181   :  { %v3716_v41 = vadd.f32 %v3715_v32, %v3714_v26  ;;  %v3769_v42 = vrot.slane %v3768_v33, 4 }
 0x182   :  { %v3905_v43 = vadd.f32 %v3904_v35, %v3903_v30  ;;  %v3958_v44 = vrot.slane %v3957_v38, 4 }
 0x183   :  { %v3717_v27 = vrot.slane %v3716_v41, 2  ;;  %v3770_v48 = vadd.f32 %v3769_v42, %v3768_v33 }
 0x184   :  { %v3906_v49 = vrot.slane %v3905_v43, 2  ;;  %v3959_v50 = vadd.f32 %v3958_v44, %v3957_v38 }
 0x185   :  { %v3718_v51 = vadd.f32 %v3717_v27, %v3716_v41  ;;  %v3771_v53 = vrot.slane %v3770_v48, 2 }
 0x186   :  { %v3907_v37 = vadd.f32 %v3906_v49, %v3905_v43  ;;  %v3960_v56 = vrot.slane %v3959_v50, 2 }
 0x187   :  { %v3719_v57 = vrot.slane %v3718_v51, 1  ;;  %v3772_v58 = vadd.f32 %v3771_v53, %v3770_v48 }
 0x188   :  { %v3908_v59 = vrot.slane %v3907_v37, 1  ;;  %v3961_v36 = vadd.f32 %v3960_v56, %v3959_v50 }
 0x189   :  { %v3720_v61 = vadd.f32 %v3719_v57, %v3718_v51  ;;  %v3773_v62 = vrot.slane %v3772_v58, 1 }
 0x18a   :  { %v3909_v63 = vadd.f32 %v3908_v59, %v3907_v37  ;;  %v3962_v5 = vrot.slane %v3961_v36, 1 }
 0x18b   :  { %v3774_v0 = vadd.f32 %v3773_v62, %v3772_v58 }
 0x18c   :  { %v7078_v1 = vadd.f32 %v3909_v63, %v3720_v61  ;;  %v3963_v11 = vadd.f32 %v3962_v5, %v3961_v36 }
 0x18e   :  { %v7080_v2 = vadd.f32 %v3963_v11, %v3774_v0 }
 0x1bd   :  { %v5508_v4 = vpop.f32.mrb[16].mxu0 }
 0x1be   :  { %v5634_v6 = vadd.f32 %v5508_v4, %v1838_v12  ;;  %v5588_v40 = vpop.f32.mrb[16].mxu1  ;;  %v2615_v7 = vpop.f32.mrb[17].mxu0 }
 0x1bf   :  { %v5650_v46 = vadd.f32 %v5588_v40, %v2713_v3  ;;  %v5635_v47 = vadd.f32 %v2615_v7, %v1836_v18  ;;  %v3489_v54 = vpop.f32.mrb[17].mxu1  ;;  %v5509_v55 = vpop.f32.mrb[18].mxu0 }
 0x1c0   :  { %2696 = vst.msk [vmem:[#allocation2 + $0x110] sm:$0xff] %vm19_vm1, %v5634_v6  ;;  %v5651_v10 = vadd.f32 %v3489_v54, %v2711_v34  ;;  %v5636_v13 = vadd.f32 %v5509_v55, %v1839_v39  ;;  %v5589_v14 = vpop.f32.mrb[18].mxu1  ;;  %v2618_v15 = vpop.f32.mrb[19].mxu0 }
 0x1c1   :  { %3570 = vst.msk [vmem:[#allocation2 + $0x190] sm:$0xff] %vm19_vm1, %v5650_v46  ;;  %2694 = vst.msk [vmem:[#allocation2 + $0x100] sm:$0xff] %vm19_vm1, %v5635_v47  ;;  %v5652_v16 = vadd.f32 %v5589_v14, %v2714_v8  ;;  %v5637_v17 = vadd.f32 %v2618_v15, %v1837_v9  ;;  %v3492_v19 = vpop.f32.mrb[19].mxu1 }
 0x1c2   :  { %3568 = vst.msk [vmem:[#allocation2 + $0x180] sm:$0xff] %vm19_vm1, %v5651_v10  ;;  %2697 = vst.msk [vmem:[#allocation2 + $0x118] sm:$0xff] %vm19_vm1, %v5636_v13  ;;  %v5653_v20 = vadd.f32 %v3492_v19, %v2712_v60 }
 0x1c3   :  { %3571 = vst.msk [vmem:[#allocation2 + $0x198] sm:$0xff] %vm19_vm1, %v5652_v16  ;;  %2695 = vst.msk [vmem:[#allocation2 + $0x108] sm:$0xff] %vm19_vm1, %v5637_v17 }
 0x1c4   :  { %3569 = vst.msk [vmem:[#allocation2 + $0x188] sm:$0xff] %vm19_vm1, %v5653_v20 }
 0x1c5   :  { %v5512_v24 = vpop.f32.mrb[20].mxu0 }
 0x1c6   :  { %v5638_v45 = vadd.f32 %v5512_v24, %v1842_v21  ;;  %v5592_v26 = vpop.f32.mrb[20].mxu1  ;;  %v2631_v28 = vpop.f32.mrb[21].mxu0 }
 0x1c7   :  { %v3967_v29 = vld [vmem:[#allocation2 + $0x110] sm:$0xff]  ;;  %v5654_v30 = vadd.f32 %v5592_v26, %v2717_v22  ;;  %v5639_v52 = vadd.f32 %v2631_v28, %v1840_v23  ;;  %v3505_v31 = vpop.f32.mrb[21].mxu1  ;;  %v7090_v32 = vpop.f32.mrb[22].mxu0  ;;  %v2718_v26 = vld [vmem:[#allocation2 + $0x1b8] sm:$0xff] }
 0x1c8   :  { %v5092_v33 = vpack.c.bf16 %v3967_v29, %v3967_v29  ;;  %v7092_v35 = vld [vmem:[#allocation2 + $0x190] sm:$0xff]  ;;  %v3965_v38 = vld [vmem:[#allocation2 + $0x100] sm:$0xff]  ;;  %2700 = vst.msk [vmem:[#allocation2 + $0x130] sm:$0xff] %vm19_vm1, %v5638_v45  ;;  %v5655_v41 = vadd.f32 %v3505_v31, %v2715_v25  ;;  %v7095_v42 = vpop.f32.mrb[22].mxu1  ;;  %v7097_v43 = vpop.f32.mrb[23].mxu0  ;;  %v4065_v7 = vsel %vm19_vm1, %v3967_v29, 0.0  ;;  %v4102_v60 = vmul.f32 %v3967_v29, %v3967_v29 }
 0x1c9   :  { %v5108_v44 = vpack.c.bf16 %v7092_v35, %v7092_v35  ;;  %v5090_v27 = vpack.c.bf16 %v3965_v38, %v3965_v38  ;;  %v4154_v48 = vld [vmem:[#allocation2 + $0x180] sm:$0xff]  ;;  %v7101_v49 = vld [vmem:[#allocation2 + $0x118] sm:$0xff]  ;;  %3574 = vst.msk [vmem:[#allocation2 + $0x1b0] sm:$0xff] %vm19_vm1, %v5654_v30  ;;  %2698 = vst.msk [vmem:[#allocation2 + $0x120] sm:$0xff] %vm19_vm1, %v5639_v52  ;;  %v7105_v50 = vpop.f32.mrb[23].mxu1  ;;  %v4062_v59 = vsel %vm19_vm1, %v3965_v38, 0.0  ;;  %v4100_v36 = vmul.f32 %v3965_v38, %v3965_v38 }
 0x1ca   :  { %5012 = vst.msk [vmem:[%s7410_s2 + $0x88] sm:$0xf] %vm3667_vm2, %v5092_v33  ;;  %v5106_v51 = vpack.c.bf16 %v4154_v48, %v4154_v48  ;;  %v7111_v53 = vld [vmem:[#allocation2 + $0x198] sm:$0xff]  ;;  %v3966_v37 = vld [vmem:[#allocation2 + $0x108] sm:$0xff]  ;;  %v5093_v56 = vpack.c.bf16 %v7101_v49, %v7101_v49  ;;  %v4289_v63 = vmul.f32 %v4154_v48, %v4154_v48  ;;  %v4291_v10 = vmul.f32 %v7092_v35, %v7092_v35  ;;  %v1846_v52 = vld [vmem:[#allocation2 + $0x150] sm:$0xff] }
 0x1cb   :  { %3572 = vst.msk [vmem:[#allocation2 + $0x1a0] sm:$0xff] %vm19_vm1, %v5655_v41  ;;  %v4155_v57 = vld [vmem:[#allocation2 + $0x188] sm:$0xff]  ;;  %v5109_v58 = vpack.c.bf16 %v7111_v53, %v7111_v53  ;;  %v5091_v61 = vpack.c.bf16 %v3966_v37, %v3966_v37  ;;  %v4063_v5 = vsel %vm19_vm1, %v3966_v37, 0.0  ;;  %v4101_v0 = vmul.f32 %v3966_v37, %v3966_v37  ;;  %v1843_v45 = vld [vmem:[#allocation2 + $0x138] sm:$0xff]  ;;  %v2721_v41 = vld [vmem:[#allocation2 + $0x1d0] sm:$0xff] }
 0x1cc   :  { %5044 = vst.msk [vmem:[%s7410_s2 + $0xc8] sm:$0xf] %vm3667_vm2, %v5108_v44  ;;  %5010 = vst.msk [vmem:[%s7410_s2 + $0x80] sm:$0xf] %vm3667_vm2, %v5090_v27  ;;  %v5107_v11 = vpack.c.bf16 %v4155_v57, %v4155_v57  ;;  %v4064_v18 = vadd.f32 %v4063_v5, %v4062_v59  ;;  %v4252_v4 = vsel %vm19_vm1, %v4155_v57, 0.0  ;;  %v4290_v34 = vmul.f32 %v4155_v57, %v4155_v57  ;;  %v1841_v29 = vld [vmem:[#allocation2 + $0x128] sm:$0xff] }
 0x1cd   :  { %5042 = vst.msk [vmem:[%s7410_s2 + $0xc0] sm:$0xf] %vm3667_vm2, %v5106_v51  ;;  %5013 = vst.msk [vmem:[%s7410_s2 + $0x8c] sm:$0xf] %vm3667_vm2, %v5093_v56  ;;  %v7135_v62 = vpop.f32.mrb[24].mxu0  ;;  %v4117_v8 = vsel %vm19_vm1, %v4101_v0, 0.0  ;;  %v7213_v37 = vmul.f32 %v7111_v53, %v7111_v53 }
 0x1ce   :  { %5045 = vst.msk [vmem:[%s7410_s2 + $0xcc] sm:$0xf] %vm3667_vm2, %v5109_v58  ;;  %v7142_v12 = vpop.f32.mrb[24].mxu1  ;;  %v7144_v3 = vpop.f32.mrb[25].mxu0  ;;  %5011 = vst.msk [vmem:[%s7410_s2 + $0x84] sm:$0xf] %vm3667_vm2, %v5091_v61  ;;  %v4066_v22 = vadd.f32 %v4065_v7, %v4064_v18 }
 0x1cf   :  { %v7151_v39 = vld [vmem:[#allocation2 + $0x130] sm:$0xff]  ;;  %v7153_v6 = vpop.f32.mrb[25].mxu1  ;;  %v7155_v40 = vpop.f32.mrb[26].mxu0  ;;  %5043 = vst.msk [vmem:[%s7410_s2 + $0xc4] sm:$0xf] %vm3667_vm2, %v5107_v11  ;;  %v4251_v13 = vsel %vm19_vm1, %v4154_v48, 0.0  ;;  %v4103_v48 = vmul.f32 %v7101_v49, %v7101_v49 }
 0x1d0   :  { %v5096_v9 = vpack.c.bf16 %v7151_v39, %v7151_v39  ;;  %v7165_v46 = vld [vmem:[#allocation2 + $0x1b0] sm:$0xff]  ;;  %v7167_v47 = vld [vmem:[#allocation2 + $0x120] sm:$0xff]  ;;  %v7169_v54 = vpop.f32.mrb[26].mxu1  ;;  %v7171_v55 = vpop.f32.mrb[27].mxu0  ;;  %v4306_v14 = vsel %vm19_vm1, %v4290_v34, 0.0  ;;  %v4116_v16 = vsel %vm19_vm1, %v4100_v36, 0.0  ;;  %v4253_v19 = vadd.f32 %v4252_v4, %v4251_v13 }
 0x1d1   :  { %v7177_v15 = vpop.f32.mrb[27].mxu1  ;;  %v4305_v17 = vsel %vm19_vm1, %v4289_v63, 0.0  ;;  %v5112_v20 = vpack.c.bf16 %v7165_v46, %v7165_v46  ;;  %v4118_v23 = vadd.f32 %v4117_v8, %v4116_v16  ;;  %v5094_v25 = vpack.c.bf16 %v7167_v47, %v7167_v47  ;;  %v2716_v30 = vld [vmem:[#allocation2 + $0x1a8] sm:$0xff]  ;;  %v1844_v44 = vld [vmem:[#allocation2 + $0x140] sm:$0xff]  ;;  %v1847_v58 = vld [vmem:[#allocation2 + $0x158] sm:$0xff] }
 0x1d2   :  { %5016 = vst.msk [vmem:[%s7410_s2 + $0x98] sm:$0xf] %vm3667_vm2, %v5096_v9  ;;  %v7187_v21 = vld [vmem:[#allocation2 + $0x1a0] sm:$0xff]  ;;  %v4307_v24 = vadd.f32 %v4306_v14, %v4305_v17  ;;  %v4254_v28 = vsel %vm19_vm1, %v7092_v35, 0.0  ;;  %v4119_v31 = vsel %vm19_vm1, %v4102_v60, 0.0  ;;  %v4308_v33 = vsel %vm19_vm1, %v4291_v10, 0.0 }
 0x1d3   :  { %5048 = vst.msk [vmem:[%s7410_s2 + $0xd8] sm:$0xf] %vm3667_vm2, %v5112_v20  ;;  %v4067_v38 = vsel %vm19_vm1, %v7101_v49, 0.0  ;;  %5014 = vst.msk [vmem:[%s7410_s2 + $0x90] sm:$0xf] %vm3667_vm2, %v5094_v25  ;;  %v5110_v35 = vpack.c.bf16 %v7187_v21, %v7187_v21  ;;  %v4256_v51 = vsel %vm19_vm1, %v7111_v53, 0.0  ;;  %v4255_v56 = vadd.f32 %v4254_v28, %v4253_v19 }
 0x1d4   :  { %v2719_v57 = vld [vmem:[#allocation2 + $0x1c0] sm:$0xff]  ;;  %v2722_v59 = vld [vmem:[#allocation2 + $0x1d8] sm:$0xff]  ;;  %v4120_v63 = vadd.f32 %v4119_v31, %v4118_v23  ;;  %v7215_v5 = vadd.f32 %v4308_v33, %v4307_v24  ;;  %v7217_v0 = vadd.f32 %v4067_v38, %v4066_v22  ;;  %v5640_v49 = vadd.f32 %v7090_v32, %v1843_v45  ;;  %v1845_v53 = vld [vmem:[#allocation2 + $0x148] sm:$0xff] }
 0x1d5   :  { %v5520_v27 = vpop.f32.mrb[28].mxu0  ;;  %5046 = vst.msk [vmem:[%s7410_s2 + $0xd0] sm:$0xf] %vm3667_vm2, %v5110_v35  ;;  %v2720_v11 = vld [vmem:[#allocation2 + $0x1c8] sm:$0xff]  ;;  %v1850_v18 = vld [vmem:[#allocation2 + $0x170] sm:$0xff]  ;;  %v4104_v7 = vmul.f32 %v7167_v47, %v7167_v47  ;;  %v5656_v8 = vadd.f32 %v7095_v42, %v2718_v26  ;;  %v5641_v9 = vadd.f32 %v7097_v43, %v1841_v29  ;;  %v5657_v60 = vadd.f32 %v7105_v50, %v2716_v30  ;;  %v1848_v13 = vld [vmem:[#allocation2 + $0x160] sm:$0xff] }
 0x1d6   :  { %v5600_v36 = vpop.f32.mrb[28].mxu1  ;;  %v2663_v61 = vpop.f32.mrb[29].mxu0  ;;  %v2725_v10 = vld [vmem:[#allocation2 + $0x1f0] sm:$0xff]  ;;  %v2723_v14 = vld [vmem:[#allocation2 + $0x1e0] sm:$0xff]  ;;  %v4293_v32 = vmul.f32 %v7187_v21, %v7187_v21  ;;  %2701 = vst.msk [vmem:[#allocation2 + $0x138] sm:$0xff] %vm19_vm1, %v5640_v49  ;;  %v5642_v19 = vadd.f32 %v7135_v62, %v1846_v52  ;;  %v5658_v20 = vadd.f32 %v7142_v12, %v2721_v41  ;;  %v5643_v42 = vadd.f32 %v7144_v3, %v1844_v44  ;;  %v1851_v22 = vld [vmem:[#allocation2 + $0x178] sm:$0xff] }
 0x1d7   :  { %v3537_v4 = vpop.f32.mrb[29].mxu1  ;;  %v5521_v34 = vpop.f32.mrb[30].mxu0  ;;  %v2726_v43 = vld [vmem:[#allocation2 + $0x1f8] sm:$0xff]  ;;  %v1849_v23 = vld [vmem:[#allocation2 + $0x168] sm:$0xff]  ;;  %3575 = vst.msk [vmem:[#allocation2 + $0x1b8] sm:$0xff] %vm19_vm1, %v5656_v8  ;;  %2699 = vst.msk [vmem:[#allocation2 + $0x128] sm:$0xff] %vm19_vm1, %v5641_v9  ;;  %v5659_v24 = vadd.f32 %v7153_v6, %v2719_v57  ;;  %v5644_v25 = vadd.f32 %v7155_v40, %v1847_v58  ;;  %v5660_v62 = vadd.f32 %v7169_v54, %v2722_v59 }
 0x1d8   :  { %v5601_v16 = vpop.f32.mrb[30].mxu1  ;;  %v2666_v17 = vpop.f32.mrb[31].mxu0  ;;  %3573 = vst.msk [vmem:[#allocation2 + $0x1a8] sm:$0xff] %vm19_vm1, %v5657_v60  ;;  %v5645_v12 = vadd.f32 %v7171_v55, %v1845_v53  ;;  %v2724_v45 = vld [vmem:[#allocation2 + $0x1e8] sm:$0xff]  ;;  %2704 = vst.msk [vmem:[#allocation2 + $0x150] sm:$0xff] %vm19_vm1, %v5642_v19  ;;  %v5661_v3 = vadd.f32 %v7177_v15, %v2720_v11  ;;  %v5646_v26 = vadd.f32 %v5520_v27, %v1850_v18  ;;  %v4121_v30 = vsel %vm19_vm1, %v4103_v48, 0.0 }
 0x1d9   :  { %v3540_v50 = vpop.f32.mrb[31].mxu1  ;;  %3578 = vst.msk [vmem:[#allocation2 + $0x1d0] sm:$0xff] %vm19_vm1, %v5658_v20  ;;  %2702 = vst.msk [vmem:[#allocation2 + $0x140] sm:$0xff] %vm19_vm1, %v5643_v42  ;;  %v5662_v28 = vadd.f32 %v5600_v36, %v2725_v10  ;;  %v5647_v29 = vadd.f32 %v2663_v61, %v1848_v13  ;;  %v5663_v6 = vadd.f32 %v3537_v4, %v2723_v14  ;;  %v4069_v15 = vsel %vm19_vm1, %v7167_v47, 0.0 }
 0x1da   :  { %3576 = vst.msk [vmem:[#allocation2 + $0x1c0] sm:$0xff] %vm19_vm1, %v5659_v24  ;;  %2705 = vst.msk [vmem:[#allocation2 + $0x158] sm:$0xff] %vm19_vm1, %v5644_v25  ;;  %v5648_v40 = vadd.f32 %v5521_v34, %v1851_v22  ;;  %v5664_v54 = vadd.f32 %v5601_v16, %v2726_v43  ;;  %v5649_v55 = vadd.f32 %v2666_v17, %v1849_v23  ;;  %v4310_v33 = vsel %vm19_vm1, %v7213_v37, 0.0 }
 0x1db   :  { %3579 = vst.msk [vmem:[#allocation2 + $0x1d8] sm:$0xff] %vm19_vm1, %v5660_v62  ;;  %2703 = vst.msk [vmem:[#allocation2 + $0x148] sm:$0xff] %vm19_vm1, %v5645_v12  ;;  %v4257_v52 = vadd.f32 %v4256_v51, %v4255_v56  ;;  %v5665_v31 = vadd.f32 %v3540_v50, %v2724_v45  ;;  %v4106_v38 = vmul.f32 %v7151_v39, %v7151_v39  ;;  %v4258_v47 = vsel %vm19_vm1, %v7187_v21, 0.0 }
 0x1dc   :  { %3577 = vst.msk [vmem:[#allocation2 + $0x1c8] sm:$0xff] %vm19_vm1, %v5661_v3  ;;  %2708 = vst.msk [vmem:[#allocation2 + $0x170] sm:$0xff] %vm19_vm1, %v5646_v26  ;;  %v4122_v35 = vadd.f32 %v4121_v30, %v4120_v63  ;;  %v4123_v41 = vsel %vm19_vm1, %v4104_v7, 0.0  ;;  %v4311_v44 = vadd.f32 %v4310_v33, %v7215_v5  ;;  %v4073_v27 = vsel %vm19_vm1, %v7151_v39, 0.0 }
 0x1dd   :  { %3582 = vst.msk [vmem:[#allocation2 + $0x1f0] sm:$0xff] %vm19_vm1, %v5662_v28  ;;  %2706 = vst.msk [vmem:[#allocation2 + $0x160] sm:$0xff] %vm19_vm1, %v5647_v29  ;;  %v4070_v48 = vadd.f32 %v4069_v15, %v7217_v0  ;;  %v4312_v21 = vsel %vm19_vm1, %v4293_v32, 0.0  ;;  %v3972_v51 = vld [vmem:[#allocation2 + $0x138] sm:$0xff]  ;;  %v4262_v37 = vsel %vm19_vm1, %v7165_v46, 0.0  ;;  %v4295_v56 = vmul.f32 %v7165_v46, %v7165_v46 }
 0x1de   :  { %3580 = vst.msk [vmem:[#allocation2 + $0x1e0] sm:$0xff] %vm19_vm1, %v5663_v6  ;;  %2709 = vst.msk [vmem:[#allocation2 + $0x178] sm:$0xff] %vm19_vm1, %v5648_v40  ;;  %v4259_v57 = vadd.f32 %v4258_v47, %v4257_v52  ;;  %v5097_v58 = vpack.c.bf16 %v3972_v51, %v3972_v51  ;;  %v4161_v59 = vld [vmem:[#allocation2 + $0x1b8] sm:$0xff]  ;;  %v3970_v36 = vld [vmem:[#allocation2 + $0x128] sm:$0xff]  ;;  %v4127_v63 = vsel %vm19_vm1, %v4106_v38, 0.0  ;;  %v4124_v5 = vadd.f32 %v4123_v41, %v4122_v35 }
 0x1df   :  { %3583 = vst.msk [vmem:[#allocation2 + $0x1f8] sm:$0xff] %vm19_vm1, %v5664_v54  ;;  %2707 = vst.msk [vmem:[#allocation2 + $0x168] sm:$0xff] %vm19_vm1, %v5649_v55  ;;  %v4159_v61 = vld [vmem:[#allocation2 + $0x1a8] sm:$0xff]  ;;  %v5113_v39 = vpack.c.bf16 %v4161_v59, %v4161_v59  ;;  %v5095_v49 = vpack.c.bf16 %v3970_v36, %v3970_v36  ;;  %v3975_v0 = vld [vmem:[#allocation2 + $0x150] sm:$0xff]  ;;  %v4313_v53 = vadd.f32 %v4312_v21, %v4311_v44  ;;  %v4071_v11 = vsel %vm19_vm1, %v3970_v36, 0.0 }
 0x1e0   :  { %3581 = vst.msk [vmem:[#allocation2 + $0x1e8] sm:$0xff] %vm19_vm1, %v5665_v31  ;;  %v4105_v46 = vmul.f32 %v3970_v36, %v3970_v36  ;;  %v5111_v18 = vpack.c.bf16 %v4159_v61, %v4159_v61  ;;  %v4107_v4 = vmul.f32 %v3972_v51, %v3972_v51  ;;  %v4072_v34 = vadd.f32 %v4071_v11, %v4070_v48  ;;  %v4164_v9 = vld [vmem:[#allocation2 + $0x1d0] sm:$0xff]  ;;  %v3973_v16 = vld [vmem:[#allocation2 + $0x140] sm:$0xff] }
 0x1e1   :  { %5017 = vst.msk [vmem:[%s7410_s2 + $0x9c] sm:$0xf] %vm3667_vm2, %v5097_v58  ;;  %5049 = vst.msk [vmem:[%s7410_s2 + $0xdc] sm:$0xf] %vm3667_vm2, %v5113_v39  ;;  %v4260_v7 = vsel %vm19_vm1, %v4159_v61, 0.0  ;;  %v4294_v8 = vmul.f32 %v4159_v61, %v4159_v61  ;;  %v4316_v60 = vsel %vm19_vm1, %v4295_v56, 0.0  ;;  %v5100_v14 = vpack.c.bf16 %v3975_v0, %v3975_v0 }
 0x1e2   :  { %5015 = vst.msk [vmem:[%s7410_s2 + $0x94] sm:$0xf] %vm3667_vm2, %v5095_v49  ;;  %v4125_v10 = vsel %vm19_vm1, %v4105_v46, 0.0  ;;  %5047 = vst.msk [vmem:[%s7410_s2 + $0xd4] sm:$0xf] %vm3667_vm2, %v5111_v18  ;;  %v4261_v13 = vadd.f32 %v4260_v7, %v4259_v57  ;;  %v4075_v17 = vsel %vm19_vm1, %v3972_v51, 0.0  ;;  %v4074_v32 = vadd.f32 %v4073_v27, %v4072_v34 }
 0x1e3   :  { %v4126_v19 = vadd.f32 %v4125_v10, %v4124_v5  ;;  %v4314_v20 = vsel %vm19_vm1, %v4294_v8, 0.0  ;;  %v4296_v42 = vmul.f32 %v4161_v59, %v4161_v59  ;;  %5020 = vst.msk [vmem:[%s7410_s2 + $0xa8] sm:$0xf] %vm3667_vm2, %v5100_v14  ;;  %v5116_v23 = vpack.c.bf16 %v4164_v9, %v4164_v9  ;;  %v4162_v50 = vld [vmem:[#allocation2 + $0x1c0] sm:$0xff]  ;;  %v3976_v29 = vld [vmem:[#allocation2 + $0x158] sm:$0xff]  ;;  %v3974_v38 = vld [vmem:[#allocation2 + $0x148] sm:$0xff] }
 0x1e4   :  { %v4263_v22 = vadd.f32 %v4262_v37, %v4261_v13  ;;  %v4315_v43 = vadd.f32 %v4314_v20, %v4313_v53  ;;  %v4129_v24 = vsel %vm19_vm1, %v4107_v4, 0.0  ;;  %v4264_v25 = vsel %vm19_vm1, %v4161_v59, 0.0  ;;  %v4165_v30 = vld [vmem:[#allocation2 + $0x1d8] sm:$0xff]  ;;  %v4163_v27 = vld [vmem:[#allocation2 + $0x1c8] sm:$0xff]  ;;  %v3979_v36 = vld [vmem:[#allocation2 + $0x170] sm:$0xff] }
 0x1e5   :  { %v4128_v62 = vadd.f32 %v4127_v63, %v4126_v19  ;;  %v5098_v12 = vpack.c.bf16 %v3973_v16, %v3973_v16  ;;  %5052 = vst.msk [vmem:[%s7410_s2 + $0xe8] sm:$0xf] %vm3667_vm2, %v5116_v23  ;;  %v4076_v3 = vadd.f32 %v4075_v17, %v4074_v32  ;;  %v4077_v26 = vsel %vm19_vm1, %v3973_v16, 0.0  ;;  %v4168_v46 = vld [vmem:[#allocation2 + $0x1f0] sm:$0xff]  ;;  %v3977_v8 = vld [vmem:[#allocation2 + $0x160] sm:$0xff] }
 0x1e6   :  { %v4317_v45 = vadd.f32 %v4316_v60, %v4315_v43  ;;  %v4108_v28 = vmul.f32 %v3973_v16, %v3973_v16  ;;  %v4110_v6 = vmul.f32 %v3975_v0, %v3975_v0  ;;  %v5114_v54 = vpack.c.bf16 %v4162_v50, %v4162_v50  ;;  %v4166_v19 = vld [vmem:[#allocation2 + $0x1e0] sm:$0xff] }
 0x1e7   :  { %5018 = vst.msk [vmem:[%s7410_s2 + $0xa0] sm:$0xf] %vm3667_vm2, %v5098_v12  ;;  %v4130_v40 = vadd.f32 %v4129_v24, %v4128_v62  ;;  %v4265_v55 = vadd.f32 %v4264_v25, %v4263_v22  ;;  %v4318_v15 = vsel %vm19_vm1, %v4296_v42, 0.0  ;;  %v4266_v31 = vsel %vm19_vm1, %v4162_v50, 0.0  ;;  %v3980_v62 = vld [vmem:[#allocation2 + $0x178] sm:$0xff] }
 0x1e8   :  { %v4131_v52 = vsel %vm19_vm1, %v4108_v28, 0.0  ;;  %v4297_v33 = vmul.f32 %v4162_v50, %v4162_v50  ;;  %v4081_v35 = vsel %vm19_vm1, %v3975_v0, 0.0  ;;  %v4078_v47 = vadd.f32 %v4077_v26, %v4076_v3  ;;  %5050 = vst.msk [vmem:[%s7410_s2 + $0xe0] sm:$0xf] %vm3667_vm2, %v5114_v54  ;;  %v4169_v26 = vld [vmem:[#allocation2 + $0x1f8] sm:$0xff]  ;;  %v3978_v54 = vld [vmem:[#allocation2 + $0x168] sm:$0xff] }
 0x1e9   :  { %v4319_v41 = vadd.f32 %v4318_v15, %v4317_v45  ;;  %v5101_v44 = vpack.c.bf16 %v3976_v29, %v3976_v29  ;;  %v4299_v48 = vmul.f32 %v4164_v9, %v4164_v9  ;;  %v4267_v21 = vadd.f32 %v4266_v31, %v4265_v55 }
 0x1ea   :  { %v4320_v51 = vsel %vm19_vm1, %v4297_v33, 0.0  ;;  %v5117_v37 = vpack.c.bf16 %v4165_v30, %v4165_v30  ;;  %v4135_v56 = vsel %vm19_vm1, %v4110_v6, 0.0  ;;  %v4270_v57 = vsel %vm19_vm1, %v4164_v9, 0.0 }
 0x1eb   :  { %v4132_v58 = vadd.f32 %v4131_v52, %v4130_v40  ;;  %5021 = vst.msk [vmem:[%s7410_s2 + $0xac] sm:$0xf] %vm3667_vm2, %v5101_v44  ;;  %v5099_v59 = vpack.c.bf16 %v3974_v38, %v3974_v38  ;;  %v4321_v61 = vadd.f32 %v4320_v51, %v4319_v41  ;;  %v4079_v63 = vsel %vm19_vm1, %v3974_v38, 0.0  ;;  %v4167_v52 = vld [vmem:[#allocation2 + $0x1e8] sm:$0xff] }
 0x1ec   :  { %5053 = vst.msk [vmem:[%s7410_s2 + $0xec] sm:$0xf] %vm3667_vm2, %v5117_v37  ;;  %v4109_v5 = vmul.f32 %v3974_v38, %v3974_v38  ;;  %v5115_v39 = vpack.c.bf16 %v4163_v27, %v4163_v27  ;;  %v4111_v49 = vmul.f32 %v3976_v29, %v3976_v29  ;;  %v4080_v0 = vadd.f32 %v4079_v63, %v4078_v47 }
 0x1ed   :  { %5019 = vst.msk [vmem:[%s7410_s2 + $0xa4] sm:$0xf] %vm3667_vm2, %v5099_v59  ;;  %v4268_v53 = vsel %vm19_vm1, %v4163_v27, 0.0  ;;  %v4298_v11 = vmul.f32 %v4163_v27, %v4163_v27  ;;  %v4324_v18 = vsel %vm19_vm1, %v4299_v48, 0.0  ;;  %v5104_v7 = vpack.c.bf16 %v3979_v36, %v3979_v36 }
 0x1ee   :  { %v4133_v4 = vsel %vm19_vm1, %v4109_v5, 0.0  ;;  %5051 = vst.msk [vmem:[%s7410_s2 + $0xe4] sm:$0xf] %vm3667_vm2, %v5115_v39  ;;  %v4269_v34 = vadd.f32 %v4268_v53, %v4267_v21  ;;  %v4083_v9 = vsel %vm19_vm1, %v3976_v29, 0.0  ;;  %v4082_v60 = vadd.f32 %v4081_v35, %v4080_v0 }
 0x1ef   :  { %v4134_v10 = vadd.f32 %v4133_v4, %v4132_v58  ;;  %v4322_v13 = vsel %vm19_vm1, %v4298_v11, 0.0  ;;  %v4300_v14 = vmul.f32 %v4165_v30, %v4165_v30  ;;  %5024 = vst.msk [vmem:[%s7410_s2 + $0xb8] sm:$0xf] %vm3667_vm2, %v5104_v7  ;;  %v5120_v32 = vpack.c.bf16 %v4168_v46, %v4168_v46 }
 0x1f0   :  { %v4271_v16 = vadd.f32 %v4270_v57, %v4269_v34  ;;  %v4323_v17 = vadd.f32 %v4322_v13, %v4321_v61  ;;  %v4137_v20 = vsel %vm19_vm1, %v4111_v49, 0.0  ;;  %v4272_v42 = vsel %vm19_vm1, %v4165_v30, 0.0 }
 0x1f1   :  { %v4136_v22 = vadd.f32 %v4135_v56, %v4134_v10  ;;  %v5102_v43 = vpack.c.bf16 %v3977_v8, %v3977_v8  ;;  %5056 = vst.msk [vmem:[%s7410_s2 + $0xf8] sm:$0xf] %vm3667_vm2, %v5120_v32  ;;  %v4084_v50 = vadd.f32 %v4083_v9, %v4082_v60  ;;  %v4085_v24 = vsel %vm19_vm1, %v3977_v8, 0.0 }
 0x1f2   :  { %v4325_v23 = vadd.f32 %v4324_v18, %v4323_v17  ;;  %v4112_v25 = vmul.f32 %v3977_v8, %v3977_v8  ;;  %v5118_v45 = vpack.c.bf16 %v4166_v19, %v4166_v19  ;;  %v4273_v3 = vadd.f32 %v4272_v42, %v4271_v16 }
 0x1f3   :  { %5022 = vst.msk [vmem:[%s7410_s2 + $0xb0] sm:$0xf] %vm3667_vm2, %v5102_v43  ;;  %v4138_v12 = vadd.f32 %v4137_v20, %v4136_v22  ;;  %v4326_v28 = vsel %vm19_vm1, %v4300_v14, 0.0  ;;  %v4274_v6 = vsel %vm19_vm1, %v4166_v19, 0.0  ;;  %v4301_v40 = vmul.f32 %v4166_v19, %v4166_v19 }
 0x1f4   :  { %v4139_v29 = vsel %vm19_vm1, %v4112_v25, 0.0  ;;  %v4086_v55 = vadd.f32 %v4085_v24, %v4084_v50  ;;  %5054 = vst.msk [vmem:[%s7410_s2 + $0xf0] sm:$0xf] %vm3667_vm2, %v5118_v45  ;;  %v4327_v30 = vadd.f32 %v4326_v28, %v4325_v23  ;;  %v5105_v15 = vpack.c.bf16 %v3980_v62, %v3980_v62 }
 0x1f5   :  { %v4275_v31 = vadd.f32 %v4274_v6, %v4273_v3  ;;  %v4328_v33 = vsel %vm19_vm1, %v4301_v40, 0.0  ;;  %v5121_v38 = vpack.c.bf16 %v4169_v26, %v4169_v26  ;;  %v4089_v35 = vsel %vm19_vm1, %v3979_v36, 0.0 }
 0x1f6   :  { %v4114_v47 = vmul.f32 %v3979_v36, %v3979_v36  ;;  %v4140_v41 = vadd.f32 %v4139_v29, %v4138_v12  ;;  %5025 = vst.msk [vmem:[%s7410_s2 + $0xbc] sm:$0xf] %vm3667_vm2, %v5105_v15  ;;  %v5103_v44 = vpack.c.bf16 %v3978_v54, %v3978_v54  ;;  %v4329_v27 = vadd.f32 %v4328_v33, %v4327_v30 }
 0x1f7   :  { %5057 = vst.msk [vmem:[%s7410_s2 + $0xfc] sm:$0xf] %vm3667_vm2, %v5121_v38  ;;  %v4087_v48 = vsel %vm19_vm1, %v3978_v54, 0.0  ;;  %v4113_v21 = vmul.f32 %v3978_v54, %v3978_v54  ;;  %v5119_v51 = vpack.c.bf16 %v4167_v52, %v4167_v52  ;;  %v4303_v37 = vmul.f32 %v4168_v46, %v4168_v46 }
 0x1f8   :  { %5023 = vst.msk [vmem:[%s7410_s2 + $0xb4] sm:$0xf] %vm3667_vm2, %v5103_v44  ;;  %v4088_v56 = vadd.f32 %v4087_v48, %v4086_v55  ;;  %v4276_v57 = vsel %vm19_vm1, %v4167_v52, 0.0  ;;  %v4302_v58 = vmul.f32 %v4167_v52, %v4167_v52  ;;  %v4278_v59 = vsel %vm19_vm1, %v4168_v46, 0.0 }
 0x1f9   :  { %v4115_v36 = vmul.f32 %v3980_v62, %v3980_v62  ;;  %v4141_v61 = vsel %vm19_vm1, %v4113_v21, 0.0  ;;  %5055 = vst.msk [vmem:[%s7410_s2 + $0xf4] sm:$0xf] %vm3667_vm2, %v5119_v51  ;;  %v4277_v63 = vadd.f32 %v4276_v57, %v4275_v31  ;;  %v4304_v5 = vmul.f32 %v4169_v26, %v4169_v26 }
 0x1fa   :  { %v4090_v39 = vadd.f32 %v4089_v35, %v4088_v56  ;;  %v4142_v49 = vadd.f32 %v4141_v61, %v4140_v41  ;;  %v4330_v0 = vsel %vm19_vm1, %v4302_v58, 0.0  ;;  %v4143_v53 = vsel %vm19_vm1, %v4114_v47, 0.0 }
 0x1fb   :  { %v4091_v11 = vsel %vm19_vm1, %v3980_v62, 0.0  ;;  %v4279_v18 = vadd.f32 %v4278_v59, %v4277_v63  ;;  %v4331_v46 = vadd.f32 %v4330_v0, %v4329_v27  ;;  %v4332_v4 = vsel %vm19_vm1, %v4303_v37, 0.0 }
 0x1fc   :  { %v4280_v34 = vsel %vm19_vm1, %v4169_v26, 0.0  ;;  %v4092_v7 = vadd.f32 %v4091_v11, %v4090_v39  ;;  %v4144_v8 = vadd.f32 %v4143_v53, %v4142_v49  ;;  %v4145_v9 = vsel %vm19_vm1, %v4115_v36, 0.0 }
 0x1fd   :  { %v4281_v60 = vadd.f32 %v4280_v34, %v4279_v18  ;;  %v4333_v10 = vadd.f32 %v4332_v4, %v4331_v46  ;;  %v4334_v13 = vsel %vm19_vm1, %v4304_v5, 0.0 }
 0x1fe   :  { %v4093_v14 = vrot.slane %v4092_v7, 4  ;;  %v4146_v16 = vadd.f32 %v4145_v9, %v4144_v8 }
 0x1ff   :  { %v4282_v17 = vrot.slane %v4281_v60, 4  ;;  %v4335_v32 = vadd.f32 %v4334_v13, %v4333_v10 }
 0x200   :  { %v4094_v19 = vadd.f32 %v4093_v14, %v4092_v7  ;;  %v4147_v20 = vrot.slane %v4146_v16, 4 }
 0x201   :  { %v4283_v42 = vadd.f32 %v4282_v17, %v4281_v60  ;;  %v4336_v22 = vrot.slane %v4335_v32, 4 }
 0x202   :  { %v4095_v43 = vrot.slane %v4094_v19, 2  ;;  %v4148_v23 = vadd.f32 %v4147_v20, %v4146_v16 }
 0x203   :  { %v4284_v50 = vrot.slane %v4283_v42, 2  ;;  %v4337_v24 = vadd.f32 %v4336_v22, %v4335_v32 }
 0x204   :  { %v4096_v25 = vadd.f32 %v4095_v43, %v4094_v19  ;;  %v4149_v62 = vrot.slane %v4148_v23, 2 }
 0x205   :  { %v4285_v12 = vadd.f32 %v4284_v50, %v4283_v42  ;;  %v4338_v45 = vrot.slane %v4337_v24, 2 }
 0x206   :  { %v4097_v3 = vrot.slane %v4096_v25, 1  ;;  %v4150_v26 = vadd.f32 %v4149_v62, %v4148_v23 }
 0x207   :  { %v4286_v28 = vrot.slane %v4285_v12, 1  ;;  %v4339_v29 = vadd.f32 %v4338_v45, %v4337_v24 }
 0x208   :  { %v4098_v6 = vadd.f32 %v4097_v3, %v4096_v25  ;;  %v4151_v40 = vrot.slane %v4150_v26, 1 }
 0x209   :  { %v4340_v54 = vrot.slane %v4339_v29, 1  ;;  %v4287_v15 = vadd.f32 %v4286_v28, %v4285_v12 }
 0x20a   :  { %v4099_v55 = vadd.f32 %v4098_v6, %v7078_v1  ;;  %v4152_v30 = vadd.f32 %v4151_v40, %v4150_v26 }
 0x20b   :  { %v4341_v33 = vadd.f32 %v4340_v54, %v4339_v29 }
 0x20c   :  { %v4153_v52 = vadd.f32 %v4152_v30, %v7080_v2  ;;  %v4288_v31 = vadd.f32 %v4287_v15, %v4099_v55 }
 0x20e   :  { %v4342_v38 = vadd.f32 %v4341_v33, %v4153_v52  ;;  %4344 = vst.msk [vmem:[%s7411_s3] sm:$0x1] %vm4343_vm3, %v4288_v31 }
 0x210   :  { %4345 = vst.msk [vmem:[%s7412_s4] sm:$0x1] %vm4343_vm3, %v4342_v38 }

// kernel: generator_forward.7
= control target key start
LH: loop header
LB: loop body
LE: loop exit
PB: predicated region body
PF: predicated region fallthrough
CT: control target
= control target key end

     0   :  { %vm568_vm0 = vcmask 130048   ;;  %vm11932_vm1 = vcmask 1041408   ;;  %vm11933_vm2 = vsmask.f32 1280  ;;  %vm11935_vm3 = vcmask 1043458   ;;  %s20412_s1 = inlined_call_operand.vmem [shape: bf16[4,4,16,128], index: 1, kind: input, shape index: {}]   ;;  %s20413_s0 = inlined_call_operand.vmem [shape: bf16[9,512,16], index: 0, kind: input, shape index: {}]   ;;  %s20414_s2 = inlined_call_operand.vmem [shape: bf16[4,3,512], index: 2, kind: output, shape index: {}]  }
   0x1   :  { %v17029_v0 = vld [vmem:[%s20412_s1] sm:$0xff]   ;;  %v17033_v4 = vld [vmem:[%s20413_s0 + $0x8] sm:$0xff]   ;;  %v17036_v7 = vld [vmem:[%s20413_s0 + $0x10] sm:$0xff]   ;;  %vm11936_vm4 = vsmask.f32 3328  ;;  %vm11939_vm7 = vcmask 1045508  }
   0x2   :  { %v17030_v1 = vld [vmem:[%s20412_s1 + $0x20] sm:$0xff]   ;;  %15204 = vmatprep.subr.bf16.mxu0 %v17029_v0  ;;  %v17034_v5 = vld [vmem:[%s20412_s1 + $0x8] sm:$0xff]   ;;  %v17037_v8 = vld [vmem:[%s20413_s0 + $0x110] sm:$0xff]   ;;  %vm11940_vm8 = vsmask.f32 5376  ;;  %vm11943_vm11 = vcmask 1047558  }
   0x3   :  { %v17031_v2 = vld [vmem:[%s20413_s0] sm:$0xff]   ;;  %15468 = vmatprep.subr.bf16.mxu1 %v17030_v1  ;;  %15205 = vmatpush3.bf16.msra.mxu0 %v17029_v0  ;;  %v17035_v6 = vld [vmem:[%s20413_s0 + $0x108] sm:$0xff]   ;;  %v17038_v9 = vld [vmem:[%s20413_s0 + $0x18] sm:$0xff]   ;;  %vm11944_vm12 = vsmask.f32 7424 }
   0x4   :  { %v17032_v3 = vld [vmem:[%s20413_s0 + $0x100] sm:$0xff]   ;;  %15469 = vmatpush3.bf16.msra.mxu1 %v17030_v1  ;;  %15206 = vmatprep.mubr.msk.bf16.mxu0 %vm568_vm0, %v17031_v2  ;;  %v17039_v11 = vld [vmem:[%s20413_s0 + $0x118] sm:$0xff]   ;;  %v17042_v13 = vld [vmem:[%s20413_s0 + $0x28] sm:$0xff]  }
   0x5   :  { %15470 = vmatprep.mubr.msk.bf16.mxu1 %vm568_vm0, %v17032_v3  ;;  %15270 = vmatprep.subr.bf16.mxu0 %v17034_v5  ;;  %v17040_v10 = vld [vmem:[%s20413_s0 + $0x20] sm:$0xff]   ;;  %v17044_v14 = vld [vmem:[%s20413_s0 + $0x30] sm:$0xff]   ;;  %v17043_v15 = vld [vmem:[%s20413_s0 + $0x128] sm:$0xff]  }
   0x6   :  { %15207 = vmatmul.mubr.msk.bf16.vlgmr.msra.gmra.mrb[0].mxu0 %vm568_vm0, %v17033_v4  ;;  %v17041_v12 = vld [vmem:[%s20413_s0 + $0x120] sm:$0xff]   ;;  %v17045_v16 = vld [vmem:[%s20413_s0 + $0x130] sm:$0xff]   ;;  %v17046_v17 = vld [vmem:[%s20413_s0 + $0x38] sm:$0xff]  }
   0x7   :  { %15471 = vmatmul.mubr.msk.bf16.vlgmr.msra.gmra.mrb[0].mxu1 %vm568_vm0, %v17035_v6  ;;  %15271 = vmatpush3.bf16.msra.mxu0 %v17034_v5  ;;  %v17048_v18 = vld [vmem:[%s20413_s0 + $0x40] sm:$0xff]   ;;  %v17047_v19 = vld [vmem:[%s20413_s0 + $0x138] sm:$0xff]   ;;  %v17050_v21 = vld [vmem:[%s20413_s0 + $0x48] sm:$0xff]  }
   0x8   :  { %15210 = vmatprep.mubr.msk.bf16.mxu0 %vm568_vm0, %v17036_v7  ;;  %15474 = vmatprep.mubr.msk.bf16.mxu1 %vm568_vm0, %v17037_v8  ;;  %v17049_v20 = vld [vmem:[%s20413_s0 + $0x140] sm:$0xff]   ;;  %v17052_v22 = vld [vmem:[%s20413_s0 + $0x50] sm:$0xff]   ;;  %v17051_v23 = vld [vmem:[%s20413_s0 + $0x148] sm:$0xff]  }
   0x9   :  { %v17053_v24 = vld [vmem:[%s20413_s0 + $0x150] sm:$0xff]   ;;  %v17068_v25 = vld [vmem:[%s20412_s1 + $0x28] sm:$0xff]   ;;  %v17054_v26 = vld [vmem:[%s20413_s0 + $0x58] sm:$0xff]  }
   0xa   :  { %15534 = vmatprep.subr.bf16.mxu1 %v17068_v25  ;;  %v17056_v27 = vld [vmem:[%s20413_s0 + $0x60] sm:$0xff]   ;;  %v17055_v28 = vld [vmem:[%s20413_s0 + $0x158] sm:$0xff]   ;;  %v17058_v30 = vld [vmem:[%s20413_s0 + $0x68] sm:$0xff]  }
   0xb   :  { %15535 = vmatpush3.bf16.msra.mxu1 %v17068_v25  ;;  %v17057_v29 = vld [vmem:[%s20413_s0 + $0x160] sm:$0xff]   ;;  %v17060_v31 = vld [vmem:[%s20413_s0 + $0x70] sm:$0xff]   ;;  %v17059_v32 = vld [vmem:[%s20413_s0 + $0x168] sm:$0xff]  }
   0xc   :  { %v17061_v33 = vld [vmem:[%s20413_s0 + $0x170] sm:$0xff]   ;;  %v17062_v34 = vld [vmem:[%s20413_s0 + $0x78] sm:$0xff]   ;;  %v17064_v35 = vld [vmem:[%s20413_s0 + $0x80] sm:$0xff]  }
   0xd   :  { %v17063_v36 = vld [vmem:[%s20413_s0 + $0x178] sm:$0xff]   ;;  %v17065_v37 = vld [vmem:[%s20413_s0 + $0x180] sm:$0xff]   ;;  %v17066_v38 = vld [vmem:[%s20413_s0 + $0x88] sm:$0xff]  }
   0xe   :  { %15211 = vmatmul.mubr.msk.bf16.gmra.mrb[4].mxu0 %vm568_vm0, %v17038_v9  ;;  %v17069_v39 = vld [vmem:[%s20413_s0 + $0x90] sm:$0xff]   ;;  %v17067_v40 = vld [vmem:[%s20413_s0 + $0x188] sm:$0xff]   ;;  %v17071_v43 = vld [vmem:[%s20413_s0 + $0x98] sm:$0xff]  }
   0xf   :  { %15214 = vmatprep.mubr.msk.bf16.mxu0 %vm568_vm0, %v17040_v10  ;;  %15475 = vmatmul.mubr.msk.bf16.gmra.mrb[4].mxu1 %vm568_vm0, %v17039_v11  ;;  %v17070_v41 = vld [vmem:[%s20413_s0 + $0x190] sm:$0xff]   ;;  %v17073_v44 = vld [vmem:[%s20413_s0 + $0xa0] sm:$0xff]   ;;  %v17072_v45 = vld [vmem:[%s20413_s0 + $0x198] sm:$0xff]  }
  0x10   :  { %15478 = vmatprep.mubr.msk.bf16.mxu1 %vm568_vm0, %v17041_v12  ;;  %v17770_v42 = vld [vmem:[%s20412_s1 + $0x10] sm:$0xff]   ;;  %v17074_v46 = vld [vmem:[%s20413_s0 + $0x1a0] sm:$0xff]   ;;  %v17075_v47 = vld [vmem:[%s20413_s0 + $0xa8] sm:$0xff]  }
  0x11   :  { %15336 = vmatprep.subr.bf16.mxu0 %v17770_v42  ;;  %v17077_v48 = vld [vmem:[%s20413_s0 + $0xb0] sm:$0xff]   ;;  %v17076_v49 = vld [vmem:[%s20413_s0 + $0x1a8] sm:$0xff]   ;;  %v17079_v51 = vld [vmem:[%s20413_s0 + $0xb8] sm:$0xff]  }
  0x12   :  { %v17078_v50 = vld [vmem:[%s20413_s0 + $0x1b0] sm:$0xff]   ;;  %v17081_v52 = vld [vmem:[%s20413_s0 + $0xc0] sm:$0xff]   ;;  %v17080_v53 = vld [vmem:[%s20413_s0 + $0x1b8] sm:$0xff]  }
  0x13   :  { %v17082_v54 = vld [vmem:[%s20413_s0 + $0x1c0] sm:$0xff]   ;;  %v17083_v55 = vld [vmem:[%s20413_s0 + $0xc8] sm:$0xff]   ;;  %v17085_v56 = vld [vmem:[%s20413_s0 + $0xd0] sm:$0xff]  }
  0x14   :  { %v17084_v57 = vld [vmem:[%s20413_s0 + $0x1c8] sm:$0xff]   ;;  %v17086_v58 = vld [vmem:[%s20413_s0 + $0x1d0] sm:$0xff]   ;;  %v17087_v60 = vld [vmem:[%s20413_s0 + $0xd8] sm:$0xff]  }
  0x15   :  { %v17134_v59 = vld [vmem:[%s20412_s1 + $0x30] sm:$0xff]   ;;  %v17089_v61 = vld [vmem:[%s20413_s0 + $0xe0] sm:$0xff]   ;;  %v17088_v62 = vld [vmem:[%s20413_s0 + $0x1d8] sm:$0xff]  }
  0x16   :  { %15215 = vmatmul.mubr.msk.bf16.gmra.mrb[8].mxu0 %vm568_vm0, %v17042_v13  ;;  %15600 = vmatprep.subr.bf16.mxu1 %v17134_v59  ;;  %v17090_v63 = vld [vmem:[%s20413_s0 + $0x1e0] sm:$0xff]   ;;  %v17091_v0 = vld [vmem:[%s20413_s0 + $0xe8] sm:$0xff]   ;;  %v17093_v1 = vld [vmem:[%s20413_s0 + $0xf0] sm:$0xff]  }
  0x17   :  { %15218 = vmatprep.mubr.msk.bf16.mxu0 %vm568_vm0, %v17044_v14  ;;  %15479 = vmatmul.mubr.msk.bf16.gmra.mrb[8].mxu1 %vm568_vm0, %v17043_v15  ;;  %v17092_v2 = vld [vmem:[%s20413_s0 + $0x1e8] sm:$0xff]   ;;  %v17094_v3 = vld [vmem:[%s20413_s0 + $0x1f0] sm:$0xff]   ;;  %v17095_v4 = vld [vmem:[%s20413_s0 + $0xf8] sm:$0xff]  }
  0x18   :  { %15482 = vmatprep.mubr.msk.bf16.mxu1 %vm568_vm0, %v17045_v16  ;;  %v17097_v5 = vld [vmem:[%s20413_s0 + $0x100] sm:$0xff]   ;;  %v17096_v6 = vld [vmem:[%s20413_s0 + $0x1f8] sm:$0xff]   ;;  %v17099_v8 = vld [vmem:[%s20413_s0 + $0x108] sm:$0xff]  }
  0x19   :  { %v17098_v7 = vld [vmem:[%s20413_s0 + $0x200] sm:$0xff]   ;;  %v17102_v9 = vld [vmem:[%s20413_s0 + $0x110] sm:$0xff]   ;;  %v17101_v10 = vld [vmem:[%s20413_s0 + $0x208] sm:$0xff]  }
  0x1a   :  { %v17103_v11 = vld [vmem:[%s20413_s0 + $0x210] sm:$0xff]   ;;  %v17910_v12 = vld [vmem:[%s20412_s1 + $0x18] sm:$0xff]   ;;  %v17106_v14 = vld [vmem:[%s20413_s0 + $0x120] sm:$0xff]  }
  0x1b   :  { %v17104_v13 = vld [vmem:[%s20413_s0 + $0x118] sm:$0xff]   ;;  %v17107_v16 = vld [vmem:[%s20413_s0 + $0x220] sm:$0xff]   ;;  %v17116_v25 = vld [vmem:[%s20413_s0 + $0x148] sm:$0xff]  }
  0x1c   :  { %v17105_v15 = vld [vmem:[%s20413_s0 + $0x218] sm:$0xff]   ;;  %vm20304_vm5 = vmand %vm11932_vm1, %vm11933_vm2 }
  0x1d   :  { %vm20308_vm6 = vmand %vm11935_vm3, %vm11936_vm4 }
  0x1e   :  { %15219 = vmatmul.mubr.msk.bf16.gmra.mrb[12].mxu0 %vm568_vm0, %v17046_v17  ;;  %v17108_v17 = vld [vmem:[%s20413_s0 + $0x128] sm:$0xff]   ;;  %vm11938_vm9 = vmor %vm20308_vm6, %vm20304_vm5 }
  0x1f   :  { %15222 = vmatprep.mubr.msk.bf16.mxu0 %vm568_vm0, %v17048_v18  ;;  %15483 = vmatmul.mubr.msk.bf16.gmra.mrb[12].mxu1 %vm568_vm0, %v17047_v19  ;;  %v17110_v18 = vld [vmem:[%s20413_s0 + $0x130] sm:$0xff]   ;;  %v17109_v19 = vld [vmem:[%s20413_s0 + $0x228] sm:$0xff]   ;;  %vm11941_vm10 = vmand %vm11939_vm7, %vm11940_vm8 }
  0x20   :  { %15486 = vmatprep.mubr.msk.bf16.mxu1 %vm568_vm0, %v17049_v20  ;;  %v17111_v20 = vld [vmem:[%s20413_s0 + $0x230] sm:$0xff]   ;;  %vm11942_vm13 = vmor %vm11941_vm10, %vm11938_vm9 }
  0x21   :  { %vm11945_vm14 = vmand %vm11943_vm11, %vm11944_vm12 }
  0x22   :  { %vm20326_vm15 = vmor %vm11945_vm14, %vm11942_vm13 }
  0x26   :  { %15223 = vmatmul.mubr.msk.bf16.gmra.mrb[16].mxu0 %vm568_vm0, %v17050_v21  ;;  %v17112_v21 = vld [vmem:[%s20413_s0 + $0x138] sm:$0xff]  }
  0x27   :  { %15226 = vmatprep.mubr.msk.bf16.mxu0 %vm568_vm0, %v17052_v22  ;;  %15487 = vmatmul.mubr.msk.bf16.gmra.mrb[16].mxu1 %vm568_vm0, %v17051_v23  ;;  %v17114_v22 = vld [vmem:[%s20413_s0 + $0x140] sm:$0xff]   ;;  %v17113_v23 = vld [vmem:[%s20413_s0 + $0x238] sm:$0xff]  }
  0x28   :  { %15490 = vmatprep.mubr.msk.bf16.mxu1 %vm568_vm0, %v17053_v24  ;;  %v17115_v24 = vld [vmem:[%s20413_s0 + $0x240] sm:$0xff]  }
  0x2e   :  { %15227 = vmatmul.mubr.msk.bf16.gmra.mrb[20].mxu0 %vm568_vm0, %v17054_v26  ;;  %v17118_v26 = vld [vmem:[%s20413_s0 + $0x150] sm:$0xff]  }
  0x2f   :  { %15230 = vmatprep.mubr.msk.bf16.mxu0 %vm568_vm0, %v17056_v27  ;;  %15491 = vmatmul.mubr.msk.bf16.gmra.mrb[20].mxu1 %vm568_vm0, %v17055_v28  ;;  %v17117_v27 = vld [vmem:[%s20413_s0 + $0x248] sm:$0xff]   ;;  %v17119_v28 = vld [vmem:[%s20413_s0 + $0x250] sm:$0xff]  }
  0x30   :  { %15494 = vmatprep.mubr.msk.bf16.mxu1 %vm568_vm0, %v17057_v29  ;;  %v17120_v29 = vld [vmem:[%s20413_s0 + $0x158] sm:$0xff]  }
  0x36   :  { %15231 = vmatmul.mubr.msk.bf16.gmra.mrb[24].mxu0 %vm568_vm0, %v17058_v30  ;;  %v17122_v30 = vld [vmem:[%s20413_s0 + $0x160] sm:$0xff]  }
  0x37   :  { %15234 = vmatprep.mubr.msk.bf16.mxu0 %vm568_vm0, %v17060_v31  ;;  %15495 = vmatmul.mubr.msk.bf16.gmra.mrb[24].mxu1 %vm568_vm0, %v17059_v32  ;;  %v17121_v31 = vld [vmem:[%s20413_s0 + $0x258] sm:$0xff]   ;;  %v17123_v32 = vld [vmem:[%s20413_s0 + $0x260] sm:$0xff]  }
  0x38   :  { %15498 = vmatprep.mubr.msk.bf16.mxu1 %vm568_vm0, %v17061_v33  ;;  %v17124_v33 = vld [vmem:[%s20413_s0 + $0x168] sm:$0xff]  }
  0x3e   :  { %15235 = vmatmul.mubr.msk.bf16.gmra.mrb[28].mxu0 %vm568_vm0, %v17062_v34  ;;  %v17126_v34 = vld [vmem:[%s20413_s0 + $0x170] sm:$0xff]  }
  0x3f   :  { %15238 = vmatprep.mubr.msk.bf16.mxu0 %vm568_vm0, %v17064_v35  ;;  %15499 = vmatmul.mubr.msk.bf16.gmra.mrb[28].mxu1 %vm568_vm0, %v17063_v36  ;;  %v17125_v35 = vld [vmem:[%s20413_s0 + $0x268] sm:$0xff]   ;;  %v17127_v36 = vld [vmem:[%s20413_s0 + $0x270] sm:$0xff]  }
  0x40   :  { %15502 = vmatprep.mubr.msk.bf16.mxu1 %vm568_vm0, %v17065_v37  ;;  %v17128_v37 = vld [vmem:[%s20413_s0 + $0x178] sm:$0xff]  }
  0x46   :  { %15239 = vmatmul.mubr.msk.bf16.gmra.mrb[32].mxu0 %vm568_vm0, %v17066_v38  ;;  %v17130_v38 = vld [vmem:[%s20413_s0 + $0x180] sm:$0xff]  }
  0x47   :  { %15242 = vmatprep.mubr.msk.bf16.mxu0 %vm568_vm0, %v17069_v39  ;;  %15503 = vmatmul.mubr.msk.bf16.gmra.mrb[32].mxu1 %vm568_vm0, %v17067_v40  ;;  %v17129_v39 = vld [vmem:[%s20413_s0 + $0x278] sm:$0xff]   ;;  %v17131_v40 = vld [vmem:[%s20413_s0 + $0x280] sm:$0xff]  }
  0x48   :  { %15506 = vmatprep.mubr.msk.bf16.mxu1 %vm568_vm0, %v17070_v41  ;;  %v17132_v41 = vld [vmem:[%s20413_s0 + $0x188] sm:$0xff]  }
  0x4e   :  { %15243 = vmatmul.mubr.msk.bf16.gmra.mrb[36].mxu0 %vm568_vm0, %v17071_v43  ;;  %v17133_v43 = vld [vmem:[%s20413_s0 + $0x288] sm:$0xff]  }
  0x4f   :  { %15246 = vmatprep.mubr.msk.bf16.mxu0 %vm568_vm0, %v17073_v44  ;;  %15507 = vmatmul.mubr.msk.bf16.gmra.mrb[36].mxu1 %vm568_vm0, %v17072_v45  ;;  %v17136_v44 = vld [vmem:[%s20413_s0 + $0x290] sm:$0xff]   ;;  %v17137_v45 = vld [vmem:[%s20413_s0 + $0x198] sm:$0xff]  }
  0x50   :  { %15510 = vmatprep.mubr.msk.bf16.mxu1 %vm568_vm0, %v17074_v46  ;;  %v18046_v46 = vld [vmem:[%s20412_s1 + $0x38] sm:$0xff]  }
  0x56   :  { %15247 = vmatmul.mubr.msk.bf16.gmra.mrb[40].mxu0 %vm568_vm0, %v17075_v47  ;;  %v17139_v47 = vld [vmem:[%s20413_s0 + $0x1a0] sm:$0xff]  }
  0x57   :  { %15250 = vmatprep.mubr.msk.bf16.mxu0 %vm568_vm0, %v17077_v48  ;;  %15511 = vmatmul.mubr.msk.bf16.gmra.mrb[40].mxu1 %vm568_vm0, %v17076_v49  ;;  %v17138_v48 = vld [vmem:[%s20413_s0 + $0x298] sm:$0xff]   ;;  %v17140_v49 = vld [vmem:[%s20413_s0 + $0x2a0] sm:$0xff]  }
  0x58   :  { %15514 = vmatprep.mubr.msk.bf16.mxu1 %vm568_vm0, %v17078_v50  ;;  %v17141_v50 = vld [vmem:[%s20413_s0 + $0x1a8] sm:$0xff]  }
  0x5e   :  { %15251 = vmatmul.mubr.msk.bf16.gmra.mrb[44].mxu0 %vm568_vm0, %v17079_v51  ;;  %v17143_v51 = vld [vmem:[%s20413_s0 + $0x1b0] sm:$0xff]  }
  0x5f   :  { %15254 = vmatprep.mubr.msk.bf16.mxu0 %vm568_vm0, %v17081_v52  ;;  %15515 = vmatmul.mubr.msk.bf16.gmra.mrb[44].mxu1 %vm568_vm0, %v17080_v53  ;;  %v17142_v52 = vld [vmem:[%s20413_s0 + $0x2a8] sm:$0xff]   ;;  %v17144_v53 = vld [vmem:[%s20413_s0 + $0x2b0] sm:$0xff]  }
  0x60   :  { %15518 = vmatprep.mubr.msk.bf16.mxu1 %vm568_vm0, %v17082_v54  ;;  %v17145_v54 = vld [vmem:[%s20413_s0 + $0x1b8] sm:$0xff]  }
  0x66   :  { %15255 = vmatmul.mubr.msk.bf16.gmra.mrb[48].mxu0 %vm568_vm0, %v17083_v55  ;;  %v17147_v55 = vld [vmem:[%s20413_s0 + $0x1c0] sm:$0xff]  }
  0x67   :  { %15258 = vmatprep.mubr.msk.bf16.mxu0 %vm568_vm0, %v17085_v56  ;;  %15519 = vmatmul.mubr.msk.bf16.gmra.mrb[48].mxu1 %vm568_vm0, %v17084_v57  ;;  %v17146_v56 = vld [vmem:[%s20413_s0 + $0x2b8] sm:$0xff]   ;;  %v17148_v57 = vld [vmem:[%s20413_s0 + $0x2c0] sm:$0xff]  }
  0x68   :  { %15522 = vmatprep.mubr.msk.bf16.mxu1 %vm568_vm0, %v17086_v58  ;;  %v17149_v58 = vld [vmem:[%s20413_s0 + $0x1c8] sm:$0xff]  }
  0x6e   :  { %15259 = vmatmul.mubr.msk.bf16.gmra.mrb[52].mxu0 %vm568_vm0, %v17087_v60  ;;  %v17150_v60 = vld [vmem:[%s20413_s0 + $0x2c8] sm:$0xff]  }
  0x6f   :  { %15262 = vmatprep.mubr.msk.bf16.mxu0 %vm568_vm0, %v17089_v61  ;;  %15523 = vmatmul.mubr.msk.bf16.gmra.mrb[52].mxu1 %vm568_vm0, %v17088_v62  ;;  %v17152_v61 = vld [vmem:[%s20413_s0 + $0x2d0] sm:$0xff]   ;;  %v17153_v62 = vld [vmem:[%s20413_s0 + $0x1d8] sm:$0xff]  }
  0x70   :  { %15526 = vmatprep.mubr.msk.bf16.mxu1 %vm568_vm0, %v17090_v63  ;;  %v17155_v63 = vld [vmem:[%s20413_s0 + $0x1e0] sm:$0xff]  }
  0x76   :  { %15263 = vmatmul.mubr.msk.bf16.gmra.mrb[56].mxu0 %vm568_vm0, %v17091_v0  ;;  %v17154_v0 = vld [vmem:[%s20413_s0 + $0x2d8] sm:$0xff]  }
  0x77   :  { %15266 = vmatprep.mubr.msk.bf16.mxu0 %vm568_vm0, %v17093_v1  ;;  %15527 = vmatmul.mubr.msk.bf16.gmra.mrb[56].mxu1 %vm568_vm0, %v17092_v2  ;;  %v17156_v1 = vld [vmem:[%s20413_s0 + $0x2e0] sm:$0xff]   ;;  %v17157_v2 = vld [vmem:[%s20413_s0 + $0x1e8] sm:$0xff]  }
  0x78   :  { %15530 = vmatprep.mubr.msk.bf16.mxu1 %vm568_vm0, %v17094_v3  ;;  %v17159_v3 = vld [vmem:[%s20413_s0 + $0x1f0] sm:$0xff]  }
  0x7e   :  { %15267 = vmatmul.mubr.msk.bf16.gmra.mrb[60].mxu0 %vm568_vm0, %v17095_v4  ;;  %v17158_v4 = vld [vmem:[%s20413_s0 + $0x2e8] sm:$0xff]  }
  0x7f   :  { %15272 = vmatprep.mubr.msk.bf16.mxu0 %vm568_vm0, %v17097_v5  ;;  %15531 = vmatmul.mubr.msk.bf16.gmra.mrb[60].mxu1 %vm568_vm0, %v17096_v6  ;;  %v17160_v5 = vld [vmem:[%s20413_s0 + $0x2f0] sm:$0xff]   ;;  %v17161_v6 = vld [vmem:[%s20413_s0 + $0x1f8] sm:$0xff]  }
  0x80   :  { %15536 = vmatprep.mubr.msk.bf16.mxu1 %vm568_vm0, %v17098_v7  ;;  %v17163_v7 = vld [vmem:[%s20413_s0 + $0x300] sm:$0xff]  }
  0x86   :  { %15273 = vmatmul.mubr.msk.bf16.vlgmr.msra.gmra.mrb[0].mxu0 %vm568_vm0, %v17099_v8  ;;  %v17162_v8 = vld [vmem:[%s20413_s0 + $0x2f8] sm:$0xff]  }
  0x87   :  { %15337 = vmatpush3.bf16.msra.mxu0 %v17770_v42  ;;  %15276 = vmatprep.mubr.msk.bf16.mxu0 %vm568_vm0, %v17102_v9  ;;  %v17135_v42 = vld [vmem:[%s20413_s0 + $0x190] sm:$0xff]   ;;  %v17164_v9 = vld [vmem:[%s20413_s0 + $0x400] sm:$0xff]  }
  0x88   :  { %15537 = vmatmul.mubr.msk.bf16.vlgmr.msra.gmra.mrb[0].mxu1 %vm568_vm0, %v17101_v10  ;;  %15402 = vmatprep.subr.bf16.mxu0 %v17910_v12  ;;  %v17165_v10 = vld [vmem:[%s20413_s0 + $0x308] sm:$0xff]  }
  0x89   :  { %15540 = vmatprep.mubr.msk.bf16.mxu1 %vm568_vm0, %v17103_v11  ;;  %15601 = vmatpush3.bf16.msra.mxu1 %v17134_v59  ;;  %v17151_v59 = vld [vmem:[%s20413_s0 + $0x1d0] sm:$0xff]  }
  0x8a   :  { %15666 = vmatprep.subr.bf16.mxu1 %v18046_v46  ;;  %v17168_v11 = vld [vmem:[%s20413_s0 + $0x310] sm:$0xff]  }
  0x8e   :  { %15277 = vmatmul.mubr.msk.bf16.gmra.mrb[4].mxu0 %vm568_vm0, %v17104_v13  ;;  %v17167_v13 = vld [vmem:[%s20413_s0 + $0x408] sm:$0xff]  }
  0x8f   :  { %15280 = vmatprep.mubr.msk.bf16.mxu0 %vm568_vm0, %v17106_v14  ;;  %v17169_v14 = vld [vmem:[%s20413_s0 + $0x410] sm:$0xff]  }
  0x90   :  { %15541 = vmatmul.mubr.msk.bf16.gmra.mrb[4].mxu1 %vm568_vm0, %v17105_v15  ;;  %v17170_v15 = vld [vmem:[%s20413_s0 + $0x318] sm:$0xff]  }
  0x91   :  { %15544 = vmatprep.mubr.msk.bf16.mxu1 %vm568_vm0, %v17107_v16  ;;  %v18181_v16 = vld [vmem:[%s20412_s1 + $0x40] sm:$0xff]  }
  0x96   :  { %15281 = vmatmul.mubr.msk.bf16.gmra.mrb[8].mxu0 %vm568_vm0, %v17108_v17  ;;  %v17172_v17 = vld [vmem:[%s20413_s0 + $0x320] sm:$0xff]  }
  0x97   :  { %15284 = vmatprep.mubr.msk.bf16.mxu0 %vm568_vm0, %v17110_v18  ;;  %v17173_v18 = vld [vmem:[%s20413_s0 + $0x420] sm:$0xff]  }
  0x98   :  { %15545 = vmatmul.mubr.msk.bf16.gmra.mrb[8].mxu1 %vm568_vm0, %v17109_v19  ;;  %v17174_v19 = vld [vmem:[%s20413_s0 + $0x328] sm:$0xff]  }
  0x99   :  { %15548 = vmatprep.mubr.msk.bf16.mxu1 %vm568_vm0, %v17111_v20  ;;  %v17176_v20 = vld [vmem:[%s20413_s0 + $0x330] sm:$0xff]  }
  0x9e   :  { %15285 = vmatmul.mubr.msk.bf16.gmra.mrb[12].mxu0 %vm568_vm0, %v17112_v21  ;;  %v17175_v21 = vld [vmem:[%s20413_s0 + $0x428] sm:$0xff]  }
  0x9f   :  { %15288 = vmatprep.mubr.msk.bf16.mxu0 %vm568_vm0, %v17114_v22  ;;  %v17177_v22 = vld [vmem:[%s20413_s0 + $0x430] sm:$0xff]  }
  0xa0   :  { %15549 = vmatmul.mubr.msk.bf16.gmra.mrb[12].mxu1 %vm568_vm0, %v17113_v23  ;;  %v17178_v23 = vld [vmem:[%s20413_s0 + $0x338] sm:$0xff]  }
  0xa1   :  { %15552 = vmatprep.mubr.msk.bf16.mxu1 %vm568_vm0, %v17115_v24  ;;  %v17180_v24 = vld [vmem:[%s20413_s0 + $0x340] sm:$0xff]  }
  0xa6   :  { %15289 = vmatmul.mubr.msk.bf16.gmra.mrb[16].mxu0 %vm568_vm0, %v17116_v25  ;;  %v17179_v25 = vld [vmem:[%s20413_s0 + $0x438] sm:$0xff]  }
  0xa7   :  { %15292 = vmatprep.mubr.msk.bf16.mxu0 %vm568_vm0, %v17118_v26  ;;  %v17181_v26 = vld [vmem:[%s20413_s0 + $0x440] sm:$0xff]  }
  0xa8   :  { %15553 = vmatmul.mubr.msk.bf16.gmra.mrb[16].mxu1 %vm568_vm0, %v17117_v27  ;;  %v17182_v27 = vld [vmem:[%s20413_s0 + $0x348] sm:$0xff]  }
  0xa9   :  { %15556 = vmatprep.mubr.msk.bf16.mxu1 %vm568_vm0, %v17119_v28  ;;  %v17184_v28 = vld [vmem:[%s20413_s0 + $0x350] sm:$0xff]  }
  0xae   :  { %15293 = vmatmul.mubr.msk.bf16.gmra.mrb[20].mxu0 %vm568_vm0, %v17120_v29  ;;  %v17183_v29 = vld [vmem:[%s20413_s0 + $0x448] sm:$0xff]  }
  0xaf   :  { %15296 = vmatprep.mubr.msk.bf16.mxu0 %vm568_vm0, %v17122_v30  ;;  %v17185_v30 = vld [vmem:[%s20413_s0 + $0x450] sm:$0xff]  }
  0xb0   :  { %15557 = vmatmul.mubr.msk.bf16.gmra.mrb[20].mxu1 %vm568_vm0, %v17121_v31  ;;  %v17186_v31 = vld [vmem:[%s20413_s0 + $0x358] sm:$0xff]  }
  0xb1   :  { %15560 = vmatprep.mubr.msk.bf16.mxu1 %vm568_vm0, %v17123_v32  ;;  %v17188_v32 = vld [vmem:[%s20413_s0 + $0x360] sm:$0xff]  }
  0xb6   :  { %15297 = vmatmul.mubr.msk.bf16.gmra.mrb[24].mxu0 %vm568_vm0, %v17124_v33  ;;  %v17187_v33 = vld [vmem:[%s20413_s0 + $0x458] sm:$0xff]  }
  0xb7   :  { %15300 = vmatprep.mubr.msk.bf16.mxu0 %vm568_vm0, %v17126_v34  ;;  %v17189_v34 = vld [vmem:[%s20413_s0 + $0x460] sm:$0xff]  }
  0xb8   :  { %15561 = vmatmul.mubr.msk.bf16.gmra.mrb[24].mxu1 %vm568_vm0, %v17125_v35  ;;  %v17190_v35 = vld [vmem:[%s20413_s0 + $0x368] sm:$0xff]  }
  0xb9   :  { %15564 = vmatprep.mubr.msk.bf16.mxu1 %vm568_vm0, %v17127_v36  ;;  %v17192_v36 = vld [vmem:[%s20413_s0 + $0x370] sm:$0xff]  }
  0xbe   :  { %15301 = vmatmul.mubr.msk.bf16.gmra.mrb[28].mxu0 %vm568_vm0, %v17128_v37  ;;  %v17191_v37 = vld [vmem:[%s20413_s0 + $0x468] sm:$0xff]  }
  0xbf   :  { %15304 = vmatprep.mubr.msk.bf16.mxu0 %vm568_vm0, %v17130_v38  ;;  %v17193_v38 = vld [vmem:[%s20413_s0 + $0x470] sm:$0xff]  }
  0xc0   :  { %15565 = vmatmul.mubr.msk.bf16.gmra.mrb[28].mxu1 %vm568_vm0, %v17129_v39  ;;  %v17194_v39 = vld [vmem:[%s20413_s0 + $0x378] sm:$0xff]  }
  0xc1   :  { %15568 = vmatprep.mubr.msk.bf16.mxu1 %vm568_vm0, %v17131_v40  ;;  %v17196_v40 = vld [vmem:[%s20413_s0 + $0x380] sm:$0xff]  }
  0xc6   :  { %15305 = vmatmul.mubr.msk.bf16.gmra.mrb[32].mxu0 %vm568_vm0, %v17132_v41  ;;  %v17195_v41 = vld [vmem:[%s20413_s0 + $0x478] sm:$0xff]  }
  0xc7   :  { %15308 = vmatprep.mubr.msk.bf16.mxu0 %vm568_vm0, %v17135_v42  ;;  %v17197_v42 = vld [vmem:[%s20413_s0 + $0x480] sm:$0xff]  }
  0xc8   :  { %15569 = vmatmul.mubr.msk.bf16.gmra.mrb[32].mxu1 %vm568_vm0, %v17133_v43  ;;  %v17198_v43 = vld [vmem:[%s20413_s0 + $0x388] sm:$0xff]  }
  0xc9   :  { %15572 = vmatprep.mubr.msk.bf16.mxu1 %vm568_vm0, %v17136_v44  ;;  %v17201_v44 = vld [vmem:[%s20413_s0 + $0x390] sm:$0xff]  }
  0xce   :  { %15309 = vmatmul.mubr.msk.bf16.gmra.mrb[36].mxu0 %vm568_vm0, %v17137_v45  ;;  %v17199_v45 = vld [vmem:[%s20413_s0 + $0x488] sm:$0xff]  }
  0xcf   :  { %15312 = vmatprep.mubr.msk.bf16.mxu0 %vm568_vm0, %v17139_v47  ;;  %v17203_v47 = vld [vmem:[%s20413_s0 + $0x398] sm:$0xff]  }
  0xd0   :  { %15573 = vmatmul.mubr.msk.bf16.gmra.mrb[36].mxu1 %vm568_vm0, %v17138_v48  ;;  %v18316_v48 = vld [vmem:[%s20412_s1 + $0x60] sm:$0xff]  }
  0xd1   :  { %15576 = vmatprep.mubr.msk.bf16.mxu1 %vm568_vm0, %v17140_v49  ;;  %v17205_v49 = vld [vmem:[%s20413_s0 + $0x3a0] sm:$0xff]  }
  0xd6   :  { %15313 = vmatmul.mubr.msk.bf16.gmra.mrb[40].mxu0 %vm568_vm0, %v17141_v50  ;;  %v17204_v50 = vld [vmem:[%s20413_s0 + $0x498] sm:$0xff]  }
  0xd7   :  { %15316 = vmatprep.mubr.msk.bf16.mxu0 %vm568_vm0, %v17143_v51  ;;  %v17206_v51 = vld [vmem:[%s20413_s0 + $0x4a0] sm:$0xff]  }
  0xd8   :  { %15577 = vmatmul.mubr.msk.bf16.gmra.mrb[40].mxu1 %vm568_vm0, %v17142_v52  ;;  %v17207_v52 = vld [vmem:[%s20413_s0 + $0x3a8] sm:$0xff]  }
  0xd9   :  { %15580 = vmatprep.mubr.msk.bf16.mxu1 %vm568_vm0, %v17144_v53  ;;  %v17209_v53 = vld [vmem:[%s20413_s0 + $0x3b0] sm:$0xff]  }
  0xde   :  { %15317 = vmatmul.mubr.msk.bf16.gmra.mrb[44].mxu0 %vm568_vm0, %v17145_v54  ;;  %v17208_v54 = vld [vmem:[%s20413_s0 + $0x4a8] sm:$0xff]  }
  0xdf   :  { %15320 = vmatprep.mubr.msk.bf16.mxu0 %vm568_vm0, %v17147_v55  ;;  %v17210_v55 = vld [vmem:[%s20413_s0 + $0x4b0] sm:$0xff]  }
  0xe0   :  { %15581 = vmatmul.mubr.msk.bf16.gmra.mrb[44].mxu1 %vm568_vm0, %v17146_v56  ;;  %v17211_v56 = vld [vmem:[%s20413_s0 + $0x3b8] sm:$0xff]  }
  0xe1   :  { %15584 = vmatprep.mubr.msk.bf16.mxu1 %vm568_vm0, %v17148_v57  ;;  %v17213_v57 = vld [vmem:[%s20413_s0 + $0x3c0] sm:$0xff]  }
  0xe6   :  { %15321 = vmatmul.mubr.msk.bf16.gmra.mrb[48].mxu0 %vm568_vm0, %v17149_v58  ;;  %v17212_v58 = vld [vmem:[%s20413_s0 + $0x4b8] sm:$0xff]  }
  0xe7   :  { %15324 = vmatprep.mubr.msk.bf16.mxu0 %vm568_vm0, %v17151_v59  ;;  %v17214_v59 = vld [vmem:[%s20413_s0 + $0x4c0] sm:$0xff]  }
  0xe8   :  { %15585 = vmatmul.mubr.msk.bf16.gmra.mrb[48].mxu1 %vm568_vm0, %v17150_v60  ;;  %v17215_v60 = vld [vmem:[%s20413_s0 + $0x3c8] sm:$0xff]  }
  0xe9   :  { %15588 = vmatprep.mubr.msk.bf16.mxu1 %vm568_vm0, %v17152_v61  ;;  %v17217_v61 = vld [vmem:[%s20413_s0 + $0x3d0] sm:$0xff]  }
  0xee   :  { %15325 = vmatmul.mubr.msk.bf16.gmra.mrb[52].mxu0 %vm568_vm0, %v17153_v62  ;;  %v17216_v62 = vld [vmem:[%s20413_s0 + $0x4c8] sm:$0xff]  }
  0xef   :  { %15328 = vmatprep.mubr.msk.bf16.mxu0 %vm568_vm0, %v17155_v63  ;;  %v17218_v63 = vld [vmem:[%s20413_s0 + $0x4d0] sm:$0xff]  }
  0xf0   :  { %15589 = vmatmul.mubr.msk.bf16.gmra.mrb[52].mxu1 %vm568_vm0, %v17154_v0  ;;  %v17219_v0 = vld [vmem:[%s20413_s0 + $0x3d8] sm:$0xff]  }
  0xf1   :  { %15592 = vmatprep.mubr.msk.bf16.mxu1 %vm568_vm0, %v17156_v1  ;;  %v17221_v1 = vld [vmem:[%s20413_s0 + $0x3e0] sm:$0xff]  }
  0xf6   :  { %15329 = vmatmul.mubr.msk.bf16.gmra.mrb[56].mxu0 %vm568_vm0, %v17157_v2  ;;  %v17220_v2 = vld [vmem:[%s20413_s0 + $0x4d8] sm:$0xff]  }
  0xf7   :  { %15332 = vmatprep.mubr.msk.bf16.mxu0 %vm568_vm0, %v17159_v3  ;;  %v17222_v3 = vld [vmem:[%s20413_s0 + $0x4e0] sm:$0xff]  }
  0xf8   :  { %15593 = vmatmul.mubr.msk.bf16.gmra.mrb[56].mxu1 %vm568_vm0, %v17158_v4  ;;  %v17223_v4 = vld [vmem:[%s20413_s0 + $0x3e8] sm:$0xff]  }
  0xf9   :  { %15596 = vmatprep.mubr.msk.bf16.mxu1 %vm568_vm0, %v17160_v5  ;;  %v17225_v5 = vld [vmem:[%s20413_s0 + $0x3f0] sm:$0xff]  }
  0xfe   :  { %15333 = vmatmul.mubr.msk.bf16.gmra.mrb[60].mxu0 %vm568_vm0, %v17161_v6  ;;  %v17224_v6 = vld [vmem:[%s20413_s0 + $0x4e8] sm:$0xff]  }
  0xff   :  { %15338 = vmatprep.mubr.msk.bf16.mxu0 %vm568_vm0, %v17163_v7  ;;  %v17226_v7 = vld [vmem:[%s20413_s0 + $0x4f0] sm:$0xff]  }
 0x100   :  { %15597 = vmatmul.mubr.msk.bf16.gmra.mrb[60].mxu1 %vm568_vm0, %v17162_v8  ;;  %v17227_v8 = vld [vmem:[%s20413_s0 + $0x3f8] sm:$0xff]  }
 0x101   :  { %15602 = vmatprep.mubr.msk.bf16.mxu1 %vm568_vm0, %v17164_v9  ;;  %v17229_v9 = vld [vmem:[%s20413_s0 + $0x400] sm:$0xff]  }
 0x106   :  { %15339 = vmatmul.mubr.msk.bf16.vlgmr.msra.gmra.mrb[0].mxu0 %vm568_vm0, %v17165_v10  ;;  %v17228_v10 = vld [vmem:[%s20413_s0 + $0x4f8] sm:$0xff]  }
 0x107   :  { %15403 = vmatpush3.bf16.msra.mxu0 %v17910_v12  ;;  %15342 = vmatprep.mubr.msk.bf16.mxu0 %vm568_vm0, %v17168_v11  ;;  %v17171_v12 = vld [vmem:[%s20413_s0 + $0x418] sm:$0xff]   ;;  %v17230_v11 = vld [vmem:[%s20413_s0 + $0x500] sm:$0xff]  }
 0x108   :  { %15603 = vmatmul.mubr.msk.bf16.vlgmr.msra.gmra.mrb[0].mxu1 %vm568_vm0, %v17167_v13  ;;  %15732 = vmatprep.subr.bf16.mxu0 %v18181_v16  ;;  %v17231_v13 = vld [vmem:[%s20413_s0 + $0x408] sm:$0xff]  }
 0x109   :  { %15606 = vmatprep.mubr.msk.bf16.mxu1 %vm568_vm0, %v17169_v14  ;;  %15667 = vmatpush3.bf16.msra.mxu1 %v18046_v46  ;;  %v17202_v46 = vld [vmem:[%s20413_s0 + $0x490] sm:$0xff]  }
 0x10a   :  { %15996 = vmatprep.subr.bf16.mxu1 %v18316_v48  ;;  %v17234_v14 = vld [vmem:[%s20413_s0 + $0x410] sm:$0xff]  }
 0x10e   :  { %15343 = vmatmul.mubr.msk.bf16.gmra.mrb[4].mxu0 %vm568_vm0, %v17170_v15  ;;  %v17232_v15 = vld [vmem:[%s20413_s0 + $0x508] sm:$0xff]  }
 0x10f   :  { %15346 = vmatprep.mubr.msk.bf16.mxu0 %vm568_vm0, %v17172_v17  ;;  %v17235_v17 = vld [vmem:[%s20413_s0 + $0x510] sm:$0xff]  }
 0x110   :  { %15607 = vmatmul.mubr.msk.bf16.gmra.mrb[4].mxu1 %vm568_vm0, %v17171_v12  ;;  %v18445_v12 = vld [vmem:[%s20412_s1 + $0x48] sm:$0xff]  }
 0x111   :  { %15610 = vmatprep.mubr.msk.bf16.mxu1 %vm568_vm0, %v17173_v18  ;;  %v17236_v18 = vld [vmem:[%s20413_s0 + $0x418] sm:$0xff]  }
 0x116   :  { %15347 = vmatmul.mubr.msk.bf16.gmra.mrb[8].mxu0 %vm568_vm0, %v17174_v19  ;;  %v17238_v19 = vld [vmem:[%s20413_s0 + $0x420] sm:$0xff]  }
 0x117   :  { %15350 = vmatprep.mubr.msk.bf16.mxu0 %vm568_vm0, %v17176_v20  ;;  %v17239_v20 = vld [vmem:[%s20413_s0 + $0x520] sm:$0xff]  }
 0x118   :  { %15611 = vmatmul.mubr.msk.bf16.gmra.mrb[8].mxu1 %vm568_vm0, %v17175_v21  ;;  %v17240_v21 = vld [vmem:[%s20413_s0 + $0x428] sm:$0xff]  }
 0x119   :  { %15614 = vmatprep.mubr.msk.bf16.mxu1 %vm568_vm0, %v17177_v22  ;;  %v17242_v22 = vld [vmem:[%s20413_s0 + $0x430] sm:$0xff]  }
 0x11e   :  { %15351 = vmatmul.mubr.msk.bf16.gmra.mrb[12].mxu0 %vm568_vm0, %v17178_v23  ;;  %v17241_v23 = vld [vmem:[%s20413_s0 + $0x528] sm:$0xff]  }
 0x11f   :  { %15354 = vmatprep.mubr.msk.bf16.mxu0 %vm568_vm0, %v17180_v24  ;;  %v17243_v24 = vld [vmem:[%s20413_s0 + $0x530] sm:$0xff]  }
 0x120   :  { %15615 = vmatmul.mubr.msk.bf16.gmra.mrb[12].mxu1 %vm568_vm0, %v17179_v25  ;;  %v17244_v25 = vld [vmem:[%s20413_s0 + $0x438] sm:$0xff]  }
 0x121   :  { %15618 = vmatprep.mubr.msk.bf16.mxu1 %vm568_vm0, %v17181_v26  ;;  %v17246_v26 = vld [vmem:[%s20413_s0 + $0x440] sm:$0xff]  }
 0x126   :  { %15355 = vmatmul.mubr.msk.bf16.gmra.mrb[16].mxu0 %vm568_vm0, %v17182_v27  ;;  %v17245_v27 = vld [vmem:[%s20413_s0 + $0x538] sm:$0xff]  }
 0x127   :  { %15358 = vmatprep.mubr.msk.bf16.mxu0 %vm568_vm0, %v17184_v28  ;;  %v17247_v28 = vld [vmem:[%s20413_s0 + $0x540] sm:$0xff]  }
 0x128   :  { %15619 = vmatmul.mubr.msk.bf16.gmra.mrb[16].mxu1 %vm568_vm0, %v17183_v29  ;;  %v17248_v29 = vld [vmem:[%s20413_s0 + $0x448] sm:$0xff]  }
 0x129   :  { %15622 = vmatprep.mubr.msk.bf16.mxu1 %vm568_vm0, %v17185_v30  ;;  %v17250_v30 = vld [vmem:[%s20413_s0 + $0x450] sm:$0xff]  }
 0x12e   :  { %15359 = vmatmul.mubr.msk.bf16.gmra.mrb[20].mxu0 %vm568_vm0, %v17186_v31  ;;  %v17249_v31 = vld [vmem:[%s20413_s0 + $0x548] sm:$0xff]  }
 0x12f   :  { %15362 = vmatprep.mubr.msk.bf16.mxu0 %vm568_vm0, %v17188_v32  ;;  %v17251_v32 = vld [vmem:[%s20413_s0 + $0x550] sm:$0xff]  }
 0x130   :  { %15623 = vmatmul.mubr.msk.bf16.gmra.mrb[20].mxu1 %vm568_vm0, %v17187_v33  ;;  %v17252_v33 = vld [vmem:[%s20413_s0 + $0x458] sm:$0xff]  }
 0x131   :  { %15626 = vmatprep.mubr.msk.bf16.mxu1 %vm568_vm0, %v17189_v34  ;;  %v17254_v34 = vld [vmem:[%s20413_s0 + $0x460] sm:$0xff]  }
 0x136   :  { %15363 = vmatmul.mubr.msk.bf16.gmra.mrb[24].mxu0 %vm568_vm0, %v17190_v35  ;;  %v17253_v35 = vld [vmem:[%s20413_s0 + $0x558] sm:$0xff]  }
 0x137   :  { %15366 = vmatprep.mubr.msk.bf16.mxu0 %vm568_vm0, %v17192_v36  ;;  %v17255_v36 = vld [vmem:[%s20413_s0 + $0x560] sm:$0xff]  }
 0x138   :  { %15627 = vmatmul.mubr.msk.bf16.gmra.mrb[24].mxu1 %vm568_vm0, %v17191_v37  ;;  %v17256_v37 = vld [vmem:[%s20413_s0 + $0x468] sm:$0xff]  }
 0x139   :  { %15630 = vmatprep.mubr.msk.bf16.mxu1 %vm568_vm0, %v17193_v38  ;;  %v17258_v38 = vld [vmem:[%s20413_s0 + $0x470] sm:$0xff]  }
 0x13e   :  { %15367 = vmatmul.mubr.msk.bf16.gmra.mrb[28].mxu0 %vm568_vm0, %v17194_v39  ;;  %v17257_v39 = vld [vmem:[%s20413_s0 + $0x568] sm:$0xff]  }
 0x13f   :  { %15370 = vmatprep.mubr.msk.bf16.mxu0 %vm568_vm0, %v17196_v40  ;;  %v17259_v40 = vld [vmem:[%s20413_s0 + $0x570] sm:$0xff]  }
 0x140   :  { %15631 = vmatmul.mubr.msk.bf16.gmra.mrb[28].mxu1 %vm568_vm0, %v17195_v41  ;;  %v17260_v41 = vld [vmem:[%s20413_s0 + $0x478] sm:$0xff]  }
 0x141   :  { %15634 = vmatprep.mubr.msk.bf16.mxu1 %vm568_vm0, %v17197_v42  ;;  %v17262_v42 = vld [vmem:[%s20413_s0 + $0x480] sm:$0xff]  }
 0x146   :  { %15371 = vmatmul.mubr.msk.bf16.gmra.mrb[32].mxu0 %vm568_vm0, %v17198_v43  ;;  %v17261_v43 = vld [vmem:[%s20413_s0 + $0x578] sm:$0xff]  }
 0x147   :  { %15374 = vmatprep.mubr.msk.bf16.mxu0 %vm568_vm0, %v17201_v44  ;;  %v17263_v44 = vld [vmem:[%s20413_s0 + $0x580] sm:$0xff]  }
 0x148   :  { %15635 = vmatmul.mubr.msk.bf16.gmra.mrb[32].mxu1 %vm568_vm0, %v17199_v45  ;;  %v17264_v45 = vld [vmem:[%s20413_s0 + $0x488] sm:$0xff]  }
 0x149   :  { %15638 = vmatprep.mubr.msk.bf16.mxu1 %vm568_vm0, %v17202_v46  ;;  %v17267_v46 = vld [vmem:[%s20413_s0 + $0x490] sm:$0xff]  }
 0x14e   :  { %15375 = vmatmul.mubr.msk.bf16.gmra.mrb[36].mxu0 %vm568_vm0, %v17203_v47  ;;  %v17265_v47 = vld [vmem:[%s20413_s0 + $0x588] sm:$0xff]  }
 0x14f   :  { %15378 = vmatprep.mubr.msk.bf16.mxu0 %vm568_vm0, %v17205_v49  ;;  %v18583_v49 = vld [vmem:[%s20412_s1 + $0x68] sm:$0xff]  }
 0x150   :  { %15639 = vmatmul.mubr.msk.bf16.gmra.mrb[36].mxu1 %vm568_vm0, %v17204_v50  ;;  %v17269_v50 = vld [vmem:[%s20413_s0 + $0x498] sm:$0xff]  }
 0x151   :  { %15642 = vmatprep.mubr.msk.bf16.mxu1 %vm568_vm0, %v17206_v51  ;;  %v17271_v51 = vld [vmem:[%s20413_s0 + $0x4a0] sm:$0xff]  }
 0x156   :  { %15379 = vmatmul.mubr.msk.bf16.gmra.mrb[40].mxu0 %vm568_vm0, %v17207_v52  ;;  %v17270_v52 = vld [vmem:[%s20413_s0 + $0x598] sm:$0xff]  }
 0x157   :  { %15382 = vmatprep.mubr.msk.bf16.mxu0 %vm568_vm0, %v17209_v53  ;;  %v17272_v53 = vld [vmem:[%s20413_s0 + $0x5a0] sm:$0xff]  }
 0x158   :  { %15643 = vmatmul.mubr.msk.bf16.gmra.mrb[40].mxu1 %vm568_vm0, %v17208_v54  ;;  %v17273_v54 = vld [vmem:[%s20413_s0 + $0x4a8] sm:$0xff]  }
 0x159   :  { %15646 = vmatprep.mubr.msk.bf16.mxu1 %vm568_vm0, %v17210_v55  ;;  %v17275_v55 = vld [vmem:[%s20413_s0 + $0x4b0] sm:$0xff]  }
 0x15e   :  { %15383 = vmatmul.mubr.msk.bf16.gmra.mrb[44].mxu0 %vm568_vm0, %v17211_v56  ;;  %v17274_v56 = vld [vmem:[%s20413_s0 + $0x5a8] sm:$0xff]  }
 0x15f   :  { %15386 = vmatprep.mubr.msk.bf16.mxu0 %vm568_vm0, %v17213_v57  ;;  %v17276_v57 = vld [vmem:[%s20413_s0 + $0x5b0] sm:$0xff]  }
 0x160   :  { %15647 = vmatmul.mubr.msk.bf16.gmra.mrb[44].mxu1 %vm568_vm0, %v17212_v58  ;;  %v17277_v58 = vld [vmem:[%s20413_s0 + $0x4b8] sm:$0xff]  }
 0x161   :  { %15650 = vmatprep.mubr.msk.bf16.mxu1 %vm568_vm0, %v17214_v59  ;;  %v17279_v59 = vld [vmem:[%s20413_s0 + $0x4c0] sm:$0xff]  }
 0x166   :  { %15387 = vmatmul.mubr.msk.bf16.gmra.mrb[48].mxu0 %vm568_vm0, %v17215_v60  ;;  %v17278_v60 = vld [vmem:[%s20413_s0 + $0x5b8] sm:$0xff]  }
 0x167   :  { %15390 = vmatprep.mubr.msk.bf16.mxu0 %vm568_vm0, %v17217_v61  ;;  %v17280_v61 = vld [vmem:[%s20413_s0 + $0x5c0] sm:$0xff]  }
 0x168   :  { %15651 = vmatmul.mubr.msk.bf16.gmra.mrb[48].mxu1 %vm568_vm0, %v17216_v62  ;;  %v17281_v62 = vld [vmem:[%s20413_s0 + $0x4c8] sm:$0xff]  }
 0x169   :  { %15654 = vmatprep.mubr.msk.bf16.mxu1 %vm568_vm0, %v17218_v63  ;;  %v17283_v63 = vld [vmem:[%s20413_s0 + $0x4d0] sm:$0xff]  }
 0x16e   :  { %15391 = vmatmul.mubr.msk.bf16.gmra.mrb[52].mxu0 %vm568_vm0, %v17219_v0  ;;  %v17282_v0 = vld [vmem:[%s20413_s0 + $0x5c8] sm:$0xff]  }
 0x16f   :  { %15394 = vmatprep.mubr.msk.bf16.mxu0 %vm568_vm0, %v17221_v1  ;;  %v17284_v1 = vld [vmem:[%s20413_s0 + $0x5d0] sm:$0xff]  }
 0x170   :  { %15655 = vmatmul.mubr.msk.bf16.gmra.mrb[52].mxu1 %vm568_vm0, %v17220_v2  ;;  %v17285_v2 = vld [vmem:[%s20413_s0 + $0x4d8] sm:$0xff]  }
 0x171   :  { %15658 = vmatprep.mubr.msk.bf16.mxu1 %vm568_vm0, %v17222_v3  ;;  %v17287_v3 = vld [vmem:[%s20413_s0 + $0x4e0] sm:$0xff]  }
 0x176   :  { %15395 = vmatmul.mubr.msk.bf16.gmra.mrb[56].mxu0 %vm568_vm0, %v17223_v4  ;;  %v17286_v4 = vld [vmem:[%s20413_s0 + $0x5d8] sm:$0xff]  }
 0x177   :  { %15398 = vmatprep.mubr.msk.bf16.mxu0 %vm568_vm0, %v17225_v5  ;;  %v17288_v5 = vld [vmem:[%s20413_s0 + $0x5e0] sm:$0xff]  }
 0x178   :  { %15659 = vmatmul.mubr.msk.bf16.gmra.mrb[56].mxu1 %vm568_vm0, %v17224_v6  ;;  %v17289_v6 = vld [vmem:[%s20413_s0 + $0x4e8] sm:$0xff]  }
 0x179   :  { %15662 = vmatprep.mubr.msk.bf16.mxu1 %vm568_vm0, %v17226_v7  ;;  %v17291_v7 = vld [vmem:[%s20413_s0 + $0x4f0] sm:$0xff]  }
 0x17e   :  { %15399 = vmatmul.mubr.msk.bf16.gmra.mrb[60].mxu0 %vm568_vm0, %v17227_v8  ;;  %v17290_v8 = vld [vmem:[%s20413_s0 + $0x5e8] sm:$0xff]  }
 0x17f   :  { %15404 = vmatprep.mubr.msk.bf16.mxu0 %vm568_vm0, %v17229_v9  ;;  %v17292_v9 = vld [vmem:[%s20413_s0 + $0x5f0] sm:$0xff]  }
 0x180   :  { %15663 = vmatmul.mubr.msk.bf16.gmra.mrb[60].mxu1 %vm568_vm0, %v17228_v10  ;;  %v17293_v10 = vld [vmem:[%s20413_s0 + $0x4f8] sm:$0xff]  }
 0x181   :  { %15668 = vmatprep.mubr.msk.bf16.mxu1 %vm568_vm0, %v17230_v11  ;;  %v17295_v11 = vld [vmem:[%s20413_s0 + $0x300] sm:$0xff]  }
 0x186   :  { %15405 = vmatmul.mubr.msk.bf16.vlgmr.msra.gmra.mrb[0].mxu0 %vm568_vm0, %v17231_v13  ;;  %v17294_v13 = vld [vmem:[%s20413_s0 + $0x5f8] sm:$0xff]  }
 0x187   :  { %15733 = vmatpush3.bf16.msra.mxu0 %v18181_v16  ;;  %15408 = vmatprep.mubr.msk.bf16.mxu0 %vm568_vm0, %v17234_v14  ;;  %v17237_v16 = vld [vmem:[%s20413_s0 + $0x518] sm:$0xff]   ;;  %v17296_v14 = vld [vmem:[%s20413_s0 + $0x400] sm:$0xff]  }
 0x188   :  { %15669 = vmatmul.mubr.msk.bf16.vlgmr.msra.gmra.mrb[0].mxu1 %vm568_vm0, %v17232_v15  ;;  %15798 = vmatprep.subr.bf16.mxu0 %v18445_v12  ;;  %v17297_v15 = vld [vmem:[%s20413_s0 + $0x308] sm:$0xff]  }
 0x189   :  { %15672 = vmatprep.mubr.msk.bf16.mxu1 %vm568_vm0, %v17235_v17  ;;  %15997 = vmatpush3.bf16.msra.mxu1 %v18316_v48  ;;  %v17268_v48 = vld [vmem:[%s20413_s0 + $0x590] sm:$0xff]  }
 0x18a   :  { %16062 = vmatprep.subr.bf16.mxu1 %v18583_v49  ;;  %v17300_v17 = vld [vmem:[%s20413_s0 + $0x310] sm:$0xff]  }
 0x18e   :  { %15409 = vmatmul.mubr.msk.bf16.gmra.mrb[4].mxu0 %vm568_vm0, %v17236_v18  ;;  %v17299_v18 = vld [vmem:[%s20413_s0 + $0x408] sm:$0xff]  }
 0x18f   :  { %15412 = vmatprep.mubr.msk.bf16.mxu0 %vm568_vm0, %v17238_v19  ;;  %v17301_v19 = vld [vmem:[%s20413_s0 + $0x410] sm:$0xff]  }
 0x190   :  { %15673 = vmatmul.mubr.msk.bf16.gmra.mrb[4].mxu1 %vm568_vm0, %v17237_v16  ;;  %v18715_v16 = vld [vmem:[%s20412_s1 + $0x50] sm:$0xff]  }
 0x191   :  { %15676 = vmatprep.mubr.msk.bf16.mxu1 %vm568_vm0, %v17239_v20  ;;  %v17302_v20 = vld [vmem:[%s20413_s0 + $0x318] sm:$0xff]  }
 0x196   :  { %15413 = vmatmul.mubr.msk.bf16.gmra.mrb[8].mxu0 %vm568_vm0, %v17240_v21  ;;  %v17304_v21 = vld [vmem:[%s20413_s0 + $0x320] sm:$0xff]  }
 0x197   :  { %15416 = vmatprep.mubr.msk.bf16.mxu0 %vm568_vm0, %v17242_v22  ;;  %v17305_v22 = vld [vmem:[%s20413_s0 + $0x420] sm:$0xff]  }
 0x198   :  { %15677 = vmatmul.mubr.msk.bf16.gmra.mrb[8].mxu1 %vm568_vm0, %v17241_v23  ;;  %v17306_v23 = vld [vmem:[%s20413_s0 + $0x328] sm:$0xff]  }
 0x199   :  { %15680 = vmatprep.mubr.msk.bf16.mxu1 %vm568_vm0, %v17243_v24  ;;  %v17308_v24 = vld [vmem:[%s20413_s0 + $0x330] sm:$0xff]  }
 0x19e   :  { %15417 = vmatmul.mubr.msk.bf16.gmra.mrb[12].mxu0 %vm568_vm0, %v17244_v25  ;;  %v17307_v25 = vld [vmem:[%s20413_s0 + $0x428] sm:$0xff]  }
 0x19f   :  { %15420 = vmatprep.mubr.msk.bf16.mxu0 %vm568_vm0, %v17246_v26  ;;  %v17309_v26 = vld [vmem:[%s20413_s0 + $0x430] sm:$0xff]  }
 0x1a0   :  { %15681 = vmatmul.mubr.msk.bf16.gmra.mrb[12].mxu1 %vm568_vm0, %v17245_v27  ;;  %v17310_v27 = vld [vmem:[%s20413_s0 + $0x338] sm:$0xff]  }
 0x1a1   :  { %15684 = vmatprep.mubr.msk.bf16.mxu1 %vm568_vm0, %v17247_v28  ;;  %v17312_v28 = vld [vmem:[%s20413_s0 + $0x340] sm:$0xff]  }
 0x1a6   :  { %15421 = vmatmul.mubr.msk.bf16.gmra.mrb[16].mxu0 %vm568_vm0, %v17248_v29  ;;  %v17311_v29 = vld [vmem:[%s20413_s0 + $0x438] sm:$0xff]  }
 0x1a7   :  { %15424 = vmatprep.mubr.msk.bf16.mxu0 %vm568_vm0, %v17250_v30  ;;  %v17313_v30 = vld [vmem:[%s20413_s0 + $0x440] sm:$0xff]  }
 0x1a8   :  { %15685 = vmatmul.mubr.msk.bf16.gmra.mrb[16].mxu1 %vm568_vm0, %v17249_v31  ;;  %v17314_v31 = vld [vmem:[%s20413_s0 + $0x348] sm:$0xff]  }
 0x1a9   :  { %15688 = vmatprep.mubr.msk.bf16.mxu1 %vm568_vm0, %v17251_v32  ;;  %v17316_v32 = vld [vmem:[%s20413_s0 + $0x350] sm:$0xff]  }
 0x1ae   :  { %15425 = vmatmul.mubr.msk.bf16.gmra.mrb[20].mxu0 %vm568_vm0, %v17252_v33  ;;  %v17315_v33 = vld [vmem:[%s20413_s0 + $0x448] sm:$0xff]  }
 0x1af   :  { %15428 = vmatprep.mubr.msk.bf16.mxu0 %vm568_vm0, %v17254_v34  ;;  %v17317_v34 = vld [vmem:[%s20413_s0 + $0x450] sm:$0xff]  }
 0x1b0   :  { %15689 = vmatmul.mubr.msk.bf16.gmra.mrb[20].mxu1 %vm568_vm0, %v17253_v35  ;;  %v17318_v35 = vld [vmem:[%s20413_s0 + $0x358] sm:$0xff]  }
 0x1b1   :  { %15692 = vmatprep.mubr.msk.bf16.mxu1 %vm568_vm0, %v17255_v36  ;;  %v17320_v36 = vld [vmem:[%s20413_s0 + $0x360] sm:$0xff]  }
 0x1b6   :  { %15429 = vmatmul.mubr.msk.bf16.gmra.mrb[24].mxu0 %vm568_vm0, %v17256_v37  ;;  %v17319_v37 = vld [vmem:[%s20413_s0 + $0x458] sm:$0xff]  }
 0x1b7   :  { %15432 = vmatprep.mubr.msk.bf16.mxu0 %vm568_vm0, %v17258_v38  ;;  %v17321_v38 = vld [vmem:[%s20413_s0 + $0x460] sm:$0xff]  }
 0x1b8   :  { %15693 = vmatmul.mubr.msk.bf16.gmra.mrb[24].mxu1 %vm568_vm0, %v17257_v39  ;;  %v17322_v39 = vld [vmem:[%s20413_s0 + $0x368] sm:$0xff]  }
 0x1b9   :  { %15696 = vmatprep.mubr.msk.bf16.mxu1 %vm568_vm0, %v17259_v40  ;;  %v17324_v40 = vld [vmem:[%s20413_s0 + $0x370] sm:$0xff]  }
 0x1be   :  { %15433 = vmatmul.mubr.msk.bf16.gmra.mrb[28].mxu0 %vm568_vm0, %v17260_v41  ;;  %v17323_v41 = vld [vmem:[%s20413_s0 + $0x468] sm:$0xff]  }
 0x1bf   :  { %15436 = vmatprep.mubr.msk.bf16.mxu0 %vm568_vm0, %v17262_v42  ;;  %v17325_v42 = vld [vmem:[%s20413_s0 + $0x470] sm:$0xff]  }
 0x1c0   :  { %15697 = vmatmul.mubr.msk.bf16.gmra.mrb[28].mxu1 %vm568_vm0, %v17261_v43  ;;  %v17326_v43 = vld [vmem:[%s20413_s0 + $0x378] sm:$0xff]  }
 0x1c1   :  { %15700 = vmatprep.mubr.msk.bf16.mxu1 %vm568_vm0, %v17263_v44  ;;  %v17328_v44 = vld [vmem:[%s20413_s0 + $0x380] sm:$0xff]  }
 0x1c6   :  { %15437 = vmatmul.mubr.msk.bf16.gmra.mrb[32].mxu0 %vm568_vm0, %v17264_v45  ;;  %v17327_v45 = vld [vmem:[%s20413_s0 + $0x478] sm:$0xff]  }
 0x1c7   :  { %15440 = vmatprep.mubr.msk.bf16.mxu0 %vm568_vm0, %v17267_v46  ;;  %v17329_v46 = vld [vmem:[%s20413_s0 + $0x480] sm:$0xff]  }
 0x1c8   :  { %15701 = vmatmul.mubr.msk.bf16.gmra.mrb[32].mxu1 %vm568_vm0, %v17265_v47  ;;  %v17330_v47 = vld [vmem:[%s20413_s0 + $0x388] sm:$0xff]  }
 0x1c9   :  { %15704 = vmatprep.mubr.msk.bf16.mxu1 %vm568_vm0, %v17268_v48  ;;  %v17333_v48 = vld [vmem:[%s20413_s0 + $0x390] sm:$0xff]  }
 0x1ce   :  { %15441 = vmatmul.mubr.msk.bf16.gmra.mrb[36].mxu0 %vm568_vm0, %v17269_v50  ;;  %v17334_v50 = vld [vmem:[%s20413_s0 + $0x490] sm:$0xff]  }
 0x1cf   :  { %15444 = vmatprep.mubr.msk.bf16.mxu0 %vm568_vm0, %v17271_v51  ;;  %v18853_v51 = vld [vmem:[%s20412_s1 + $0x70] sm:$0xff]  }
 0x1d0   :  { %15705 = vmatmul.mubr.msk.bf16.gmra.mrb[36].mxu1 %vm568_vm0, %v17270_v52  ;;  %v17335_v52 = vld [vmem:[%s20413_s0 + $0x398] sm:$0xff]  }
 0x1d1   :  { %15708 = vmatprep.mubr.msk.bf16.mxu1 %vm568_vm0, %v17272_v53  ;;  %v17337_v53 = vld [vmem:[%s20413_s0 + $0x3a0] sm:$0xff]  }
 0x1d6   :  { %15445 = vmatmul.mubr.msk.bf16.gmra.mrb[40].mxu0 %vm568_vm0, %v17273_v54  ;;  %v17336_v54 = vld [vmem:[%s20413_s0 + $0x498] sm:$0xff]  }
 0x1d7   :  { %15448 = vmatprep.mubr.msk.bf16.mxu0 %vm568_vm0, %v17275_v55  ;;  %v17338_v55 = vld [vmem:[%s20413_s0 + $0x4a0] sm:$0xff]  }
 0x1d8   :  { %15709 = vmatmul.mubr.msk.bf16.gmra.mrb[40].mxu1 %vm568_vm0, %v17274_v56  ;;  %v17339_v56 = vld [vmem:[%s20413_s0 + $0x3a8] sm:$0xff]  }
 0x1d9   :  { %15712 = vmatprep.mubr.msk.bf16.mxu1 %vm568_vm0, %v17276_v57  ;;  %v17341_v57 = vld [vmem:[%s20413_s0 + $0x3b0] sm:$0xff]  }
 0x1de   :  { %15449 = vmatmul.mubr.msk.bf16.gmra.mrb[44].mxu0 %vm568_vm0, %v17277_v58  ;;  %v17340_v58 = vld [vmem:[%s20413_s0 + $0x4a8] sm:$0xff]  }
 0x1df   :  { %15452 = vmatprep.mubr.msk.bf16.mxu0 %vm568_vm0, %v17279_v59  ;;  %v17342_v59 = vld [vmem:[%s20413_s0 + $0x4b0] sm:$0xff]  }
 0x1e0   :  { %15713 = vmatmul.mubr.msk.bf16.gmra.mrb[44].mxu1 %vm568_vm0, %v17278_v60 }
 0x1e1   :  { %15716 = vmatprep.mubr.msk.bf16.mxu1 %vm568_vm0, %v17280_v61 }
 0x1e6   :  { %15453 = vmatmul.mubr.msk.bf16.gmra.mrb[48].mxu0 %vm568_vm0, %v17281_v62  ;;  %v17343_v62 = vld [vmem:[%s20413_s0 + $0x3b8] sm:$0xff]  }
 0x1e7   :  { %15456 = vmatprep.mubr.msk.bf16.mxu0 %vm568_vm0, %v17283_v63 }
 0x1e8   :  { %15717 = vmatmul.mubr.msk.bf16.gmra.mrb[48].mxu1 %vm568_vm0, %v17282_v0 }
 0x1e9   :  { %15720 = vmatprep.mubr.msk.bf16.mxu1 %vm568_vm0, %v17284_v1  ;;  %v17345_v1 = vld [vmem:[%s20413_s0 + $0x3c0] sm:$0xff]  }
 0x1ee   :  { %15457 = vmatmul.mubr.msk.bf16.gmra.mrb[52].mxu0 %vm568_vm0, %v17285_v2 }
 0x1ef   :  { %15460 = vmatprep.mubr.msk.bf16.mxu0 %vm568_vm0, %v17287_v3 }
 0x1f0   :  { %15721 = vmatmul.mubr.msk.bf16.gmra.mrb[52].mxu1 %vm568_vm0, %v17286_v4  ;;  %v17344_v4 = vld [vmem:[%s20413_s0 + $0x4b8] sm:$0xff]  }
 0x1f1   :  { %15724 = vmatprep.mubr.msk.bf16.mxu1 %vm568_vm0, %v17288_v5 }
 0x1f6   :  { %15461 = vmatmul.mubr.msk.bf16.gmra.mrb[56].mxu0 %vm568_vm0, %v17289_v6  ;;  %v17346_v6 = vld [vmem:[%s20413_s0 + $0x4c0] sm:$0xff]  }
 0x1f7   :  { %15464 = vmatprep.mubr.msk.bf16.mxu0 %vm568_vm0, %v17291_v7 }
 0x1f8   :  { %15725 = vmatmul.mubr.msk.bf16.gmra.mrb[56].mxu1 %vm568_vm0, %v17290_v8 }
 0x1f9   :  { %15728 = vmatprep.mubr.msk.bf16.mxu1 %vm568_vm0, %v17292_v9 }
 0x1fe   :  { %15465 = vmatmul.mubr.msk.bf16.gmra.mrb[60].mxu0 %vm568_vm0, %v17293_v10  ;;  %v17347_v10 = vld [vmem:[%s20413_s0 + $0x3c8] sm:$0xff]  }
 0x1ff   :  { %15734 = vmatprep.mubr.msk.bf16.mxu0 %vm568_vm0, %v17295_v11 }
 0x200   :  { %15729 = vmatmul.mubr.msk.bf16.gmra.mrb[60].mxu1 %vm568_vm0, %v17294_v13 }
 0x201   :  { %15998 = vmatprep.mubr.msk.bf16.mxu1 %vm568_vm0, %v17296_v14  ;;  %v17349_v14 = vld [vmem:[%s20413_s0 + $0x3d0] sm:$0xff]  }
 0x206   :  { %15735 = vmatmul.mubr.msk.bf16.vlgmr.msra.gmra.mrb[64].mxu0 %vm568_vm0, %v17297_v15 }
 0x207   :  { %15799 = vmatpush3.bf16.msra.mxu0 %v18445_v12  ;;  %15738 = vmatprep.mubr.msk.bf16.mxu0 %vm568_vm0, %v17300_v17  ;;  %v17303_v12 = vld [vmem:[%s20413_s0 + $0x418] sm:$0xff]  }
 0x208   :  { %15999 = vmatmul.mubr.msk.bf16.vlgmr.msra.gmra.mrb[64].mxu1 %vm568_vm0, %v17299_v18  ;;  %15864 = vmatprep.subr.bf16.mxu0 %v18715_v16  ;;  %v17348_v18 = vld [vmem:[%s20413_s0 + $0x4c8] sm:$0xff]  }
 0x209   :  { %16002 = vmatprep.mubr.msk.bf16.mxu1 %vm568_vm0, %v17301_v19  ;;  %16063 = vmatpush3.bf16.msra.mxu1 %v18583_v49  ;;  %v17331_v49 = vld [vmem:[%s20413_s0 + $0x488] sm:$0xff]  }
 0x20a   :  { %16128 = vmatprep.subr.bf16.mxu1 %v18853_v51 }
 0x20e   :  { %15739 = vmatmul.mubr.msk.bf16.gmra.mrb[68].mxu0 %vm568_vm0, %v17302_v20  ;;  %v17350_v20 = vld [vmem:[%s20413_s0 + $0x4d0] sm:$0xff]  }
 0x20f   :  { %15742 = vmatprep.mubr.msk.bf16.mxu0 %vm568_vm0, %v17304_v21 }
 0x210   :  { %16003 = vmatmul.mubr.msk.bf16.gmra.mrb[68].mxu1 %vm568_vm0, %v17303_v12 }
 0x211   :  { %16006 = vmatprep.mubr.msk.bf16.mxu1 %vm568_vm0, %v17305_v22 }
 0x216   :  { %15743 = vmatmul.mubr.msk.bf16.gmra.mrb[72].mxu0 %vm568_vm0, %v17306_v23  ;;  %v17351_v23 = vld [vmem:[%s20413_s0 + $0x3d8] sm:$0xff]  }
 0x217   :  { %15746 = vmatprep.mubr.msk.bf16.mxu0 %vm568_vm0, %v17308_v24 }
 0x218   :  { %16007 = vmatmul.mubr.msk.bf16.gmra.mrb[72].mxu1 %vm568_vm0, %v17307_v25 }
 0x219   :  { %16010 = vmatprep.mubr.msk.bf16.mxu1 %vm568_vm0, %v17309_v26  ;;  %v17353_v26 = vld [vmem:[%s20413_s0 + $0x3e0] sm:$0xff]  }
 0x21e   :  { %15747 = vmatmul.mubr.msk.bf16.gmra.mrb[76].mxu0 %vm568_vm0, %v17310_v27 }
 0x21f   :  { %15750 = vmatprep.mubr.msk.bf16.mxu0 %vm568_vm0, %v17312_v28 }
 0x220   :  { %16011 = vmatmul.mubr.msk.bf16.gmra.mrb[76].mxu1 %vm568_vm0, %v17311_v29  ;;  %v17352_v29 = vld [vmem:[%s20413_s0 + $0x4d8] sm:$0xff]  }
 0x221   :  { %16014 = vmatprep.mubr.msk.bf16.mxu1 %vm568_vm0, %v17313_v30 }
 0x226   :  { %15751 = vmatmul.mubr.msk.bf16.gmra.mrb[80].mxu0 %vm568_vm0, %v17314_v31  ;;  %v17354_v31 = vld [vmem:[%s20413_s0 + $0x4e0] sm:$0xff]  }
 0x227   :  { %15754 = vmatprep.mubr.msk.bf16.mxu0 %vm568_vm0, %v17316_v32 }
 0x228   :  { %16015 = vmatmul.mubr.msk.bf16.gmra.mrb[80].mxu1 %vm568_vm0, %v17315_v33 }
 0x229   :  { %16018 = vmatprep.mubr.msk.bf16.mxu1 %vm568_vm0, %v17317_v34 }
 0x22e   :  { %15755 = vmatmul.mubr.msk.bf16.gmra.mrb[84].mxu0 %vm568_vm0, %v17318_v35  ;;  %v17355_v35 = vld [vmem:[%s20413_s0 + $0x3e8] sm:$0xff]  }
 0x22f   :  { %15758 = vmatprep.mubr.msk.bf16.mxu0 %vm568_vm0, %v17320_v36 }
 0x230   :  { %16019 = vmatmul.mubr.msk.bf16.gmra.mrb[84].mxu1 %vm568_vm0, %v17319_v37 }
 0x231   :  { %16022 = vmatprep.mubr.msk.bf16.mxu1 %vm568_vm0, %v17321_v38  ;;  %v17357_v38 = vld [vmem:[%s20413_s0 + $0x3f0] sm:$0xff]  }
 0x236   :  { %15759 = vmatmul.mubr.msk.bf16.gmra.mrb[88].mxu0 %vm568_vm0, %v17322_v39 }
 0x237   :  { %15762 = vmatprep.mubr.msk.bf16.mxu0 %vm568_vm0, %v17324_v40 }
 0x238   :  { %16023 = vmatmul.mubr.msk.bf16.gmra.mrb[88].mxu1 %vm568_vm0, %v17323_v41  ;;  %v17356_v41 = vld [vmem:[%s20413_s0 + $0x4e8] sm:$0xff]  }
 0x239   :  { %16026 = vmatprep.mubr.msk.bf16.mxu1 %vm568_vm0, %v17325_v42 }
 0x23e   :  { %15763 = vmatmul.mubr.msk.bf16.gmra.mrb[92].mxu0 %vm568_vm0, %v17326_v43  ;;  %v17358_v43 = vld [vmem:[%s20413_s0 + $0x4f0] sm:$0xff]  }
 0x23f   :  { %15766 = vmatprep.mubr.msk.bf16.mxu0 %vm568_vm0, %v17328_v44 }
 0x240   :  { %16027 = vmatmul.mubr.msk.bf16.gmra.mrb[92].mxu1 %vm568_vm0, %v17327_v45 }
 0x241   :  { %16030 = vmatprep.mubr.msk.bf16.mxu1 %vm568_vm0, %v17329_v46 }
 0x246   :  { %15767 = vmatmul.mubr.msk.bf16.gmra.mrb[96].mxu0 %vm568_vm0, %v17330_v47  ;;  %v17359_v47 = vld [vmem:[%s20413_s0 + $0x3f8] sm:$0xff]  }
 0x247   :  { %15770 = vmatprep.mubr.msk.bf16.mxu0 %vm568_vm0, %v17333_v48 }
 0x248   :  { %16031 = vmatmul.mubr.msk.bf16.gmra.mrb[96].mxu1 %vm568_vm0, %v17331_v49 }
 0x249   :  { %16034 = vmatprep.mubr.msk.bf16.mxu1 %vm568_vm0, %v17334_v50 }
 0x24e   :  { %15771 = vmatmul.mubr.msk.bf16.gmra.mrb[100].mxu0 %vm568_vm0, %v17335_v52 }
 0x24f   :  { %15774 = vmatprep.mubr.msk.bf16.mxu0 %vm568_vm0, %v17337_v53  ;;  %v17360_v53 = vld [vmem:[%s20413_s0 + $0x4f8] sm:$0xff]  }
 0x250   :  { %16035 = vmatmul.mubr.msk.bf16.gmra.mrb[100].mxu1 %vm568_vm0, %v17336_v54  ;;  %v17361_v54 = vld [vmem:[%s20413_s0 + $0x400] sm:$0xff]  }
 0x251   :  { %16038 = vmatprep.mubr.msk.bf16.mxu1 %vm568_vm0, %v17338_v55 }
 0x256   :  { %15775 = vmatmul.mubr.msk.bf16.gmra.mrb[104].mxu0 %vm568_vm0, %v17339_v56  ;;  %v17362_v56 = vld [vmem:[%s20413_s0 + $0x500] sm:$0xff]  }
 0x257   :  { %15778 = vmatprep.mubr.msk.bf16.mxu0 %vm568_vm0, %v17341_v57 }
 0x258   :  { %16039 = vmatmul.mubr.msk.bf16.gmra.mrb[104].mxu1 %vm568_vm0, %v17340_v58 }
 0x259   :  { %v15406_v60 = vpop.f32.mrb[0].mxu0  ;;  %16042 = vmatprep.mubr.msk.bf16.mxu1 %vm568_vm0, %v17342_v59 }
 0x25a   :  { %v2748_v61 = vpop.f32.mrb[1].mxu0 }
 0x25b   :  { %v18892_v63 = vpop.f32.mrb[0].mxu1  ;;  %11774 = vxpose.xlu0.b32.start [1/16] (narrow) %v2748_v61, 8  ;;  %v15407_v0 = vpop.f32.mrb[2].mxu0 }
 0x25c   :  { %v18897_v2 = vpop.f32.mrb[1].mxu1  ;;  %v2751_v3 = vpop.f32.mrb[3].mxu0 }
 0x25d   :  { %v18902_v5 = vpop.f32.mrb[2].mxu1 }
 0x25e   :  { %v18907_v7 = vpop.f32.mrb[3].mxu1  ;;  %15779 = vmatmul.mubr.msk.bf16.gmra.mrb[108].mxu0 %vm568_vm0, %v17343_v62 }
 0x25f   :  { %11775 = vxpose.xlu0.b32.cont [2/16] (narrow) %v2751_v3, 8  ;;  %15782 = vmatprep.mubr.msk.bf16.mxu0 %vm568_vm0, %v17345_v1  ;;  %v17365_v3 = vld [vmem:[%s20413_s0 + $0x508] sm:$0xff]  }
 0x260   :  { %16043 = vmatmul.mubr.msk.bf16.gmra.mrb[108].mxu1 %vm568_vm0, %v17344_v4 }
 0x261   :  { %v15410_v8 = vpop.f32.mrb[4].mxu0  ;;  %16046 = vmatprep.mubr.msk.bf16.mxu1 %vm568_vm0, %v17346_v6  ;;  %v17366_v6 = vld [vmem:[%s20413_s0 + $0x410] sm:$0xff]  }
 0x262   :  { %v2764_v9 = vpop.f32.mrb[5].mxu0 }
 0x263   :  { %v18916_v11 = vpop.f32.mrb[4].mxu1  ;;  %11776 = vxpose.xlu0.b32.cont [3/16] (narrow) %v15406_v60, 8  ;;  %v15411_v13 = vpop.f32.mrb[6].mxu0  ;;  %v17363_v60 = vld [vmem:[%s20413_s0 + $0x408] sm:$0xff]  }
 0x264   :  { %v18921_v15 = vpop.f32.mrb[5].mxu1  ;;  %v2767_v17 = vpop.f32.mrb[7].mxu0 }
 0x265   :  { %v18926_v19 = vpop.f32.mrb[6].mxu1 }
 0x266   :  { %v18931_v21 = vpop.f32.mrb[7].mxu1  ;;  %15783 = vmatmul.mubr.msk.bf16.gmra.mrb[112].mxu0 %vm568_vm0, %v17347_v10  ;;  %v19043_v10 = vld [vmem:[%s20412_s1 + $0x58] sm:$0xff]  }
 0x267   :  { %11777 = vxpose.xlu0.b32.cont [4/16] (narrow) %v15407_v0, 8  ;;  %15786 = vmatprep.mubr.msk.bf16.mxu0 %vm568_vm0, %v17349_v14 }
 0x268   :  { %16047 = vmatmul.mubr.msk.bf16.gmra.mrb[112].mxu1 %vm568_vm0, %v17348_v18 }
 0x269   :  { %v15414_v12 = vpop.f32.mrb[8].mxu0  ;;  %16050 = vmatprep.mubr.msk.bf16.mxu1 %vm568_vm0, %v17350_v20  ;;  %v17370_v20 = vld [vmem:[%s20413_s0 + $0x420] sm:$0xff]  }
 0x26a   :  { %v2780_v22 = vpop.f32.mrb[9].mxu0 }
 0x26b   :  { %v18940_v24 = vpop.f32.mrb[8].mxu1  ;;  %11778 = vxpose.xlu0.b32.cont [5/16] (narrow) %v2764_v9, 8  ;;  %v18942_v25 = vpop.f32.mrb[10].mxu0 }
 0x26c   :  { %v18947_v27 = vpop.f32.mrb[9].mxu1  ;;  %v2783_v28 = vpop.f32.mrb[11].mxu0 }
 0x26d   :  { %v18952_v30 = vpop.f32.mrb[10].mxu1 }
 0x26e   :  { %v18957_v32 = vpop.f32.mrb[11].mxu1  ;;  %15787 = vmatmul.mubr.msk.bf16.gmra.mrb[116].mxu0 %vm568_vm0, %v17351_v23 }
 0x26f   :  { %11779 = vxpose.xlu0.b32.cont [6/16] (narrow) %v2767_v17, 8  ;;  %15790 = vmatprep.mubr.msk.bf16.mxu0 %vm568_vm0, %v17353_v26  ;;  %v17368_v17 = vld [vmem:[%s20413_s0 + $0x418] sm:$0xff]  }
 0x270   :  { %16051 = vmatmul.mubr.msk.bf16.gmra.mrb[116].mxu1 %vm568_vm0, %v17352_v29 }
 0x271   :  { %v18962_v33 = vpop.f32.mrb[12].mxu0  ;;  %16054 = vmatprep.mubr.msk.bf16.mxu1 %vm568_vm0, %v17354_v31  ;;  %v17372_v31 = vld [vmem:[%s20413_s0 + $0x428] sm:$0xff]  }
 0x272   :  { %v18965_v34 = vpop.f32.mrb[13].mxu0 }
 0x273   :  { %v18970_v36 = vpop.f32.mrb[12].mxu1  ;;  %11780 = vxpose.xlu0.b32.cont [7/16] (narrow) %v15410_v8, 8  ;;  %v18972_v37 = vpop.f32.mrb[14].mxu0  ;;  %v17367_v8 = vld [vmem:[%s20413_s0 + $0x510] sm:$0xff]  }
 0x274   :  { %v18977_v39 = vpop.f32.mrb[13].mxu1  ;;  %v18979_v40 = vpop.f32.mrb[15].mxu0 }
 0x275   :  { %v18984_v42 = vpop.f32.mrb[14].mxu1 }
 0x276   :  { %v18989_v44 = vpop.f32.mrb[15].mxu1  ;;  %15791 = vmatmul.mubr.msk.bf16.gmra.mrb[120].mxu0 %vm568_vm0, %v17355_v35 }
 0x277   :  { %11781 = vxpose.xlu0.b32.cont [8/16] (narrow) %v15411_v13, 8  ;;  %15794 = vmatprep.mubr.msk.bf16.mxu0 %vm568_vm0, %v17357_v38  ;;  %v17374_v38 = vld [vmem:[%s20413_s0 + $0x430] sm:$0xff]  }
 0x278   :  { %16055 = vmatmul.mubr.msk.bf16.gmra.mrb[120].mxu1 %vm568_vm0, %v17356_v41 }
 0x279   :  { %v15422_v45 = vpop.f32.mrb[16].mxu0  ;;  %16058 = vmatprep.mubr.msk.bf16.mxu1 %vm568_vm0, %v17358_v43  ;;  %v17373_v43 = vld [vmem:[%s20413_s0 + $0x528] sm:$0xff]  }
 0x27a   :  { %v2812_v46 = vpop.f32.mrb[17].mxu0 }
 0x27b   :  { %v18998_v48 = vpop.f32.mrb[16].mxu1  ;;  %11782 = vxpose.xlu0.b32.cont [9/16] (narrow) %v2780_v22, 8  ;;  %11806 = vxpose.xlu1.b32.start [1/16] (narrow) %v2812_v46, 8  ;;  %v15423_v49 = vpop.f32.mrb[18].mxu0 }
 0x27c   :  { %v19000_v50 = vpop.f32.mrb[17].mxu1  ;;  %v2815_v52 = vpop.f32.mrb[19].mxu0 }
 0x27d   :  { %v19008_v55 = vpop.f32.mrb[18].mxu1 }
 0x27e   :  { %v19013_v57 = vpop.f32.mrb[19].mxu1  ;;  %15795 = vmatmul.mubr.msk.bf16.gmra.mrb[124].mxu0 %vm568_vm0, %v17359_v47 }
 0x27f   :  { %11783 = vxpose.xlu0.b32.cont [10/16] (narrow) %v2783_v28, 8  ;;  %11807 = vxpose.xlu1.b32.cont [2/16] (narrow) %v2815_v52, 8  ;;  %v17376_v52 = vld [vmem:[%s20413_s0 + $0x438] sm:$0xff]  }
 0x280   :  { %16059 = vmatmul.mubr.msk.bf16.gmra.mrb[124].mxu1 %vm568_vm0, %v17360_v53  ;;  %15800 = vmatprep.mubr.msk.bf16.mxu0 %vm568_vm0, %v17361_v54  ;;  %v17378_v54 = vld [vmem:[%s20413_s0 + $0x440] sm:$0xff]  }
 0x281   :  { %v15426_v58 = vpop.f32.mrb[20].mxu0  ;;  %16064 = vmatprep.mubr.msk.bf16.mxu1 %vm568_vm0, %v17362_v56 }
 0x282   :  { %v2828_v59 = vpop.f32.mrb[21].mxu0 }
 0x283   :  { %v19022_v61 = vpop.f32.mrb[20].mxu1  ;;  %11784 = vxpose.xlu0.b32.cont [11/16] (narrow) %v15414_v12, 8  ;;  %11808 = vxpose.xlu1.b32.cont [3/16] (narrow) %v15422_v45, 8  ;;  %v15427_v62 = vpop.f32.mrb[22].mxu0 }
 0x284   :  { %v19024_v0 = vpop.f32.mrb[21].mxu1  ;;  %v2831_v1 = vpop.f32.mrb[23].mxu0 }
 0x285   :  { %v19029_v4 = vpop.f32.mrb[22].mxu1 }
 0x286   :  { %v19037_v9 = vpop.f32.mrb[23].mxu1  ;;  %15801 = vmatmul.mubr.msk.bf16.vlgmr.msra.gmra.mrb[64].mxu0 %vm568_vm0, %v17363_v60 }
 0x287   :  { %15865 = vmatpush3.bf16.msra.mxu0 %v18715_v16  ;;  %11785 = vxpose.xlu0.b32.cont [12/16] (narrow) %v18942_v25, 8  ;;  %v17371_v25 = vld [vmem:[%s20413_s0 + $0x520] sm:$0xff]  }
 0x288   :  { %16065 = vmatmul.mubr.msk.bf16.vlgmr.msra.gmra.mrb[64].mxu1 %vm568_vm0, %v17365_v3  ;;  %11809 = vxpose.xlu1.b32.cont [4/16] (narrow) %v15423_v49, 8 }
 0x289   :  { %v19048_v13 = vpop.f32.mrb[24].mxu0  ;;  %15804 = vmatprep.mubr.msk.bf16.mxu0 %vm568_vm0, %v17366_v6  ;;  %16068 = vmatprep.mubr.msk.bf16.mxu1 %vm568_vm0, %v17367_v8  ;;  %v17380_v6 = vld [vmem:[%s20413_s0 + $0x448] sm:$0xff]  }
 0x28a   :  { %v2844_v14 = vpop.f32.mrb[25].mxu0  ;;  %16129 = vmatpush3.bf16.msra.mxu1 %v18853_v51  ;;  %15930 = vmatprep.subr.bf16.mxu0 %v19043_v10  ;;  %v17369_v51 = vld [vmem:[%s20413_s0 + $0x518] sm:$0xff]  }
 0x28b   :  { %v19057_v16 = vpop.f32.mrb[24].mxu1  ;;  %11786 = vxpose.xlu0.b32.cont [13/16] (narrow) %v18965_v34, 8  ;;  %v19060_v18 = vpop.f32.mrb[26].mxu0 }
 0x28c   :  { %v19065_v12 = vpop.f32.mrb[25].mxu1  ;;  %11810 = vxpose.xlu1.b32.cont [5/16] (narrow) %v2828_v59, 8  ;;  %v2847_v22 = vpop.f32.mrb[27].mxu0  ;;  %v17377_v59 = vld [vmem:[%s20413_s0 + $0x538] sm:$0xff]  }
 0x28d   :  { %v19070_v23 = vpop.f32.mrb[26].mxu1 }
 0x28e   :  { %v19075_v26 = vpop.f32.mrb[27].mxu1  ;;  %15805 = vmatmul.mubr.msk.bf16.gmra.mrb[68].mxu0 %vm568_vm0, %v17368_v17 }
 0x28f   :  { %11787 = vxpose.xlu0.b32.cont [14/16] (narrow) %v18979_v40, 8  ;;  %15808 = vmatprep.mubr.msk.bf16.mxu0 %vm568_vm0, %v17370_v20 }
 0x290   :  { %16069 = vmatmul.mubr.msk.bf16.gmra.mrb[68].mxu1 %vm568_vm0, %v17369_v51  ;;  %11811 = vxpose.xlu1.b32.cont [6/16] (narrow) %v2831_v1, 8 }
 0x291   :  { %v19081_v28 = vpop.f32.mrb[28].mxu0  ;;  %16072 = vmatprep.mubr.msk.bf16.mxu1 %vm568_vm0, %v17371_v25 }
 0x292   :  { %v19084_v29 = vpop.f32.mrb[29].mxu0 }
 0x293   :  { %v19089_v34 = vpop.f32.mrb[28].mxu1  ;;  %11788 = vxpose.xlu0.b32.cont [15/16] (narrow) %v18962_v33, 8  ;;  %v19092_v35 = vpop.f32.mrb[30].mxu0  ;;  %v17375_v33 = vld [vmem:[%s20413_s0 + $0x530] sm:$0xff]  }
 0x294   :  { %v19097_v40 = vpop.f32.mrb[29].mxu1  ;;  %11812 = vxpose.xlu1.b32.cont [7/16] (narrow) %v15426_v58, 8  ;;  %v19099_v41 = vpop.f32.mrb[31].mxu0 }
 0x295   :  { %v19104_v45 = vpop.f32.mrb[30].mxu1 }
 0x296   :  { %v19109_v46 = vpop.f32.mrb[31].mxu1  ;;  %15809 = vmatmul.mubr.msk.bf16.gmra.mrb[72].mxu0 %vm568_vm0, %v17372_v31 }
 0x297   :  { %11789 = vxpose.xlu0.b32.end [16/16] (narrow) %v18972_v37, 8  ;;  %15812 = vmatprep.mubr.msk.bf16.mxu0 %vm568_vm0, %v17374_v38  ;;  %v17384_v38 = vld [vmem:[%s20413_s0 + $0x458] sm:$0xff]  }
 0x298   :  { %16073 = vmatmul.mubr.msk.bf16.gmra.mrb[72].mxu1 %vm568_vm0, %v17373_v43  ;;  %11813 = vxpose.xlu1.b32.cont [8/16] (narrow) %v15427_v62, 8 }
 0x299   :  { %v19115_v47 = vpop.f32.mrb[32].mxu0  ;;  %16076 = vmatprep.mubr.msk.bf16.mxu1 %vm568_vm0, %v17375_v33 }
 0x29a   :  { %v19118_v49 = vpop.f32.mrb[33].mxu0 }
 0x29b   :  { %v19123_v53 = vpop.f32.mrb[32].mxu1  ;;  %12014 = vxpose.xlu0.b32.start [1/16] (narrow) %v18897_v2, 8  ;;  %v19126_v37 = vpop.f32.mrb[34].mxu0  ;;  %v17379_v2 = vld [vmem:[%s20413_s0 + $0x540] sm:$0xff]  }
 0x29c   :  { %v19131_v56 = vpop.f32.mrb[33].mxu1  ;;  %11814 = vxpose.xlu1.b32.cont [9/16] (narrow) %v2844_v14, 8  ;;  %v19133_v58 = vpop.f32.mrb[35].mxu0  ;;  %v17382_v14 = vld [vmem:[%s20413_s0 + $0x450] sm:$0xff]  }
 0x29d   :  { %v19138_v60 = vpop.f32.mrb[34].mxu1 }
 0x29e   :  { %v19143_v62 = vpop.f32.mrb[35].mxu1  ;;  %15813 = vmatmul.mubr.msk.bf16.gmra.mrb[76].mxu0 %vm568_vm0, %v17376_v52 }
 0x29f   :  { %12015 = vxpose.xlu0.b32.cont [2/16] (narrow) %v18907_v7, 8  ;;  %15816 = vmatprep.mubr.msk.bf16.mxu0 %vm568_vm0, %v17378_v54  ;;  %v17385_v54 = vld [vmem:[%s20413_s0 + $0x558] sm:$0xff]  }
 0x2a0   :  { %16077 = vmatmul.mubr.msk.bf16.gmra.mrb[76].mxu1 %vm568_vm0, %v17377_v59  ;;  %11815 = vxpose.xlu1.b32.cont [10/16] (narrow) %v2847_v22, 8  ;;  %v17381_v22 = vld [vmem:[%s20413_s0 + $0x548] sm:$0xff]  }
 0x2a1   :  { %v19149_v1 = vpop.f32.mrb[36].mxu0  ;;  %16080 = vmatprep.mubr.msk.bf16.mxu1 %vm568_vm0, %v17379_v2 }
 0x2a2   :  { %v19152_v3 = vpop.f32.mrb[37].mxu0 }
 0x2a3   :  { %v19157_v8 = vpop.f32.mrb[36].mxu1  ;;  %12016 = vxpose.xlu0.b32.cont [3/16] (narrow) %v18892_v63, 8  ;;  %v19160_v7 = vpop.f32.mrb[38].mxu0  ;;  %v17383_v63 = vld [vmem:[%s20413_s0 + $0x550] sm:$0xff]  }
 0x2a4   :  { %v19165_v17 = vpop.f32.mrb[37].mxu1  ;;  %11816 = vxpose.xlu1.b32.cont [11/16] (narrow) %v19048_v13, 8  ;;  %v19168_v20 = vpop.f32.mrb[39].mxu0 }
 0x2a5   :  { %v19173_v51 = vpop.f32.mrb[38].mxu1 }
 0x2a6   :  { %v19178_v25 = vpop.f32.mrb[39].mxu1  ;;  %15817 = vmatmul.mubr.msk.bf16.gmra.mrb[80].mxu0 %vm568_vm0, %v17380_v6 }
 0x2a7   :  { %12017 = vxpose.xlu0.b32.cont [4/16] (narrow) %v18902_v5, 8  ;;  %15820 = vmatprep.mubr.msk.bf16.mxu0 %vm568_vm0, %v17382_v14  ;;  %v17388_v14 = vld [vmem:[%s20413_s0 + $0x468] sm:$0xff]  }
 0x2a8   :  { %16081 = vmatmul.mubr.msk.bf16.gmra.mrb[80].mxu1 %vm568_vm0, %v17381_v22  ;;  %11817 = vxpose.xlu1.b32.cont [12/16] (narrow) %v19060_v18, 8  ;;  %v17386_v18 = vld [vmem:[%s20413_s0 + $0x460] sm:$0xff]  }
 0x2a9   :  { %v19185_v13 = vpop.f32.mrb[40].mxu0  ;;  %16084 = vmatprep.mubr.msk.bf16.mxu1 %vm568_vm0, %v17383_v63 }
 0x2aa   :  { %v19188_v31 = vpop.f32.mrb[41].mxu0 }
 0x2ab   :  { %v19193_v43 = vpop.f32.mrb[40].mxu1  ;;  %12018 = vxpose.xlu0.b32.cont [5/16] (narrow) %v18921_v15, 8  ;;  %v19196_v5 = vpop.f32.mrb[42].mxu0  ;;  %v17387_v15 = vld [vmem:[%s20413_s0 + $0x560] sm:$0xff]  }
 0x2ac   :  { %20415 = vst [vmem:[#allocation3_spill] sm:$0xff] %v19193_v43  ;;  %v19201_v33 = vpop.f32.mrb[41].mxu1  ;;  %11818 = vxpose.xlu1.b32.cont [13/16] (narrow) %v19084_v29, 8  ;;  %v19204_v52 = vpop.f32.mrb[43].mxu0 }
 0x2ad   :  { %v19209_v59 = vpop.f32.mrb[42].mxu1 }
 0x2ae   :  { %20416 = vst [vmem:[#allocation4_spill] sm:$0xff] %v19209_v59  ;;  %v19214_v2 = vpop.f32.mrb[43].mxu1  ;;  %15821 = vmatmul.mubr.msk.bf16.gmra.mrb[84].mxu0 %vm568_vm0, %v17384_v38  ;;  %v17396_v59 = vld [vmem:[%s20413_s0 + $0x488] sm:$0xff]  }
 0x2af   :  { %12019 = vxpose.xlu0.b32.cont [6/16] (narrow) %v18931_v21, 8  ;;  %15824 = vmatprep.mubr.msk.bf16.mxu0 %vm568_vm0, %v17386_v18  ;;  %v17389_v18 = vld [vmem:[%s20413_s0 + $0x568] sm:$0xff]  }
 0x2b0   :  { %16085 = vmatmul.mubr.msk.bf16.gmra.mrb[84].mxu1 %vm568_vm0, %v17385_v54  ;;  %11819 = vxpose.xlu1.b32.cont [14/16] (narrow) %v19099_v41, 8  ;;  %v17390_v41 = vld [vmem:[%s20413_s0 + $0x470] sm:$0xff]  }
 0x2b1   :  { %v19221_v29 = vpop.f32.mrb[44].mxu0  ;;  %16088 = vmatprep.mubr.msk.bf16.mxu1 %vm568_vm0, %v17387_v15 }
 0x2b2   :  { %v19224_v6 = vpop.f32.mrb[45].mxu0 }
 0x2b3   :  { %v19229_v22 = vpop.f32.mrb[44].mxu1  ;;  %12020 = vxpose.xlu0.b32.cont [7/16] (narrow) %v18916_v11, 8  ;;  %v19232_v21 = vpop.f32.mrb[46].mxu0  ;;  %v17391_v11 = vld [vmem:[%s20413_s0 + $0x570] sm:$0xff]  }
 0x2b4   :  { %20417 = vst [vmem:[#allocation5_spill] sm:$0xff] %v19229_v22  ;;  %v19237_v63 = vpop.f32.mrb[45].mxu1  ;;  %11820 = vxpose.xlu1.b32.cont [15/16] (narrow) %v19081_v28, 8  ;;  %v19240_v38 = vpop.f32.mrb[47].mxu0  ;;  %v17392_v22 = vld [vmem:[%s20413_s0 + $0x478] sm:$0xff]  }
 0x2b5   :  { %20418 = vst [vmem:[#allocation6_spill] sm:$0xff] %v19237_v63  ;;  %v19245_v54 = vpop.f32.mrb[46].mxu1 }
 0x2b6   :  { %20419 = vst [vmem:[#allocation7_spill] sm:$0xff] %v19245_v54  ;;  %v19250_v15 = vpop.f32.mrb[47].mxu1  ;;  %15825 = vmatmul.mubr.msk.bf16.gmra.mrb[88].mxu0 %vm568_vm0, %v17388_v14 }
 0x2b7   :  { %20420 = vst [vmem:[#allocation8_spill] sm:$0xff] %v19250_v15  ;;  %12021 = vxpose.xlu0.b32.cont [8/16] (narrow) %v18926_v19, 8  ;;  %15828 = vmatprep.mubr.msk.bf16.mxu0 %vm568_vm0, %v17390_v41 }
 0x2b8   :  { %16089 = vmatmul.mubr.msk.bf16.gmra.mrb[88].mxu1 %vm568_vm0, %v17389_v18  ;;  %11821 = vxpose.xlu1.b32.end [16/16] (narrow) %v19092_v35, 8  ;;  %v17394_v35 = vld [vmem:[%s20413_s0 + $0x480] sm:$0xff]   ;;  %v17393_v18 = vld [vmem:[%s20413_s0 + $0x578] sm:$0xff]  }
 0x2b9   :  { %v19257_v28 = vpop.f32.mrb[48].mxu0  ;;  %16092 = vmatprep.mubr.msk.bf16.mxu1 %vm568_vm0, %v17391_v11 }
 0x2ba   :  { %v19260_v54 = vpop.f32.mrb[49].mxu0 }
 0x2bb   :  { %v19265_v15 = vpop.f32.mrb[48].mxu1  ;;  %12022 = vxpose.xlu0.b32.cont [9/16] (narrow) %v18947_v27, 8  ;;  %v19268_v19 = vpop.f32.mrb[50].mxu0  ;;  %v17395_v27 = vld [vmem:[%s20413_s0 + $0x580] sm:$0xff]  }
 0x2bc   :  { %20421 = vst [vmem:[#allocation9_spill] sm:$0xff] %v19265_v15  ;;  %v19273_v14 = vpop.f32.mrb[49].mxu1  ;;  %12046 = vxpose.xlu1.b32.start [1/16] (narrow) %v19000_v50, 8  ;;  %v19276_v41 = vpop.f32.mrb[51].mxu0 }
 0x2bd   :  { %v19281_v11 = vpop.f32.mrb[50].mxu1 }
 0x2be   :  { %20422 = vst [vmem:[#allocation10_spill] sm:$0xff] %v19281_v11  ;;  %v19286_v63 = vpop.f32.mrb[51].mxu1  ;;  %15829 = vmatmul.mubr.msk.bf16.gmra.mrb[92].mxu0 %vm568_vm0, %v17392_v22 }
 0x2bf   :  { %12023 = vxpose.xlu0.b32.cont [10/16] (narrow) %v18957_v32, 8  ;;  %15832 = vmatprep.mubr.msk.bf16.mxu0 %vm568_vm0, %v17394_v35 }
 0x2c0   :  { %16093 = vmatmul.mubr.msk.bf16.gmra.mrb[92].mxu1 %vm568_vm0, %v17393_v18  ;;  %12047 = vxpose.xlu1.b32.cont [2/16] (narrow) %v19013_v57, 8  ;;  %v17399_v57 = vld [vmem:[%s20413_s0 + $0x490] sm:$0xff]   ;;  %v17397_v18 = vld [vmem:[%s20413_s0 + $0x588] sm:$0xff]  }
 0x2c1   :  { %v19293_v50 = vpop.f32.mrb[52].mxu0  ;;  %16096 = vmatprep.mubr.msk.bf16.mxu1 %vm568_vm0, %v17395_v27 }
 0x2c2   :  { %v19296_v11 = vpop.f32.mrb[53].mxu0 }
 0x2c3   :  { %v19301_v15 = vpop.f32.mrb[52].mxu1  ;;  %12024 = vxpose.xlu0.b32.cont [11/16] (narrow) %v18940_v24, 8  ;;  %v19304_v32 = vpop.f32.mrb[54].mxu0  ;;  %v17400_v24 = vld [vmem:[%s20413_s0 + $0x590] sm:$0xff]  }
 0x2c4   :  { %20423 = vst [vmem:[#allocation11_spill] sm:$0xff] %v19301_v15  ;;  %v19309_v22 = vpop.f32.mrb[53].mxu1  ;;  %12048 = vxpose.xlu1.b32.cont [3/16] (narrow) %v18998_v48, 8  ;;  %v19312_v35 = vpop.f32.mrb[55].mxu0  ;;  %v19332_v48 = vld [vmem:[%s20412_s1 + $0x78] sm:$0xff]  }
 0x2c5   :  { %20424 = vst [vmem:[#allocation12_spill] sm:$0xff] %v19309_v22  ;;  %v19317_v27 = vpop.f32.mrb[54].mxu1  ;;  %16194 = vmatprep.subr.bf16.mxu1 %v19332_v48  ;;  %v17402_v22 = vld [vmem:[%s20413_s0 + $0x598] sm:$0xff]  }
 0x2c6   :  { %20425 = vst [vmem:[#allocation13_spill] sm:$0xff] %v19317_v27  ;;  %v19322_v15 = vpop.f32.mrb[55].mxu1  ;;  %15833 = vmatmul.mubr.msk.bf16.gmra.mrb[96].mxu0 %vm568_vm0, %v17396_v59 }
 0x2c7   :  { %20426 = vst [vmem:[#allocation14_spill] sm:$0xff] %v19322_v15  ;;  %12025 = vxpose.xlu0.b32.cont [12/16] (narrow) %v18952_v30, 8  ;;  %15836 = vmatprep.mubr.msk.bf16.mxu0 %vm568_vm0, %v17399_v57  ;;  %v17401_v30 = vld [vmem:[%s20413_s0 + $0x498] sm:$0xff]   ;;  %v17403_v57 = vld [vmem:[%s20413_s0 + $0x4a0] sm:$0xff]  }
 0x2c8   :  { %16097 = vmatmul.mubr.msk.bf16.gmra.mrb[96].mxu1 %vm568_vm0, %v17397_v18  ;;  %12049 = vxpose.xlu1.b32.cont [4/16] (narrow) %v19008_v55, 8 }
 0x2c9   :  { %v19334_v27 = vpop.f32.mrb[56].mxu0  ;;  %16100 = vmatprep.mubr.msk.bf16.mxu1 %vm568_vm0, %v17400_v24 }
 0x2ca   :  { %v19337_v15 = vpop.f32.mrb[57].mxu0 }
 0x2cb   :  { %v19343_v59 = vpop.f32.mrb[56].mxu1  ;;  %12026 = vxpose.xlu0.b32.cont [13/16] (narrow) %v18977_v39, 8  ;;  %v19346_v55 = vpop.f32.mrb[58].mxu0  ;;  %v17404_v39 = vld [vmem:[%s20413_s0 + $0x5a0] sm:$0xff]  }
 0x2cc   :  { %20427 = vst [vmem:[#allocation15_spill] sm:$0xff] %v19343_v59  ;;  %v19351_v18 = vpop.f32.mrb[57].mxu1  ;;  %12050 = vxpose.xlu1.b32.cont [5/16] (narrow) %v19024_v0, 8  ;;  %v19354_v24 = vpop.f32.mrb[59].mxu0 }
 0x2cd   :  { %20428 = vst [vmem:[#allocation16_spill] sm:$0xff] %v19351_v18  ;;  %v19359_v43 = vpop.f32.mrb[58].mxu1 }
 0x2ce   :  { %20429 = vst [vmem:[#allocation17_spill] sm:$0xff] %v19359_v43  ;;  %v19364_v59 = vpop.f32.mrb[59].mxu1  ;;  %15837 = vmatmul.mubr.msk.bf16.gmra.mrb[100].mxu0 %vm568_vm0, %v17401_v30 }
 0x2cf   :  { %20430 = vst [vmem:[#allocation18_spill] sm:$0xff] %v19364_v59  ;;  %12027 = vxpose.xlu0.b32.cont [14/16] (narrow) %v18989_v44, 8  ;;  %15840 = vmatprep.mubr.msk.bf16.mxu0 %vm568_vm0, %v17403_v57  ;;  %v17405_v59 = vld [vmem:[%s20413_s0 + $0x4a8] sm:$0xff]  }
 0x2d0   :  { %16101 = vmatmul.mubr.msk.bf16.gmra.mrb[100].mxu1 %vm568_vm0, %v17402_v22  ;;  %12051 = vxpose.xlu1.b32.cont [6/16] (narrow) %v19037_v9, 8  ;;  %v17407_v9 = vld [vmem:[%s20413_s0 + $0x4b0] sm:$0xff]   ;;  %v17406_v57 = vld [vmem:[%s20413_s0 + $0x5a8] sm:$0xff]  }
 0x2d1   :  { %v19371_v0 = vpop.f32.mrb[60].mxu0  ;;  %16104 = vmatprep.mubr.msk.bf16.mxu1 %vm568_vm0, %v17404_v39 }
 0x2d2   :  { %v19374_v43 = vpop.f32.mrb[61].mxu0 }
 0x2d3   :  { %v19379_v18 = vpop.f32.mrb[60].mxu1  ;;  %12028 = vxpose.xlu0.b32.cont [15/16] (narrow) %v18970_v36, 8  ;;  %v19382_v44 = vpop.f32.mrb[62].mxu0  ;;  %v17408_v36 = vld [vmem:[%s20413_s0 + $0x5b0] sm:$0xff]  }
 0x2d4   :  { %20431 = vst [vmem:[#allocation19_spill] sm:$0xff] %v19379_v18  ;;  %v19387_v22 = vpop.f32.mrb[61].mxu1  ;;  %12052 = vxpose.xlu1.b32.cont [7/16] (narrow) %v19022_v61, 8  ;;  %v19390_v30 = vpop.f32.mrb[63].mxu0  ;;  %v17409_v61 = vld [vmem:[%s20413_s0 + $0x4b8] sm:$0xff]  }
 0x2d5   :  { %v19395_v39 = vpop.f32.mrb[62].mxu1 }
 0x2d6   :  { %v19400_v18 = vpop.f32.mrb[63].mxu1  ;;  %15841 = vmatmul.mubr.msk.bf16.gmra.mrb[104].mxu0 %vm568_vm0, %v17405_v59  ;;  %v17411_v59 = vld [vmem:[%s20413_s0 + $0x4c0] sm:$0xff]  }
 0x2d7   :  { %12029 = vxpose.xlu0.b32.end [16/16] (narrow) %v18984_v42, 8  ;;  %15844 = vmatprep.mubr.msk.bf16.mxu0 %vm568_vm0, %v17407_v9  ;;  %v17410_v42 = vld [vmem:[%s20413_s0 + $0x5b8] sm:$0xff]   ;;  %v20433_v9 = vld [vmem:[#allocation9_spill] sm:$0xff] }
 0x2d8   :  { %16105 = vmatmul.mubr.msk.bf16.gmra.mrb[104].mxu1 %vm568_vm0, %v17406_v57  ;;  %12053 = vxpose.xlu1.b32.cont [8/16] (narrow) %v19029_v4, 8  ;;  %v17412_v4 = vld [vmem:[%s20413_s0 + $0x5c0] sm:$0xff]   ;;  %v20435_v57 = vld [vmem:[#allocation10_spill] sm:$0xff] }
 0x2d9   :  { %16108 = vmatprep.mubr.msk.bf16.mxu1 %vm568_vm0, %v17408_v36  ;;  %v17467_v36 = vld [vmem:[%s20413_s0 + $0x698] sm:$0xff]  }
 0x2db   :  { %11838 = vxpose.xlu0.b32.start [1/16] (narrow) %v19118_v49, 8  ;;  %v17415_v49 = vld [vmem:[%s20413_s0 + $0x4d0] sm:$0xff]  }
 0x2dc   :  { %12054 = vxpose.xlu1.b32.cont [9/16] (narrow) %v19065_v12, 8  ;;  %v17413_v12 = vld [vmem:[%s20413_s0 + $0x4c8] sm:$0xff]  }
 0x2de   :  { %15845 = vmatmul.mubr.msk.bf16.gmra.mrb[108].mxu0 %vm568_vm0, %v17409_v61  ;;  %v20436_v61 = vld [vmem:[#allocation6_spill] sm:$0xff] }
 0x2df   :  { %11839 = vxpose.xlu0.b32.cont [2/16] (narrow) %v19133_v58, 8  ;;  %15848 = vmatprep.mubr.msk.bf16.mxu0 %vm568_vm0, %v17411_v59  ;;  %v17414_v58 = vld [vmem:[%s20413_s0 + $0x5c8] sm:$0xff]   ;;  %v17469_v59 = vld [vmem:[%s20413_s0 + $0x6a0] sm:$0xff]  }
 0x2e0   :  { %16109 = vmatmul.mubr.msk.bf16.gmra.mrb[108].mxu1 %vm568_vm0, %v17410_v42  ;;  %12055 = vxpose.xlu1.b32.cont [10/16] (narrow) %v19075_v26, 8  ;;  %v17416_v26 = vld [vmem:[%s20413_s0 + $0x5d0] sm:$0xff]   ;;  %v20437_v42 = vld [vmem:[#allocation12_spill] sm:$0xff] }
 0x2e1   :  { %16112 = vmatprep.mubr.msk.bf16.mxu1 %vm568_vm0, %v17412_v4  ;;  %v17468_v4 = vld [vmem:[%s20413_s0 + $0x798] sm:$0xff]  }
 0x2e3   :  { %11840 = vxpose.xlu0.b32.cont [3/16] (narrow) %v19115_v47, 8  ;;  %v17419_v47 = vld [vmem:[%s20413_s0 + $0x4e0] sm:$0xff]  }
 0x2e4   :  { %12056 = vxpose.xlu1.b32.cont [11/16] (narrow) %v19057_v16, 8  ;;  %v17417_v16 = vld [vmem:[%s20413_s0 + $0x4d8] sm:$0xff]  }
 0x2e6   :  { %15849 = vmatmul.mubr.msk.bf16.gmra.mrb[112].mxu0 %vm568_vm0, %v17413_v12  ;;  %v17470_v12 = vld [vmem:[%s20413_s0 + $0x7a0] sm:$0xff]  }
 0x2e7   :  { %11841 = vxpose.xlu0.b32.cont [4/16] (narrow) %v19126_v37, 8  ;;  %15852 = vmatprep.mubr.msk.bf16.mxu0 %vm568_vm0, %v17415_v49  ;;  %v17418_v37 = vld [vmem:[%s20413_s0 + $0x5d8] sm:$0xff]   ;;  %v20438_v49 = vld [vmem:[#allocation8_spill] sm:$0xff] }
 0x2e8   :  { %16113 = vmatmul.mubr.msk.bf16.gmra.mrb[112].mxu1 %vm568_vm0, %v17414_v58  ;;  %12057 = vxpose.xlu1.b32.cont [12/16] (narrow) %v19070_v23, 8  ;;  %v17420_v23 = vld [vmem:[%s20413_s0 + $0x5e0] sm:$0xff]   ;;  %v20439_v58 = vld [vmem:[#allocation14_spill] sm:$0xff] }
 0x2e9   :  { %16116 = vmatprep.mubr.msk.bf16.mxu1 %vm568_vm0, %v17416_v26  ;;  %v17471_v26 = vld [vmem:[%s20413_s0 + $0x6a8] sm:$0xff]  }
 0x2eb   :  { %11842 = vxpose.xlu0.b32.cont [5/16] (narrow) %v19152_v3, 8  ;;  %v17423_v3 = vld [vmem:[%s20413_s0 + $0x4f0] sm:$0xff]  }
 0x2ec   :  { %12058 = vxpose.xlu1.b32.cont [13/16] (narrow) %v19097_v40, 8  ;;  %v17421_v40 = vld [vmem:[%s20413_s0 + $0x4e8] sm:$0xff]  }
 0x2ee   :  { %15853 = vmatmul.mubr.msk.bf16.gmra.mrb[116].mxu0 %vm568_vm0, %v17417_v16  ;;  %v20440_v16 = vld [vmem:[#allocation5_spill] sm:$0xff] }
 0x2ef   :  { %11843 = vxpose.xlu0.b32.cont [6/16] (narrow) %v19168_v20, 8  ;;  %15856 = vmatprep.mubr.msk.bf16.mxu0 %vm568_vm0, %v17419_v47  ;;  %v17422_v20 = vld [vmem:[%s20413_s0 + $0x5e8] sm:$0xff]   ;;  %v17473_v47 = vld [vmem:[%s20413_s0 + $0x6b0] sm:$0xff]  }
 0x2f0   :  { %16117 = vmatmul.mubr.msk.bf16.gmra.mrb[116].mxu1 %vm568_vm0, %v17418_v37  ;;  %12059 = vxpose.xlu1.b32.cont [14/16] (narrow) %v19109_v46, 8  ;;  %v17424_v46 = vld [vmem:[%s20413_s0 + $0x5f0] sm:$0xff]   ;;  %v20441_v37 = vld [vmem:[#allocation11_spill] sm:$0xff] }
 0x2f1   :  { %16120 = vmatprep.mubr.msk.bf16.mxu1 %vm568_vm0, %v17420_v23  ;;  %v17472_v23 = vld [vmem:[%s20413_s0 + $0x7a8] sm:$0xff]  }
 0x2f3   :  { %11844 = vxpose.xlu0.b32.cont [7/16] (narrow) %v19149_v1, 8  ;;  %v17427_v1 = vld [vmem:[%s20413_s0 + $0x600] sm:$0xff]  }
 0x2f4   :  { %12060 = vxpose.xlu1.b32.cont [15/16] (narrow) %v19089_v34, 8  ;;  %v17425_v34 = vld [vmem:[%s20413_s0 + $0x4f8] sm:$0xff]  }
 0x2f6   :  { %15857 = vmatmul.mubr.msk.bf16.gmra.mrb[120].mxu0 %vm568_vm0, %v17421_v40  ;;  %v17474_v40 = vld [vmem:[%s20413_s0 + $0x7b0] sm:$0xff]  }
 0x2f7   :  { %11845 = vxpose.xlu0.b32.cont [8/16] (narrow) %v19160_v7, 8  ;;  %15860 = vmatprep.mubr.msk.bf16.mxu0 %vm568_vm0, %v17423_v3  ;;  %v17426_v7 = vld [vmem:[%s20413_s0 + $0x5f8] sm:$0xff]   ;;  %v20442_v3 = vld [vmem:[#allocation7_spill] sm:$0xff] }
 0x2f8   :  { %16121 = vmatmul.mubr.msk.bf16.gmra.mrb[120].mxu1 %vm568_vm0, %v17422_v20  ;;  %12061 = vxpose.xlu1.b32.end [16/16] (narrow) %v19104_v45, 8  ;;  %v17428_v45 = vld [vmem:[%s20413_s0 + $0x700] sm:$0xff]   ;;  %v20443_v20 = vld [vmem:[#allocation13_spill] sm:$0xff] }
 0x2f9   :  { %16124 = vmatprep.mubr.msk.bf16.mxu1 %vm568_vm0, %v17424_v46  ;;  %v17475_v46 = vld [vmem:[%s20413_s0 + $0x6b8] sm:$0xff]  }
 0x2fb   :  { %11846 = vxpose.xlu0.b32.cont [9/16] (narrow) %v19188_v31, 8  ;;  %v17429_v31 = vld [vmem:[%s20413_s0 + $0x608] sm:$0xff]  }
 0x2fc   :  { %11870 = vxpose.xlu1.b32.start [1/16] (narrow) %v19260_v54, 8  ;;  %v17432_v54 = vld [vmem:[%s20413_s0 + $0x610] sm:$0xff]  }
 0x2fe   :  { %15861 = vmatmul.mubr.msk.bf16.gmra.mrb[124].mxu0 %vm568_vm0, %v17425_v34  ;;  %v17477_v34 = vld [vmem:[%s20413_s0 + $0x6c0] sm:$0xff]  }
 0x2ff   :  { %11847 = vxpose.xlu0.b32.cont [10/16] (narrow) %v19204_v52, 8  ;;  %15866 = vmatprep.mubr.msk.bf16.mxu0 %vm568_vm0, %v17427_v1  ;;  %v17431_v52 = vld [vmem:[%s20413_s0 + $0x708] sm:$0xff]  }
 0x300   :  { %16125 = vmatmul.mubr.msk.bf16.gmra.mrb[124].mxu1 %vm568_vm0, %v17426_v7  ;;  %11871 = vxpose.xlu1.b32.cont [2/16] (narrow) %v19276_v41, 8  ;;  %v17433_v41 = vld [vmem:[%s20413_s0 + $0x710] sm:$0xff]   ;;  %v20444_v1 = vld [vmem:[#allocation16_spill] sm:$0xff]  ;;  %v17476_v7 = vld [vmem:[%s20413_s0 + $0x7b8] sm:$0xff]  }
 0x301   :  { %16130 = vmatprep.mubr.msk.bf16.mxu1 %vm568_vm0, %v17428_v45  ;;  %v17478_v45 = vld [vmem:[%s20413_s0 + $0x7c0] sm:$0xff]  }
 0x303   :  { %11848 = vxpose.xlu0.b32.cont [11/16] (narrow) %v19185_v13, 8  ;;  %v17434_v13 = vld [vmem:[%s20413_s0 + $0x618] sm:$0xff]  }
 0x304   :  { %11872 = vxpose.xlu1.b32.cont [3/16] (narrow) %v19257_v28, 8  ;;  %v17437_v28 = vld [vmem:[%s20413_s0 + $0x720] sm:$0xff]  }
 0x306   :  { %15867 = vmatmul.mubr.msk.bf16.vlgmr.msra.gmra.mrb[64].mxu0 %vm568_vm0, %v17429_v31  ;;  %v20445_v31 = vld [vmem:[#allocation18_spill] sm:$0xff] }
 0x307   :  { %15931 = vmatpush3.bf16.msra.mxu0 %v19043_v10  ;;  %11849 = vxpose.xlu0.b32.cont [12/16] (narrow) %v19196_v5, 8  ;;  %v17436_v10 = vld [vmem:[%s20413_s0 + $0x620] sm:$0xff]   ;;  %v17435_v5 = vld [vmem:[%s20413_s0 + $0x718] sm:$0xff]  }
 0x308   :  { %16131 = vmatmul.mubr.msk.bf16.vlgmr.msra.gmra.mrb[64].mxu1 %vm568_vm0, %v17431_v52  ;;  %11873 = vxpose.xlu1.b32.cont [4/16] (narrow) %v19268_v19, 8  ;;  %v17440_v19 = vld [vmem:[%s20413_s0 + $0x630] sm:$0xff]   ;;  %v17479_v52 = vld [vmem:[%s20413_s0 + $0x6c8] sm:$0xff]  }
 0x309   :  { %15870 = vmatprep.mubr.msk.bf16.mxu0 %vm568_vm0, %v17432_v54  ;;  %16134 = vmatprep.mubr.msk.bf16.mxu1 %vm568_vm0, %v17433_v41  ;;  %v17481_v54 = vld [vmem:[%s20413_s0 + $0x6d0] sm:$0xff]   ;;  %v20446_v41 = vld [vmem:[#allocation15_spill] sm:$0xff] }
 0x30a   :  { %16195 = vmatpush3.bf16.msra.mxu1 %v19332_v48  ;;  %v17453_v48 = vld [vmem:[%s20413_s0 + $0x760] sm:$0xff]  }
 0x30b   :  { %11850 = vxpose.xlu0.b32.cont [13/16] (narrow) %v19224_v6, 8  ;;  %v17438_v6 = vld [vmem:[%s20413_s0 + $0x628] sm:$0xff]  }
 0x30c   :  { %11874 = vxpose.xlu1.b32.cont [5/16] (narrow) %v19296_v11, 8  ;;  %v17441_v11 = vld [vmem:[%s20413_s0 + $0x730] sm:$0xff]  }
 0x30e   :  { %15871 = vmatmul.mubr.msk.bf16.gmra.mrb[68].mxu0 %vm568_vm0, %v17434_v13  ;;  %v17480_v13 = vld [vmem:[%s20413_s0 + $0x7c8] sm:$0xff]  }
 0x30f   :  { %11851 = vxpose.xlu0.b32.cont [14/16] (narrow) %v19240_v38, 8  ;;  %15874 = vmatprep.mubr.msk.bf16.mxu0 %vm568_vm0, %v17436_v10  ;;  %v17439_v38 = vld [vmem:[%s20413_s0 + $0x728] sm:$0xff]   ;;  %v17482_v10 = vld [vmem:[%s20413_s0 + $0x7d0] sm:$0xff]  }
 0x310   :  { %16135 = vmatmul.mubr.msk.bf16.gmra.mrb[68].mxu1 %vm568_vm0, %v17435_v5  ;;  %11875 = vxpose.xlu1.b32.cont [6/16] (narrow) %v19312_v35, 8  ;;  %v17449_v35 = vld [vmem:[%s20413_s0 + $0x750] sm:$0xff]  }
 0x311   :  { %16138 = vmatprep.mubr.msk.bf16.mxu1 %vm568_vm0, %v17437_v28  ;;  %v20447_v5 = vld [vmem:[#allocation17_spill] sm:$0xff]  ;;  %v17483_v28 = vld [vmem:[%s20413_s0 + $0x6d8] sm:$0xff]  }
 0x313   :  { %11852 = vxpose.xlu0.b32.cont [15/16] (narrow) %v19221_v29, 8  ;;  %v17442_v29 = vld [vmem:[%s20413_s0 + $0x638] sm:$0xff]  }
 0x314   :  { %11876 = vxpose.xlu1.b32.cont [7/16] (narrow) %v19293_v50, 8  ;;  %v17444_v50 = vld [vmem:[%s20413_s0 + $0x640] sm:$0xff]  }
 0x316   :  { %15875 = vmatmul.mubr.msk.bf16.gmra.mrb[72].mxu0 %vm568_vm0, %v17438_v6  ;;  %v17485_v6 = vld [vmem:[%s20413_s0 + $0x6e0] sm:$0xff]  }
 0x317   :  { %11853 = vxpose.xlu0.b32.end [16/16] (narrow) %v19232_v21, 8  ;;  %15878 = vmatprep.mubr.msk.bf16.mxu0 %vm568_vm0, %v17440_v19  ;;  %v17443_v21 = vld [vmem:[%s20413_s0 + $0x738] sm:$0xff]  }
 0x318   :  { %16139 = vmatmul.mubr.msk.bf16.gmra.mrb[72].mxu1 %vm568_vm0, %v17439_v38  ;;  %11877 = vxpose.xlu1.b32.cont [8/16] (narrow) %v19304_v32, 8  ;;  %v17445_v32 = vld [vmem:[%s20413_s0 + $0x740] sm:$0xff]   ;;  %v17484_v19 = vld [vmem:[%s20413_s0 + $0x7d8] sm:$0xff]  }
 0x319   :  { %16142 = vmatprep.mubr.msk.bf16.mxu1 %vm568_vm0, %v17441_v11  ;;  %v17486_v38 = vld [vmem:[%s20413_s0 + $0x7e0] sm:$0xff]   ;;  %v17489_v11 = vld [vmem:[%s20413_s0 + $0x6f0] sm:$0xff]  }
 0x31b   :  { %12078 = vxpose.xlu0.b32.start [1/16] (narrow) %v19131_v56, 8  ;;  %v17446_v56 = vld [vmem:[%s20413_s0 + $0x648] sm:$0xff]  }
 0x31c   :  { %11878 = vxpose.xlu1.b32.cont [9/16] (narrow) %v19337_v15, 8  ;;  %v17448_v15 = vld [vmem:[%s20413_s0 + $0x650] sm:$0xff]  }
 0x31e   :  { %15879 = vmatmul.mubr.msk.bf16.gmra.mrb[76].mxu0 %vm568_vm0, %v17442_v29  ;;  %v20448_v29 = vld [vmem:[#allocation19_spill] sm:$0xff] }
 0x31f   :  { %12079 = vxpose.xlu0.b32.cont [2/16] (narrow) %v19143_v62, 8  ;;  %15882 = vmatprep.mubr.msk.bf16.mxu0 %vm568_vm0, %v17444_v50  ;;  %v17447_v62 = vld [vmem:[%s20413_s0 + $0x748] sm:$0xff]  }
 0x320   :  { %16143 = vmatmul.mubr.msk.bf16.gmra.mrb[76].mxu1 %vm568_vm0, %v17443_v21  ;;  %11879 = vxpose.xlu1.b32.cont [10/16] (narrow) %v19354_v24, 8  ;;  %v17460_v24 = vld [vmem:[%s20413_s0 + $0x680] sm:$0xff]   ;;  %v17488_v50 = vld [vmem:[%s20413_s0 + $0x7e8] sm:$0xff]   ;;  %v17491_v21 = vld [vmem:[%s20413_s0 + $0x6f8] sm:$0xff]  }
 0x321   :  { %16146 = vmatprep.mubr.msk.bf16.mxu1 %vm568_vm0, %v17445_v32  ;;  %v17493_v32 = vld [vmem:[%s20413_s0 + $0x700] sm:$0xff]  }
 0x323   :  { %12080 = vxpose.xlu0.b32.cont [3/16] (narrow) %v19123_v53, 8  ;;  %v17450_v53 = vld [vmem:[%s20413_s0 + $0x658] sm:$0xff]  }
 0x324   :  { %11880 = vxpose.xlu1.b32.cont [11/16] (narrow) %v19334_v27, 8  ;;  %v17452_v27 = vld [vmem:[%s20413_s0 + $0x660] sm:$0xff]  }
 0x326   :  { %15883 = vmatmul.mubr.msk.bf16.gmra.mrb[80].mxu0 %vm568_vm0, %v17446_v56  ;;  %v17492_v56 = vld [vmem:[%s20413_s0 + $0x7f8] sm:$0xff]  }
 0x327   :  { %12081 = vxpose.xlu0.b32.cont [4/16] (narrow) %v19138_v60, 8  ;;  %15886 = vmatprep.mubr.msk.bf16.mxu0 %vm568_vm0, %v17448_v15  ;;  %v17451_v60 = vld [vmem:[%s20413_s0 + $0x758] sm:$0xff]   ;;  %v17494_v15 = vld [vmem:[%s20413_s0 + $0x800] sm:$0xff]  }
 0x328   :  { %16147 = vmatmul.mubr.msk.bf16.gmra.mrb[80].mxu1 %vm568_vm0, %v17447_v62  ;;  %11881 = vxpose.xlu1.b32.cont [12/16] (narrow) %v19346_v55, 8  ;;  %v17457_v55 = vld [vmem:[%s20413_s0 + $0x770] sm:$0xff]  }
 0x329   :  { %16150 = vmatprep.mubr.msk.bf16.mxu1 %vm568_vm0, %v17449_v35  ;;  %v17497_v62 = vld [vmem:[%s20413_s0 + $0x710] sm:$0xff]   ;;  %v17496_v35 = vld [vmem:[%s20413_s0 + $0x808] sm:$0xff]  }
 0x32b   :  { %12082 = vxpose.xlu0.b32.cont [5/16] (narrow) %v19165_v17, 8  ;;  %v17454_v17 = vld [vmem:[%s20413_s0 + $0x668] sm:$0xff]  }
 0x32c   :  { %11882 = vxpose.xlu1.b32.cont [13/16] (narrow) %v19374_v43, 8  ;;  %v17456_v43 = vld [vmem:[%s20413_s0 + $0x670] sm:$0xff]  }
 0x32e   :  { %15887 = vmatmul.mubr.msk.bf16.gmra.mrb[84].mxu0 %vm568_vm0, %v17450_v53  ;;  %v17498_v53 = vld [vmem:[%s20413_s0 + $0x810] sm:$0xff]  }
 0x32f   :  { %12083 = vxpose.xlu0.b32.cont [6/16] (narrow) %v19178_v25, 8  ;;  %15890 = vmatprep.mubr.msk.bf16.mxu0 %vm568_vm0, %v17452_v27  ;;  %v17455_v25 = vld [vmem:[%s20413_s0 + $0x768] sm:$0xff]   ;;  %v17499_v27 = vld [vmem:[%s20413_s0 + $0x718] sm:$0xff]  }
 0x330   :  { %16151 = vmatmul.mubr.msk.bf16.gmra.mrb[84].mxu1 %vm568_vm0, %v17451_v60  ;;  %11883 = vxpose.xlu1.b32.cont [14/16] (narrow) %v19390_v30, 8  ;;  %v20434_v30 = vld [vmem:[#allocation4_spill] sm:$0xff]  ;;  %v17501_v60 = vld [vmem:[%s20413_s0 + $0x720] sm:$0xff]  }
 0x331   :  { %16154 = vmatprep.mubr.msk.bf16.mxu1 %vm568_vm0, %v17453_v48  ;;  %v17500_v48 = vld [vmem:[%s20413_s0 + $0x818] sm:$0xff]  }
 0x333   :  { %12084 = vxpose.xlu0.b32.cont [7/16] (narrow) %v19157_v8, 8  ;;  %v17458_v8 = vld [vmem:[%s20413_s0 + $0x678] sm:$0xff]  }
 0x334   :  { %11884 = vxpose.xlu1.b32.cont [15/16] (narrow) %v19371_v0, 8  ;;  %v17461_v0 = vld [vmem:[%s20413_s0 + $0x780] sm:$0xff]  }
 0x336   :  { %15891 = vmatmul.mubr.msk.bf16.gmra.mrb[88].mxu0 %vm568_vm0, %v17454_v17  ;;  %v17502_v17 = vld [vmem:[%s20413_s0 + $0x820] sm:$0xff]  }
 0x337   :  { %12085 = vxpose.xlu0.b32.cont [8/16] (narrow) %v19173_v51, 8  ;;  %15894 = vmatprep.mubr.msk.bf16.mxu0 %vm568_vm0, %v17456_v43  ;;  %v17459_v51 = vld [vmem:[%s20413_s0 + $0x778] sm:$0xff]   ;;  %v17503_v43 = vld [vmem:[%s20413_s0 + $0x728] sm:$0xff]  }
 0x338   :  { %16155 = vmatmul.mubr.msk.bf16.gmra.mrb[88].mxu1 %vm568_vm0, %v17455_v25  ;;  %11885 = vxpose.xlu1.b32.end [16/16] (narrow) %v19382_v44, 8  ;;  %v17465_v44 = vld [vmem:[%s20413_s0 + $0x690] sm:$0xff]  }
 0x339   :  { %16158 = vmatprep.mubr.msk.bf16.mxu1 %vm568_vm0, %v17457_v55  ;;  %v17505_v25 = vld [vmem:[%s20413_s0 + $0x730] sm:$0xff]   ;;  %v17504_v55 = vld [vmem:[%s20413_s0 + $0x828] sm:$0xff]  }
 0x33b   :  { %12086 = vxpose.xlu0.b32.cont [9/16] (narrow) %v19201_v33, 8  ;;  %v17462_v33 = vld [vmem:[%s20413_s0 + $0x688] sm:$0xff]  }
 0x33c   :  { %12110 = vxpose.xlu1.b32.start [1/16] (narrow) %v19273_v14, 8  ;;  %v20432_v14 = vld [vmem:[#allocation3_spill] sm:$0xff] }
 0x33e   :  { %15895 = vmatmul.mubr.msk.bf16.gmra.mrb[92].mxu0 %vm568_vm0, %v17458_v8  ;;  %v17506_v8 = vld [vmem:[%s20413_s0 + $0x830] sm:$0xff]  }
 0x33f   :  { %12087 = vxpose.xlu0.b32.cont [10/16] (narrow) %v19214_v2, 8  ;;  %15898 = vmatprep.mubr.msk.bf16.mxu0 %vm568_vm0, %v17460_v24  ;;  %v17463_v2 = vld [vmem:[%s20413_s0 + $0x788] sm:$0xff]   ;;  %v17507_v24 = vld [vmem:[%s20413_s0 + $0x738] sm:$0xff]  }
 0x340   :  { %16159 = vmatmul.mubr.msk.bf16.gmra.mrb[92].mxu1 %vm568_vm0, %v17459_v51  ;;  %12111 = vxpose.xlu1.b32.cont [2/16] (narrow) %v19286_v63, 8  ;;  %v17466_v63 = vld [vmem:[%s20413_s0 + $0x790] sm:$0xff]   ;;  %v17509_v51 = vld [vmem:[%s20413_s0 + $0x740] sm:$0xff]  }
 0x341   :  { %16162 = vmatprep.mubr.msk.bf16.mxu1 %vm568_vm0, %v17461_v0  ;;  %v17508_v0 = vld [vmem:[%s20413_s0 + $0x838] sm:$0xff]  }
 0x343   :  { %12088 = vxpose.xlu0.b32.cont [11/16] (narrow) %v20432_v14, 8  ;;  %v17511_v14 = vld [vmem:[%s20413_s0 + $0x748] sm:$0xff]  }
 0x344   :  { %12112 = vxpose.xlu1.b32.cont [3/16] (narrow) %v20433_v9, 8  ;;  %v17512_v9 = vld [vmem:[%s20413_s0 + $0x848] sm:$0xff]  }
 0x346   :  { %15899 = vmatmul.mubr.msk.bf16.gmra.mrb[96].mxu0 %vm568_vm0, %v17462_v33  ;;  %v17510_v33 = vld [vmem:[%s20413_s0 + $0x840] sm:$0xff]  }
 0x347   :  { %12089 = vxpose.xlu0.b32.cont [12/16] (narrow) %v20434_v30, 8  ;;  %15902 = vmatprep.mubr.msk.bf16.mxu0 %vm568_vm0, %v17465_v44  ;;  %v17513_v44 = vld [vmem:[%s20413_s0 + $0x750] sm:$0xff]   ;;  %v17517_v30 = vld [vmem:[%s20413_s0 + $0x760] sm:$0xff]  }
 0x348   :  { %16163 = vmatmul.mubr.msk.bf16.gmra.mrb[96].mxu1 %vm568_vm0, %v17463_v2  ;;  %12113 = vxpose.xlu1.b32.cont [4/16] (narrow) %v20435_v57, 8  ;;  %v17514_v2 = vld [vmem:[%s20413_s0 + $0x850] sm:$0xff]   ;;  %v17516_v57 = vld [vmem:[%s20413_s0 + $0x858] sm:$0xff]  }
 0x349   :  { %16166 = vmatprep.mubr.msk.bf16.mxu1 %vm568_vm0, %v17466_v63  ;;  %v17515_v63 = vld [vmem:[%s20413_s0 + $0x758] sm:$0xff]  }
 0x34b   :  { %12090 = vxpose.xlu0.b32.cont [13/16] (narrow) %v20436_v61, 8  ;;  %v17519_v61 = vld [vmem:[%s20413_s0 + $0x768] sm:$0xff]  }
 0x34c   :  { %12114 = vxpose.xlu1.b32.cont [5/16] (narrow) %v20437_v42, 8  ;;  %v17520_v42 = vld [vmem:[%s20413_s0 + $0x868] sm:$0xff]  }
 0x34e   :  { %15903 = vmatmul.mubr.msk.bf16.gmra.mrb[100].mxu0 %vm568_vm0, %v17467_v36  ;;  %v17518_v36 = vld [vmem:[%s20413_s0 + $0x860] sm:$0xff]  }
 0x34f   :  { %12091 = vxpose.xlu0.b32.cont [14/16] (narrow) %v20438_v49, 8  ;;  %15906 = vmatprep.mubr.msk.bf16.mxu0 %vm568_vm0, %v17469_v59  ;;  %v17521_v59 = vld [vmem:[%s20413_s0 + $0x770] sm:$0xff]   ;;  %v17525_v49 = vld [vmem:[%s20413_s0 + $0x780] sm:$0xff]  }
 0x350   :  { %16167 = vmatmul.mubr.msk.bf16.gmra.mrb[100].mxu1 %vm568_vm0, %v17468_v4  ;;  %12115 = vxpose.xlu1.b32.cont [6/16] (narrow) %v20439_v58, 8  ;;  %v17522_v4 = vld [vmem:[%s20413_s0 + $0x870] sm:$0xff]   ;;  %v17524_v58 = vld [vmem:[%s20413_s0 + $0x878] sm:$0xff]  }
 0x351   :  { %16170 = vmatprep.mubr.msk.bf16.mxu1 %vm568_vm0, %v17470_v12  ;;  %v17523_v12 = vld [vmem:[%s20413_s0 + $0x778] sm:$0xff]  }
 0x353   :  { %12092 = vxpose.xlu0.b32.cont [15/16] (narrow) %v20440_v16, 8  ;;  %v17527_v16 = vld [vmem:[%s20413_s0 + $0x788] sm:$0xff]  }
 0x354   :  { %12116 = vxpose.xlu1.b32.cont [7/16] (narrow) %v20441_v37, 8  ;;  %v17528_v37 = vld [vmem:[%s20413_s0 + $0x888] sm:$0xff]  }
 0x356   :  { %15907 = vmatmul.mubr.msk.bf16.gmra.mrb[104].mxu0 %vm568_vm0, %v17471_v26  ;;  %v17526_v26 = vld [vmem:[%s20413_s0 + $0x880] sm:$0xff]  }
 0x357   :  { %12093 = vxpose.xlu0.b32.end [16/16] (narrow) %v20442_v3, 8  ;;  %15910 = vmatprep.mubr.msk.bf16.mxu0 %vm568_vm0, %v17473_v47  ;;  %v17529_v47 = vld [vmem:[%s20413_s0 + $0x790] sm:$0xff]   ;;  %v17533_v3 = vld [vmem:[%s20413_s0 + $0x7a0] sm:$0xff]  }
 0x358   :  { %16171 = vmatmul.mubr.msk.bf16.gmra.mrb[104].mxu1 %vm568_vm0, %v17472_v23  ;;  %12117 = vxpose.xlu1.b32.cont [8/16] (narrow) %v20443_v20, 8  ;;  %v17530_v23 = vld [vmem:[%s20413_s0 + $0x890] sm:$0xff]   ;;  %v17532_v20 = vld [vmem:[%s20413_s0 + $0x898] sm:$0xff]  }
 0x359   :  { %16174 = vmatprep.mubr.msk.bf16.mxu1 %vm568_vm0, %v17474_v40  ;;  %v17531_v40 = vld [vmem:[%s20413_s0 + $0x798] sm:$0xff]  }
 0x35c   :  { %12118 = vxpose.xlu1.b32.cont [9/16] (narrow) %v20444_v1, 8  ;;  %v17537_v1 = vld [vmem:[%s20413_s0 + $0x7b0] sm:$0xff]  }
 0x35e   :  { %15911 = vmatmul.mubr.msk.bf16.gmra.mrb[108].mxu0 %vm568_vm0, %v17475_v46  ;;  %v17534_v46 = vld [vmem:[%s20413_s0 + $0x8a0] sm:$0xff]  }
 0x35f   :  { %15914 = vmatprep.mubr.msk.bf16.mxu0 %vm568_vm0, %v17477_v34  ;;  %v17535_v34 = vld [vmem:[%s20413_s0 + $0x7a8] sm:$0xff]  }
 0x360   :  { %16175 = vmatmul.mubr.msk.bf16.gmra.mrb[108].mxu1 %vm568_vm0, %v17476_v7  ;;  %12119 = vxpose.xlu1.b32.cont [10/16] (narrow) %v20445_v31, 8  ;;  %v17536_v7 = vld [vmem:[%s20413_s0 + $0x8a8] sm:$0xff]   ;;  %v17539_v31 = vld [vmem:[%s20413_s0 + $0x7b8] sm:$0xff]  }
 0x361   :  { %16178 = vmatprep.mubr.msk.bf16.mxu1 %vm568_vm0, %v17478_v45  ;;  %v17538_v45 = vld [vmem:[%s20413_s0 + $0x8b0] sm:$0xff]  }
 0x364   :  { %12120 = vxpose.xlu1.b32.cont [11/16] (narrow) %v20446_v41, 8  ;;  %v17542_v41 = vld [vmem:[%s20413_s0 + $0x8c0] sm:$0xff]  }
 0x366   :  { %15915 = vmatmul.mubr.msk.bf16.gmra.mrb[112].mxu0 %vm568_vm0, %v17479_v52  ;;  %v17541_v52 = vld [vmem:[%s20413_s0 + $0x7c0] sm:$0xff]  }
 0x367   :  { %15918 = vmatprep.mubr.msk.bf16.mxu0 %vm568_vm0, %v17481_v54  ;;  %v17540_v54 = vld [vmem:[%s20413_s0 + $0x8b8] sm:$0xff]  }
 0x368   :  { %16179 = vmatmul.mubr.msk.bf16.gmra.mrb[112].mxu1 %vm568_vm0, %v17480_v13  ;;  %12121 = vxpose.xlu1.b32.cont [12/16] (narrow) %v20447_v5, 8  ;;  %v17543_v13 = vld [vmem:[%s20413_s0 + $0x7c8] sm:$0xff]  }
 0x369   :  { %16182 = vmatprep.mubr.msk.bf16.mxu1 %vm568_vm0, %v17482_v10  ;;  %v17545_v10 = vld [vmem:[%s20413_s0 + $0x7d0] sm:$0xff]   ;;  %v17544_v5 = vld [vmem:[%s20413_s0 + $0x8c8] sm:$0xff]  }
 0x36c   :  { %12122 = vxpose.xlu1.b32.cont [13/16] (narrow) %v19387_v22, 8  ;;  %v17487_v22 = vld [vmem:[%s20413_s0 + $0x6e8] sm:$0xff]  }
 0x36e   :  { %15919 = vmatmul.mubr.msk.bf16.gmra.mrb[116].mxu0 %vm568_vm0, %v17483_v28  ;;  %v17546_v28 = vld [vmem:[%s20413_s0 + $0x8d0] sm:$0xff]  }
 0x36f   :  { %15922 = vmatprep.mubr.msk.bf16.mxu0 %vm568_vm0, %v17485_v6  ;;  %v17547_v6 = vld [vmem:[%s20413_s0 + $0x7d8] sm:$0xff]  }
 0x370   :  { %16183 = vmatmul.mubr.msk.bf16.gmra.mrb[116].mxu1 %vm568_vm0, %v17484_v19  ;;  %12123 = vxpose.xlu1.b32.cont [14/16] (narrow) %v19400_v18, 8  ;;  %v17490_v18 = vld [vmem:[%s20413_s0 + $0x7f0] sm:$0xff]   ;;  %v17549_v19 = vld [vmem:[%s20413_s0 + $0x7e0] sm:$0xff]  }
 0x371   :  { %16186 = vmatprep.mubr.msk.bf16.mxu1 %vm568_vm0, %v17486_v38  ;;  %v17548_v38 = vld [vmem:[%s20413_s0 + $0x8d8] sm:$0xff]  }
 0x374   :  { %12124 = vxpose.xlu1.b32.cont [15/16] (narrow) %v20448_v29, 8  ;;  %v17553_v29 = vld [vmem:[%s20413_s0 + $0x7f0] sm:$0xff]  }
 0x376   :  { %15923 = vmatmul.mubr.msk.bf16.gmra.mrb[120].mxu0 %vm568_vm0, %v17487_v22  ;;  %v17550_v22 = vld [vmem:[%s20413_s0 + $0x8e0] sm:$0xff]  }
 0x377   :  { %15926 = vmatprep.mubr.msk.bf16.mxu0 %vm568_vm0, %v17489_v11  ;;  %v17551_v11 = vld [vmem:[%s20413_s0 + $0x7e8] sm:$0xff]  }
 0x378   :  { %16187 = vmatmul.mubr.msk.bf16.gmra.mrb[120].mxu1 %vm568_vm0, %v17488_v50  ;;  %12125 = vxpose.xlu1.b32.end [16/16] (narrow) %v19395_v39, 8  ;;  %v17495_v39 = vld [vmem:[%s20413_s0 + $0x708] sm:$0xff]  }
 0x379   :  { %16190 = vmatprep.mubr.msk.bf16.mxu1 %vm568_vm0, %v17490_v18  ;;  %v17552_v50 = vld [vmem:[%s20413_s0 + $0x8e8] sm:$0xff]   ;;  %v17554_v18 = vld [vmem:[%s20413_s0 + $0x8f0] sm:$0xff]  }
 0x37e   :  { %15927 = vmatmul.mubr.msk.bf16.gmra.mrb[124].mxu0 %vm568_vm0, %v17491_v21  ;;  %v17555_v21 = vld [vmem:[%s20413_s0 + $0x7f8] sm:$0xff]  }
 0x37f   :  { %15932 = vmatprep.mubr.msk.bf16.mxu0 %vm568_vm0, %v17493_v32  ;;  %v17556_v32 = vld [vmem:[%s20413_s0 + $0x8f8] sm:$0xff]  }
 0x380   :  { %16191 = vmatmul.mubr.msk.bf16.gmra.mrb[124].mxu1 %vm568_vm0, %v17492_v56 }
 0x381   :  { %16196 = vmatprep.mubr.msk.bf16.mxu1 %vm568_vm0, %v17494_v15 }
 0x386   :  { %15933 = vmatmul.mubr.msk.bf16.vlgmr.msra.gmra.mrb[64].mxu0 %vm568_vm0, %v17495_v39 }
 0x387   :  { %15936 = vmatprep.mubr.msk.bf16.mxu0 %vm568_vm0, %v17497_v62 }
 0x388   :  { %16197 = vmatmul.mubr.msk.bf16.vlgmr.msra.gmra.mrb[64].mxu1 %vm568_vm0, %v17496_v35 }
 0x389   :  { %16200 = vmatprep.mubr.msk.bf16.mxu1 %vm568_vm0, %v17498_v53 }
 0x38e   :  { %15937 = vmatmul.mubr.msk.bf16.gmra.mrb[68].mxu0 %vm568_vm0, %v17499_v27 }
 0x38f   :  { %15940 = vmatprep.mubr.msk.bf16.mxu0 %vm568_vm0, %v17501_v60 }
 0x390   :  { %16201 = vmatmul.mubr.msk.bf16.gmra.mrb[68].mxu1 %vm568_vm0, %v17500_v48 }
 0x391   :  { %16204 = vmatprep.mubr.msk.bf16.mxu1 %vm568_vm0, %v17502_v17 }
 0x396   :  { %15941 = vmatmul.mubr.msk.bf16.gmra.mrb[72].mxu0 %vm568_vm0, %v17503_v43 }
 0x397   :  { %15944 = vmatprep.mubr.msk.bf16.mxu0 %vm568_vm0, %v17505_v25 }
 0x398   :  { %16205 = vmatmul.mubr.msk.bf16.gmra.mrb[72].mxu1 %vm568_vm0, %v17504_v55 }
 0x399   :  { %16208 = vmatprep.mubr.msk.bf16.mxu1 %vm568_vm0, %v17506_v8 }
 0x39e   :  { %15945 = vmatmul.mubr.msk.bf16.gmra.mrb[76].mxu0 %vm568_vm0, %v17507_v24 }
 0x39f   :  { %15948 = vmatprep.mubr.msk.bf16.mxu0 %vm568_vm0, %v17509_v51 }
 0x3a0   :  { %16209 = vmatmul.mubr.msk.bf16.gmra.mrb[76].mxu1 %vm568_vm0, %v17508_v0 }
 0x3a1   :  { %16212 = vmatprep.mubr.msk.bf16.mxu1 %vm568_vm0, %v17510_v33 }
 0x3a6   :  { %15949 = vmatmul.mubr.msk.bf16.gmra.mrb[80].mxu0 %vm568_vm0, %v17511_v14 }
 0x3a7   :  { %15952 = vmatprep.mubr.msk.bf16.mxu0 %vm568_vm0, %v17513_v44 }
 0x3a8   :  { %16213 = vmatmul.mubr.msk.bf16.gmra.mrb[80].mxu1 %vm568_vm0, %v17512_v9 }
 0x3a9   :  { %16216 = vmatprep.mubr.msk.bf16.mxu1 %vm568_vm0, %v17514_v2 }
 0x3ae   :  { %15953 = vmatmul.mubr.msk.bf16.gmra.mrb[84].mxu0 %vm568_vm0, %v17515_v63 }
 0x3af   :  { %15956 = vmatprep.mubr.msk.bf16.mxu0 %vm568_vm0, %v17517_v30 }
 0x3b0   :  { %16217 = vmatmul.mubr.msk.bf16.gmra.mrb[84].mxu1 %vm568_vm0, %v17516_v57 }
 0x3b1   :  { %16220 = vmatprep.mubr.msk.bf16.mxu1 %vm568_vm0, %v17518_v36 }
 0x3b6   :  { %15957 = vmatmul.mubr.msk.bf16.gmra.mrb[88].mxu0 %vm568_vm0, %v17519_v61 }
 0x3b7   :  { %15960 = vmatprep.mubr.msk.bf16.mxu0 %vm568_vm0, %v17521_v59 }
 0x3b8   :  { %16221 = vmatmul.mubr.msk.bf16.gmra.mrb[88].mxu1 %vm568_vm0, %v17520_v42 }
 0x3b9   :  { %16224 = vmatprep.mubr.msk.bf16.mxu1 %vm568_vm0, %v17522_v4 }
 0x3be   :  { %15961 = vmatmul.mubr.msk.bf16.gmra.mrb[92].mxu0 %vm568_vm0, %v17523_v12 }
 0x3bf   :  { %15964 = vmatprep.mubr.msk.bf16.mxu0 %vm568_vm0, %v17525_v49 }
 0x3c0   :  { %16225 = vmatmul.mubr.msk.bf16.gmra.mrb[92].mxu1 %vm568_vm0, %v17524_v58 }
 0x3c1   :  { %16228 = vmatprep.mubr.msk.bf16.mxu1 %vm568_vm0, %v17526_v26 }
 0x3c6   :  { %15965 = vmatmul.mubr.msk.bf16.gmra.mrb[96].mxu0 %vm568_vm0, %v17527_v16 }
 0x3c7   :  { %15968 = vmatprep.mubr.msk.bf16.mxu0 %vm568_vm0, %v17529_v47 }
 0x3c8   :  { %16229 = vmatmul.mubr.msk.bf16.gmra.mrb[96].mxu1 %vm568_vm0, %v17528_v37 }
 0x3c9   :  { %16232 = vmatprep.mubr.msk.bf16.mxu1 %vm568_vm0, %v17530_v23 }
 0x3ce   :  { %15969 = vmatmul.mubr.msk.bf16.gmra.mrb[100].mxu0 %vm568_vm0, %v17531_v40 }
 0x3cf   :  { %15972 = vmatprep.mubr.msk.bf16.mxu0 %vm568_vm0, %v17533_v3 }
 0x3d0   :  { %16233 = vmatmul.mubr.msk.bf16.gmra.mrb[100].mxu1 %vm568_vm0, %v17532_v20 }
 0x3d1   :  { %16236 = vmatprep.mubr.msk.bf16.mxu1 %vm568_vm0, %v17534_v46 }
 0x3d6   :  { %15973 = vmatmul.mubr.msk.bf16.gmra.mrb[104].mxu0 %vm568_vm0, %v17535_v34 }
 0x3d7   :  { %15976 = vmatprep.mubr.msk.bf16.mxu0 %vm568_vm0, %v17537_v1 }
 0x3d8   :  { %16237 = vmatmul.mubr.msk.bf16.gmra.mrb[104].mxu1 %vm568_vm0, %v17536_v7 }
 0x3d9   :  { %16240 = vmatprep.mubr.msk.bf16.mxu1 %vm568_vm0, %v17538_v45 }
 0x3de   :  { %15977 = vmatmul.mubr.msk.bf16.gmra.mrb[108].mxu0 %vm568_vm0, %v17539_v31 }
 0x3df   :  { %15980 = vmatprep.mubr.msk.bf16.mxu0 %vm568_vm0, %v17541_v52 }
 0x3e0   :  { %16241 = vmatmul.mubr.msk.bf16.gmra.mrb[108].mxu1 %vm568_vm0, %v17540_v54 }
 0x3e1   :  { %16244 = vmatprep.mubr.msk.bf16.mxu1 %vm568_vm0, %v17542_v41 }
 0x3e6   :  { %15981 = vmatmul.mubr.msk.bf16.gmra.mrb[112].mxu0 %vm568_vm0, %v17543_v13 }
 0x3e7   :  { %15984 = vmatprep.mubr.msk.bf16.mxu0 %vm568_vm0, %v17545_v10 }
 0x3e8   :  { %16245 = vmatmul.mubr.msk.bf16.gmra.mrb[112].mxu1 %vm568_vm0, %v17544_v5 }
 0x3e9   :  { %16248 = vmatprep.mubr.msk.bf16.mxu1 %vm568_vm0, %v17546_v28 }
 0x3ee   :  { %15985 = vmatmul.mubr.msk.bf16.gmra.mrb[116].mxu0 %vm568_vm0, %v17547_v6 }
 0x3ef   :  { %15988 = vmatprep.mubr.msk.bf16.mxu0 %vm568_vm0, %v17549_v19 }
 0x3f0   :  { %16249 = vmatmul.mubr.msk.bf16.gmra.mrb[116].mxu1 %vm568_vm0, %v17548_v38 }
 0x3f1   :  { %16252 = vmatprep.mubr.msk.bf16.mxu1 %vm568_vm0, %v17550_v22 }
 0x3f6   :  { %15989 = vmatmul.mubr.msk.bf16.gmra.mrb[120].mxu0 %vm568_vm0, %v17551_v11 }
 0x3f7   :  { %15992 = vmatprep.mubr.msk.bf16.mxu0 %vm568_vm0, %v17553_v29 }
 0x3f8   :  { %16253 = vmatmul.mubr.msk.bf16.gmra.mrb[120].mxu1 %vm568_vm0, %v17552_v50 }
 0x3f9   :  { %16256 = vmatprep.mubr.msk.bf16.mxu1 %vm568_vm0, %v17554_v18 }
 0x3fe   :  { %15993 = vmatmul.mubr.msk.bf16.gmra.mrb[124].mxu0 %vm568_vm0, %v17555_v21 }
 0x400   :  { %16257 = vmatmul.mubr.msk.bf16.gmra.mrb[124].mxu1 %vm568_vm0, %v17556_v32 }
 0x459   :  { %v15934_v56 = vpop.f32.mrb[64].mxu0 }
 0x45a   :  { %v8466_v15 = vpop.f32.mrb[65].mxu0 }
 0x45b   :  { %v20066_v39 = vpop.f32.mrb[64].mxu1  ;;  %12240 = vxpose.xlu0.b32.start [1/16] (narrow) %v8466_v15, 8  ;;  %v15935_v62 = vpop.f32.mrb[66].mxu0 }
 0x45c   :  { %v20068_v35 = vpop.f32.mrb[65].mxu1  ;;  %v8469_v53 = vpop.f32.mrb[67].mxu0 }
 0x45d   :  { %v20070_v27 = vpop.f32.mrb[66].mxu1 }
 0x45e   :  { %v20072_v60 = vpop.f32.mrb[67].mxu1 }
 0x45f   :  { %12241 = vxpose.xlu0.b32.cont [2/16] (narrow) %v8469_v53, 8 }
 0x461   :  { %v15938_v48 = vpop.f32.mrb[68].mxu0 }
 0x462   :  { %v8482_v17 = vpop.f32.mrb[69].mxu0 }
 0x463   :  { %v20074_v43 = vpop.f32.mrb[68].mxu1  ;;  %12242 = vxpose.xlu0.b32.cont [3/16] (narrow) %v15934_v56, 8  ;;  %v15939_v25 = vpop.f32.mrb[70].mxu0 }
 0x464   :  { %v20076_v55 = vpop.f32.mrb[69].mxu1  ;;  %v8485_v8 = vpop.f32.mrb[71].mxu0 }
 0x465   :  { %v20078_v24 = vpop.f32.mrb[70].mxu1 }
 0x466   :  { %v20080_v51 = vpop.f32.mrb[71].mxu1 }
 0x467   :  { %12243 = vxpose.xlu0.b32.cont [4/16] (narrow) %v15935_v62, 8 }
 0x469   :  { %v15942_v0 = vpop.f32.mrb[72].mxu0 }
 0x46a   :  { %v8498_v33 = vpop.f32.mrb[73].mxu0 }
 0x46b   :  { %v20082_v14 = vpop.f32.mrb[72].mxu1  ;;  %12244 = vxpose.xlu0.b32.cont [5/16] (narrow) %v8482_v17, 8  ;;  %v15943_v44 = vpop.f32.mrb[74].mxu0 }
 0x46c   :  { %v20084_v9 = vpop.f32.mrb[73].mxu1  ;;  %v8501_v2 = vpop.f32.mrb[75].mxu0 }
 0x46d   :  { %v20086_v63 = vpop.f32.mrb[74].mxu1 }
 0x46e   :  { %v20088_v30 = vpop.f32.mrb[75].mxu1 }
 0x46f   :  { %12245 = vxpose.xlu0.b32.cont [6/16] (narrow) %v8485_v8, 8 }
 0x471   :  { %v15946_v57 = vpop.f32.mrb[76].mxu0 }
 0x472   :  { %v8514_v36 = vpop.f32.mrb[77].mxu0 }
 0x473   :  { %v20090_v61 = vpop.f32.mrb[76].mxu1  ;;  %12246 = vxpose.xlu0.b32.cont [7/16] (narrow) %v15938_v48, 8  ;;  %v15947_v59 = vpop.f32.mrb[78].mxu0 }
 0x474   :  { %v20092_v42 = vpop.f32.mrb[77].mxu1  ;;  %v8517_v4 = vpop.f32.mrb[79].mxu0 }
 0x475   :  { %v20094_v12 = vpop.f32.mrb[78].mxu1 }
 0x476   :  { %v20096_v49 = vpop.f32.mrb[79].mxu1 }
 0x477   :  { %12247 = vxpose.xlu0.b32.cont [8/16] (narrow) %v15939_v25, 8 }
 0x479   :  { %v15950_v58 = vpop.f32.mrb[80].mxu0 }
 0x47a   :  { %v8530_v26 = vpop.f32.mrb[81].mxu0 }
 0x47b   :  { %v20098_v16 = vpop.f32.mrb[80].mxu1  ;;  %12248 = vxpose.xlu0.b32.cont [9/16] (narrow) %v8498_v33, 8  ;;  %12272 = vxpose.xlu1.b32.start [1/16] (narrow) %v8530_v26, 8  ;;  %v15951_v47 = vpop.f32.mrb[82].mxu0 }
 0x47c   :  { %v20100_v37 = vpop.f32.mrb[81].mxu1  ;;  %v8533_v23 = vpop.f32.mrb[83].mxu0 }
 0x47d   :  { %v20102_v40 = vpop.f32.mrb[82].mxu1 }
 0x47e   :  { %v20104_v3 = vpop.f32.mrb[83].mxu1 }
 0x47f   :  { %12249 = vxpose.xlu0.b32.cont [10/16] (narrow) %v8501_v2, 8  ;;  %12273 = vxpose.xlu1.b32.cont [2/16] (narrow) %v8533_v23, 8 }
 0x481   :  { %v15954_v20 = vpop.f32.mrb[84].mxu0 }
 0x482   :  { %v8546_v46 = vpop.f32.mrb[85].mxu0 }
 0x483   :  { %v20106_v34 = vpop.f32.mrb[84].mxu1  ;;  %12250 = vxpose.xlu0.b32.cont [11/16] (narrow) %v15942_v0, 8  ;;  %12274 = vxpose.xlu1.b32.cont [3/16] (narrow) %v15950_v58, 8  ;;  %v15955_v1 = vpop.f32.mrb[86].mxu0 }
 0x484   :  { %v20108_v7 = vpop.f32.mrb[85].mxu1  ;;  %v8549_v45 = vpop.f32.mrb[87].mxu0 }
 0x485   :  { %v20110_v31 = vpop.f32.mrb[86].mxu1 }
 0x486   :  { %v20112_v52 = vpop.f32.mrb[87].mxu1 }
 0x487   :  { %12251 = vxpose.xlu0.b32.cont [12/16] (narrow) %v15943_v44, 8  ;;  %12275 = vxpose.xlu1.b32.cont [4/16] (narrow) %v15951_v47, 8 }
 0x489   :  { %v15958_v54 = vpop.f32.mrb[88].mxu0 }
 0x48a   :  { %v8562_v41 = vpop.f32.mrb[89].mxu0 }
 0x48b   :  { %v20114_v13 = vpop.f32.mrb[88].mxu1  ;;  %12252 = vxpose.xlu0.b32.cont [13/16] (narrow) %v8514_v36, 8  ;;  %12276 = vxpose.xlu1.b32.cont [5/16] (narrow) %v8546_v46, 8  ;;  %v15959_v10 = vpop.f32.mrb[90].mxu0 }
 0x48c   :  { %v20116_v5 = vpop.f32.mrb[89].mxu1  ;;  %v8565_v28 = vpop.f32.mrb[91].mxu0 }
 0x48d   :  { %v20118_v6 = vpop.f32.mrb[90].mxu1 }
 0x48e   :  { %v20120_v19 = vpop.f32.mrb[91].mxu1 }
 0x48f   :  { %12253 = vxpose.xlu0.b32.cont [14/16] (narrow) %v8517_v4, 8  ;;  %12277 = vxpose.xlu1.b32.cont [6/16] (narrow) %v8549_v45, 8 }
 0x491   :  { %v15962_v38 = vpop.f32.mrb[92].mxu0 }
 0x492   :  { %v8578_v22 = vpop.f32.mrb[93].mxu0 }
 0x493   :  { %v20122_v11 = vpop.f32.mrb[92].mxu1  ;;  %12254 = vxpose.xlu0.b32.cont [15/16] (narrow) %v15946_v57, 8  ;;  %12278 = vxpose.xlu1.b32.cont [7/16] (narrow) %v15954_v20, 8  ;;  %v15963_v29 = vpop.f32.mrb[94].mxu0 }
 0x494   :  { %v20124_v50 = vpop.f32.mrb[93].mxu1  ;;  %v8581_v18 = vpop.f32.mrb[95].mxu0 }
 0x495   :  { %v20126_v21 = vpop.f32.mrb[94].mxu1 }
 0x496   :  { %v20128_v32 = vpop.f32.mrb[95].mxu1 }
 0x497   :  { %12255 = vxpose.xlu0.b32.end [16/16] (narrow) %v15947_v59, 8  ;;  %12279 = vxpose.xlu1.b32.cont [8/16] (narrow) %v15955_v1, 8 }
 0x499   :  { %v20130_v56 = vpop.f32.mrb[96].mxu0 }
 0x49a   :  { %v20132_v15 = vpop.f32.mrb[97].mxu0 }
 0x49b   :  { %v20134_v62 = vpop.f32.mrb[96].mxu1  ;;  %12466 = vxpose.xlu0.b32.start [1/16] (narrow) %v20068_v35, 8  ;;  %12280 = vxpose.xlu1.b32.cont [9/16] (narrow) %v8562_v41, 8  ;;  %v20137_v53 = vpop.f32.mrb[98].mxu0 }
 0x49c   :  { %v20139_v48 = vpop.f32.mrb[97].mxu1  ;;  %v20141_v17 = vpop.f32.mrb[99].mxu0 }
 0x49d   :  { %v20143_v25 = vpop.f32.mrb[98].mxu1 }
 0x49e   :  { %v20145_v8 = vpop.f32.mrb[99].mxu1 }
 0x49f   :  { %12467 = vxpose.xlu0.b32.cont [2/16] (narrow) %v20072_v60, 8  ;;  %12281 = vxpose.xlu1.b32.cont [10/16] (narrow) %v8565_v28, 8 }
 0x4a1   :  { %v20148_v0 = vpop.f32.mrb[100].mxu0 }
 0x4a2   :  { %v20150_v33 = vpop.f32.mrb[101].mxu0 }
 0x4a3   :  { %v20152_v44 = vpop.f32.mrb[100].mxu1  ;;  %12468 = vxpose.xlu0.b32.cont [3/16] (narrow) %v20066_v39, 8  ;;  %12282 = vxpose.xlu1.b32.cont [11/16] (narrow) %v15958_v54, 8  ;;  %v20155_v35 = vpop.f32.mrb[102].mxu0 }
 0x4a4   :  { %v20157_v2 = vpop.f32.mrb[101].mxu1  ;;  %v20159_v57 = vpop.f32.mrb[103].mxu0 }
 0x4a5   :  { %v20161_v36 = vpop.f32.mrb[102].mxu1 }
 0x4a6   :  { %v20163_v59 = vpop.f32.mrb[103].mxu1 }
 0x4a7   :  { %12469 = vxpose.xlu0.b32.cont [4/16] (narrow) %v20070_v27, 8  ;;  %12283 = vxpose.xlu1.b32.cont [12/16] (narrow) %v15959_v10, 8 }
 0x4a9   :  { %v20166_v60 = vpop.f32.mrb[104].mxu0 }
 0x4aa   :  { %v20168_v4 = vpop.f32.mrb[105].mxu0 }
 0x4ab   :  { %v20170_v58 = vpop.f32.mrb[104].mxu1  ;;  %12470 = vxpose.xlu0.b32.cont [5/16] (narrow) %v20076_v55, 8  ;;  %12284 = vxpose.xlu1.b32.cont [13/16] (narrow) %v8578_v22, 8  ;;  %v20173_v39 = vpop.f32.mrb[106].mxu0 }
 0x4ac   :  { %v20175_v26 = vpop.f32.mrb[105].mxu1  ;;  %v20177_v47 = vpop.f32.mrb[107].mxu0 }
 0x4ad   :  { %v20179_v23 = vpop.f32.mrb[106].mxu1 }
 0x4ae   :  { %v20181_v20 = vpop.f32.mrb[107].mxu1 }
 0x4af   :  { %12471 = vxpose.xlu0.b32.cont [6/16] (narrow) %v20080_v51, 8  ;;  %12285 = vxpose.xlu1.b32.cont [14/16] (narrow) %v8581_v18, 8 }
 0x4b1   :  { %v20184_v27 = vpop.f32.mrb[108].mxu0 }
 0x4b2   :  { %v20186_v46 = vpop.f32.mrb[109].mxu0 }
 0x4b3   :  { %v20188_v1 = vpop.f32.mrb[108].mxu1  ;;  %12472 = vxpose.xlu0.b32.cont [7/16] (narrow) %v20074_v43, 8  ;;  %12286 = vxpose.xlu1.b32.cont [15/16] (narrow) %v15962_v38, 8  ;;  %v20191_v55 = vpop.f32.mrb[110].mxu0 }
 0x4b4   :  { %20449 = vst [vmem:[#allocation3_spill] sm:$0xff] %v20188_v1  ;;  %v20193_v45 = vpop.f32.mrb[109].mxu1  ;;  %v20195_v54 = vpop.f32.mrb[111].mxu0 }
 0x4b5   :  { %20450 = vst [vmem:[#allocation9_spill] sm:$0xff] %v20193_v45  ;;  %v20197_v41 = vpop.f32.mrb[110].mxu1 }
 0x4b6   :  { %20451 = vst [vmem:[#allocation4_spill] sm:$0xff] %v20197_v41  ;;  %v20199_v10 = vpop.f32.mrb[111].mxu1 }
 0x4b7   :  { %20452 = vst [vmem:[#allocation10_spill] sm:$0xff] %v20199_v10  ;;  %12473 = vxpose.xlu0.b32.cont [8/16] (narrow) %v20078_v24, 8  ;;  %12287 = vxpose.xlu1.b32.end [16/16] (narrow) %v15963_v29, 8 }
 0x4b9   :  { %v20202_v51 = vpop.f32.mrb[112].mxu0 }
 0x4ba   :  { %v20204_v28 = vpop.f32.mrb[113].mxu0 }
 0x4bb   :  { %v20206_v22 = vpop.f32.mrb[112].mxu1  ;;  %12474 = vxpose.xlu0.b32.cont [9/16] (narrow) %v20084_v9, 8  ;;  %12498 = vxpose.xlu1.b32.start [1/16] (narrow) %v20100_v37, 8  ;;  %v20210_v43 = vpop.f32.mrb[114].mxu0 }
 0x4bc   :  { %v20212_v38 = vpop.f32.mrb[113].mxu1  ;;  %v20214_v18 = vpop.f32.mrb[115].mxu0 }
 0x4bd   :  { %v20216_v41 = vpop.f32.mrb[114].mxu1 }
 0x4be   :  { %20453 = vst [vmem:[#allocation6_spill] sm:$0xff] %v20216_v41  ;;  %v20218_v24 = vpop.f32.mrb[115].mxu1 }
 0x4bf   :  { %12475 = vxpose.xlu0.b32.cont [10/16] (narrow) %v20088_v30, 8  ;;  %12499 = vxpose.xlu1.b32.cont [2/16] (narrow) %v20104_v3, 8 }
 0x4c1   :  { %v20222_v29 = vpop.f32.mrb[116].mxu0 }
 0x4c2   :  { %v20224_v1 = vpop.f32.mrb[117].mxu0 }
 0x4c3   :  { %v20226_v9 = vpop.f32.mrb[116].mxu1  ;;  %12476 = vxpose.xlu0.b32.cont [11/16] (narrow) %v20082_v14, 8  ;;  %12500 = vxpose.xlu1.b32.cont [3/16] (narrow) %v20098_v16, 8  ;;  %v20230_v37 = vpop.f32.mrb[118].mxu0 }
 0x4c4   :  { %20454 = vst [vmem:[#allocation12_spill] sm:$0xff] %v20226_v9  ;;  %v20232_v10 = vpop.f32.mrb[117].mxu1  ;;  %v20234_v45 = vpop.f32.mrb[119].mxu0 }
 0x4c5   :  { %20455 = vst [vmem:[#allocation8_spill] sm:$0xff] %v20232_v10  ;;  %v20236_v41 = vpop.f32.mrb[118].mxu1 }
 0x4c6   :  { %20456 = vst [vmem:[#allocation14_spill] sm:$0xff] %v20236_v41  ;;  %v20238_v30 = vpop.f32.mrb[119].mxu1 }
 0x4c7   :  { %20457 = vst [vmem:[#allocation5_spill] sm:$0xff] %v20238_v30  ;;  %12477 = vxpose.xlu0.b32.cont [12/16] (narrow) %v20086_v63, 8  ;;  %12501 = vxpose.xlu1.b32.cont [4/16] (narrow) %v20102_v40, 8 }
 0x4c9   :  { %v20242_v3 = vpop.f32.mrb[120].mxu0 }
 0x4ca   :  { %v20244_v9 = vpop.f32.mrb[121].mxu0 }
 0x4cb   :  { %v20246_v14 = vpop.f32.mrb[120].mxu1  ;;  %12478 = vxpose.xlu0.b32.cont [13/16] (narrow) %v20092_v42, 8  ;;  %12502 = vxpose.xlu1.b32.cont [5/16] (narrow) %v20108_v7, 8  ;;  %v20250_v16 = vpop.f32.mrb[122].mxu0 }
 0x4cc   :  { %20458 = vst [vmem:[#allocation11_spill] sm:$0xff] %v20246_v14  ;;  %v20252_v10 = vpop.f32.mrb[121].mxu1  ;;  %v20254_v41 = vpop.f32.mrb[123].mxu0 }
 0x4cd   :  { %20459 = vst [vmem:[#allocation7_spill] sm:$0xff] %v20252_v10  ;;  %v20256_v30 = vpop.f32.mrb[122].mxu1 }
 0x4ce   :  { %20460 = vst [vmem:[#allocation13_spill] sm:$0xff] %v20256_v30  ;;  %v20258_v63 = vpop.f32.mrb[123].mxu1 }
 0x4cf   :  { %20461 = vst [vmem:[#allocation16_spill] sm:$0xff] %v20258_v63  ;;  %12479 = vxpose.xlu0.b32.cont [14/16] (narrow) %v20096_v49, 8  ;;  %12503 = vxpose.xlu1.b32.cont [6/16] (narrow) %v20112_v52, 8  ;;  %v11919_v52 = vlaneseq }
 0x4d1   :  { %v20262_v40 = vpop.f32.mrb[124].mxu0 }
 0x4d2   :  { %v20264_v14 = vpop.f32.mrb[125].mxu0 }
 0x4d3   :  { %v20266_v42 = vpop.f32.mrb[124].mxu1  ;;  %12480 = vxpose.xlu0.b32.cont [15/16] (narrow) %v20090_v61, 8  ;;  %12504 = vxpose.xlu1.b32.cont [7/16] (narrow) %v20106_v34, 8  ;;  %v20270_v7 = vpop.f32.mrb[126].mxu0 }
 0x4d4   :  { %v20272_v10 = vpop.f32.mrb[125].mxu1  ;;  %v20274_v30 = vpop.f32.mrb[127].mxu0 }
 0x4d5   :  { %v20276_v63 = vpop.f32.mrb[126].mxu1  ;;  %v11790_v61 = vpop.trf.xlu0 }
 0x4d6   :  { %v20278_v49 = vpop.f32.mrb[127].mxu1  ;;  %17557 = vtanh.f32 %v11790_v61 }
 0x4d7   :  { %12481 = vxpose.xlu0.b32.end [16/16] (narrow) %v20094_v12, 8  ;;  %12505 = vxpose.xlu1.b32.cont [8/16] (narrow) %v20110_v31, 8  ;;  %v11822_v12 = vpop.trf.xlu1 }
 0x4d8   :  { %17559 = vtanh.f32 %v11822_v12 }
 0x4d9   :  { %v12030_v34 = vpop.trf.xlu0 }
 0x4da   :  { %17561 = vtanh.f32 %v12030_v34 }
 0x4db   :  { %12506 = vxpose.xlu1.b32.cont [9/16] (narrow) %v20116_v5, 8  ;;  %12304 = vxpose.xlu0.b32.start [1/16] (narrow) %v20132_v15, 8  ;;  %v12062_v31 = vpop.trf.xlu1  ;;  %v11920_v15 = vshrl.u32 %v11919_v52, 7 }
 0x4dc   :  { %17563 = vtanh.f32 %v12062_v31 }
 0x4df   :  { %12507 = vxpose.xlu1.b32.cont [10/16] (narrow) %v20120_v19, 8  ;;  %12305 = vxpose.xlu0.b32.cont [2/16] (narrow) %v20141_v17, 8  ;;  %v11886_v5 = vpop.trf.xlu1 }
 0x4e3   :  { %12508 = vxpose.xlu1.b32.cont [11/16] (narrow) %v20114_v13, 8  ;;  %12306 = vxpose.xlu0.b32.cont [3/16] (narrow) %v20130_v56, 8  ;;  %v11854_v13 = vpop.trf.xlu0 }
 0x4e4   :  { %17565 = vtanh.f32 %v11854_v13 }
 0x4e5   :  { %17567 = vtanh.f32 %v11886_v5 }
 0x4e7   :  { %12509 = vxpose.xlu1.b32.cont [12/16] (narrow) %v20118_v6, 8  ;;  %12307 = vxpose.xlu0.b32.cont [4/16] (narrow) %v20137_v53, 8  ;;  %v17589_v6 = vmov 1983009808   ;;  %v14674_v53 = vld [vmem:[%s20414_s2 + $0x18] sm:$0xff] }
 0x4e8   :  { %v11917_v19 = vunpack.c.l.s4 %v17589_v6 }
 0x4ea   :  { %v11918_v56 = vunpack.c.0.s8 %v11917_v19 }
 0x4eb   :  { %12510 = vxpose.xlu1.b32.cont [13/16] (narrow) %v20124_v50, 8  ;;  %12308 = vxpose.xlu0.b32.cont [5/16] (narrow) %v20150_v33, 8  ;;  %v12094_v50 = vpop.trf.xlu0 }
 0x4ec   :  { %17569 = vtanh.f32 %v12094_v50  ;;  %v20318_v33 = vsub.s32 %v11918_v56, %v11920_v15 }
 0x4ef   :  { %12511 = vxpose.xlu1.b32.cont [14/16] (narrow) %v20128_v32, 8  ;;  %12309 = vxpose.xlu0.b32.cont [6/16] (narrow) %v20159_v57, 8  ;;  %v17558_v32 = vpop.eup %17557 }
 0x4f0   :  { %v17560_v17 = vpop.eup %17559 }
 0x4f3   :  { %12512 = vxpose.xlu1.b32.cont [15/16] (narrow) %v20122_v11, 8  ;;  %12310 = vxpose.xlu0.b32.cont [7/16] (narrow) %v20148_v0, 8  ;;  %v17562_v0 = vpop.eup %17561 }
 0x4f4   :  { %v17564_v57 = vpop.eup %17563 }
 0x4f7   :  { %12513 = vxpose.xlu1.b32.end [16/16] (narrow) %v20126_v21, 8  ;;  %12311 = vxpose.xlu0.b32.cont [8/16] (narrow) %v20155_v35, 8  ;;  %v12126_v21 = vpop.trf.xlu1  ;;  %v14662_v35 = vpack.c.bf16 %v17560_v17, %v17558_v32 }
 0x4f8   :  { %17571 = vtanh.f32 %v12126_v21 }
 0x4fb   :  { %12312 = vxpose.xlu0.b32.cont [9/16] (narrow) %v20168_v4, 8  ;;  %12336 = vxpose.xlu1.b32.start [1/16] (narrow) %v20204_v28, 8 }
 0x4ff   :  { %12313 = vxpose.xlu0.b32.cont [10/16] (narrow) %v20177_v47, 8  ;;  %12337 = vxpose.xlu1.b32.cont [2/16] (narrow) %v20214_v18, 8  ;;  %v14664_v47 = vpack.c.bf16 %v17564_v57, %v17562_v0 }
 0x503   :  { %12314 = vxpose.xlu0.b32.cont [11/16] (narrow) %v20166_v60, 8  ;;  %12338 = vxpose.xlu1.b32.cont [3/16] (narrow) %v20202_v51, 8  ;;  %v17566_v60 = vpop.eup %17565 }
 0x504   :  { %v17568_v4 = vpop.eup %17567 }
 0x505   :  { %v14663_v51 = vpack.c.bf16 %v17568_v4, %v17566_v60  ;;  %v17570_v28 = vpop.eup %17569 }
 0x506   :  { %v17572_v18 = vpop.eup %17571 }
 0x507   :  { %12315 = vxpose.xlu0.b32.cont [12/16] (narrow) %v20173_v39, 8  ;;  %12339 = vxpose.xlu1.b32.cont [4/16] (narrow) %v20210_v43, 8  ;;  %v11922_v39 = vrot.slane %v14662_v35, %v20318_v33  ;;  %v11929_v43 = vrot.slane %v14663_v51, %v20318_v33  ;;  %v14665_v34 = vpack.c.bf16 %v17572_v18, %v17570_v28 }
 0x509   :  { %v11930_v12 = vcombine.low %v11922_v39, %v11929_v43  ;;  %v12169_v52 = vrot.slane %v14665_v34, %v20318_v33 }
 0x50b   :  { %12316 = vxpose.xlu0.b32.cont [13/16] (narrow) %v20186_v46, 8  ;;  %12340 = vxpose.xlu1.b32.cont [5/16] (narrow) %v20224_v1, 8  ;;  %v11947_v46 = vld [vmem:[%s20414_s2] sm:$0xff]  ;;  %v12162_v1 = vrot.slane %v14664_v47, %v20318_v33 }
 0x50c   :  { %v11948_v31 = vsel %vm20326_vm15, %v11930_v12, %v11947_v46 }
 0x50d   :  { %11949 = vst [vmem:[%s20414_s2] sm:$0xff] %v11948_v31 }
 0x50f   :  { %12317 = vxpose.xlu0.b32.cont [14/16] (narrow) %v20195_v54, 8  ;;  %12341 = vxpose.xlu1.b32.cont [6/16] (narrow) %v20234_v45, 8  ;;  %v14666_v45 = vld [vmem:[%s20414_s2 + $0x8] sm:$0xff]  ;;  %v12170_v54 = vcombine.low %v12162_v1, %v12169_v52 }
 0x511   :  { %v12174_v13 = vsel %vm20326_vm15, %v12170_v54, %v14666_v45 }
 0x512   :  { %14667 = vst [vmem:[%s20414_s2 + $0x8] sm:$0xff] %v12174_v13 }
 0x513   :  { %12318 = vxpose.xlu0.b32.cont [15/16] (narrow) %v20184_v27, 8  ;;  %12342 = vxpose.xlu1.b32.cont [7/16] (narrow) %v20222_v29, 8  ;;  %v20470_v27 = vld [vmem:[#allocation8_spill] sm:$0xff]  ;;  %v20479_v29 = vld [vmem:[#allocation11_spill] sm:$0xff] }
 0x517   :  { %12319 = vxpose.xlu0.b32.end [16/16] (narrow) %v20191_v55, 8  ;;  %12343 = vxpose.xlu1.b32.cont [8/16] (narrow) %v20230_v37, 8  ;;  %v20471_v55 = vld [vmem:[#allocation10_spill] sm:$0xff] }
 0x51b   :  { %12530 = vxpose.xlu0.b32.start [1/16] (narrow) %v20139_v48, 8  ;;  %12344 = vxpose.xlu1.b32.cont [9/16] (narrow) %v20244_v9, 8  ;;  %v12256_v48 = vpop.trf.xlu0  ;;  %v20480_v9 = vld [vmem:[#allocation13_spill] sm:$0xff] }
 0x51f   :  { %12531 = vxpose.xlu0.b32.cont [2/16] (narrow) %v20145_v8, 8  ;;  %12345 = vxpose.xlu1.b32.cont [10/16] (narrow) %v20254_v41, 8  ;;  %v20473_v41 = vld [vmem:[#allocation3_spill] sm:$0xff] }
 0x523   :  { %12532 = vxpose.xlu0.b32.cont [3/16] (narrow) %v20134_v62, 8  ;;  %12346 = vxpose.xlu1.b32.cont [11/16] (narrow) %v20242_v3, 8  ;;  %v12288_v62 = vpop.trf.xlu1 }
 0x527   :  { %12533 = vxpose.xlu0.b32.cont [4/16] (narrow) %v20143_v25, 8  ;;  %12347 = vxpose.xlu1.b32.cont [12/16] (narrow) %v20250_v16, 8  ;;  %v12482_v25 = vpop.trf.xlu0 }
 0x528   :  { %17573 = vtanh.f32 %v12482_v25 }
 0x52b   :  { %12534 = vxpose.xlu0.b32.cont [5/16] (narrow) %v20157_v2, 8  ;;  %12348 = vxpose.xlu1.b32.cont [13/16] (narrow) %v20264_v14, 8 }
 0x52f   :  { %12535 = vxpose.xlu0.b32.cont [6/16] (narrow) %v20163_v59, 8  ;;  %12349 = vxpose.xlu1.b32.cont [14/16] (narrow) %v20274_v30, 8 }
 0x533   :  { %12536 = vxpose.xlu0.b32.cont [7/16] (narrow) %v20152_v44, 8  ;;  %12350 = vxpose.xlu1.b32.cont [15/16] (narrow) %v20262_v40, 8  ;;  %v17574_v44 = vpop.eup %17573 }
 0x537   :  { %12537 = vxpose.xlu0.b32.cont [8/16] (narrow) %v20161_v36, 8  ;;  %12351 = vxpose.xlu1.b32.end [16/16] (narrow) %v20270_v7, 8  ;;  %v20468_v36 = vld [vmem:[#allocation6_spill] sm:$0xff] }
 0x53b   :  { %12538 = vxpose.xlu0.b32.cont [9/16] (narrow) %v20175_v26, 8  ;;  %12562 = vxpose.xlu1.b32.start [1/16] (narrow) %v20212_v38, 8  ;;  %v12514_v8 = vpop.trf.xlu1  ;;  %v20469_v26 = vld [vmem:[#allocation9_spill] sm:$0xff]  ;;  %v20476_v38 = vld [vmem:[#allocation14_spill] sm:$0xff] }
 0x53c   :  { %17575 = vtanh.f32 %v12514_v8 }
 0x53d   :  { %17577 = vtanh.f32 %v12256_v48 }
 0x53e   :  { %17579 = vtanh.f32 %v12288_v62 }
 0x53f   :  { %12539 = vxpose.xlu0.b32.cont [10/16] (narrow) %v20181_v20, 8  ;;  %12563 = vxpose.xlu1.b32.cont [2/16] (narrow) %v20218_v24, 8  ;;  %v20472_v20 = vld [vmem:[#allocation5_spill] sm:$0xff]  ;;  %v20478_v24 = vld [vmem:[#allocation16_spill] sm:$0xff] }
 0x543   :  { %12540 = vxpose.xlu0.b32.cont [11/16] (narrow) %v20170_v58, 8  ;;  %12564 = vxpose.xlu1.b32.cont [3/16] (narrow) %v20206_v22, 8  ;;  %v20474_v58 = vld [vmem:[#allocation12_spill] sm:$0xff] }
 0x544   :  { %v20475_v22 = vld [vmem:[#allocation4_spill] sm:$0xff] }
 0x546   :  { %v17576_v2 = vpop.eup %17575 }
 0x547   :  { %12541 = vxpose.xlu0.b32.cont [12/16] (narrow) %v20179_v23, 8  ;;  %12565 = vxpose.xlu1.b32.cont [4/16] (narrow) %v20468_v36, 8  ;;  %v14672_v59 = vpack.c.bf16 %v17576_v2, %v17574_v44  ;;  %v20477_v23 = vld [vmem:[#allocation7_spill] sm:$0xff]  ;;  %v17578_v3 = vpop.eup %17577 }
 0x548   :  { %v17580_v14 = vpop.eup %17579 }
 0x549   :  { %v14668_v16 = vpack.c.bf16 %v17580_v14, %v17578_v3  ;;  %v12614_v56 = vrot.slane %v14672_v59, %v20318_v33 }
 0x54b   :  { %12542 = vxpose.xlu0.b32.cont [13/16] (narrow) %v20469_v26, 8  ;;  %12566 = vxpose.xlu1.b32.cont [5/16] (narrow) %v20470_v27, 8  ;;  %v12388_v5 = vrot.slane %v14668_v16, %v20318_v33 }
 0x54f   :  { %12543 = vxpose.xlu0.b32.cont [14/16] (narrow) %v20471_v55, 8  ;;  %12567 = vxpose.xlu1.b32.cont [6/16] (narrow) %v20472_v20, 8 }
 0x553   :  { %12544 = vxpose.xlu0.b32.cont [15/16] (narrow) %v20473_v41, 8  ;;  %12568 = vxpose.xlu1.b32.cont [7/16] (narrow) %v20474_v58, 8 }
 0x557   :  { %12545 = vxpose.xlu0.b32.end [16/16] (narrow) %v20475_v22, 8  ;;  %12569 = vxpose.xlu1.b32.cont [8/16] (narrow) %v20476_v38, 8 }
 0x55b   :  { %12570 = vxpose.xlu1.b32.cont [9/16] (narrow) %v20477_v23, 8  ;;  %v12320_v37 = vpop.trf.xlu0 }
 0x55c   :  { %17581 = vtanh.f32 %v12320_v37 }
 0x55f   :  { %12571 = vxpose.xlu1.b32.cont [10/16] (narrow) %v20478_v24, 8 }
 0x563   :  { %12572 = vxpose.xlu1.b32.cont [11/16] (narrow) %v20479_v29, 8 }
 0x566   :  { %v17582_v40 = vpop.eup %17581 }
 0x567   :  { %12573 = vxpose.xlu1.b32.cont [12/16] (narrow) %v20480_v9, 8 }
 0x56b   :  { %12574 = vxpose.xlu1.b32.cont [13/16] (narrow) %v20272_v10, 8 }
 0x56f   :  { %12575 = vxpose.xlu1.b32.cont [14/16] (narrow) %v20278_v49, 8 }
 0x573   :  { %12576 = vxpose.xlu1.b32.cont [15/16] (narrow) %v20266_v42, 8  ;;  %v14670_v42 = vld [vmem:[%s20414_s2 + $0x10] sm:$0xff] }
 0x577   :  { %12577 = vxpose.xlu1.b32.end [16/16] (narrow) %v20276_v63, 8 }
 0x57b   :  { %v12352_v30 = vpop.trf.xlu1 }
 0x57c   :  { %17583 = vtanh.f32 %v12352_v30 }
 0x586   :  { %v17584_v7 = vpop.eup %17583 }
 0x587   :  { %v14669_v10 = vpack.c.bf16 %v17584_v7, %v17582_v40 }
 0x589   :  { %v12395_v49 = vrot.slane %v14669_v10, %v20318_v33 }
 0x58b   :  { %v12396_v6 = vcombine.low %v12388_v5, %v12395_v49 }
 0x58d   :  { %v12400_v63 = vsel %vm20326_vm15, %v12396_v6, %v14670_v42 }
 0x58e   :  { %14671 = vst [vmem:[%s20414_s2 + $0x10] sm:$0xff] %v12400_v63 }
 0x59b   :  { %v12546_v19 = vpop.trf.xlu0 }
 0x59c   :  { %17585 = vtanh.f32 %v12546_v19 }
 0x5a6   :  { %v17586_v50 = vpop.eup %17585 }
 0x5bb   :  { %v12578_v11 = vpop.trf.xlu1 }
 0x5bc   :  { %17587 = vtanh.f32 %v12578_v11 }
 0x5c6   :  { %v17588_v21 = vpop.eup %17587 }
 0x5c7   :  { %v14673_v32 = vpack.c.bf16 %v17588_v21, %v17586_v50 }
 0x5c9   :  { %v12621_v15 = vrot.slane %v14673_v32, %v20318_v33 }
 0x5cb   :  { %v12622_v17 = vcombine.low %v12614_v56, %v12621_v15 }
 0x5cd   :  { %v12626_v0 = vsel %vm20326_vm15, %v12622_v17, %v14674_v53 }
 0x5ce   :  { %14675 = vst [vmem:[%s20414_s2 + $0x18] sm:$0xff] %v12626_v0 }

</bundles_post_ra>
